<compile_context>
chip_gen: v7x
topology: tpu7x:2x2x1
jax: 0.10.0
libtpu: 0.0.40
codegen_flags: <defaults>
</compile_context>

<pallas_src>
from functools import partial

import numpy as np
import jax
import jax.numpy as jnp
from jax.experimental import pallas as pl
from jax.experimental.pallas import tpu as pltpu


# ----------------------------------------------------------------------------
# generation-aware budgets
# ----------------------------------------------------------------------------
def _detect_tpu_budget():
    try:
        kind = jax.devices()[0].device_kind.lower()
    except Exception:
        kind = ""
    if ("v5" in kind) or ("v6" in kind):        # 128 MiB physical VMEM
        return 1024, 64 * 1024 * 1024
    return 512, 32 * 1024 * 1024                 # v7x (64 MiB VMEM) / unknown


_TM_TARGET, _VMEM_LIMIT = _detect_tpu_budget()


def _cparams(*sem):
    return pltpu.CompilerParams(dimension_semantics=tuple(sem),
                                vmem_limit_bytes=_VMEM_LIMIT)


def _row_tile(M):
    return M if M <= _TM_TARGET else _TM_TARGET


# ----------------------------------------------------------------------------
# static helpers (trace-time; masks are numpy constants)
# ----------------------------------------------------------------------------
def _tap_masks(H, W):
    """(H*W, 9) f32; mask[m, t] == 1 iff tap t=(dr,dc) of pixel m stays in-image."""
    hh = np.repeat(np.arange(H), W)
    ww = np.tile(np.arange(W), H)
    cols = []
    for dr in (-1, 0, 1):
        for dc in (-1, 0, 1):
            ok = (hh + dr >= 0) & (hh + dr < H) & (ww + dc >= 0) & (ww + dc < W)
            cols.append(ok.astype(np.float32))
    return jnp.asarray(np.stack(cols, axis=1))


def _conv3x3_taps_weight(w_oihw):
    """PyTorch Conv2d weight (Cout, Cin, 3, 3) -> (9*Cin, Cout) bf16, tap-major."""
    blocks = [jnp.transpose(w_oihw[:, :, di, dj], (1, 0))
              for di in range(3) for dj in range(3)]
    return jnp.concatenate(blocks, axis=0).astype(jnp.bfloat16)


def _deconv_weights(w_iohw):
    """ConvTranspose2d(k4,s2,p1) weight (Cin, Cout, 4, 4) -> two (9*Cin, 2*Cout)
    bf16 tap-weight matrices, one per output-row phase; lanes ordered (pw, co)."""
    Cin, Cout = w_iohw.shape[0], w_iohw.shape[1]
    zero = jnp.zeros((Cin, Cout), w_iohw.dtype)
    groups = []
    for ph in range(2):
        taps = []
        for dr in (-1, 0, 1):
            ky = ph + 1 - 2 * dr
            for dc in (-1, 0, 1):
                cols = []
                for pw in range(2):
                    kx = pw + 1 - 2 * dc
                    if 0 <= ky < 4 and 0 <= kx < 4:
                        cols.append(w_iohw[:, :, ky, kx])
                    else:
                        cols.append(zero)
                taps.append(jnp.concatenate(cols, axis=1))          # (Cin, 2*Cout)
        groups.append(jnp.concatenate(taps, axis=0).astype(jnp.bfloat16))
    return groups[0], groups[1]


# ----------------------------------------------------------------------------
# in-kernel implicit-GEMM 3x3 conv helper
# ----------------------------------------------------------------------------
def _conv_taps(inp_f32, scratch, mask_v, w_ref, C, HW, W, pad, taps):
    """inp_f32: (HW, C) f32 value; w_ref: (9*C, Cout) bf16 ref.
    Tap shifts come from static slices of the halo-padded f32 scratch; rows whose
    source pixel is outside the image are zeroed with mask_v (HW, 9)."""
    scratch[pad:pad + HW, :C] = inp_f32
    acc = None
    for (t, off) in taps:
        if off == 0:
            tap = inp_f32                                            # center, no mask
        else:
            tap = scratch[pad + off:pad + off + HW, :C] * mask_v[:, t:t + 1]
        y = jnp.dot(tap.astype(jnp.bfloat16), w_ref[t * C:(t + 1) * C, :],
                    preferred_element_type=jnp.float32)
        acc = y if acc is None else acc + y
    return acc


# ----------------------------------------------------------------------------
# Kernel 1: fused  Conv3x3(bias) -> [Residual]*L -> ReLU   (one batch image/step)
# ----------------------------------------------------------------------------
def _stack_kernel(x_ref, mask_ref, w0_ref, b0_ref, *rest,
                  H, W, c_in, c_hidden, n_layers):
    o_ref = rest[2 * n_layers]
    scratch = rest[2 * n_layers + 1]
    HW = H * W
    pad = W + 1
    taps = [((dr + 1) * 3 + (dc + 1), dr * W + dc)
            for dr in (-1, 0, 1) for dc in (-1, 0, 1)]

    sc_w = scratch.shape[1]
    scratch[0:pad, :] = jnp.zeros((pad, sc_w), jnp.float32)
    scratch[pad + HW:2 * pad + HW, :] = jnp.zeros((pad, sc_w), jnp.float32)
    mask_v = mask_ref[...]

    x0 = x_ref[0].astype(jnp.float32)                                 # (HW, c_in)
    x = _conv_taps(x0, scratch, mask_v, w0_ref, c_in, HW, W, pad, taps)
    x = x + b0_ref[...]                                               # (HW, c_hidden) f32

    for l in range(n_layers):
        w1_ref = rest[2 * l]
        w2_ref = rest[2 * l + 1]
        a = jnp.maximum(x, 0.0)
        h = _conv_taps(a, scratch, mask_v, w1_ref, c_hidden, HW, W, pad, taps)
        h = jnp.maximum(h, 0.0).astype(jnp.bfloat16)
        x = x + jnp.dot(h, w2_ref[...], preferred_element_type=jnp.float32)

    x = jnp.maximum(x, 0.0)                                           # stack final ReLU
    o_ref[0] = x.astype(o_ref.dtype)


def conv3x3_residual_stack(x_nhwc, w0_oihw, b0, res_layers, *, out_dtype):
    """Fused Conv2d(3x3, pad 1, bias) + ResidualStack in one pallas_call."""
    B, H, W, Cin = x_nhwc.shape
    nh = w0_oihw.shape[0]
    HW, pad = H * W, W + 1
    L = len(res_layers)

    mask = _tap_masks(H, W)
    W0 = _conv3x3_taps_weight(w0_oihw)                                # (9*Cin, nh)
    b0v = b0.reshape(1, nh).astype(jnp.float32)
    layer_args, layer_specs = [], []
    for (w1, w2) in res_layers:
        nrh = w1.shape[0]
        layer_args.append(_conv3x3_taps_weight(w1))                   # (9*nh, nrh)
        layer_args.append(jnp.transpose(w2[:, :, 0, 0], (1, 0)).astype(jnp.bfloat16))
        layer_specs.append(pl.BlockSpec((9 * nh, nrh), lambda b: (0, 0)))
        layer_specs.append(pl.BlockSpec((nrh, nh), lambda b: (0, 0)))

    xf = x_nhwc.reshape(B, HW, Cin).astype(jnp.bfloat16)
    kern = partial(_stack_kernel, H=H, W=W, c_in=Cin, c_hidden=nh, n_layers=L)
    # TODO(synk): for large H*W, switch to row-band tiles with a manual halo DMA
    # (pl.ANY + make_async_copy) instead of one whole image per grid step.
    out = pl.pallas_call(
        kern,
        out_shape=jax.ShapeDtypeStruct((B, HW, nh), out_dtype),
        grid=(B,),
        in_specs=[pl.BlockSpec((1, HW, Cin), lambda b: (b, 0, 0)),
                  pl.BlockSpec((HW, 9), lambda b: (0, 0)),
                  pl.BlockSpec((9 * Cin, nh), lambda b: (0, 0)),
                  pl.BlockSpec((1, nh), lambda b: (0, 0))] + layer_specs,
        out_specs=pl.BlockSpec((1, HW, nh), lambda b: (b, 0, 0)),
        scratch_shapes=[pltpu.VMEM((HW + 2 * pad, max(Cin, nh)), jnp.float32)],
        compiler_params=_cparams("parallel"),
    )(xf, mask, W0, b0v, *layer_args)
    return out.reshape(B, H, W, nh)


# ----------------------------------------------------------------------------
# Kernel 2: ConvTranspose2d(k=4, s=2, p=1) as same-resolution implicit GEMM
# producing the two output-row phases (lanes ordered (pw, cout)).
# ----------------------------------------------------------------------------
def _deconv_kernel(x_ref, mask_ref, w0_ref, w1_ref, b_ref, o0_ref, o1_ref, scratch,
                   *, H, W, c_in, relu):
    HW = H * W
    pad = W + 1
    sc_w = scratch.shape[1]
    scratch[0:pad, :] = jnp.zeros((pad, sc_w), jnp.float32)
    scratch[pad + HW:2 * pad + HW, :] = jnp.zeros((pad, sc_w), jnp.float32)
    mask_v = mask_ref[...]

    xin = x_ref[0].astype(jnp.float32)                                # (HW, c_in)
    scratch[pad:pad + HW, :c_in] = xin
    bias = b_ref[...]                                                 # (1, 2*Cout)

    for w_ref, o_ref, dr_list in ((w0_ref, o0_ref, (-1, 0)),
                                  (w1_ref, o1_ref, (0, 1))):
        acc = None
        for dr in dr_list:
            for dc in (-1, 0, 1):
                t = (dr + 1) * 3 + (dc + 1)
                off = dr * W + dc
                if off == 0:
                    tap = xin
                else:
                    tap = scratch[pad + off:pad + off + HW, :c_in] * mask_v[:, t:t + 1]
                y = jnp.dot(tap.astype(jnp.bfloat16),
                            w_ref[t * c_in:(t + 1) * c_in, :],
                            preferred_element_type=jnp.float32)
                acc = y if acc is None else acc + y
        acc = acc + bias
        if relu:
            acc = jnp.maximum(acc, 0.0)
        o_ref[0] = acc.astype(o_ref.dtype)


def conv_transpose4x4_s2(x_nhwc, w_iohw, bias, *, relu, out_dtype):
    B, H, W, Cin = x_nhwc.shape
    Cout = w_iohw.shape[1]
    HW, pad = H * W, W + 1
    w0, w1 = _deconv_weights(w_iohw)
    mask = _tap_masks(H, W)
    b2 = jnp.tile(bias.astype(jnp.float32), 2).reshape(1, 2 * Cout)
    xf = x_nhwc.reshape(B, HW, Cin).astype(jnp.bfloat16)
    kern = partial(_deconv_kernel, H=H, W=W, c_in=Cin, relu=relu)
    y0, y1 = pl.pallas_call(
        kern,
        out_shape=(jax.ShapeDtypeStruct((B, HW, 2 * Cout), out_dtype),
                   jax.ShapeDtypeStruct((B, HW, 2 * Cout), out_dtype)),
        grid=(B,),
        in_specs=[pl.BlockSpec((1, HW, Cin), lambda b: (b, 0, 0)),
                  pl.BlockSpec((HW, 9), lambda b: (0, 0)),
                  pl.BlockSpec((9 * Cin, 2 * Cout), lambda b: (0, 0)),
                  pl.BlockSpec((9 * Cin, 2 * Cout), lambda b: (0, 0)),
                  pl.BlockSpec((1, 2 * Cout), lambda b: (0, 0))],
        out_specs=(pl.BlockSpec((1, HW, 2 * Cout), lambda b: (b, 0, 0)),
                   pl.BlockSpec((1, HW, 2 * Cout), lambda b: (b, 0, 0))),
        scratch_shapes=[pltpu.VMEM((HW + 2 * pad, Cin), jnp.float32)],
        compiler_params=_cparams("parallel"),
    )(xf, mask, w0, w1, b2)
    # phase interleave: row 2h <- y0, row 2h+1 <- y1 (lane-wise reshape is free).
    # TODO(synk): write the phase rows straight into the (B,2H,2W,Cout) buffer
    # from the kernel (needs strided output index maps) to drop this copy.
    y0 = y0.reshape(B, H, 2 * W, Cout)
    y1 = y1.reshape(B, H, 2 * W, Cout)
    return jnp.stack([y0, y1], axis=2).reshape(B, 2 * H, 2 * W, Cout)


# ----------------------------------------------------------------------------
# Kernel 3: row-tiled fused matmul for the two stride-2 encoder convs
# ----------------------------------------------------------------------------
def _mm_kernel(a_ref, b_ref, bias_ref, o_ref, *, act):
    y = jnp.dot(a_ref[...], b_ref[...], preferred_element_type=jnp.float32)
    y = y + bias_ref[...]
    if act == "relu":
        y = jnp.maximum(y, 0.0)
    o_ref[...] = y.astype(o_ref.dtype)


def matmul_fused(A, Bm, bias2, *, act="none", out_dtype=jnp.float32):
    M, K = A.shape
    N = Bm.shape[1]
    TM = _row_tile(M)
    return pl.pallas_call(
        partial(_mm_kernel, act=act),
        out_shape=jax.ShapeDtypeStruct((M, N), out_dtype),
        grid=(pl.cdiv(M, TM),),
        in_specs=[pl.BlockSpec((TM, K), lambda i: (i, 0)),
                  pl.BlockSpec((K, N), lambda i: (0, 0)),
                  pl.BlockSpec((1, N), lambda i: (0, 0))],
        out_specs=pl.BlockSpec((TM, N), lambda i: (i, 0)),
        compiler_params=_cparams("parallel"),
    )(A, Bm, bias2)


def _extract_patches(x, kh, kw, stride):
    B, H, W, C = x.shape
    Ho = (H - kh) // stride + 1
    Wo = (W - kw) // stride + 1
    cols = []
    for i in range(kh):
        for j in range(kw):
            cols.append(x[:, i: i + (Ho - 1) * stride + 1: stride,
                             j: j + (Wo - 1) * stride + 1: stride, :])
    patches = jnp.stack(cols, axis=3)
    return patches.reshape(B, Ho, Wo, kh * kw * C)


def conv2d_strided(x_nhwc, w_oihw, bias, *, stride, padding, act="none",
                   out_dtype=jnp.float32):
    # TODO(synk): phase-decompose the stride-2 4x4 convs into implicit-GEMM
    # kernels too; with their small channel counts the wrapper im2col is a
    # minor share of total HBM traffic.
    B, H, W, Cin = x_nhwc.shape
    Cout, _, kh, kw = w_oihw.shape
    xp = jnp.pad(x_nhwc, ((0, 0), (padding, padding), (padding, padding), (0, 0)))
    patches = _extract_patches(xp, kh, kw, stride)
    Ho, Wo = patches.shape[1], patches.shape[2]
    A = patches.reshape(B * Ho * Wo, kh * kw * Cin).astype(jnp.bfloat16)
    Wm = jnp.transpose(w_oihw, (2, 3, 1, 0)).reshape(kh * kw * Cin, Cout)
    Wm = Wm.astype(jnp.bfloat16)
    b2 = bias.astype(jnp.float32).reshape(1, Cout)
    out = matmul_fused(A, Wm, b2, act=act, out_dtype=out_dtype)
    return out.reshape(B, Ho, Wo, Cout)


# ----------------------------------------------------------------------------
# Kernel 4: vector quantizer (pre-VQ 1x1 conv fused), fully parallel row tiles
# ----------------------------------------------------------------------------
def _vq_kernel(z_ref, wp_ref, bp_ref, e_ref, e2_ref,
               dist_ref, idx_ref, enc_ref, q_ref, psq_ref, pcnt_ref, *, m_actual):
    i = pl.program_id(0)
    x = jnp.dot(z_ref[...], wp_ref[...],
                preferred_element_type=jnp.float32) + bp_ref[...]     # (TM, D) f32
    e = e_ref[...]                                                    # (Ne, D)
    TM = x.shape[0]
    Ne = e.shape[0]

    x2 = jnp.sum(x * x, axis=1, keepdims=True)                        # (TM, 1)
    xe = jax.lax.dot_general(x, e, (((1,), (1,)), ((), ())),
                             preferred_element_type=jnp.float32)      # (TM, Ne)
    d = x2 + e2_ref[...] - 2.0 * xe
    dist_ref[...] = d

    col = jax.lax.broadcasted_iota(jnp.int32, (TM, Ne), 1)
    dmin = jnp.min(d, axis=1, keepdims=True)
    idx = jnp.min(jnp.where(d == dmin, col, Ne), axis=1, keepdims=True)
    idx_ref[...] = idx

    enc = (col == idx).astype(jnp.float32)                            # one-hot
    enc_ref[...] = enc
    q = jnp.dot(enc, e, preferred_element_type=jnp.float32)           # (TM, D)
    q_ref[...] = q

    # per-tile partial sums; padding rows of the last tile are masked out
    row = jax.lax.broadcasted_iota(jnp.int32, (TM, 1), 0) + i * TM
    valid = row < m_actual
    diff = jnp.where(valid, q - x, 0.0)
    psq_ref[...] = jnp.sum(jnp.sum(diff * diff, axis=1, keepdims=True),
                           axis=0, keepdims=True)                     # (1, 1)
    encv = jnp.where(valid, enc, 0.0)
    pcnt_ref[...] = jnp.sum(encv, axis=0, keepdims=True)              # (1, Ne)


def vq_pallas(z_flat, w_pre_oihw, b_pre, emb, commitment_cost):
    M, Ch = z_flat.shape
    Ne, D = emb.shape
    Wp = jnp.transpose(w_pre_oihw[:, :, 0, 0], (1, 0)).astype(jnp.float32)  # (Ch, D)
    bp = b_pre.reshape(1, D).astype(jnp.float32)
    embf = emb.astype(jnp.float32)
    e2 = jnp.sum(embf * embf, axis=1).reshape(1, Ne)                  # hoisted

    TM = _row_tile(M)
    T = pl.cdiv(M, TM)
    dist, idx, enc, q, psq, pcnt = pl.pallas_call(
        partial(_vq_kernel, m_actual=M),
        out_shape=(jax.ShapeDtypeStruct((M, Ne), jnp.float32),
                   jax.ShapeDtypeStruct((M, 1), jnp.int32),
                   jax.ShapeDtypeStruct((M, Ne), jnp.float32),
                   jax.ShapeDtypeStruct((M, D), jnp.float32),
                   jax.ShapeDtypeStruct((T, 1), jnp.float32),
                   jax.ShapeDtypeStruct((T, Ne), jnp.float32)),
        grid=(T,),
        in_specs=[pl.BlockSpec((TM, Ch), lambda i: (i, 0)),
                  pl.BlockSpec((Ch, D), lambda i: (0, 0)),
                  pl.BlockSpec((1, D), lambda i: (0, 0)),
                  pl.BlockSpec((Ne, D), lambda i: (0, 0)),
                  pl.BlockSpec((1, Ne), lambda i: (0, 0))],
        out_specs=(pl.BlockSpec((TM, Ne), lambda i: (i, 0)),
                   pl.BlockSpec((TM, 1), lambda i: (i, 0)),
                   pl.BlockSpec((TM, Ne), lambda i: (i, 0)),
                   pl.BlockSpec((TM, D), lambda i: (i, 0)),
                   pl.BlockSpec((1, 1), lambda i: (i, 0)),
                   pl.BlockSpec((1, Ne), lambda i: (i, 0))),
        compiler_params=_cparams("parallel"),
    )(z_flat.astype(jnp.float32), Wp, bp, embf, e2)

    # forward-pass loss: q_latent_loss + commitment_cost * e_latent_loss,
    # which equals (1 + beta) * mse since both terms are identical in value.
    mse = jnp.sum(psq) / jnp.float32(M * D)
    loss = (1.0 + commitment_cost) * mse
    avg = jnp.sum(pcnt, axis=0) / jnp.float32(M)
    perplexity = jnp.exp(-jnp.sum(avg * jnp.log(avg + 1e-10)))
    return dist, idx, enc, q, loss, perplexity


# ----------------------------------------------------------------------------
# Model assembly
# ----------------------------------------------------------------------------
def forward(params, x_nchw, commitment_cost):
    p = params
    x = jnp.transpose(x_nchw, (0, 2, 3, 1)).astype(jnp.float32)       # NCHW -> NHWC

    # Encoder
    h = conv2d_strided(x, p["e_conv1_w"], p["e_conv1_b"], stride=2, padding=1,
                       act="relu", out_dtype=jnp.bfloat16)
    h = conv2d_strided(h, p["e_conv2_w"], p["e_conv2_b"], stride=2, padding=1,
                       act="relu", out_dtype=jnp.bfloat16)
    z = conv3x3_residual_stack(h, p["e_conv3_w"], p["e_conv3_b"], p["e_res"],
                               out_dtype=jnp.float32)                  # f32 for VQ

    # pre-VQ 1x1 conv + vector quantizer (fused kernel)
    B, H, W, Ch = z.shape
    z_flat = z.reshape(B * H * W, Ch)
    distances, enc_idx, encodings, q_flat, loss, perplexity = vq_pallas(
        z_flat, p["pre_vq_w"], p["pre_vq_b"], p["embedding"], commitment_cost)
    D = p["embedding"].shape[1]
    # straight-through: inputs + (q - inputs).detach() == q in the forward pass
    # TODO(synk): add stop_gradient / custom_vjp if this is ever differentiated.
    quantized = q_flat.reshape(B, H, W, D)

    # Decoder
    d = conv3x3_residual_stack(quantized.astype(jnp.bfloat16),
                               p["d_conv1_w"], p["d_conv1_b"], p["d_res"],
                               out_dtype=jnp.bfloat16)
    d = conv_transpose4x4_s2(d, p["d_ct1_w"], p["d_ct1_b"], relu=True,
                             out_dtype=jnp.bfloat16)
    d = conv_transpose4x4_s2(d, p["d_ct2_w"], p["d_ct2_b"], relu=False,
                             out_dtype=jnp.float32)

    x_recon = jnp.transpose(d, (0, 3, 1, 2))                           # NHWC -> NCHW
    return loss, x_recon, perplexity, distances, enc_idx, encodings


# ----------------------------------------------------------------------------
# Deterministic parameter initialization (PyTorch weight layouts)
# ----------------------------------------------------------------------------
def init_params(key, in_channels, num_hiddens, num_residual_layers,
                num_residual_hiddens, num_embeddings, embedding_dim):
    keys = iter(jax.random.split(key, 64))

    def conv_w(cout, cin, kh, kw, scale=0.1):
        return scale * jax.random.normal(next(keys), (cout, cin, kh, kw), jnp.float32)

    def bias(c, scale=0.01):
        return scale * jax.random.normal(next(keys), (c,), jnp.float32)

    nh, nrh = num_hiddens, num_residual_hiddens
    p = {}
    # Encoder
    p["e_conv1_w"] = conv_w(nh // 2, in_channels, 4, 4)
    p["e_conv1_b"] = bias(nh // 2)
    p["e_conv2_w"] = conv_w(nh, nh // 2, 4, 4)
    p["e_conv2_b"] = bias(nh)
    p["e_conv3_w"] = conv_w(nh, nh, 3, 3)
    p["e_conv3_b"] = bias(nh)
    p["e_res"] = [(conv_w(nrh, nh, 3, 3), conv_w(nh, nrh, 1, 1))
                  for _ in range(num_residual_layers)]
    # pre-VQ conv
    p["pre_vq_w"] = conv_w(embedding_dim, nh, 1, 1)
    p["pre_vq_b"] = bias(embedding_dim)
    # VQ codebook: uniform(-1/K, 1/K) as in the PyTorch module
    p["embedding"] = jax.random.uniform(
        next(keys), (num_embeddings, embedding_dim), jnp.float32,
        minval=-1.0 / num_embeddings, maxval=1.0 / num_embeddings)
    # Decoder
    p["d_conv1_w"] = conv_w(nh, embedding_dim, 3, 3)
    p["d_conv1_b"] = bias(nh)
    p["d_res"] = [(conv_w(nrh, nh, 3, 3), conv_w(nh, nrh, 1, 1))
                  for _ in range(num_residual_layers)]
    # ConvTranspose2d weights in PyTorch IOHW layout (Cin, Cout, kh, kw)
    p["d_ct1_w"] = 0.1 * jax.random.normal(next(keys), (nh, nh // 2, 4, 4), jnp.float32)
    p["d_ct1_b"] = bias(nh // 2)
    p["d_ct2_w"] = 0.1 * jax.random.normal(next(keys), (nh // 2, 3, 4, 4), jnp.float32)
    p["d_ct2_b"] = bias(3)
    return p


if __name__ == "__main__":
    in_channels = 3
    num_hiddens = 32
    num_residual_layers = 2
    num_residual_hiddens = 8
    num_embeddings = 16
    embedding_dim = 8
    commitment_cost = 0.25

    key = jax.random.PRNGKey(0)
    k_params, k_x = jax.random.split(key)
    params = init_params(k_params, in_channels, num_hiddens, num_residual_layers,
                         num_residual_hiddens, num_embeddings, embedding_dim)

    x = jax.random.normal(k_x, (2, in_channels, 16, 16), jnp.float32)  # NCHW like PyTorch

    fwd = jax.jit(partial(forward, commitment_cost=commitment_cost))
    loss, x_recon, perplexity, distances, enc_idx, encodings = fwd(params, x)
    jax.block_until_ready((loss, x_recon, perplexity, distances, enc_idx, encodings))

    assert x_recon.shape == (2, 3, 16, 16)
    assert distances.shape == (2 * 4 * 4, num_embeddings)
    assert enc_idx.shape == (2 * 4 * 4, 1)
    assert encodings.shape == (2 * 4 * 4, num_embeddings)
    print("KERNEL_OK")
</pallas_src>

<mosaic_0001>
module attributes {stable_mosaic.version = 11 : i64} {
  func.func @_mm_kernel(%arg0: i32, %arg1: memref<128x48xbf16, #tpu.memory_space<vmem>>, %arg2: memref<48x16xbf16, #tpu.memory_space<vmem>>, %arg3: memref<1x16xf32, #tpu.memory_space<vmem>>, %arg4: memref<128x16xbf16, #tpu.memory_space<vmem>>) attributes {dimension_semantics = [#tpu.dimension_semantics<parallel>], iteration_bounds = array<i64: 1>, scalar_prefetch = 0 : i64, scratch_operands = 0 : i64, tpu.core_type = #tpu.core_type<tc>, window_params = [{transform_indices = @transform_0, window_bounds = array<i64: 128, 48>}, {pipeline_mode = #tpu.pipeline_mode<synchronous>, transform_indices = @transform_1, window_bounds = array<i64: 48, 16>}, {pipeline_mode = #tpu.pipeline_mode<synchronous>, transform_indices = @transform_2, window_bounds = array<i64: 1, 16>}, {transform_indices = @transform_3, window_bounds = array<i64: 128, 16>}]} {
    %c0 = arith.constant 0 : index
    %c0_0 = arith.constant 0 : index
    %0 = vector.load %arg1[%c0, %c0_0] : memref<128x48xbf16, #tpu.memory_space<vmem>>, vector<128x48xbf16>
    %c0_1 = arith.constant 0 : index
    %c0_2 = arith.constant 0 : index
    %1 = vector.load %arg2[%c0_1, %c0_2] : memref<48x16xbf16, #tpu.memory_space<vmem>>, vector<48x16xbf16>
    %cst = arith.constant dense<0.000000e+00> : vector<128x16xf32>
    %2 = tpu.matmul %0, %1, %cst {dimension_numbers = #tpu.dot_dimension_numbers<[1], [0], [0], [1], [0, 0, 1, 1], [], []>} : vector<128x48xbf16>, vector<48x16xbf16>, vector<128x16xf32> -> vector<128x16xf32>
    %c0_3 = arith.constant 0 : index
    %c0_4 = arith.constant 0 : index
    %3 = vector.load %arg3[%c0_3, %c0_4] : memref<1x16xf32, #tpu.memory_space<vmem>>, vector<1x16xf32>
    %4 = vector.broadcast %3 : vector<1x16xf32> to vector<128x16xf32>
    %5 = arith.addf %2, %4 : vector<128x16xf32>
    %cst_5 = arith.constant 0.000000e+00 : f32
    %6 = vector.broadcast %cst_5 : f32 to vector<128x16xf32>
    %7 = arith.maximumf %5, %6 : vector<128x16xf32>
    %8 = arith.truncf %7 : vector<128x16xf32> to vector<128x16xbf16>
    %c0_6 = arith.constant 0 : index
    %c0_7 = arith.constant 0 : index
    %9 = vector.load %arg4[%c0_6, %c0_7] : memref<128x16xbf16, #tpu.memory_space<vmem>>, vector<128x16xbf16>
    tpu.vector_store %arg4[%c0_6, %c0_7], %8 {strides = array<i32>} : memref<128x16xbf16, #tpu.memory_space<vmem>>, vector<128x16xbf16>,
    return
  }
  func.func @transform_0(%arg0: i32) -> (i32, i32) {
    %c0_i32 = arith.constant 0 : i32
    %c0_i32_0 = arith.constant 0 : i32
    return %arg0, %c0_i32 : i32, i32
  }
  func.func @transform_1(%arg0: i32) -> (i32, i32) {
    %c0_i32 = arith.constant 0 : i32
    %c0_i32_0 = arith.constant 0 : i32
    %c0_i32_1 = arith.constant 0 : i32
    return %c0_i32, %c0_i32_0 : i32, i32
  }
  func.func @transform_2(%arg0: i32) -> (i32, i32) {
    %c0_i32 = arith.constant 0 : i32
    %c0_i32_0 = arith.constant 0 : i32
    %c0_i32_1 = arith.constant 0 : i32
    return %c0_i32, %c0_i32_0 : i32, i32
  }
  func.func @transform_3(%arg0: i32) -> (i32, i32) {
    %c0_i32 = arith.constant 0 : i32
    %c0_i32_0 = arith.constant 0 : i32
    return %arg0, %c0_i32 : i32, i32
  }
}

module attributes {stable_mosaic.version = 11 : i64} {
  func.func @_mm_kernel(%arg0: i32, %arg1: memref<32x256xbf16, #tpu.memory_space<vmem>>, %arg2: memref<256x32xbf16, #tpu.memory_space<vmem>>, %arg3: memref<1x32xf32, #tpu.memory_space<vmem>>, %arg4: memref<32x32xbf16, #tpu.memory_space<vmem>>) attributes {dimension_semantics = [#tpu.dimension_semantics<parallel>], iteration_bounds = array<i64: 1>, scalar_prefetch = 0 : i64, scratch_operands = 0 : i64, tpu.core_type = #tpu.core_type<tc>, window_params = [{transform_indices = @transform_0, window_bounds = array<i64: 32, 256>}, {pipeline_mode = #tpu.pipeline_mode<synchronous>, transform_indices = @transform_1, window_bounds = array<i64: 256, 32>}, {pipeline_mode = #tpu.pipeline_mode<synchronous>, transform_indices = @transform_2, window_bounds = array<i64: 1, 32>}, {transform_indices = @transform_3, window_bounds = array<i64: 32, 32>}]} {
    %c0 = arith.constant 0 : index
    %c0_0 = arith.constant 0 : index
    %0 = vector.load %arg1[%c0, %c0_0] : memref<32x256xbf16, #tpu.memory_space<vmem>>, vector<32x256xbf16>
    %c0_1 = arith.constant 0 : index
    %c0_2 = arith.constant 0 : index
    %1 = vector.load %arg2[%c0_1, %c0_2] : memref<256x32xbf16, #tpu.memory_space<vmem>>, vector<256x32xbf16>
    %cst = arith.constant dense<0.000000e+00> : vector<32x32xf32>
    %2 = tpu.matmul %0, %1, %cst {dimension_numbers = #tpu.dot_dimension_numbers<[1], [0], [0], [1], [0, 0, 1, 1], [], []>} : vector<32x256xbf16>, vector<256x32xbf16>, vector<32x32xf32> -> vector<32x32xf32>
    %c0_3 = arith.constant 0 : index
    %c0_4 = arith.constant 0 : index
    %3 = vector.load %arg3[%c0_3, %c0_4] : memref<1x32xf32, #tpu.memory_space<vmem>>, vector<1x32xf32>
    %4 = vector.broadcast %3 : vector<1x32xf32> to vector<32x32xf32>
    %5 = arith.addf %2, %4 : vector<32x32xf32>
    %cst_5 = arith.constant 0.000000e+00 : f32
    %6 = vector.broadcast %cst_5 : f32 to vector<32x32xf32>
    %7 = arith.maximumf %5, %6 : vector<32x32xf32>
    %8 = arith.truncf %7 : vector<32x32xf32> to vector<32x32xbf16>
    %c0_6 = arith.constant 0 : index
    %c0_7 = arith.constant 0 : index
    %9 = vector.load %arg4[%c0_6, %c0_7] : memref<32x32xbf16, #tpu.memory_space<vmem>>, vector<32x32xbf16>
    tpu.vector_store %arg4[%c0_6, %c0_7], %8 {strides = array<i32>} : memref<32x32xbf16, #tpu.memory_space<vmem>>, vector<32x32xbf16>,
    return
  }
  func.func @transform_0(%arg0: i32) -> (i32, i32) {
    %c0_i32 = arith.constant 0 : i32
    %c0_i32_0 = arith.constant 0 : i32
    return %arg0, %c0_i32 : i32, i32
  }
  func.func @transform_1(%arg0: i32) -> (i32, i32) {
    %c0_i32 = arith.constant 0 : i32
    %c0_i32_0 = arith.constant 0 : i32
    %c0_i32_1 = arith.constant 0 : i32
    return %c0_i32, %c0_i32_0 : i32, i32
  }
  func.func @transform_2(%arg0: i32) -> (i32, i32) {
    %c0_i32 = arith.constant 0 : i32
    %c0_i32_0 = arith.constant 0 : i32
    %c0_i32_1 = arith.constant 0 : i32
    return %c0_i32, %c0_i32_0 : i32, i32
  }
  func.func @transform_3(%arg0: i32) -> (i32, i32) {
    %c0_i32 = arith.constant 0 : i32
    %c0_i32_0 = arith.constant 0 : i32
    return %arg0, %c0_i32 : i32, i32
  }
}

module attributes {stable_mosaic.version = 11 : i64} {
  func.func @_vq_kernel(%arg0: i32, %arg1: memref<32x32xf32, #tpu.memory_space<vmem>>, %arg2: memref<32x8xf32, #tpu.memory_space<vmem>>, %arg3: memref<1x8xf32, #tpu.memory_space<vmem>>, %arg4: memref<16x8xf32, #tpu.memory_space<vmem>>, %arg5: memref<1x16xf32, #tpu.memory_space<vmem>>, %arg6: memref<32x16xf32, #tpu.memory_space<vmem>>, %arg7: memref<32x1xi32, #tpu.memory_space<vmem>>, %arg8: memref<32x16xf32, #tpu.memory_space<vmem>>, %arg9: memref<32x8xf32, #tpu.memory_space<vmem>>, %arg10: memref<1x1xf32, #tpu.memory_space<vmem>>, %arg11: memref<1x16xf32, #tpu.memory_space<vmem>>) attributes {dimension_semantics = [#tpu.dimension_semantics<parallel>], iteration_bounds = array<i64: 1>, scalar_prefetch = 0 : i64, scratch_operands = 0 : i64, tpu.core_type = #tpu.core_type<tc>, window_params = [{transform_indices = @transform_0, window_bounds = array<i64: 32, 32>}, {pipeline_mode = #tpu.pipeline_mode<synchronous>, transform_indices = @transform_1, window_bounds = array<i64: 32, 8>}, {pipeline_mode = #tpu.pipeline_mode<synchronous>, transform_indices = @transform_2, window_bounds = array<i64: 1, 8>}, {pipeline_mode = #tpu.pipeline_mode<synchronous>, transform_indices = @transform_3, window_bounds = array<i64: 16, 8>}, {pipeline_mode = #tpu.pipeline_mode<synchronous>, transform_indices = @transform_4, window_bounds = array<i64: 1, 16>}, {transform_indices = @transform_5, window_bounds = array<i64: 32, 16>}, {transform_indices = @transform_6, window_bounds = array<i64: 32, 1>}, {transform_indices = @transform_7, window_bounds = array<i64: 32, 16>}, {transform_indices = @transform_8, window_bounds = array<i64: 32, 8>}, {transform_indices = @transform_9, window_bounds = array<i64: 1, 1>}, {transform_indices = @transform_10, window_bounds = array<i64: 1, 16>}]} {
    %c0 = arith.constant 0 : index
    %c0_0 = arith.constant 0 : index
    %0 = vector.load %arg1[%c0, %c0_0] : memref<32x32xf32, #tpu.memory_space<vmem>>, vector<32x32xf32>
    %c0_1 = arith.constant 0 : index
    %c0_2 = arith.constant 0 : index
    %1 = vector.load %arg2[%c0_1, %c0_2] : memref<32x8xf32, #tpu.memory_space<vmem>>, vector<32x8xf32>
    %cst = arith.constant dense<0.000000e+00> : vector<32x8xf32>
    %2 = tpu.matmul %0, %1, %cst {dimension_numbers = #tpu.dot_dimension_numbers<[1], [0], [0], [1], [0, 0, 1, 1], [], []>} : vector<32x32xf32>, vector<32x8xf32>, vector<32x8xf32> -> vector<32x8xf32>
    %c0_3 = arith.constant 0 : index
    %c0_4 = arith.constant 0 : index
    %3 = vector.load %arg3[%c0_3, %c0_4] : memref<1x8xf32, #tpu.memory_space<vmem>>, vector<1x8xf32>
    %4 = vector.broadcast %3 : vector<1x8xf32> to vector<32x8xf32>
    %5 = arith.addf %2, %4 : vector<32x8xf32>
    %c0_5 = arith.constant 0 : index
    %c0_6 = arith.constant 0 : index
    %6 = vector.load %arg4[%c0_5, %c0_6] : memref<16x8xf32, #tpu.memory_space<vmem>>, vector<16x8xf32>
    %7 = arith.mulf %5, %5 : vector<32x8xf32>
    %cst_7 = arith.constant dense<0.000000e+00> : vector<32xf32>
    %8 = vector.multi_reduction <add>, %7, %cst_7 [1] : vector<32x8xf32> to vector<32xf32>
    %9 = vector.shape_cast %8 : vector<32xf32> to vector<32x1xf32>
    %cst_8 = arith.constant dense<0.000000e+00> : vector<32x16xf32>
    %10 = tpu.matmul %5, %6, %cst_8 {dimension_numbers = #tpu.dot_dimension_numbers<[1], [1], [0], [0], [0, 0, 1, 0], [], []>} : vector<32x8xf32>, vector<16x8xf32>, vector<32x16xf32> -> vector<32x16xf32>
    %c0_9 = arith.constant 0 : index
    %c0_10 = arith.constant 0 : index
    %11 = vector.load %arg5[%c0_9, %c0_10] : memref<1x16xf32, #tpu.memory_space<vmem>>, vector<1x16xf32>
    %12 = vector.broadcast %9 : vector<32x1xf32> to vector<32x16xf32>
    %13 = vector.broadcast %11 : vector<1x16xf32> to vector<32x16xf32>
    %14 = arith.addf %12, %13 : vector<32x16xf32>
    %cst_11 = arith.constant 2.000000e+00 : f32
    %15 = vector.broadcast %cst_11 : f32 to vector<32x16xf32>
    %16 = arith.mulf %15, %10 : vector<32x16xf32>
    %17 = arith.subf %14, %16 : vector<32x16xf32>
    %c0_12 = arith.constant 0 : index
    %c0_13 = arith.constant 0 : index
    %18 = vector.load %arg6[%c0_12, %c0_13] : memref<32x16xf32, #tpu.memory_space<vmem>>, vector<32x16xf32>
    tpu.vector_store %arg6[%c0_12, %c0_13], %17 {strides = array<i32>} : memref<32x16xf32, #tpu.memory_space<vmem>>, vector<32x16xf32>,
    %19 = tpu.iota {dimensions = array<i32: 1>} : vector<32x16xi32>
    %cst_14 = arith.constant dense<0x7F800000> : vector<32xf32>
    %20 = vector.multi_reduction <minimumf>, %17, %cst_14 [1] : vector<32x16xf32> to vector<32xf32>
    %21 = vector.shape_cast %20 : vector<32xf32> to vector<32x1xf32>
    %22 = vector.broadcast %21 : vector<32x1xf32> to vector<32x16xf32>
    %23 = arith.cmpf oeq, %17, %22 : vector<32x16xf32>
    %c16_i32 = arith.constant 16 : i32
    %24 = vector.broadcast %c16_i32 : i32 to vector<32x16xi32>
    %25 = arith.select %23, %19, %24 : vector<32x16xi1>, vector<32x16xi32>
    %cst_15 = arith.constant dense<2147483647> : vector<32xi32>
    %26 = vector.multi_reduction <minsi>, %25, %cst_15 [1] : vector<32x16xi32> to vector<32xi32>
    %27 = vector.shape_cast %26 : vector<32xi32> to vector<32x1xi32>
    %c0_16 = arith.constant 0 : index
    %c0_17 = arith.constant 0 : index
    %28 = vector.load %arg7[%c0_16, %c0_17] : memref<32x1xi32, #tpu.memory_space<vmem>>, vector<32x1xi32>
    tpu.vector_store %arg7[%c0_16, %c0_17], %27 {strides = array<i32>} : memref<32x1xi32, #tpu.memory_space<vmem>>, vector<32x1xi32>,
    %29 = vector.broadcast %27 : vector<32x1xi32> to vector<32x16xi32>
    %30 = arith.cmpi eq, %19, %29 : vector<32x16xi32>
    %31 = arith.extui %30 : vector<32x16xi1> to vector<32x16xi32>
    %32 = arith.sitofp %31 : vector<32x16xi32> to vector<32x16xf32>
    %c0_18 = arith.constant 0 : index
    %c0_19 = arith.constant 0 : index
    %33 = vector.load %arg8[%c0_18, %c0_19] : memref<32x16xf32, #tpu.memory_space<vmem>>, vector<32x16xf32>
    tpu.vector_store %arg8[%c0_18, %c0_19], %32 {strides = array<i32>} : memref<32x16xf32, #tpu.memory_space<vmem>>, vector<32x16xf32>,
    %cst_20 = arith.constant dense<0.000000e+00> : vector<32x8xf32>
    %34 = tpu.matmul %32, %6, %cst_20 {dimension_numbers = #tpu.dot_dimension_numbers<[1], [0], [0], [1], [0, 0, 1, 1], [], []>} : vector<32x16xf32>, vector<16x8xf32>, vector<32x8xf32> -> vector<32x8xf32>
    %c0_21 = arith.constant 0 : index
    %c0_22 = arith.constant 0 : index
    %35 = vector.load %arg9[%c0_21, %c0_22] : memref<32x8xf32, #tpu.memory_space<vmem>>, vector<32x8xf32>
    tpu.vector_store %arg9[%c0_21, %c0_22], %34 {strides = array<i32>} : memref<32x8xf32, #tpu.memory_space<vmem>>, vector<32x8xf32>,
    %36 = tpu.iota {dimensions = array<i32: 0>} : vector<32x1xi32>
    %c32_i32 = arith.constant 32 : i32
    %37 = arith.muli %arg0, %c32_i32 : i32
    %38 = vector.broadcast %37 : i32 to vector<32x1xi32>
    %39 = arith.addi %36, %38 : vector<32x1xi32>
    %c32_i32_23 = arith.constant 32 : i32
    %40 = vector.broadcast %c32_i32_23 : i32 to vector<32x1xi32>
    %41 = arith.cmpi slt, %39, %40 : vector<32x1xi32>
    %42 = arith.subf %34, %5 : vector<32x8xf32>
    %cst_24 = arith.constant 0.000000e+00 : f32
    %43 = vector.shape_cast %41 : vector<32x1xi1> to vector<32x1xi1>
    %44 = vector.broadcast %43 : vector<32x1xi1> to vector<32x8xi1>
    %45 = vector.broadcast %cst_24 : f32 to vector<32x8xf32>
    %46 = arith.select %44, %42, %45 : vector<32x8xi1>, vector<32x8xf32>
    %47 = arith.mulf %46, %46 : vector<32x8xf32>
    %cst_25 = arith.constant dense<0.000000e+00> : vector<32xf32>
    %48 = vector.multi_reduction <add>, %47, %cst_25 [1] : vector<32x8xf32> to vector<32xf32>
    %49 = vector.shape_cast %48 : vector<32xf32> to vector<32x1xf32>
    %cst_26 = arith.constant dense<0.000000e+00> : vector<1xf32>
    %50 = vector.multi_reduction <add>, %49, %cst_26 [0] : vector<32x1xf32> to vector<1xf32>
    %51 = vector.shape_cast %50 : vector<1xf32> to vector<1x1xf32>
    %c0_27 = arith.constant 0 : index
    %c0_28 = arith.constant 0 : index
    %52 = vector.load %arg10[%c0_27, %c0_28] : memref<1x1xf32, #tpu.memory_space<vmem>>, vector<1x1xf32>
    tpu.vector_store %arg10[%c0_27, %c0_28], %51 {strides = array<i32>} : memref<1x1xf32, #tpu.memory_space<vmem>>, vector<1x1xf32>,
    %cst_29 = arith.constant 0.000000e+00 : f32
    %53 = vector.shape_cast %41 : vector<32x1xi1> to vector<32x1xi1>
    %54 = vector.broadcast %53 : vector<32x1xi1> to vector<32x16xi1>
    %55 = vector.broadcast %cst_29 : f32 to vector<32x16xf32>
    %56 = arith.select %54, %32, %55 : vector<32x16xi1>, vector<32x16xf32>
    %cst_30 = arith.constant dense<0.000000e+00> : vector<16xf32>
    %57 = vector.multi_reduction <add>, %56, %cst_30 [0] : vector<32x16xf32> to vector<16xf32>
    %58 = vector.shape_cast %57 : vector<16xf32> to vector<1x16xf32>
    %c0_31 = arith.constant 0 : index
    %c0_32 = arith.constant 0 : index
    %59 = vector.load %arg11[%c0_31, %c0_32] : memref<1x16xf32, #tpu.memory_space<vmem>>, vector<1x16xf32>
    tpu.vector_store %arg11[%c0_31, %c0_32], %58 {strides = array<i32>} : memref<1x16xf32, #tpu.memory_space<vmem>>, vector<1x16xf32>,
    return
  }
  func.func @transform_0(%arg0: i32) -> (i32, i32) {
    %c0_i32 = arith.constant 0 : i32
    %c0_i32_0 = arith.constant 0 : i32
    return %arg0, %c0_i32 : i32, i32
  }
  func.func @transform_1(%arg0: i32) -> (i32, i32) {
    %c0_i32 = arith.constant 0 : i32
    %c0_i32_0 = arith.constant 0 : i32
    %c0_i32_1 = arith.constant 0 : i32
    return %c0_i32, %c0_i32_0 : i32, i32
  }
  func.func @transform_2(%arg0: i32) -> (i32, i32) {
    %c0_i32 = arith.constant 0 : i32
    %c0_i32_0 = arith.constant 0 : i32
    %c0_i32_1 = arith.constant 0 : i32
    return %c0_i32, %c0_i32_0 : i32, i32
  }
  func.func @transform_3(%arg0: i32) -> (i32, i32) {
    %c0_i32 = arith.constant 0 : i32
    %c0_i32_0 = arith.constant 0 : i32
    %c0_i32_1 = arith.constant 0 : i32
    return %c0_i32, %c0_i32_0 : i32, i32
  }
  func.func @transform_4(%arg0: i32) -> (i32, i32) {
    %c0_i32 = arith.constant 0 : i32
    %c0_i32_0 = arith.constant 0 : i32
    %c0_i32_1 = arith.constant 0 : i32
    return %c0_i32, %c0_i32_0 : i32, i32
  }
  func.func @transform_5(%arg0: i32) -> (i32, i32) {
    %c0_i32 = arith.constant 0 : i32
    %c0_i32_0 = arith.constant 0 : i32
    return %arg0, %c0_i32 : i32, i32
  }
  func.func @transform_6(%arg0: i32) -> (i32, i32) {
    %c0_i32 = arith.constant 0 : i32
    %c0_i32_0 = arith.constant 0 : i32
    return %arg0, %c0_i32 : i32, i32
  }
  func.func @transform_7(%arg0: i32) -> (i32, i32) {
    %c0_i32 = arith.constant 0 : i32
    %c0_i32_0 = arith.constant 0 : i32
    return %arg0, %c0_i32 : i32, i32
  }
  func.func @transform_8(%arg0: i32) -> (i32, i32) {
    %c0_i32 = arith.constant 0 : i32
    %c0_i32_0 = arith.constant 0 : i32
    return %arg0, %c0_i32 : i32, i32
  }
  func.func @transform_9(%arg0: i32) -> (i32, i32) {
    %c0_i32 = arith.constant 0 : i32
    %c0_i32_0 = arith.constant 0 : i32
    return %arg0, %c0_i32 : i32, i32
  }
  func.func @transform_10(%arg0: i32) -> (i32, i32) {
    %c0_i32 = arith.constant 0 : i32
    %c0_i32_0 = arith.constant 0 : i32
    return %arg0, %c0_i32 : i32, i32
  }
}

module attributes {stable_mosaic.version = 11 : i64} {
  func.func @_stack_kernel(%arg0: i32, %arg1: memref<1x16x32xbf16, #tpu.memory_space<vmem>>, %arg2: memref<16x9xf32, #tpu.memory_space<vmem>>, %arg3: memref<288x32xbf16, #tpu.memory_space<vmem>>, %arg4: memref<1x32xf32, #tpu.memory_space<vmem>>, %arg5: memref<288x8xbf16, #tpu.memory_space<vmem>>, %arg6: memref<8x32xbf16, #tpu.memory_space<vmem>>, %arg7: memref<288x8xbf16, #tpu.memory_space<vmem>>, %arg8: memref<8x32xbf16, #tpu.memory_space<vmem>>, %arg9: memref<1x16x32xf32, #tpu.memory_space<vmem>>, %arg10: memref<26x32xf32, #tpu.memory_space<vmem>>) attributes {dimension_semantics = [#tpu.dimension_semantics<parallel>], iteration_bounds = array<i64: 2>, scalar_prefetch = 0 : i64, scratch_operands = 1 : i64, tpu.core_type = #tpu.core_type<tc>, window_params = [{transform_indices = @transform_0, window_bounds = array<i64: 1, 16, 32>}, {pipeline_mode = #tpu.pipeline_mode<synchronous>, transform_indices = @transform_1, window_bounds = array<i64: 16, 9>}, {pipeline_mode = #tpu.pipeline_mode<synchronous>, transform_indices = @transform_2, window_bounds = array<i64: 288, 32>}, {pipeline_mode = #tpu.pipeline_mode<synchronous>, transform_indices = @transform_3, window_bounds = array<i64: 1, 32>}, {pipeline_mode = #tpu.pipeline_mode<synchronous>, transform_indices = @transform_4, window_bounds = array<i64: 288, 8>}, {pipeline_mode = #tpu.pipeline_mode<synchronous>, transform_indices = @transform_5, window_bounds = array<i64: 8, 32>}, {pipeline_mode = #tpu.pipeline_mode<synchronous>, transform_indices = @transform_6, window_bounds = array<i64: 288, 8>}, {pipeline_mode = #tpu.pipeline_mode<synchronous>, transform_indices = @transform_7, window_bounds = array<i64: 8, 32>}, {transform_indices = @transform_8, window_bounds = array<i64: 1, 16, 32>}]} {
    %cst = arith.constant 0.000000e+00 : f32
    %0 = vector.broadcast %cst : f32 to vector<5x32xf32>
    %c0 = arith.constant 0 : index
    %c0_0 = arith.constant 0 : index
    %1 = vector.load %arg10[%c0, %c0_0] : memref<26x32xf32, #tpu.memory_space<vmem>>, vector<5x32xf32>
    tpu.vector_store %arg10[%c0, %c0_0], %0 {strides = array<i32>} : memref<26x32xf32, #tpu.memory_space<vmem>>, vector<5x32xf32>,
    %cst_1 = arith.constant 0.000000e+00 : f32
    %2 = vector.broadcast %cst_1 : f32 to vector<5x32xf32>
    %c21 = arith.constant 21 : index
    %c0_2 = arith.constant 0 : index
    %3 = vector.load %arg10[%c21, %c0_2] : memref<26x32xf32, #tpu.memory_space<vmem>>, vector<5x32xf32>
    tpu.vector_store %arg10[%c21, %c0_2], %2 {strides = array<i32>} : memref<26x32xf32, #tpu.memory_space<vmem>>, vector<5x32xf32>,
    %c0_3 = arith.constant 0 : index
    %c0_4 = arith.constant 0 : index
    %4 = vector.load %arg2[%c0_3, %c0_4] : memref<16x9xf32, #tpu.memory_space<vmem>>, vector<16x9xf32>
    %c0_5 = arith.constant 0 : index
    %c0_6 = arith.constant 0 : index
    %c0_7 = arith.constant 0 : index
    %5 = vector.load %arg1[%c0_5, %c0_6, %c0_7] : memref<1x16x32xbf16, #tpu.memory_space<vmem>>, vector<1x16x32xbf16>
    %6 = vector.shape_cast %5 : vector<1x16x32xbf16> to vector<16x32xbf16>
    %7 = arith.extf %6 : vector<16x32xbf16> to vector<16x32xf32>
    %c5 = arith.constant 5 : index
    %c0_8 = arith.constant 0 : index
    %8 = vector.load %arg10[%c5, %c0_8] : memref<26x32xf32, #tpu.memory_space<vmem>>, vector<16x32xf32>
    tpu.vector_store %arg10[%c5, %c0_8], %7 {strides = array<i32>} : memref<26x32xf32, #tpu.memory_space<vmem>>, vector<16x32xf32>,
    %c0_9 = arith.constant 0 : index
    %c0_10 = arith.constant 0 : index
    %9 = vector.load %arg10[%c0_9, %c0_10] : memref<26x32xf32, #tpu.memory_space<vmem>>, vector<16x32xf32>
    %10 = vector.extract_strided_slice %4 {offsets = [0, 0], sizes = [16, 1], strides = [1, 1]} : vector<16x9xf32> to vector<16x1xf32>
    %11 = vector.broadcast %10 : vector<16x1xf32> to vector<16x32xf32>
    %12 = arith.mulf %9, %11 : vector<16x32xf32>
    %13 = arith.truncf %12 : vector<16x32xf32> to vector<16x32xbf16>
    %c0_11 = arith.constant 0 : index
    %c0_12 = arith.constant 0 : index
    %14 = vector.load %arg3[%c0_11, %c0_12] : memref<288x32xbf16, #tpu.memory_space<vmem>>, vector<32x32xbf16>
    %cst_13 = arith.constant dense<0.000000e+00> : vector<16x32xf32>
    %15 = tpu.matmul %13, %14, %cst_13 {dimension_numbers = #tpu.dot_dimension_numbers<[1], [0], [0], [1], [0, 0, 1, 1], [], []>} : vector<16x32xbf16>, vector<32x32xbf16>, vector<16x32xf32> -> vector<16x32xf32>
    %c1 = arith.constant 1 : index
    %c0_14 = arith.constant 0 : index
    %16 = vector.load %arg10[%c1, %c0_14] : memref<26x32xf32, #tpu.memory_space<vmem>>, vector<16x32xf32>
    %17 = vector.extract_strided_slice %4 {offsets = [0, 1], sizes = [16, 1], strides = [1, 1]} : vector<16x9xf32> to vector<16x1xf32>
    %18 = vector.broadcast %17 : vector<16x1xf32> to vector<16x32xf32>
    %19 = arith.mulf %16, %18 : vector<16x32xf32>
    %20 = arith.truncf %19 : vector<16x32xf32> to vector<16x32xbf16>
    %c32 = arith.constant 32 : index
    %c0_15 = arith.constant 0 : index
    %21 = vector.load %arg3[%c32, %c0_15] : memref<288x32xbf16, #tpu.memory_space<vmem>>, vector<32x32xbf16>
    %cst_16 = arith.constant dense<0.000000e+00> : vector<16x32xf32>
    %22 = tpu.matmul %20, %21, %cst_16 {dimension_numbers = #tpu.dot_dimension_numbers<[1], [0], [0], [1], [0, 0, 1, 1], [], []>} : vector<16x32xbf16>, vector<32x32xbf16>, vector<16x32xf32> -> vector<16x32xf32>
    %23 = arith.addf %15, %22 : vector<16x32xf32>
    %c2 = arith.constant 2 : index
    %c0_17 = arith.constant 0 : index
    %24 = vector.load %arg10[%c2, %c0_17] : memref<26x32xf32, #tpu.memory_space<vmem>>, vector<16x32xf32>
    %25 = vector.extract_strided_slice %4 {offsets = [0, 2], sizes = [16, 1], strides = [1, 1]} : vector<16x9xf32> to vector<16x1xf32>
    %26 = vector.broadcast %25 : vector<16x1xf32> to vector<16x32xf32>
    %27 = arith.mulf %24, %26 : vector<16x32xf32>
    %28 = arith.truncf %27 : vector<16x32xf32> to vector<16x32xbf16>
    %c64 = arith.constant 64 : index
    %c0_18 = arith.constant 0 : index
    %29 = vector.load %arg3[%c64, %c0_18] : memref<288x32xbf16, #tpu.memory_space<vmem>>, vector<32x32xbf16>
    %cst_19 = arith.constant dense<0.000000e+00> : vector<16x32xf32>
    %30 = tpu.matmul %28, %29, %cst_19 {dimension_numbers = #tpu.dot_dimension_numbers<[1], [0], [0], [1], [0, 0, 1, 1], [], []>} : vector<16x32xbf16>, vector<32x32xbf16>, vector<16x32xf32> -> vector<16x32xf32>
    %31 = arith.addf %23, %30 : vector<16x32xf32>
    %c4 = arith.constant 4 : index
    %c0_20 = arith.constant 0 : index
    %32 = vector.load %arg10[%c4, %c0_20] : memref<26x32xf32, #tpu.memory_space<vmem>>, vector<16x32xf32>
    %33 = vector.extract_strided_slice %4 {offsets = [0, 3], sizes = [16, 1], strides = [1, 1]} : vector<16x9xf32> to vector<16x1xf32>
    %34 = vector.broadcast %33 : vector<16x1xf32> to vector<16x32xf32>
    %35 = arith.mulf %32, %34 : vector<16x32xf32>
    %36 = arith.truncf %35 : vector<16x32xf32> to vector<16x32xbf16>
    %c96 = arith.constant 96 : index
    %c0_21 = arith.constant 0 : index
    %37 = vector.load %arg3[%c96, %c0_21] : memref<288x32xbf16, #tpu.memory_space<vmem>>, vector<32x32xbf16>
    %cst_22 = arith.constant dense<0.000000e+00> : vector<16x32xf32>
    %38 = tpu.matmul %36, %37, %cst_22 {dimension_numbers = #tpu.dot_dimension_numbers<[1], [0], [0], [1], [0, 0, 1, 1], [], []>} : vector<16x32xbf16>, vector<32x32xbf16>, vector<16x32xf32> -> vector<16x32xf32>
    %39 = arith.addf %31, %38 : vector<16x32xf32>
    %40 = arith.truncf %7 : vector<16x32xf32> to vector<16x32xbf16>
    %c128 = arith.constant 128 : index
    %c0_23 = arith.constant 0 : index
    %41 = vector.load %arg3[%c128, %c0_23] : memref<288x32xbf16, #tpu.memory_space<vmem>>, vector<32x32xbf16>
    %cst_24 = arith.constant dense<0.000000e+00> : vector<16x32xf32>
    %42 = tpu.matmul %40, %41, %cst_24 {dimension_numbers = #tpu.dot_dimension_numbers<[1], [0], [0], [1], [0, 0, 1, 1], [], []>} : vector<16x32xbf16>, vector<32x32xbf16>, vector<16x32xf32> -> vector<16x32xf32>
    %43 = arith.addf %39, %42 : vector<16x32xf32>
    %c6 = arith.constant 6 : index
    %c0_25 = arith.constant 0 : index
    %44 = vector.load %arg10[%c6, %c0_25] : memref<26x32xf32, #tpu.memory_space<vmem>>, vector<16x32xf32>
    %45 = vector.extract_strided_slice %4 {offsets = [0, 5], sizes = [16, 1], strides = [1, 1]} : vector<16x9xf32> to vector<16x1xf32>
    %46 = vector.broadcast %45 : vector<16x1xf32> to vector<16x32xf32>
    %47 = arith.mulf %44, %46 : vector<16x32xf32>
    %48 = arith.truncf %47 : vector<16x32xf32> to vector<16x32xbf16>
    %c160 = arith.constant 160 : index
    %c0_26 = arith.constant 0 : index
    %49 = vector.load %arg3[%c160, %c0_26] : memref<288x32xbf16, #tpu.memory_space<vmem>>, vector<32x32xbf16>
    %cst_27 = arith.constant dense<0.000000e+00> : vector<16x32xf32>
    %50 = tpu.matmul %48, %49, %cst_27 {dimension_numbers = #tpu.dot_dimension_numbers<[1], [0], [0], [1], [0, 0, 1, 1], [], []>} : vector<16x32xbf16>, vector<32x32xbf16>, vector<16x32xf32> -> vector<16x32xf32>
    %51 = arith.addf %43, %50 : vector<16x32xf32>
    %c8 = arith.constant 8 : index
    %c0_28 = arith.constant 0 : index
    %52 = vector.load %arg10[%c8, %c0_28] : memref<26x32xf32, #tpu.memory_space<vmem>>, vector<16x32xf32>
    %53 = vector.extract_strided_slice %4 {offsets = [0, 6], sizes = [16, 1], strides = [1, 1]} : vector<16x9xf32> to vector<16x1xf32>
    %54 = vector.broadcast %53 : vector<16x1xf32> to vector<16x32xf32>
    %55 = arith.mulf %52, %54 : vector<16x32xf32>
    %56 = arith.truncf %55 : vector<16x32xf32> to vector<16x32xbf16>
    %c192 = arith.constant 192 : index
    %c0_29 = arith.constant 0 : index
    %57 = vector.load %arg3[%c192, %c0_29] : memref<288x32xbf16, #tpu.memory_space<vmem>>, vector<32x32xbf16>
    %cst_30 = arith.constant dense<0.000000e+00> : vector<16x32xf32>
    %58 = tpu.matmul %56, %57, %cst_30 {dimension_numbers = #tpu.dot_dimension_numbers<[1], [0], [0], [1], [0, 0, 1, 1], [], []>} : vector<16x32xbf16>, vector<32x32xbf16>, vector<16x32xf32> -> vector<16x32xf32>
    %59 = arith.addf %51, %58 : vector<16x32xf32>
    %c9 = arith.constant 9 : index
    %c0_31 = arith.constant 0 : index
    %60 = vector.load %arg10[%c9, %c0_31] : memref<26x32xf32, #tpu.memory_space<vmem>>, vector<16x32xf32>
    %61 = vector.extract_strided_slice %4 {offsets = [0, 7], sizes = [16, 1], strides = [1, 1]} : vector<16x9xf32> to vector<16x1xf32>
    %62 = vector.broadcast %61 : vector<16x1xf32> to vector<16x32xf32>
    %63 = arith.mulf %60, %62 : vector<16x32xf32>
    %64 = arith.truncf %63 : vector<16x32xf32> to vector<16x32xbf16>
    %c224 = arith.constant 224 : index
    %c0_32 = arith.constant 0 : index
    %65 = vector.load %arg3[%c224, %c0_32] : memref<288x32xbf16, #tpu.memory_space<vmem>>, vector<32x32xbf16>
    %cst_33 = arith.constant dense<0.000000e+00> : vector<16x32xf32>
    %66 = tpu.matmul %64, %65, %cst_33 {dimension_numbers = #tpu.dot_dimension_numbers<[1], [0], [0], [1], [0, 0, 1, 1], [], []>} : vector<16x32xbf16>, vector<32x32xbf16>, vector<16x32xf32> -> vector<16x32xf32>
    %67 = arith.addf %59, %66 : vector<16x32xf32>
    %c10 = arith.constant 10 : index
    %c0_34 = arith.constant 0 : index
    %68 = vector.load %arg10[%c10, %c0_34] : memref<26x32xf32, #tpu.memory_space<vmem>>, vector<16x32xf32>
    %69 = vector.extract_strided_slice %4 {offsets = [0, 8], sizes = [16, 1], strides = [1, 1]} : vector<16x9xf32> to vector<16x1xf32>
    %70 = vector.broadcast %69 : vector<16x1xf32> to vector<16x32xf32>
    %71 = arith.mulf %68, %70 : vector<16x32xf32>
    %72 = arith.truncf %71 : vector<16x32xf32> to vector<16x32xbf16>
    %c256 = arith.constant 256 : index
    %c0_35 = arith.constant 0 : index
    %73 = vector.load %arg3[%c256, %c0_35] : memref<288x32xbf16, #tpu.memory_space<vmem>>, vector<32x32xbf16>
    %cst_36 = arith.constant dense<0.000000e+00> : vector<16x32xf32>
    %74 = tpu.matmul %72, %73, %cst_36 {dimension_numbers = #tpu.dot_dimension_numbers<[1], [0], [0], [1], [0, 0, 1, 1], [], []>} : vector<16x32xbf16>, vector<32x32xbf16>, vector<16x32xf32> -> vector<16x32xf32>
    %75 = arith.addf %67, %74 : vector<16x32xf32>
    %c0_37 = arith.constant 0 : index
    %c0_38 = arith.constant 0 : index
    %76 = vector.load %arg4[%c0_37, %c0_38] : memref<1x32xf32, #tpu.memory_space<vmem>>, vector<1x32xf32>
    %77 = vector.broadcast %76 : vector<1x32xf32> to vector<16x32xf32>
    %78 = arith.addf %75, %77 : vector<16x32xf32>
    %cst_39 = arith.constant 0.000000e+00 : f32
    %79 = vector.broadcast %cst_39 : f32 to vector<16x32xf32>
    %80 = arith.maximumf %78, %79 : vector<16x32xf32>
    %c5_40 = arith.constant 5 : index
    %c0_41 = arith.constant 0 : index
    %81 = vector.load %arg10[%c5_40, %c0_41] : memref<26x32xf32, #tpu.memory_space<vmem>>, vector<16x32xf32>
    tpu.vector_store %arg10[%c5_40, %c0_41], %80 {strides = array<i32>} : memref<26x32xf32, #tpu.memory_space<vmem>>, vector<16x32xf32>,
    %c0_42 = arith.constant 0 : index
    %c0_43 = arith.constant 0 : index
    %82 = vector.load %arg10[%c0_42, %c0_43] : memref<26x32xf32, #tpu.memory_space<vmem>>, vector<16x32xf32>
    %83 = vector.extract_strided_slice %4 {offsets = [0, 0], sizes = [16, 1], strides = [1, 1]} : vector<16x9xf32> to vector<16x1xf32>
    %84 = vector.broadcast %83 : vector<16x1xf32> to vector<16x32xf32>
    %85 = arith.mulf %82, %84 : vector<16x32xf32>
    %86 = arith.truncf %85 : vector<16x32xf32> to vector<16x32xbf16>
    %c0_44 = arith.constant 0 : index
    %c0_45 = arith.constant 0 : index
    %87 = vector.load %arg5[%c0_44, %c0_45] : memref<288x8xbf16, #tpu.memory_space<vmem>>, vector<32x8xbf16>
    %cst_46 = arith.constant dense<0.000000e+00> : vector<16x8xf32>
    %88 = tpu.matmul %86, %87, %cst_46 {dimension_numbers = #tpu.dot_dimension_numbers<[1], [0], [0], [1], [0, 0, 1, 1], [], []>} : vector<16x32xbf16>, vector<32x8xbf16>, vector<16x8xf32> -> vector<16x8xf32>
    %c1_47 = arith.constant 1 : index
    %c0_48 = arith.constant 0 : index
    %89 = vector.load %arg10[%c1_47, %c0_48] : memref<26x32xf32, #tpu.memory_space<vmem>>, vector<16x32xf32>
    %90 = vector.extract_strided_slice %4 {offsets = [0, 1], sizes = [16, 1], strides = [1, 1]} : vector<16x9xf32> to vector<16x1xf32>
    %91 = vector.broadcast %90 : vector<16x1xf32> to vector<16x32xf32>
    %92 = arith.mulf %89, %91 : vector<16x32xf32>
    %93 = arith.truncf %92 : vector<16x32xf32> to vector<16x32xbf16>
    %c32_49 = arith.constant 32 : index
    %c0_50 = arith.constant 0 : index
    %94 = vector.load %arg5[%c32_49, %c0_50] : memref<288x8xbf16, #tpu.memory_space<vmem>>, vector<32x8xbf16>
    %cst_51 = arith.constant dense<0.000000e+00> : vector<16x8xf32>
    %95 = tpu.matmul %93, %94, %cst_51 {dimension_numbers = #tpu.dot_dimension_numbers<[1], [0], [0], [1], [0, 0, 1, 1], [], []>} : vector<16x32xbf16>, vector<32x8xbf16>, vector<16x8xf32> -> vector<16x8xf32>
    %96 = arith.addf %88, %95 : vector<16x8xf32>
    %c2_52 = arith.constant 2 : index
    %c0_53 = arith.constant 0 : index
    %97 = vector.load %arg10[%c2_52, %c0_53] : memref<26x32xf32, #tpu.memory_space<vmem>>, vector<16x32xf32>
    %98 = vector.extract_strided_slice %4 {offsets = [0, 2], sizes = [16, 1], strides = [1, 1]} : vector<16x9xf32> to vector<16x1xf32>
    %99 = vector.broadcast %98 : vector<16x1xf32> to vector<16x32xf32>
    %100 = arith.mulf %97, %99 : vector<16x32xf32>
    %101 = arith.truncf %100 : vector<16x32xf32> to vector<16x32xbf16>
    %c64_54 = arith.constant 64 : index
    %c0_55 = arith.constant 0 : index
    %102 = vector.load %arg5[%c64_54, %c0_55] : memref<288x8xbf16, #tpu.memory_space<vmem>>, vector<32x8xbf16>
    %cst_56 = arith.constant dense<0.000000e+00> : vector<16x8xf32>
    %103 = tpu.matmul %101, %102, %cst_56 {dimension_numbers = #tpu.dot_dimension_numbers<[1], [0], [0], [1], [0, 0, 1, 1], [], []>} : vector<16x32xbf16>, vector<32x8xbf16>, vector<16x8xf32> -> vector<16x8xf32>
    %104 = arith.addf %96, %103 : vector<16x8xf32>
    %c4_57 = arith.constant 4 : index
    %c0_58 = arith.constant 0 : index
    %105 = vector.load %arg10[%c4_57, %c0_58] : memref<26x32xf32, #tpu.memory_space<vmem>>, vector<16x32xf32>
    %106 = vector.extract_strided_slice %4 {offsets = [0, 3], sizes = [16, 1], strides = [1, 1]} : vector<16x9xf32> to vector<16x1xf32>
    %107 = vector.broadcast %106 : vector<16x1xf32> to vector<16x32xf32>
    %108 = arith.mulf %105, %107 : vector<16x32xf32>
    %109 = arith.truncf %108 : vector<16x32xf32> to vector<16x32xbf16>
    %c96_59 = arith.constant 96 : index
    %c0_60 = arith.constant 0 : index
    %110 = vector.load %arg5[%c96_59, %c0_60] : memref<288x8xbf16, #tpu.memory_space<vmem>>, vector<32x8xbf16>
    %cst_61 = arith.constant dense<0.000000e+00> : vector<16x8xf32>
    %111 = tpu.matmul %109, %110, %cst_61 {dimension_numbers = #tpu.dot_dimension_numbers<[1], [0], [0], [1], [0, 0, 1, 1], [], []>} : vector<16x32xbf16>, vector<32x8xbf16>, vector<16x8xf32> -> vector<16x8xf32>
    %112 = arith.addf %104, %111 : vector<16x8xf32>
    %113 = arith.truncf %80 : vector<16x32xf32> to vector<16x32xbf16>
    %c128_62 = arith.constant 128 : index
    %c0_63 = arith.constant 0 : index
    %114 = vector.load %arg5[%c128_62, %c0_63] : memref<288x8xbf16, #tpu.memory_space<vmem>>, vector<32x8xbf16>
    %cst_64 = arith.constant dense<0.000000e+00> : vector<16x8xf32>
    %115 = tpu.matmul %113, %114, %cst_64 {dimension_numbers = #tpu.dot_dimension_numbers<[1], [0], [0], [1], [0, 0, 1, 1], [], []>} : vector<16x32xbf16>, vector<32x8xbf16>, vector<16x8xf32> -> vector<16x8xf32>
    %116 = arith.addf %112, %115 : vector<16x8xf32>
    %c6_65 = arith.constant 6 : index
    %c0_66 = arith.constant 0 : index
    %117 = vector.load %arg10[%c6_65, %c0_66] : memref<26x32xf32, #tpu.memory_space<vmem>>, vector<16x32xf32>
    %118 = vector.extract_strided_slice %4 {offsets = [0, 5], sizes = [16, 1], strides = [1, 1]} : vector<16x9xf32> to vector<16x1xf32>
    %119 = vector.broadcast %118 : vector<16x1xf32> to vector<16x32xf32>
    %120 = arith.mulf %117, %119 : vector<16x32xf32>
    %121 = arith.truncf %120 : vector<16x32xf32> to vector<16x32xbf16>
    %c160_67 = arith.constant 160 : index
    %c0_68 = arith.constant 0 : index
    %122 = vector.load %arg5[%c160_67, %c0_68] : memref<288x8xbf16, #tpu.memory_space<vmem>>, vector<32x8xbf16>
    %cst_69 = arith.constant dense<0.000000e+00> : vector<16x8xf32>
    %123 = tpu.matmul %121, %122, %cst_69 {dimension_numbers = #tpu.dot_dimension_numbers<[1], [0], [0], [1], [0, 0, 1, 1], [], []>} : vector<16x32xbf16>, vector<32x8xbf16>, vector<16x8xf32> -> vector<16x8xf32>
    %124 = arith.addf %116, %123 : vector<16x8xf32>
    %c8_70 = arith.constant 8 : index
    %c0_71 = arith.constant 0 : index
    %125 = vector.load %arg10[%c8_70, %c0_71] : memref<26x32xf32, #tpu.memory_space<vmem>>, vector<16x32xf32>
    %126 = vector.extract_strided_slice %4 {offsets = [0, 6], sizes = [16, 1], strides = [1, 1]} : vector<16x9xf32> to vector<16x1xf32>
    %127 = vector.broadcast %126 : vector<16x1xf32> to vector<16x32xf32>
    %128 = arith.mulf %125, %127 : vector<16x32xf32>
    %129 = arith.truncf %128 : vector<16x32xf32> to vector<16x32xbf16>
    %c192_72 = arith.constant 192 : index
    %c0_73 = arith.constant 0 : index
    %130 = vector.load %arg5[%c192_72, %c0_73] : memref<288x8xbf16, #tpu.memory_space<vmem>>, vector<32x8xbf16>
    %cst_74 = arith.constant dense<0.000000e+00> : vector<16x8xf32>
    %131 = tpu.matmul %129, %130, %cst_74 {dimension_numbers = #tpu.dot_dimension_numbers<[1], [0], [0], [1], [0, 0, 1, 1], [], []>} : vector<16x32xbf16>, vector<32x8xbf16>, vector<16x8xf32> -> vector<16x8xf32>
    %132 = arith.addf %124, %131 : vector<16x8xf32>
    %c9_75 = arith.constant 9 : index
    %c0_76 = arith.constant 0 : index
    %133 = vector.load %arg10[%c9_75, %c0_76] : memref<26x32xf32, #tpu.memory_space<vmem>>, vector<16x32xf32>
    %134 = vector.extract_strided_slice %4 {offsets = [0, 7], sizes = [16, 1], strides = [1, 1]} : vector<16x9xf32> to vector<16x1xf32>
    %135 = vector.broadcast %134 : vector<16x1xf32> to vector<16x32xf32>
    %136 = arith.mulf %133, %135 : vector<16x32xf32>
    %137 = arith.truncf %136 : vector<16x32xf32> to vector<16x32xbf16>
    %c224_77 = arith.constant 224 : index
    %c0_78 = arith.constant 0 : index
    %138 = vector.load %arg5[%c224_77, %c0_78] : memref<288x8xbf16, #tpu.memory_space<vmem>>, vector<32x8xbf16>
    %cst_79 = arith.constant dense<0.000000e+00> : vector<16x8xf32>
    %139 = tpu.matmul %137, %138, %cst_79 {dimension_numbers = #tpu.dot_dimension_numbers<[1], [0], [0], [1], [0, 0, 1, 1], [], []>} : vector<16x32xbf16>, vector<32x8xbf16>, vector<16x8xf32> -> vector<16x8xf32>
    %140 = arith.addf %132, %139 : vector<16x8xf32>
    %c10_80 = arith.constant 10 : index
    %c0_81 = arith.constant 0 : index
    %141 = vector.load %arg10[%c10_80, %c0_81] : memref<26x32xf32, #tpu.memory_space<vmem>>, vector<16x32xf32>
    %142 = vector.extract_strided_slice %4 {offsets = [0, 8], sizes = [16, 1], strides = [1, 1]} : vector<16x9xf32> to vector<16x1xf32>
    %143 = vector.broadcast %142 : vector<16x1xf32> to vector<16x32xf32>
    %144 = arith.mulf %141, %143 : vector<16x32xf32>
    %145 = arith.truncf %144 : vector<16x32xf32> to vector<16x32xbf16>
    %c256_82 = arith.constant 256 : index
    %c0_83 = arith.constant 0 : index
    %146 = vector.load %arg5[%c256_82, %c0_83] : memref<288x8xbf16, #tpu.memory_space<vmem>>, vector<32x8xbf16>
    %cst_84 = arith.constant dense<0.000000e+00> : vector<16x8xf32>
    %147 = tpu.matmul %145, %146, %cst_84 {dimension_numbers = #tpu.dot_dimension_numbers<[1], [0], [0], [1], [0, 0, 1, 1], [], []>} : vector<16x32xbf16>, vector<32x8xbf16>, vector<16x8xf32> -> vector<16x8xf32>
    %148 = arith.addf %140, %147 : vector<16x8xf32>
    %cst_85 = arith.constant 0.000000e+00 : f32
    %149 = vector.broadcast %cst_85 : f32 to vector<16x8xf32>
    %150 = arith.maximumf %148, %149 : vector<16x8xf32>
    %151 = arith.truncf %150 : vector<16x8xf32> to vector<16x8xbf16>
    %c0_86 = arith.constant 0 : index
    %c0_87 = arith.constant 0 : index
    %152 = vector.load %arg6[%c0_86, %c0_87] : memref<8x32xbf16, #tpu.memory_space<vmem>>, vector<8x32xbf16>
    %cst_88 = arith.constant dense<0.000000e+00> : vector<16x32xf32>
    %153 = tpu.matmul %151, %152, %cst_88 {dimension_numbers = #tpu.dot_dimension_numbers<[1], [0], [0], [1], [0, 0, 1, 1], [], []>} : vector<16x8xbf16>, vector<8x32xbf16>, vector<16x32xf32> -> vector<16x32xf32>
    %154 = arith.addf %78, %153 : vector<16x32xf32>
    %cst_89 = arith.constant 0.000000e+00 : f32
    %155 = vector.broadcast %cst_89 : f32 to vector<16x32xf32>
    %156 = arith.maximumf %154, %155 : vector<16x32xf32>
    %c5_90 = arith.constant 5 : index
    %c0_91 = arith.constant 0 : index
    %157 = vector.load %arg10[%c5_90, %c0_91] : memref<26x32xf32, #tpu.memory_space<vmem>>, vector<16x32xf32>
    tpu.vector_store %arg10[%c5_90, %c0_91], %156 {strides = array<i32>} : memref<26x32xf32, #tpu.memory_space<vmem>>, vector<16x32xf32>,
    %c0_92 = arith.constant 0 : index
    %c0_93 = arith.constant 0 : index
    %158 = vector.load %arg10[%c0_92, %c0_93] : memref<26x32xf32, #tpu.memory_space<vmem>>, vector<16x32xf32>
    %159 = vector.extract_strided_slice %4 {offsets = [0, 0], sizes = [16, 1], strides = [1, 1]} : vector<16x9xf32> to vector<16x1xf32>
    %160 = vector.broadcast %159 : vector<16x1xf32> to vector<16x32xf32>
    %161 = arith.mulf %158, %160 : vector<16x32xf32>
    %162 = arith.truncf %161 : vector<16x32xf32> to vector<16x32xbf16>
    %c0_94 = arith.constant 0 : index
    %c0_95 = arith.constant 0 : index
    %163 = vector.load %arg7[%c0_94, %c0_95] : memref<288x8xbf16, #tpu.memory_space<vmem>>, vector<32x8xbf16>
    %cst_96 = arith.constant dense<0.000000e+00> : vector<16x8xf32>
    %164 = tpu.matmul %162, %163, %cst_96 {dimension_numbers = #tpu.dot_dimension_numbers<[1], [0], [0], [1], [0, 0, 1, 1], [], []>} : vector<16x32xbf16>, vector<32x8xbf16>, vector<16x8xf32> -> vector<16x8xf32>
    %c1_97 = arith.constant 1 : index
    %c0_98 = arith.constant 0 : index
    %165 = vector.load %arg10[%c1_97, %c0_98] : memref<26x32xf32, #tpu.memory_space<vmem>>, vector<16x32xf32>
    %166 = vector.extract_strided_slice %4 {offsets = [0, 1], sizes = [16, 1], strides = [1, 1]} : vector<16x9xf32> to vector<16x1xf32>
    %167 = vector.broadcast %166 : vector<16x1xf32> to vector<16x32xf32>
    %168 = arith.mulf %165, %167 : vector<16x32xf32>
    %169 = arith.truncf %168 : vector<16x32xf32> to vector<16x32xbf16>
    %c32_99 = arith.constant 32 : index
    %c0_100 = arith.constant 0 : index
    %170 = vector.load %arg7[%c32_99, %c0_100] : memref<288x8xbf16, #tpu.memory_space<vmem>>, vector<32x8xbf16>
    %cst_101 = arith.constant dense<0.000000e+00> : vector<16x8xf32>
    %171 = tpu.matmul %169, %170, %cst_101 {dimension_numbers = #tpu.dot_dimension_numbers<[1], [0], [0], [1], [0, 0, 1, 1], [], []>} : vector<16x32xbf16>, vector<32x8xbf16>, vector<16x8xf32> -> vector<16x8xf32>
    %172 = arith.addf %164, %171 : vector<16x8xf32>
    %c2_102 = arith.constant 2 : index
    %c0_103 = arith.constant 0 : index
    %173 = vector.load %arg10[%c2_102, %c0_103] : memref<26x32xf32, #tpu.memory_space<vmem>>, vector<16x32xf32>
    %174 = vector.extract_strided_slice %4 {offsets = [0, 2], sizes = [16, 1], strides = [1, 1]} : vector<16x9xf32> to vector<16x1xf32>
    %175 = vector.broadcast %174 : vector<16x1xf32> to vector<16x32xf32>
    %176 = arith.mulf %173, %175 : vector<16x32xf32>
    %177 = arith.truncf %176 : vector<16x32xf32> to vector<16x32xbf16>
    %c64_104 = arith.constant 64 : index
    %c0_105 = arith.constant 0 : index
    %178 = vector.load %arg7[%c64_104, %c0_105] : memref<288x8xbf16, #tpu.memory_space<vmem>>, vector<32x8xbf16>
    %cst_106 = arith.constant dense<0.000000e+00> : vector<16x8xf32>
    %179 = tpu.matmul %177, %178, %cst_106 {dimension_numbers = #tpu.dot_dimension_numbers<[1], [0], [0], [1], [0, 0, 1, 1], [], []>} : vector<16x32xbf16>, vector<32x8xbf16>, vector<16x8xf32> -> vector<16x8xf32>
    %180 = arith.addf %172, %179 : vector<16x8xf32>
    %c4_107 = arith.constant 4 : index
    %c0_108 = arith.constant 0 : index
    %181 = vector.load %arg10[%c4_107, %c0_108] : memref<26x32xf32, #tpu.memory_space<vmem>>, vector<16x32xf32>
    %182 = vector.extract_strided_slice %4 {offsets = [0, 3], sizes = [16, 1], strides = [1, 1]} : vector<16x9xf32> to vector<16x1xf32>
    %183 = vector.broadcast %182 : vector<16x1xf32> to vector<16x32xf32>
    %184 = arith.mulf %181, %183 : vector<16x32xf32>
    %185 = arith.truncf %184 : vector<16x32xf32> to vector<16x32xbf16>
    %c96_109 = arith.constant 96 : index
    %c0_110 = arith.constant 0 : index
    %186 = vector.load %arg7[%c96_109, %c0_110] : memref<288x8xbf16, #tpu.memory_space<vmem>>, vector<32x8xbf16>
    %cst_111 = arith.constant dense<0.000000e+00> : vector<16x8xf32>
    %187 = tpu.matmul %185, %186, %cst_111 {dimension_numbers = #tpu.dot_dimension_numbers<[1], [0], [0], [1], [0, 0, 1, 1], [], []>} : vector<16x32xbf16>, vector<32x8xbf16>, vector<16x8xf32> -> vector<16x8xf32>
    %188 = arith.addf %180, %187 : vector<16x8xf32>
    %189 = arith.truncf %156 : vector<16x32xf32> to vector<16x32xbf16>
    %c128_112 = arith.constant 128 : index
    %c0_113 = arith.constant 0 : index
    %190 = vector.load %arg7[%c128_112, %c0_113] : memref<288x8xbf16, #tpu.memory_space<vmem>>, vector<32x8xbf16>
    %cst_114 = arith.constant dense<0.000000e+00> : vector<16x8xf32>
    %191 = tpu.matmul %189, %190, %cst_114 {dimension_numbers = #tpu.dot_dimension_numbers<[1], [0], [0], [1], [0, 0, 1, 1], [], []>} : vector<16x32xbf16>, vector<32x8xbf16>, vector<16x8xf32> -> vector<16x8xf32>
    %192 = arith.addf %188, %191 : vector<16x8xf32>
    %c6_115 = arith.constant 6 : index
    %c0_116 = arith.constant 0 : index
    %193 = vector.load %arg10[%c6_115, %c0_116] : memref<26x32xf32, #tpu.memory_space<vmem>>, vector<16x32xf32>
    %194 = vector.extract_strided_slice %4 {offsets = [0, 5], sizes = [16, 1], strides = [1, 1]} : vector<16x9xf32> to vector<16x1xf32>
    %195 = vector.broadcast %194 : vector<16x1xf32> to vector<16x32xf32>
    %196 = arith.mulf %193, %195 : vector<16x32xf32>
    %197 = arith.truncf %196 : vector<16x32xf32> to vector<16x32xbf16>
    %c160_117 = arith.constant 160 : index
    %c0_118 = arith.constant 0 : index
    %198 = vector.load %arg7[%c160_117, %c0_118] : memref<288x8xbf16, #tpu.memory_space<vmem>>, vector<32x8xbf16>
    %cst_119 = arith.constant dense<0.000000e+00> : vector<16x8xf32>
    %199 = tpu.matmul %197, %198, %cst_119 {dimension_numbers = #tpu.dot_dimension_numbers<[1], [0], [0], [1], [0, 0, 1, 1], [], []>} : vector<16x32xbf16>, vector<32x8xbf16>, vector<16x8xf32> -> vector<16x8xf32>
    %200 = arith.addf %192, %199 : vector<16x8xf32>
    %c8_120 = arith.constant 8 : index
    %c0_121 = arith.constant 0 : index
    %201 = vector.load %arg10[%c8_120, %c0_121] : memref<26x32xf32, #tpu.memory_space<vmem>>, vector<16x32xf32>
    %202 = vector.extract_strided_slice %4 {offsets = [0, 6], sizes = [16, 1], strides = [1, 1]} : vector<16x9xf32> to vector<16x1xf32>
    %203 = vector.broadcast %202 : vector<16x1xf32> to vector<16x32xf32>
    %204 = arith.mulf %201, %203 : vector<16x32xf32>
    %205 = arith.truncf %204 : vector<16x32xf32> to vector<16x32xbf16>
    %c192_122 = arith.constant 192 : index
    %c0_123 = arith.constant 0 : index
    %206 = vector.load %arg7[%c192_122, %c0_123] : memref<288x8xbf16, #tpu.memory_space<vmem>>, vector<32x8xbf16>
    %cst_124 = arith.constant dense<0.000000e+00> : vector<16x8xf32>
    %207 = tpu.matmul %205, %206, %cst_124 {dimension_numbers = #tpu.dot_dimension_numbers<[1], [0], [0], [1], [0, 0, 1, 1], [], []>} : vector<16x32xbf16>, vector<32x8xbf16>, vector<16x8xf32> -> vector<16x8xf32>
    %208 = arith.addf %200, %207 : vector<16x8xf32>
    %c9_125 = arith.constant 9 : index
    %c0_126 = arith.constant 0 : index
    %209 = vector.load %arg10[%c9_125, %c0_126] : memref<26x32xf32, #tpu.memory_space<vmem>>, vector<16x32xf32>
    %210 = vector.extract_strided_slice %4 {offsets = [0, 7], sizes = [16, 1], strides = [1, 1]} : vector<16x9xf32> to vector<16x1xf32>
    %211 = vector.broadcast %210 : vector<16x1xf32> to vector<16x32xf32>
    %212 = arith.mulf %209, %211 : vector<16x32xf32>
    %213 = arith.truncf %212 : vector<16x32xf32> to vector<16x32xbf16>
    %c224_127 = arith.constant 224 : index
    %c0_128 = arith.constant 0 : index
    %214 = vector.load %arg7[%c224_127, %c0_128] : memref<288x8xbf16, #tpu.memory_space<vmem>>, vector<32x8xbf16>
    %cst_129 = arith.constant dense<0.000000e+00> : vector<16x8xf32>
    %215 = tpu.matmul %213, %214, %cst_129 {dimension_numbers = #tpu.dot_dimension_numbers<[1], [0], [0], [1], [0, 0, 1, 1], [], []>} : vector<16x32xbf16>, vector<32x8xbf16>, vector<16x8xf32> -> vector<16x8xf32>
    %216 = arith.addf %208, %215 : vector<16x8xf32>
    %c10_130 = arith.constant 10 : index
    %c0_131 = arith.constant 0 : index
    %217 = vector.load %arg10[%c10_130, %c0_131] : memref<26x32xf32, #tpu.memory_space<vmem>>, vector<16x32xf32>
    %218 = vector.extract_strided_slice %4 {offsets = [0, 8], sizes = [16, 1], strides = [1, 1]} : vector<16x9xf32> to vector<16x1xf32>
    %219 = vector.broadcast %218 : vector<16x1xf32> to vector<16x32xf32>
    %220 = arith.mulf %217, %219 : vector<16x32xf32>
    %221 = arith.truncf %220 : vector<16x32xf32> to vector<16x32xbf16>
    %c256_132 = arith.constant 256 : index
    %c0_133 = arith.constant 0 : index
    %222 = vector.load %arg7[%c256_132, %c0_133] : memref<288x8xbf16, #tpu.memory_space<vmem>>, vector<32x8xbf16>
    %cst_134 = arith.constant dense<0.000000e+00> : vector<16x8xf32>
    %223 = tpu.matmul %221, %222, %cst_134 {dimension_numbers = #tpu.dot_dimension_numbers<[1], [0], [0], [1], [0, 0, 1, 1], [], []>} : vector<16x32xbf16>, vector<32x8xbf16>, vector<16x8xf32> -> vector<16x8xf32>
    %224 = arith.addf %216, %223 : vector<16x8xf32>
    %cst_135 = arith.constant 0.000000e+00 : f32
    %225 = vector.broadcast %cst_135 : f32 to vector<16x8xf32>
    %226 = arith.maximumf %224, %225 : vector<16x8xf32>
    %227 = arith.truncf %226 : vector<16x8xf32> to vector<16x8xbf16>
    %c0_136 = arith.constant 0 : index
    %c0_137 = arith.constant 0 : index
    %228 = vector.load %arg8[%c0_136, %c0_137] : memref<8x32xbf16, #tpu.memory_space<vmem>>, vector<8x32xbf16>
    %cst_138 = arith.constant dense<0.000000e+00> : vector<16x32xf32>
    %229 = tpu.matmul %227, %228, %cst_138 {dimension_numbers = #tpu.dot_dimension_numbers<[1], [0], [0], [1], [0, 0, 1, 1], [], []>} : vector<16x8xbf16>, vector<8x32xbf16>, vector<16x32xf32> -> vector<16x32xf32>
    %230 = arith.addf %154, %229 : vector<16x32xf32>
    %cst_139 = arith.constant 0.000000e+00 : f32
    %231 = vector.broadcast %cst_139 : f32 to vector<16x32xf32>
    %232 = arith.maximumf %230, %231 : vector<16x32xf32>
    %c0_140 = arith.constant 0 : index
    %c0_141 = arith.constant 0 : index
    %c0_142 = arith.constant 0 : index
    %233 = vector.load %arg9[%c0_140, %c0_141, %c0_142] : memref<1x16x32xf32, #tpu.memory_space<vmem>>, vector<1x16x32xf32>
    %234 = vector.shape_cast %233 : vector<1x16x32xf32> to vector<16x32xf32>
    %235 = vector.shape_cast %232 : vector<16x32xf32> to vector<1x16x32xf32>
    tpu.vector_store %arg9[%c0_140, %c0_141, %c0_142], %235 {strides = array<i32>} : memref<1x16x32xf32, #tpu.memory_space<vmem>>, vector<1x16x32xf32>,
    return
  }
  func.func @transform_0(%arg0: i32) -> (i32, i32, i32) {
    %c0_i32 = arith.constant 0 : i32
    %c0_i32_0 = arith.constant 0 : i32
    %c0_i32_1 = arith.constant 0 : i32
    return %arg0, %c0_i32, %c0_i32_0 : i32, i32, i32
  }
  func.func @transform_1(%arg0: i32) -> (i32, i32) {
    %c0_i32 = arith.constant 0 : i32
    %c0_i32_0 = arith.constant 0 : i32
    %c0_i32_1 = arith.constant 0 : i32
    return %c0_i32, %c0_i32_0 : i32, i32
  }
  func.func @transform_2(%arg0: i32) -> (i32, i32) {
    %c0_i32 = arith.constant 0 : i32
    %c0_i32_0 = arith.constant 0 : i32
    %c0_i32_1 = arith.constant 0 : i32
    return %c0_i32, %c0_i32_0 : i32, i32
  }
  func.func @transform_3(%arg0: i32) -> (i32, i32) {
    %c0_i32 = arith.constant 0 : i32
    %c0_i32_0 = arith.constant 0 : i32
    %c0_i32_1 = arith.constant 0 : i32
    return %c0_i32, %c0_i32_0 : i32, i32
  }
  func.func @transform_4(%arg0: i32) -> (i32, i32) {
    %c0_i32 = arith.constant 0 : i32
    %c0_i32_0 = arith.constant 0 : i32
    %c0_i32_1 = arith.constant 0 : i32
    return %c0_i32, %c0_i32_0 : i32, i32
  }
  func.func @transform_5(%arg0: i32) -> (i32, i32) {
    %c0_i32 = arith.constant 0 : i32
    %c0_i32_0 = arith.constant 0 : i32
    %c0_i32_1 = arith.constant 0 : i32
    return %c0_i32, %c0_i32_0 : i32, i32
  }
  func.func @transform_6(%arg0: i32) -> (i32, i32) {
    %c0_i32 = arith.constant 0 : i32
    %c0_i32_0 = arith.constant 0 : i32
    %c0_i32_1 = arith.constant 0 : i32
    return %c0_i32, %c0_i32_0 : i32, i32
  }
  func.func @transform_7(%arg0: i32) -> (i32, i32) {
    %c0_i32 = arith.constant 0 : i32
    %c0_i32_0 = arith.constant 0 : i32
    %c0_i32_1 = arith.constant 0 : i32
    return %c0_i32, %c0_i32_0 : i32, i32
  }
  func.func @transform_8(%arg0: i32) -> (i32, i32, i32) {
    %c0_i32 = arith.constant 0 : i32
    %c0_i32_0 = arith.constant 0 : i32
    %c0_i32_1 = arith.constant 0 : i32
    return %arg0, %c0_i32, %c0_i32_0 : i32, i32, i32
  }
}

module attributes {stable_mosaic.version = 11 : i64} {
  func.func @_stack_kernel(%arg0: i32, %arg1: memref<1x16x8xbf16, #tpu.memory_space<vmem>>, %arg2: memref<16x9xf32, #tpu.memory_space<vmem>>, %arg3: memref<72x32xbf16, #tpu.memory_space<vmem>>, %arg4: memref<1x32xf32, #tpu.memory_space<vmem>>, %arg5: memref<288x8xbf16, #tpu.memory_space<vmem>>, %arg6: memref<8x32xbf16, #tpu.memory_space<vmem>>, %arg7: memref<288x8xbf16, #tpu.memory_space<vmem>>, %arg8: memref<8x32xbf16, #tpu.memory_space<vmem>>, %arg9: memref<1x16x32xbf16, #tpu.memory_space<vmem>>, %arg10: memref<26x32xf32, #tpu.memory_space<vmem>>) attributes {dimension_semantics = [#tpu.dimension_semantics<parallel>], iteration_bounds = array<i64: 2>, scalar_prefetch = 0 : i64, scratch_operands = 1 : i64, tpu.core_type = #tpu.core_type<tc>, window_params = [{transform_indices = @transform_0, window_bounds = array<i64: 1, 16, 8>}, {pipeline_mode = #tpu.pipeline_mode<synchronous>, transform_indices = @transform_1, window_bounds = array<i64: 16, 9>}, {pipeline_mode = #tpu.pipeline_mode<synchronous>, transform_indices = @transform_2, window_bounds = array<i64: 72, 32>}, {pipeline_mode = #tpu.pipeline_mode<synchronous>, transform_indices = @transform_3, window_bounds = array<i64: 1, 32>}, {pipeline_mode = #tpu.pipeline_mode<synchronous>, transform_indices = @transform_4, window_bounds = array<i64: 288, 8>}, {pipeline_mode = #tpu.pipeline_mode<synchronous>, transform_indices = @transform_5, window_bounds = array<i64: 8, 32>}, {pipeline_mode = #tpu.pipeline_mode<synchronous>, transform_indices = @transform_6, window_bounds = array<i64: 288, 8>}, {pipeline_mode = #tpu.pipeline_mode<synchronous>, transform_indices = @transform_7, window_bounds = array<i64: 8, 32>}, {transform_indices = @transform_8, window_bounds = array<i64: 1, 16, 32>}]} {
    %cst = arith.constant 0.000000e+00 : f32
    %0 = vector.broadcast %cst : f32 to vector<5x32xf32>
    %c0 = arith.constant 0 : index
    %c0_0 = arith.constant 0 : index
    %1 = vector.load %arg10[%c0, %c0_0] : memref<26x32xf32, #tpu.memory_space<vmem>>, vector<5x32xf32>
    tpu.vector_store %arg10[%c0, %c0_0], %0 {strides = array<i32>} : memref<26x32xf32, #tpu.memory_space<vmem>>, vector<5x32xf32>,
    %cst_1 = arith.constant 0.000000e+00 : f32
    %2 = vector.broadcast %cst_1 : f32 to vector<5x32xf32>
    %c21 = arith.constant 21 : index
    %c0_2 = arith.constant 0 : index
    %3 = vector.load %arg10[%c21, %c0_2] : memref<26x32xf32, #tpu.memory_space<vmem>>, vector<5x32xf32>
    tpu.vector_store %arg10[%c21, %c0_2], %2 {strides = array<i32>} : memref<26x32xf32, #tpu.memory_space<vmem>>, vector<5x32xf32>,
    %c0_3 = arith.constant 0 : index
    %c0_4 = arith.constant 0 : index
    %4 = vector.load %arg2[%c0_3, %c0_4] : memref<16x9xf32, #tpu.memory_space<vmem>>, vector<16x9xf32>
    %c0_5 = arith.constant 0 : index
    %c0_6 = arith.constant 0 : index
    %c0_7 = arith.constant 0 : index
    %5 = vector.load %arg1[%c0_5, %c0_6, %c0_7] : memref<1x16x8xbf16, #tpu.memory_space<vmem>>, vector<1x16x8xbf16>
    %6 = vector.shape_cast %5 : vector<1x16x8xbf16> to vector<16x8xbf16>
    %7 = arith.extf %6 : vector<16x8xbf16> to vector<16x8xf32>
    %c5 = arith.constant 5 : index
    %c0_8 = arith.constant 0 : index
    %8 = vector.load %arg10[%c5, %c0_8] : memref<26x32xf32, #tpu.memory_space<vmem>>, vector<16x8xf32>
    tpu.vector_store %arg10[%c5, %c0_8], %7 {strides = array<i32>} : memref<26x32xf32, #tpu.memory_space<vmem>>, vector<16x8xf32>,
    %c0_9 = arith.constant 0 : index
    %c0_10 = arith.constant 0 : index
    %9 = vector.load %arg10[%c0_9, %c0_10] : memref<26x32xf32, #tpu.memory_space<vmem>>, vector<16x8xf32>
    %10 = vector.extract_strided_slice %4 {offsets = [0, 0], sizes = [16, 1], strides = [1, 1]} : vector<16x9xf32> to vector<16x1xf32>
    %11 = vector.broadcast %10 : vector<16x1xf32> to vector<16x8xf32>
    %12 = arith.mulf %9, %11 : vector<16x8xf32>
    %13 = arith.truncf %12 : vector<16x8xf32> to vector<16x8xbf16>
    %c0_11 = arith.constant 0 : index
    %c0_12 = arith.constant 0 : index
    %14 = vector.load %arg3[%c0_11, %c0_12] : memref<72x32xbf16, #tpu.memory_space<vmem>>, vector<8x32xbf16>
    %cst_13 = arith.constant dense<0.000000e+00> : vector<16x32xf32>
    %15 = tpu.matmul %13, %14, %cst_13 {dimension_numbers = #tpu.dot_dimension_numbers<[1], [0], [0], [1], [0, 0, 1, 1], [], []>} : vector<16x8xbf16>, vector<8x32xbf16>, vector<16x32xf32> -> vector<16x32xf32>
    %c1 = arith.constant 1 : index
    %c0_14 = arith.constant 0 : index
    %16 = vector.load %arg10[%c1, %c0_14] : memref<26x32xf32, #tpu.memory_space<vmem>>, vector<16x8xf32>
    %17 = vector.extract_strided_slice %4 {offsets = [0, 1], sizes = [16, 1], strides = [1, 1]} : vector<16x9xf32> to vector<16x1xf32>
    %18 = vector.broadcast %17 : vector<16x1xf32> to vector<16x8xf32>
    %19 = arith.mulf %16, %18 : vector<16x8xf32>
    %20 = arith.truncf %19 : vector<16x8xf32> to vector<16x8xbf16>
    %c8 = arith.constant 8 : index
    %c0_15 = arith.constant 0 : index
    %21 = vector.load %arg3[%c8, %c0_15] : memref<72x32xbf16, #tpu.memory_space<vmem>>, vector<8x32xbf16>
    %cst_16 = arith.constant dense<0.000000e+00> : vector<16x32xf32>
    %22 = tpu.matmul %20, %21, %cst_16 {dimension_numbers = #tpu.dot_dimension_numbers<[1], [0], [0], [1], [0, 0, 1, 1], [], []>} : vector<16x8xbf16>, vector<8x32xbf16>, vector<16x32xf32> -> vector<16x32xf32>
    %23 = arith.addf %15, %22 : vector<16x32xf32>
    %c2 = arith.constant 2 : index
    %c0_17 = arith.constant 0 : index
    %24 = vector.load %arg10[%c2, %c0_17] : memref<26x32xf32, #tpu.memory_space<vmem>>, vector<16x8xf32>
    %25 = vector.extract_strided_slice %4 {offsets = [0, 2], sizes = [16, 1], strides = [1, 1]} : vector<16x9xf32> to vector<16x1xf32>
    %26 = vector.broadcast %25 : vector<16x1xf32> to vector<16x8xf32>
    %27 = arith.mulf %24, %26 : vector<16x8xf32>
    %28 = arith.truncf %27 : vector<16x8xf32> to vector<16x8xbf16>
    %c16 = arith.constant 16 : index
    %c0_18 = arith.constant 0 : index
    %29 = vector.load %arg3[%c16, %c0_18] : memref<72x32xbf16, #tpu.memory_space<vmem>>, vector<8x32xbf16>
    %cst_19 = arith.constant dense<0.000000e+00> : vector<16x32xf32>
    %30 = tpu.matmul %28, %29, %cst_19 {dimension_numbers = #tpu.dot_dimension_numbers<[1], [0], [0], [1], [0, 0, 1, 1], [], []>} : vector<16x8xbf16>, vector<8x32xbf16>, vector<16x32xf32> -> vector<16x32xf32>
    %31 = arith.addf %23, %30 : vector<16x32xf32>
    %c4 = arith.constant 4 : index
    %c0_20 = arith.constant 0 : index
    %32 = vector.load %arg10[%c4, %c0_20] : memref<26x32xf32, #tpu.memory_space<vmem>>, vector<16x8xf32>
    %33 = vector.extract_strided_slice %4 {offsets = [0, 3], sizes = [16, 1], strides = [1, 1]} : vector<16x9xf32> to vector<16x1xf32>
    %34 = vector.broadcast %33 : vector<16x1xf32> to vector<16x8xf32>
    %35 = arith.mulf %32, %34 : vector<16x8xf32>
    %36 = arith.truncf %35 : vector<16x8xf32> to vector<16x8xbf16>
    %c24 = arith.constant 24 : index
    %c0_21 = arith.constant 0 : index
    %37 = vector.load %arg3[%c24, %c0_21] : memref<72x32xbf16, #tpu.memory_space<vmem>>, vector<8x32xbf16>
    %cst_22 = arith.constant dense<0.000000e+00> : vector<16x32xf32>
    %38 = tpu.matmul %36, %37, %cst_22 {dimension_numbers = #tpu.dot_dimension_numbers<[1], [0], [0], [1], [0, 0, 1, 1], [], []>} : vector<16x8xbf16>, vector<8x32xbf16>, vector<16x32xf32> -> vector<16x32xf32>
    %39 = arith.addf %31, %38 : vector<16x32xf32>
    %40 = arith.truncf %7 : vector<16x8xf32> to vector<16x8xbf16>
    %c32 = arith.constant 32 : index
    %c0_23 = arith.constant 0 : index
    %41 = vector.load %arg3[%c32, %c0_23] : memref<72x32xbf16, #tpu.memory_space<vmem>>, vector<8x32xbf16>
    %cst_24 = arith.constant dense<0.000000e+00> : vector<16x32xf32>
    %42 = tpu.matmul %40, %41, %cst_24 {dimension_numbers = #tpu.dot_dimension_numbers<[1], [0], [0], [1], [0, 0, 1, 1], [], []>} : vector<16x8xbf16>, vector<8x32xbf16>, vector<16x32xf32> -> vector<16x32xf32>
    %43 = arith.addf %39, %42 : vector<16x32xf32>
    %c6 = arith.constant 6 : index
    %c0_25 = arith.constant 0 : index
    %44 = vector.load %arg10[%c6, %c0_25] : memref<26x32xf32, #tpu.memory_space<vmem>>, vector<16x8xf32>
    %45 = vector.extract_strided_slice %4 {offsets = [0, 5], sizes = [16, 1], strides = [1, 1]} : vector<16x9xf32> to vector<16x1xf32>
    %46 = vector.broadcast %45 : vector<16x1xf32> to vector<16x8xf32>
    %47 = arith.mulf %44, %46 : vector<16x8xf32>
    %48 = arith.truncf %47 : vector<16x8xf32> to vector<16x8xbf16>
    %c40 = arith.constant 40 : index
    %c0_26 = arith.constant 0 : index
    %49 = vector.load %arg3[%c40, %c0_26] : memref<72x32xbf16, #tpu.memory_space<vmem>>, vector<8x32xbf16>
    %cst_27 = arith.constant dense<0.000000e+00> : vector<16x32xf32>
    %50 = tpu.matmul %48, %49, %cst_27 {dimension_numbers = #tpu.dot_dimension_numbers<[1], [0], [0], [1], [0, 0, 1, 1], [], []>} : vector<16x8xbf16>, vector<8x32xbf16>, vector<16x32xf32> -> vector<16x32xf32>
    %51 = arith.addf %43, %50 : vector<16x32xf32>
    %c8_28 = arith.constant 8 : index
    %c0_29 = arith.constant 0 : index
    %52 = vector.load %arg10[%c8_28, %c0_29] : memref<26x32xf32, #tpu.memory_space<vmem>>, vector<16x8xf32>
    %53 = vector.extract_strided_slice %4 {offsets = [0, 6], sizes = [16, 1], strides = [1, 1]} : vector<16x9xf32> to vector<16x1xf32>
    %54 = vector.broadcast %53 : vector<16x1xf32> to vector<16x8xf32>
    %55 = arith.mulf %52, %54 : vector<16x8xf32>
    %56 = arith.truncf %55 : vector<16x8xf32> to vector<16x8xbf16>
    %c48 = arith.constant 48 : index
    %c0_30 = arith.constant 0 : index
    %57 = vector.load %arg3[%c48, %c0_30] : memref<72x32xbf16, #tpu.memory_space<vmem>>, vector<8x32xbf16>
    %cst_31 = arith.constant dense<0.000000e+00> : vector<16x32xf32>
    %58 = tpu.matmul %56, %57, %cst_31 {dimension_numbers = #tpu.dot_dimension_numbers<[1], [0], [0], [1], [0, 0, 1, 1], [], []>} : vector<16x8xbf16>, vector<8x32xbf16>, vector<16x32xf32> -> vector<16x32xf32>
    %59 = arith.addf %51, %58 : vector<16x32xf32>
    %c9 = arith.constant 9 : index
    %c0_32 = arith.constant 0 : index
    %60 = vector.load %arg10[%c9, %c0_32] : memref<26x32xf32, #tpu.memory_space<vmem>>, vector<16x8xf32>
    %61 = vector.extract_strided_slice %4 {offsets = [0, 7], sizes = [16, 1], strides = [1, 1]} : vector<16x9xf32> to vector<16x1xf32>
    %62 = vector.broadcast %61 : vector<16x1xf32> to vector<16x8xf32>
    %63 = arith.mulf %60, %62 : vector<16x8xf32>
    %64 = arith.truncf %63 : vector<16x8xf32> to vector<16x8xbf16>
    %c56 = arith.constant 56 : index
    %c0_33 = arith.constant 0 : index
    %65 = vector.load %arg3[%c56, %c0_33] : memref<72x32xbf16, #tpu.memory_space<vmem>>, vector<8x32xbf16>
    %cst_34 = arith.constant dense<0.000000e+00> : vector<16x32xf32>
    %66 = tpu.matmul %64, %65, %cst_34 {dimension_numbers = #tpu.dot_dimension_numbers<[1], [0], [0], [1], [0, 0, 1, 1], [], []>} : vector<16x8xbf16>, vector<8x32xbf16>, vector<16x32xf32> -> vector<16x32xf32>
    %67 = arith.addf %59, %66 : vector<16x32xf32>
    %c10 = arith.constant 10 : index
    %c0_35 = arith.constant 0 : index
    %68 = vector.load %arg10[%c10, %c0_35] : memref<26x32xf32, #tpu.memory_space<vmem>>, vector<16x8xf32>
    %69 = vector.extract_strided_slice %4 {offsets = [0, 8], sizes = [16, 1], strides = [1, 1]} : vector<16x9xf32> to vector<16x1xf32>
    %70 = vector.broadcast %69 : vector<16x1xf32> to vector<16x8xf32>
    %71 = arith.mulf %68, %70 : vector<16x8xf32>
    %72 = arith.truncf %71 : vector<16x8xf32> to vector<16x8xbf16>
    %c64 = arith.constant 64 : index
    %c0_36 = arith.constant 0 : index
    %73 = vector.load %arg3[%c64, %c0_36] : memref<72x32xbf16, #tpu.memory_space<vmem>>, vector<8x32xbf16>
    %cst_37 = arith.constant dense<0.000000e+00> : vector<16x32xf32>
    %74 = tpu.matmul %72, %73, %cst_37 {dimension_numbers = #tpu.dot_dimension_numbers<[1], [0], [0], [1], [0, 0, 1, 1], [], []>} : vector<16x8xbf16>, vector<8x32xbf16>, vector<16x32xf32> -> vector<16x32xf32>
    %75 = arith.addf %67, %74 : vector<16x32xf32>
    %c0_38 = arith.constant 0 : index
    %c0_39 = arith.constant 0 : index
    %76 = vector.load %arg4[%c0_38, %c0_39] : memref<1x32xf32, #tpu.memory_space<vmem>>, vector<1x32xf32>
    %77 = vector.broadcast %76 : vector<1x32xf32> to vector<16x32xf32>
    %78 = arith.addf %75, %77 : vector<16x32xf32>
    %cst_40 = arith.constant 0.000000e+00 : f32
    %79 = vector.broadcast %cst_40 : f32 to vector<16x32xf32>
    %80 = arith.maximumf %78, %79 : vector<16x32xf32>
    %c5_41 = arith.constant 5 : index
    %c0_42 = arith.constant 0 : index
    %81 = vector.load %arg10[%c5_41, %c0_42] : memref<26x32xf32, #tpu.memory_space<vmem>>, vector<16x32xf32>
    tpu.vector_store %arg10[%c5_41, %c0_42], %80 {strides = array<i32>} : memref<26x32xf32, #tpu.memory_space<vmem>>, vector<16x32xf32>,
    %c0_43 = arith.constant 0 : index
    %c0_44 = arith.constant 0 : index
    %82 = vector.load %arg10[%c0_43, %c0_44] : memref<26x32xf32, #tpu.memory_space<vmem>>, vector<16x32xf32>
    %83 = vector.extract_strided_slice %4 {offsets = [0, 0], sizes = [16, 1], strides = [1, 1]} : vector<16x9xf32> to vector<16x1xf32>
    %84 = vector.broadcast %83 : vector<16x1xf32> to vector<16x32xf32>
    %85 = arith.mulf %82, %84 : vector<16x32xf32>
    %86 = arith.truncf %85 : vector<16x32xf32> to vector<16x32xbf16>
    %c0_45 = arith.constant 0 : index
    %c0_46 = arith.constant 0 : index
    %87 = vector.load %arg5[%c0_45, %c0_46] : memref<288x8xbf16, #tpu.memory_space<vmem>>, vector<32x8xbf16>
    %cst_47 = arith.constant dense<0.000000e+00> : vector<16x8xf32>
    %88 = tpu.matmul %86, %87, %cst_47 {dimension_numbers = #tpu.dot_dimension_numbers<[1], [0], [0], [1], [0, 0, 1, 1], [], []>} : vector<16x32xbf16>, vector<32x8xbf16>, vector<16x8xf32> -> vector<16x8xf32>
    %c1_48 = arith.constant 1 : index
    %c0_49 = arith.constant 0 : index
    %89 = vector.load %arg10[%c1_48, %c0_49] : memref<26x32xf32, #tpu.memory_space<vmem>>, vector<16x32xf32>
    %90 = vector.extract_strided_slice %4 {offsets = [0, 1], sizes = [16, 1], strides = [1, 1]} : vector<16x9xf32> to vector<16x1xf32>
    %91 = vector.broadcast %90 : vector<16x1xf32> to vector<16x32xf32>
    %92 = arith.mulf %89, %91 : vector<16x32xf32>
    %93 = arith.truncf %92 : vector<16x32xf32> to vector<16x32xbf16>
    %c32_50 = arith.constant 32 : index
    %c0_51 = arith.constant 0 : index
    %94 = vector.load %arg5[%c32_50, %c0_51] : memref<288x8xbf16, #tpu.memory_space<vmem>>, vector<32x8xbf16>
    %cst_52 = arith.constant dense<0.000000e+00> : vector<16x8xf32>
    %95 = tpu.matmul %93, %94, %cst_52 {dimension_numbers = #tpu.dot_dimension_numbers<[1], [0], [0], [1], [0, 0, 1, 1], [], []>} : vector<16x32xbf16>, vector<32x8xbf16>, vector<16x8xf32> -> vector<16x8xf32>
    %96 = arith.addf %88, %95 : vector<16x8xf32>
    %c2_53 = arith.constant 2 : index
    %c0_54 = arith.constant 0 : index
    %97 = vector.load %arg10[%c2_53, %c0_54] : memref<26x32xf32, #tpu.memory_space<vmem>>, vector<16x32xf32>
    %98 = vector.extract_strided_slice %4 {offsets = [0, 2], sizes = [16, 1], strides = [1, 1]} : vector<16x9xf32> to vector<16x1xf32>
    %99 = vector.broadcast %98 : vector<16x1xf32> to vector<16x32xf32>
    %100 = arith.mulf %97, %99 : vector<16x32xf32>
    %101 = arith.truncf %100 : vector<16x32xf32> to vector<16x32xbf16>
    %c64_55 = arith.constant 64 : index
    %c0_56 = arith.constant 0 : index
    %102 = vector.load %arg5[%c64_55, %c0_56] : memref<288x8xbf16, #tpu.memory_space<vmem>>, vector<32x8xbf16>
    %cst_57 = arith.constant dense<0.000000e+00> : vector<16x8xf32>
    %103 = tpu.matmul %101, %102, %cst_57 {dimension_numbers = #tpu.dot_dimension_numbers<[1], [0], [0], [1], [0, 0, 1, 1], [], []>} : vector<16x32xbf16>, vector<32x8xbf16>, vector<16x8xf32> -> vector<16x8xf32>
    %104 = arith.addf %96, %103 : vector<16x8xf32>
    %c4_58 = arith.constant 4 : index
    %c0_59 = arith.constant 0 : index
    %105 = vector.load %arg10[%c4_58, %c0_59] : memref<26x32xf32, #tpu.memory_space<vmem>>, vector<16x32xf32>
    %106 = vector.extract_strided_slice %4 {offsets = [0, 3], sizes = [16, 1], strides = [1, 1]} : vector<16x9xf32> to vector<16x1xf32>
    %107 = vector.broadcast %106 : vector<16x1xf32> to vector<16x32xf32>
    %108 = arith.mulf %105, %107 : vector<16x32xf32>
    %109 = arith.truncf %108 : vector<16x32xf32> to vector<16x32xbf16>
    %c96 = arith.constant 96 : index
    %c0_60 = arith.constant 0 : index
    %110 = vector.load %arg5[%c96, %c0_60] : memref<288x8xbf16, #tpu.memory_space<vmem>>, vector<32x8xbf16>
    %cst_61 = arith.constant dense<0.000000e+00> : vector<16x8xf32>
    %111 = tpu.matmul %109, %110, %cst_61 {dimension_numbers = #tpu.dot_dimension_numbers<[1], [0], [0], [1], [0, 0, 1, 1], [], []>} : vector<16x32xbf16>, vector<32x8xbf16>, vector<16x8xf32> -> vector<16x8xf32>
    %112 = arith.addf %104, %111 : vector<16x8xf32>
    %113 = arith.truncf %80 : vector<16x32xf32> to vector<16x32xbf16>
    %c128 = arith.constant 128 : index
    %c0_62 = arith.constant 0 : index
    %114 = vector.load %arg5[%c128, %c0_62] : memref<288x8xbf16, #tpu.memory_space<vmem>>, vector<32x8xbf16>
    %cst_63 = arith.constant dense<0.000000e+00> : vector<16x8xf32>
    %115 = tpu.matmul %113, %114, %cst_63 {dimension_numbers = #tpu.dot_dimension_numbers<[1], [0], [0], [1], [0, 0, 1, 1], [], []>} : vector<16x32xbf16>, vector<32x8xbf16>, vector<16x8xf32> -> vector<16x8xf32>
    %116 = arith.addf %112, %115 : vector<16x8xf32>
    %c6_64 = arith.constant 6 : index
    %c0_65 = arith.constant 0 : index
    %117 = vector.load %arg10[%c6_64, %c0_65] : memref<26x32xf32, #tpu.memory_space<vmem>>, vector<16x32xf32>
    %118 = vector.extract_strided_slice %4 {offsets = [0, 5], sizes = [16, 1], strides = [1, 1]} : vector<16x9xf32> to vector<16x1xf32>
    %119 = vector.broadcast %118 : vector<16x1xf32> to vector<16x32xf32>
    %120 = arith.mulf %117, %119 : vector<16x32xf32>
    %121 = arith.truncf %120 : vector<16x32xf32> to vector<16x32xbf16>
    %c160 = arith.constant 160 : index
    %c0_66 = arith.constant 0 : index
    %122 = vector.load %arg5[%c160, %c0_66] : memref<288x8xbf16, #tpu.memory_space<vmem>>, vector<32x8xbf16>
    %cst_67 = arith.constant dense<0.000000e+00> : vector<16x8xf32>
    %123 = tpu.matmul %121, %122, %cst_67 {dimension_numbers = #tpu.dot_dimension_numbers<[1], [0], [0], [1], [0, 0, 1, 1], [], []>} : vector<16x32xbf16>, vector<32x8xbf16>, vector<16x8xf32> -> vector<16x8xf32>
    %124 = arith.addf %116, %123 : vector<16x8xf32>
    %c8_68 = arith.constant 8 : index
    %c0_69 = arith.constant 0 : index
    %125 = vector.load %arg10[%c8_68, %c0_69] : memref<26x32xf32, #tpu.memory_space<vmem>>, vector<16x32xf32>
    %126 = vector.extract_strided_slice %4 {offsets = [0, 6], sizes = [16, 1], strides = [1, 1]} : vector<16x9xf32> to vector<16x1xf32>
    %127 = vector.broadcast %126 : vector<16x1xf32> to vector<16x32xf32>
    %128 = arith.mulf %125, %127 : vector<16x32xf32>
    %129 = arith.truncf %128 : vector<16x32xf32> to vector<16x32xbf16>
    %c192 = arith.constant 192 : index
    %c0_70 = arith.constant 0 : index
    %130 = vector.load %arg5[%c192, %c0_70] : memref<288x8xbf16, #tpu.memory_space<vmem>>, vector<32x8xbf16>
    %cst_71 = arith.constant dense<0.000000e+00> : vector<16x8xf32>
    %131 = tpu.matmul %129, %130, %cst_71 {dimension_numbers = #tpu.dot_dimension_numbers<[1], [0], [0], [1], [0, 0, 1, 1], [], []>} : vector<16x32xbf16>, vector<32x8xbf16>, vector<16x8xf32> -> vector<16x8xf32>
    %132 = arith.addf %124, %131 : vector<16x8xf32>
    %c9_72 = arith.constant 9 : index
    %c0_73 = arith.constant 0 : index
    %133 = vector.load %arg10[%c9_72, %c0_73] : memref<26x32xf32, #tpu.memory_space<vmem>>, vector<16x32xf32>
    %134 = vector.extract_strided_slice %4 {offsets = [0, 7], sizes = [16, 1], strides = [1, 1]} : vector<16x9xf32> to vector<16x1xf32>
    %135 = vector.broadcast %134 : vector<16x1xf32> to vector<16x32xf32>
    %136 = arith.mulf %133, %135 : vector<16x32xf32>
    %137 = arith.truncf %136 : vector<16x32xf32> to vector<16x32xbf16>
    %c224 = arith.constant 224 : index
    %c0_74 = arith.constant 0 : index
    %138 = vector.load %arg5[%c224, %c0_74] : memref<288x8xbf16, #tpu.memory_space<vmem>>, vector<32x8xbf16>
    %cst_75 = arith.constant dense<0.000000e+00> : vector<16x8xf32>
    %139 = tpu.matmul %137, %138, %cst_75 {dimension_numbers = #tpu.dot_dimension_numbers<[1], [0], [0], [1], [0, 0, 1, 1], [], []>} : vector<16x32xbf16>, vector<32x8xbf16>, vector<16x8xf32> -> vector<16x8xf32>
    %140 = arith.addf %132, %139 : vector<16x8xf32>
    %c10_76 = arith.constant 10 : index
    %c0_77 = arith.constant 0 : index
    %141 = vector.load %arg10[%c10_76, %c0_77] : memref<26x32xf32, #tpu.memory_space<vmem>>, vector<16x32xf32>
    %142 = vector.extract_strided_slice %4 {offsets = [0, 8], sizes = [16, 1], strides = [1, 1]} : vector<16x9xf32> to vector<16x1xf32>
    %143 = vector.broadcast %142 : vector<16x1xf32> to vector<16x32xf32>
    %144 = arith.mulf %141, %143 : vector<16x32xf32>
    %145 = arith.truncf %144 : vector<16x32xf32> to vector<16x32xbf16>
    %c256 = arith.constant 256 : index
    %c0_78 = arith.constant 0 : index
    %146 = vector.load %arg5[%c256, %c0_78] : memref<288x8xbf16, #tpu.memory_space<vmem>>, vector<32x8xbf16>
    %cst_79 = arith.constant dense<0.000000e+00> : vector<16x8xf32>
    %147 = tpu.matmul %145, %146, %cst_79 {dimension_numbers = #tpu.dot_dimension_numbers<[1], [0], [0], [1], [0, 0, 1, 1], [], []>} : vector<16x32xbf16>, vector<32x8xbf16>, vector<16x8xf32> -> vector<16x8xf32>
    %148 = arith.addf %140, %147 : vector<16x8xf32>
    %cst_80 = arith.constant 0.000000e+00 : f32
    %149 = vector.broadcast %cst_80 : f32 to vector<16x8xf32>
    %150 = arith.maximumf %148, %149 : vector<16x8xf32>
    %151 = arith.truncf %150 : vector<16x8xf32> to vector<16x8xbf16>
    %c0_81 = arith.constant 0 : index
    %c0_82 = arith.constant 0 : index
    %152 = vector.load %arg6[%c0_81, %c0_82] : memref<8x32xbf16, #tpu.memory_space<vmem>>, vector<8x32xbf16>
    %cst_83 = arith.constant dense<0.000000e+00> : vector<16x32xf32>
    %153 = tpu.matmul %151, %152, %cst_83 {dimension_numbers = #tpu.dot_dimension_numbers<[1], [0], [0], [1], [0, 0, 1, 1], [], []>} : vector<16x8xbf16>, vector<8x32xbf16>, vector<16x32xf32> -> vector<16x32xf32>
    %154 = arith.addf %78, %153 : vector<16x32xf32>
    %cst_84 = arith.constant 0.000000e+00 : f32
    %155 = vector.broadcast %cst_84 : f32 to vector<16x32xf32>
    %156 = arith.maximumf %154, %155 : vector<16x32xf32>
    %c5_85 = arith.constant 5 : index
    %c0_86 = arith.constant 0 : index
    %157 = vector.load %arg10[%c5_85, %c0_86] : memref<26x32xf32, #tpu.memory_space<vmem>>, vector<16x32xf32>
    tpu.vector_store %arg10[%c5_85, %c0_86], %156 {strides = array<i32>} : memref<26x32xf32, #tpu.memory_space<vmem>>, vector<16x32xf32>,
    %c0_87 = arith.constant 0 : index
    %c0_88 = arith.constant 0 : index
    %158 = vector.load %arg10[%c0_87, %c0_88] : memref<26x32xf32, #tpu.memory_space<vmem>>, vector<16x32xf32>
    %159 = vector.extract_strided_slice %4 {offsets = [0, 0], sizes = [16, 1], strides = [1, 1]} : vector<16x9xf32> to vector<16x1xf32>
    %160 = vector.broadcast %159 : vector<16x1xf32> to vector<16x32xf32>
    %161 = arith.mulf %158, %160 : vector<16x32xf32>
    %162 = arith.truncf %161 : vector<16x32xf32> to vector<16x32xbf16>
    %c0_89 = arith.constant 0 : index
    %c0_90 = arith.constant 0 : index
    %163 = vector.load %arg7[%c0_89, %c0_90] : memref<288x8xbf16, #tpu.memory_space<vmem>>, vector<32x8xbf16>
    %cst_91 = arith.constant dense<0.000000e+00> : vector<16x8xf32>
    %164 = tpu.matmul %162, %163, %cst_91 {dimension_numbers = #tpu.dot_dimension_numbers<[1], [0], [0], [1], [0, 0, 1, 1], [], []>} : vector<16x32xbf16>, vector<32x8xbf16>, vector<16x8xf32> -> vector<16x8xf32>
    %c1_92 = arith.constant 1 : index
    %c0_93 = arith.constant 0 : index
    %165 = vector.load %arg10[%c1_92, %c0_93] : memref<26x32xf32, #tpu.memory_space<vmem>>, vector<16x32xf32>
    %166 = vector.extract_strided_slice %4 {offsets = [0, 1], sizes = [16, 1], strides = [1, 1]} : vector<16x9xf32> to vector<16x1xf32>
    %167 = vector.broadcast %166 : vector<16x1xf32> to vector<16x32xf32>
    %168 = arith.mulf %165, %167 : vector<16x32xf32>
    %169 = arith.truncf %168 : vector<16x32xf32> to vector<16x32xbf16>
    %c32_94 = arith.constant 32 : index
    %c0_95 = arith.constant 0 : index
    %170 = vector.load %arg7[%c32_94, %c0_95] : memref<288x8xbf16, #tpu.memory_space<vmem>>, vector<32x8xbf16>
    %cst_96 = arith.constant dense<0.000000e+00> : vector<16x8xf32>
    %171 = tpu.matmul %169, %170, %cst_96 {dimension_numbers = #tpu.dot_dimension_numbers<[1], [0], [0], [1], [0, 0, 1, 1], [], []>} : vector<16x32xbf16>, vector<32x8xbf16>, vector<16x8xf32> -> vector<16x8xf32>
    %172 = arith.addf %164, %171 : vector<16x8xf32>
    %c2_97 = arith.constant 2 : index
    %c0_98 = arith.constant 0 : index
    %173 = vector.load %arg10[%c2_97, %c0_98] : memref<26x32xf32, #tpu.memory_space<vmem>>, vector<16x32xf32>
    %174 = vector.extract_strided_slice %4 {offsets = [0, 2], sizes = [16, 1], strides = [1, 1]} : vector<16x9xf32> to vector<16x1xf32>
    %175 = vector.broadcast %174 : vector<16x1xf32> to vector<16x32xf32>
    %176 = arith.mulf %173, %175 : vector<16x32xf32>
    %177 = arith.truncf %176 : vector<16x32xf32> to vector<16x32xbf16>
    %c64_99 = arith.constant 64 : index
    %c0_100 = arith.constant 0 : index
    %178 = vector.load %arg7[%c64_99, %c0_100] : memref<288x8xbf16, #tpu.memory_space<vmem>>, vector<32x8xbf16>
    %cst_101 = arith.constant dense<0.000000e+00> : vector<16x8xf32>
    %179 = tpu.matmul %177, %178, %cst_101 {dimension_numbers = #tpu.dot_dimension_numbers<[1], [0], [0], [1], [0, 0, 1, 1], [], []>} : vector<16x32xbf16>, vector<32x8xbf16>, vector<16x8xf32> -> vector<16x8xf32>
    %180 = arith.addf %172, %179 : vector<16x8xf32>
    %c4_102 = arith.constant 4 : index
    %c0_103 = arith.constant 0 : index
    %181 = vector.load %arg10[%c4_102, %c0_103] : memref<26x32xf32, #tpu.memory_space<vmem>>, vector<16x32xf32>
    %182 = vector.extract_strided_slice %4 {offsets = [0, 3], sizes = [16, 1], strides = [1, 1]} : vector<16x9xf32> to vector<16x1xf32>
    %183 = vector.broadcast %182 : vector<16x1xf32> to vector<16x32xf32>
    %184 = arith.mulf %181, %183 : vector<16x32xf32>
    %185 = arith.truncf %184 : vector<16x32xf32> to vector<16x32xbf16>
    %c96_104 = arith.constant 96 : index
    %c0_105 = arith.constant 0 : index
    %186 = vector.load %arg7[%c96_104, %c0_105] : memref<288x8xbf16, #tpu.memory_space<vmem>>, vector<32x8xbf16>
    %cst_106 = arith.constant dense<0.000000e+00> : vector<16x8xf32>
    %187 = tpu.matmul %185, %186, %cst_106 {dimension_numbers = #tpu.dot_dimension_numbers<[1], [0], [0], [1], [0, 0, 1, 1], [], []>} : vector<16x32xbf16>, vector<32x8xbf16>, vector<16x8xf32> -> vector<16x8xf32>
    %188 = arith.addf %180, %187 : vector<16x8xf32>
    %189 = arith.truncf %156 : vector<16x32xf32> to vector<16x32xbf16>
    %c128_107 = arith.constant 128 : index
    %c0_108 = arith.constant 0 : index
    %190 = vector.load %arg7[%c128_107, %c0_108] : memref<288x8xbf16, #tpu.memory_space<vmem>>, vector<32x8xbf16>
    %cst_109 = arith.constant dense<0.000000e+00> : vector<16x8xf32>
    %191 = tpu.matmul %189, %190, %cst_109 {dimension_numbers = #tpu.dot_dimension_numbers<[1], [0], [0], [1], [0, 0, 1, 1], [], []>} : vector<16x32xbf16>, vector<32x8xbf16>, vector<16x8xf32> -> vector<16x8xf32>
    %192 = arith.addf %188, %191 : vector<16x8xf32>
    %c6_110 = arith.constant 6 : index
    %c0_111 = arith.constant 0 : index
    %193 = vector.load %arg10[%c6_110, %c0_111] : memref<26x32xf32, #tpu.memory_space<vmem>>, vector<16x32xf32>
    %194 = vector.extract_strided_slice %4 {offsets = [0, 5], sizes = [16, 1], strides = [1, 1]} : vector<16x9xf32> to vector<16x1xf32>
    %195 = vector.broadcast %194 : vector<16x1xf32> to vector<16x32xf32>
    %196 = arith.mulf %193, %195 : vector<16x32xf32>
    %197 = arith.truncf %196 : vector<16x32xf32> to vector<16x32xbf16>
    %c160_112 = arith.constant 160 : index
    %c0_113 = arith.constant 0 : index
    %198 = vector.load %arg7[%c160_112, %c0_113] : memref<288x8xbf16, #tpu.memory_space<vmem>>, vector<32x8xbf16>
    %cst_114 = arith.constant dense<0.000000e+00> : vector<16x8xf32>
    %199 = tpu.matmul %197, %198, %cst_114 {dimension_numbers = #tpu.dot_dimension_numbers<[1], [0], [0], [1], [0, 0, 1, 1], [], []>} : vector<16x32xbf16>, vector<32x8xbf16>, vector<16x8xf32> -> vector<16x8xf32>
    %200 = arith.addf %192, %199 : vector<16x8xf32>
    %c8_115 = arith.constant 8 : index
    %c0_116 = arith.constant 0 : index
    %201 = vector.load %arg10[%c8_115, %c0_116] : memref<26x32xf32, #tpu.memory_space<vmem>>, vector<16x32xf32>
    %202 = vector.extract_strided_slice %4 {offsets = [0, 6], sizes = [16, 1], strides = [1, 1]} : vector<16x9xf32> to vector<16x1xf32>
    %203 = vector.broadcast %202 : vector<16x1xf32> to vector<16x32xf32>
    %204 = arith.mulf %201, %203 : vector<16x32xf32>
    %205 = arith.truncf %204 : vector<16x32xf32> to vector<16x32xbf16>
    %c192_117 = arith.constant 192 : index
    %c0_118 = arith.constant 0 : index
    %206 = vector.load %arg7[%c192_117, %c0_118] : memref<288x8xbf16, #tpu.memory_space<vmem>>, vector<32x8xbf16>
    %cst_119 = arith.constant dense<0.000000e+00> : vector<16x8xf32>
    %207 = tpu.matmul %205, %206, %cst_119 {dimension_numbers = #tpu.dot_dimension_numbers<[1], [0], [0], [1], [0, 0, 1, 1], [], []>} : vector<16x32xbf16>, vector<32x8xbf16>, vector<16x8xf32> -> vector<16x8xf32>
    %208 = arith.addf %200, %207 : vector<16x8xf32>
    %c9_120 = arith.constant 9 : index
    %c0_121 = arith.constant 0 : index
    %209 = vector.load %arg10[%c9_120, %c0_121] : memref<26x32xf32, #tpu.memory_space<vmem>>, vector<16x32xf32>
    %210 = vector.extract_strided_slice %4 {offsets = [0, 7], sizes = [16, 1], strides = [1, 1]} : vector<16x9xf32> to vector<16x1xf32>
    %211 = vector.broadcast %210 : vector<16x1xf32> to vector<16x32xf32>
    %212 = arith.mulf %209, %211 : vector<16x32xf32>
    %213 = arith.truncf %212 : vector<16x32xf32> to vector<16x32xbf16>
    %c224_122 = arith.constant 224 : index
    %c0_123 = arith.constant 0 : index
    %214 = vector.load %arg7[%c224_122, %c0_123] : memref<288x8xbf16, #tpu.memory_space<vmem>>, vector<32x8xbf16>
    %cst_124 = arith.constant dense<0.000000e+00> : vector<16x8xf32>
    %215 = tpu.matmul %213, %214, %cst_124 {dimension_numbers = #tpu.dot_dimension_numbers<[1], [0], [0], [1], [0, 0, 1, 1], [], []>} : vector<16x32xbf16>, vector<32x8xbf16>, vector<16x8xf32> -> vector<16x8xf32>
    %216 = arith.addf %208, %215 : vector<16x8xf32>
    %c10_125 = arith.constant 10 : index
    %c0_126 = arith.constant 0 : index
    %217 = vector.load %arg10[%c10_125, %c0_126] : memref<26x32xf32, #tpu.memory_space<vmem>>, vector<16x32xf32>
    %218 = vector.extract_strided_slice %4 {offsets = [0, 8], sizes = [16, 1], strides = [1, 1]} : vector<16x9xf32> to vector<16x1xf32>
    %219 = vector.broadcast %218 : vector<16x1xf32> to vector<16x32xf32>
    %220 = arith.mulf %217, %219 : vector<16x32xf32>
    %221 = arith.truncf %220 : vector<16x32xf32> to vector<16x32xbf16>
    %c256_127 = arith.constant 256 : index
    %c0_128 = arith.constant 0 : index
    %222 = vector.load %arg7[%c256_127, %c0_128] : memref<288x8xbf16, #tpu.memory_space<vmem>>, vector<32x8xbf16>
    %cst_129 = arith.constant dense<0.000000e+00> : vector<16x8xf32>
    %223 = tpu.matmul %221, %222, %cst_129 {dimension_numbers = #tpu.dot_dimension_numbers<[1], [0], [0], [1], [0, 0, 1, 1], [], []>} : vector<16x32xbf16>, vector<32x8xbf16>, vector<16x8xf32> -> vector<16x8xf32>
    %224 = arith.addf %216, %223 : vector<16x8xf32>
    %cst_130 = arith.constant 0.000000e+00 : f32
    %225 = vector.broadcast %cst_130 : f32 to vector<16x8xf32>
    %226 = arith.maximumf %224, %225 : vector<16x8xf32>
    %227 = arith.truncf %226 : vector<16x8xf32> to vector<16x8xbf16>
    %c0_131 = arith.constant 0 : index
    %c0_132 = arith.constant 0 : index
    %228 = vector.load %arg8[%c0_131, %c0_132] : memref<8x32xbf16, #tpu.memory_space<vmem>>, vector<8x32xbf16>
    %cst_133 = arith.constant dense<0.000000e+00> : vector<16x32xf32>
    %229 = tpu.matmul %227, %228, %cst_133 {dimension_numbers = #tpu.dot_dimension_numbers<[1], [0], [0], [1], [0, 0, 1, 1], [], []>} : vector<16x8xbf16>, vector<8x32xbf16>, vector<16x32xf32> -> vector<16x32xf32>
    %230 = arith.addf %154, %229 : vector<16x32xf32>
    %cst_134 = arith.constant 0.000000e+00 : f32
    %231 = vector.broadcast %cst_134 : f32 to vector<16x32xf32>
    %232 = arith.maximumf %230, %231 : vector<16x32xf32>
    %233 = arith.truncf %232 : vector<16x32xf32> to vector<16x32xbf16>
    %c0_135 = arith.constant 0 : index
    %c0_136 = arith.constant 0 : index
    %c0_137 = arith.constant 0 : index
    %234 = vector.load %arg9[%c0_135, %c0_136, %c0_137] : memref<1x16x32xbf16, #tpu.memory_space<vmem>>, vector<1x16x32xbf16>
    %235 = vector.shape_cast %234 : vector<1x16x32xbf16> to vector<16x32xbf16>
    %236 = vector.shape_cast %233 : vector<16x32xbf16> to vector<1x16x32xbf16>
    tpu.vector_store %arg9[%c0_135, %c0_136, %c0_137], %236 {strides = array<i32>} : memref<1x16x32xbf16, #tpu.memory_space<vmem>>, vector<1x16x32xbf16>,
    return
  }
  func.func @transform_0(%arg0: i32) -> (i32, i32, i32) {
    %c0_i32 = arith.constant 0 : i32
    %c0_i32_0 = arith.constant 0 : i32
    %c0_i32_1 = arith.constant 0 : i32
    return %arg0, %c0_i32, %c0_i32_0 : i32, i32, i32
  }
  func.func @transform_1(%arg0: i32) -> (i32, i32) {
    %c0_i32 = arith.constant 0 : i32
    %c0_i32_0 = arith.constant 0 : i32
    %c0_i32_1 = arith.constant 0 : i32
    return %c0_i32, %c0_i32_0 : i32, i32
  }
  func.func @transform_2(%arg0: i32) -> (i32, i32) {
    %c0_i32 = arith.constant 0 : i32
    %c0_i32_0 = arith.constant 0 : i32
    %c0_i32_1 = arith.constant 0 : i32
    return %c0_i32, %c0_i32_0 : i32, i32
  }
  func.func @transform_3(%arg0: i32) -> (i32, i32) {
    %c0_i32 = arith.constant 0 : i32
    %c0_i32_0 = arith.constant 0 : i32
    %c0_i32_1 = arith.constant 0 : i32
    return %c0_i32, %c0_i32_0 : i32, i32
  }
  func.func @transform_4(%arg0: i32) -> (i32, i32) {
    %c0_i32 = arith.constant 0 : i32
    %c0_i32_0 = arith.constant 0 : i32
    %c0_i32_1 = arith.constant 0 : i32
    return %c0_i32, %c0_i32_0 : i32, i32
  }
  func.func @transform_5(%arg0: i32) -> (i32, i32) {
    %c0_i32 = arith.constant 0 : i32
    %c0_i32_0 = arith.constant 0 : i32
    %c0_i32_1 = arith.constant 0 : i32
    return %c0_i32, %c0_i32_0 : i32, i32
  }
  func.func @transform_6(%arg0: i32) -> (i32, i32) {
    %c0_i32 = arith.constant 0 : i32
    %c0_i32_0 = arith.constant 0 : i32
    %c0_i32_1 = arith.constant 0 : i32
    return %c0_i32, %c0_i32_0 : i32, i32
  }
  func.func @transform_7(%arg0: i32) -> (i32, i32) {
    %c0_i32 = arith.constant 0 : i32
    %c0_i32_0 = arith.constant 0 : i32
    %c0_i32_1 = arith.constant 0 : i32
    return %c0_i32, %c0_i32_0 : i32, i32
  }
  func.func @transform_8(%arg0: i32) -> (i32, i32, i32) {
    %c0_i32 = arith.constant 0 : i32
    %c0_i32_0 = arith.constant 0 : i32
    %c0_i32_1 = arith.constant 0 : i32
    return %arg0, %c0_i32, %c0_i32_0 : i32, i32, i32
  }
}

module attributes {stable_mosaic.version = 11 : i64} {
  func.func @_deconv_kernel(%arg0: i32, %arg1: memref<1x16x32xbf16, #tpu.memory_space<vmem>>, %arg2: memref<16x9xf32, #tpu.memory_space<vmem>>, %arg3: memref<288x32xbf16, #tpu.memory_space<vmem>>, %arg4: memref<288x32xbf16, #tpu.memory_space<vmem>>, %arg5: memref<1x32xf32, #tpu.memory_space<vmem>>, %arg6: memref<1x16x32xbf16, #tpu.memory_space<vmem>>, %arg7: memref<1x16x32xbf16, #tpu.memory_space<vmem>>, %arg8: memref<26x32xf32, #tpu.memory_space<vmem>>) attributes {dimension_semantics = [#tpu.dimension_semantics<parallel>], iteration_bounds = array<i64: 2>, scalar_prefetch = 0 : i64, scratch_operands = 1 : i64, tpu.core_type = #tpu.core_type<tc>, window_params = [{transform_indices = @transform_0, window_bounds = array<i64: 1, 16, 32>}, {pipeline_mode = #tpu.pipeline_mode<synchronous>, transform_indices = @transform_1, window_bounds = array<i64: 16, 9>}, {pipeline_mode = #tpu.pipeline_mode<synchronous>, transform_indices = @transform_2, window_bounds = array<i64: 288, 32>}, {pipeline_mode = #tpu.pipeline_mode<synchronous>, transform_indices = @transform_3, window_bounds = array<i64: 288, 32>}, {pipeline_mode = #tpu.pipeline_mode<synchronous>, transform_indices = @transform_4, window_bounds = array<i64: 1, 32>}, {transform_indices = @transform_5, window_bounds = array<i64: 1, 16, 32>}, {transform_indices = @transform_6, window_bounds = array<i64: 1, 16, 32>}]} {
    %cst = arith.constant 0.000000e+00 : f32
    %0 = vector.broadcast %cst : f32 to vector<5x32xf32>
    %c0 = arith.constant 0 : index
    %c0_0 = arith.constant 0 : index
    %1 = vector.load %arg8[%c0, %c0_0] : memref<26x32xf32, #tpu.memory_space<vmem>>, vector<5x32xf32>
    tpu.vector_store %arg8[%c0, %c0_0], %0 {strides = array<i32>} : memref<26x32xf32, #tpu.memory_space<vmem>>, vector<5x32xf32>,
    %cst_1 = arith.constant 0.000000e+00 : f32
    %2 = vector.broadcast %cst_1 : f32 to vector<5x32xf32>
    %c21 = arith.constant 21 : index
    %c0_2 = arith.constant 0 : index
    %3 = vector.load %arg8[%c21, %c0_2] : memref<26x32xf32, #tpu.memory_space<vmem>>, vector<5x32xf32>
    tpu.vector_store %arg8[%c21, %c0_2], %2 {strides = array<i32>} : memref<26x32xf32, #tpu.memory_space<vmem>>, vector<5x32xf32>,
    %c0_3 = arith.constant 0 : index
    %c0_4 = arith.constant 0 : index
    %4 = vector.load %arg2[%c0_3, %c0_4] : memref<16x9xf32, #tpu.memory_space<vmem>>, vector<16x9xf32>
    %c0_5 = arith.constant 0 : index
    %c0_6 = arith.constant 0 : index
    %c0_7 = arith.constant 0 : index
    %5 = vector.load %arg1[%c0_5, %c0_6, %c0_7] : memref<1x16x32xbf16, #tpu.memory_space<vmem>>, vector<1x16x32xbf16>
    %6 = vector.shape_cast %5 : vector<1x16x32xbf16> to vector<16x32xbf16>
    %7 = arith.extf %6 : vector<16x32xbf16> to vector<16x32xf32>
    %c5 = arith.constant 5 : index
    %c0_8 = arith.constant 0 : index
    %8 = vector.load %arg8[%c5, %c0_8] : memref<26x32xf32, #tpu.memory_space<vmem>>, vector<16x32xf32>
    tpu.vector_store %arg8[%c5, %c0_8], %7 {strides = array<i32>} : memref<26x32xf32, #tpu.memory_space<vmem>>, vector<16x32xf32>,
    %c0_9 = arith.constant 0 : index
    %c0_10 = arith.constant 0 : index
    %9 = vector.load %arg5[%c0_9, %c0_10] : memref<1x32xf32, #tpu.memory_space<vmem>>, vector<1x32xf32>
    %c0_11 = arith.constant 0 : index
    %c0_12 = arith.constant 0 : index
    %10 = vector.load %arg8[%c0_11, %c0_12] : memref<26x32xf32, #tpu.memory_space<vmem>>, vector<16x32xf32>
    %11 = vector.extract_strided_slice %4 {offsets = [0, 0], sizes = [16, 1], strides = [1, 1]} : vector<16x9xf32> to vector<16x1xf32>
    %12 = vector.broadcast %11 : vector<16x1xf32> to vector<16x32xf32>
    %13 = arith.mulf %10, %12 : vector<16x32xf32>
    %14 = arith.truncf %13 : vector<16x32xf32> to vector<16x32xbf16>
    %c0_13 = arith.constant 0 : index
    %c0_14 = arith.constant 0 : index
    %15 = vector.load %arg3[%c0_13, %c0_14] : memref<288x32xbf16, #tpu.memory_space<vmem>>, vector<32x32xbf16>
    %cst_15 = arith.constant dense<0.000000e+00> : vector<16x32xf32>
    %16 = tpu.matmul %14, %15, %cst_15 {dimension_numbers = #tpu.dot_dimension_numbers<[1], [0], [0], [1], [0, 0, 1, 1], [], []>} : vector<16x32xbf16>, vector<32x32xbf16>, vector<16x32xf32> -> vector<16x32xf32>
    %c1 = arith.constant 1 : index
    %c0_16 = arith.constant 0 : index
    %17 = vector.load %arg8[%c1, %c0_16] : memref<26x32xf32, #tpu.memory_space<vmem>>, vector<16x32xf32>
    %18 = vector.extract_strided_slice %4 {offsets = [0, 1], sizes = [16, 1], strides = [1, 1]} : vector<16x9xf32> to vector<16x1xf32>
    %19 = vector.broadcast %18 : vector<16x1xf32> to vector<16x32xf32>
    %20 = arith.mulf %17, %19 : vector<16x32xf32>
    %21 = arith.truncf %20 : vector<16x32xf32> to vector<16x32xbf16>
    %c32 = arith.constant 32 : index
    %c0_17 = arith.constant 0 : index
    %22 = vector.load %arg3[%c32, %c0_17] : memref<288x32xbf16, #tpu.memory_space<vmem>>, vector<32x32xbf16>
    %cst_18 = arith.constant dense<0.000000e+00> : vector<16x32xf32>
    %23 = tpu.matmul %21, %22, %cst_18 {dimension_numbers = #tpu.dot_dimension_numbers<[1], [0], [0], [1], [0, 0, 1, 1], [], []>} : vector<16x32xbf16>, vector<32x32xbf16>, vector<16x32xf32> -> vector<16x32xf32>
    %24 = arith.addf %16, %23 : vector<16x32xf32>
    %c2 = arith.constant 2 : index
    %c0_19 = arith.constant 0 : index
    %25 = vector.load %arg8[%c2, %c0_19] : memref<26x32xf32, #tpu.memory_space<vmem>>, vector<16x32xf32>
    %26 = vector.extract_strided_slice %4 {offsets = [0, 2], sizes = [16, 1], strides = [1, 1]} : vector<16x9xf32> to vector<16x1xf32>
    %27 = vector.broadcast %26 : vector<16x1xf32> to vector<16x32xf32>
    %28 = arith.mulf %25, %27 : vector<16x32xf32>
    %29 = arith.truncf %28 : vector<16x32xf32> to vector<16x32xbf16>
    %c64 = arith.constant 64 : index
    %c0_20 = arith.constant 0 : index
    %30 = vector.load %arg3[%c64, %c0_20] : memref<288x32xbf16, #tpu.memory_space<vmem>>, vector<32x32xbf16>
    %cst_21 = arith.constant dense<0.000000e+00> : vector<16x32xf32>
    %31 = tpu.matmul %29, %30, %cst_21 {dimension_numbers = #tpu.dot_dimension_numbers<[1], [0], [0], [1], [0, 0, 1, 1], [], []>} : vector<16x32xbf16>, vector<32x32xbf16>, vector<16x32xf32> -> vector<16x32xf32>
    %32 = arith.addf %24, %31 : vector<16x32xf32>
    %c4 = arith.constant 4 : index
    %c0_22 = arith.constant 0 : index
    %33 = vector.load %arg8[%c4, %c0_22] : memref<26x32xf32, #tpu.memory_space<vmem>>, vector<16x32xf32>
    %34 = vector.extract_strided_slice %4 {offsets = [0, 3], sizes = [16, 1], strides = [1, 1]} : vector<16x9xf32> to vector<16x1xf32>
    %35 = vector.broadcast %34 : vector<16x1xf32> to vector<16x32xf32>
    %36 = arith.mulf %33, %35 : vector<16x32xf32>
    %37 = arith.truncf %36 : vector<16x32xf32> to vector<16x32xbf16>
    %c96 = arith.constant 96 : index
    %c0_23 = arith.constant 0 : index
    %38 = vector.load %arg3[%c96, %c0_23] : memref<288x32xbf16, #tpu.memory_space<vmem>>, vector<32x32xbf16>
    %cst_24 = arith.constant dense<0.000000e+00> : vector<16x32xf32>
    %39 = tpu.matmul %37, %38, %cst_24 {dimension_numbers = #tpu.dot_dimension_numbers<[1], [0], [0], [1], [0, 0, 1, 1], [], []>} : vector<16x32xbf16>, vector<32x32xbf16>, vector<16x32xf32> -> vector<16x32xf32>
    %40 = arith.addf %32, %39 : vector<16x32xf32>
    %41 = arith.truncf %7 : vector<16x32xf32> to vector<16x32xbf16>
    %c128 = arith.constant 128 : index
    %c0_25 = arith.constant 0 : index
    %42 = vector.load %arg3[%c128, %c0_25] : memref<288x32xbf16, #tpu.memory_space<vmem>>, vector<32x32xbf16>
    %cst_26 = arith.constant dense<0.000000e+00> : vector<16x32xf32>
    %43 = tpu.matmul %41, %42, %cst_26 {dimension_numbers = #tpu.dot_dimension_numbers<[1], [0], [0], [1], [0, 0, 1, 1], [], []>} : vector<16x32xbf16>, vector<32x32xbf16>, vector<16x32xf32> -> vector<16x32xf32>
    %44 = arith.addf %40, %43 : vector<16x32xf32>
    %c6 = arith.constant 6 : index
    %c0_27 = arith.constant 0 : index
    %45 = vector.load %arg8[%c6, %c0_27] : memref<26x32xf32, #tpu.memory_space<vmem>>, vector<16x32xf32>
    %46 = vector.extract_strided_slice %4 {offsets = [0, 5], sizes = [16, 1], strides = [1, 1]} : vector<16x9xf32> to vector<16x1xf32>
    %47 = vector.broadcast %46 : vector<16x1xf32> to vector<16x32xf32>
    %48 = arith.mulf %45, %47 : vector<16x32xf32>
    %49 = arith.truncf %48 : vector<16x32xf32> to vector<16x32xbf16>
    %c160 = arith.constant 160 : index
    %c0_28 = arith.constant 0 : index
    %50 = vector.load %arg3[%c160, %c0_28] : memref<288x32xbf16, #tpu.memory_space<vmem>>, vector<32x32xbf16>
    %cst_29 = arith.constant dense<0.000000e+00> : vector<16x32xf32>
    %51 = tpu.matmul %49, %50, %cst_29 {dimension_numbers = #tpu.dot_dimension_numbers<[1], [0], [0], [1], [0, 0, 1, 1], [], []>} : vector<16x32xbf16>, vector<32x32xbf16>, vector<16x32xf32> -> vector<16x32xf32>
    %52 = arith.addf %44, %51 : vector<16x32xf32>
    %53 = vector.broadcast %9 : vector<1x32xf32> to vector<16x32xf32>
    %54 = arith.addf %52, %53 : vector<16x32xf32>
    %cst_30 = arith.constant 0.000000e+00 : f32
    %55 = vector.broadcast %cst_30 : f32 to vector<16x32xf32>
    %56 = arith.maximumf %54, %55 : vector<16x32xf32>
    %57 = arith.truncf %56 : vector<16x32xf32> to vector<16x32xbf16>
    %c0_31 = arith.constant 0 : index
    %c0_32 = arith.constant 0 : index
    %c0_33 = arith.constant 0 : index
    %58 = vector.load %arg6[%c0_31, %c0_32, %c0_33] : memref<1x16x32xbf16, #tpu.memory_space<vmem>>, vector<1x16x32xbf16>
    %59 = vector.shape_cast %58 : vector<1x16x32xbf16> to vector<16x32xbf16>
    %60 = vector.shape_cast %57 : vector<16x32xbf16> to vector<1x16x32xbf16>
    tpu.vector_store %arg6[%c0_31, %c0_32, %c0_33], %60 {strides = array<i32>} : memref<1x16x32xbf16, #tpu.memory_space<vmem>>, vector<1x16x32xbf16>,
    %c4_34 = arith.constant 4 : index
    %c0_35 = arith.constant 0 : index
    %61 = vector.load %arg8[%c4_34, %c0_35] : memref<26x32xf32, #tpu.memory_space<vmem>>, vector<16x32xf32>
    %62 = vector.extract_strided_slice %4 {offsets = [0, 3], sizes = [16, 1], strides = [1, 1]} : vector<16x9xf32> to vector<16x1xf32>
    %63 = vector.broadcast %62 : vector<16x1xf32> to vector<16x32xf32>
    %64 = arith.mulf %61, %63 : vector<16x32xf32>
    %65 = arith.truncf %64 : vector<16x32xf32> to vector<16x32xbf16>
    %c96_36 = arith.constant 96 : index
    %c0_37 = arith.constant 0 : index
    %66 = vector.load %arg4[%c96_36, %c0_37] : memref<288x32xbf16, #tpu.memory_space<vmem>>, vector<32x32xbf16>
    %cst_38 = arith.constant dense<0.000000e+00> : vector<16x32xf32>
    %67 = tpu.matmul %65, %66, %cst_38 {dimension_numbers = #tpu.dot_dimension_numbers<[1], [0], [0], [1], [0, 0, 1, 1], [], []>} : vector<16x32xbf16>, vector<32x32xbf16>, vector<16x32xf32> -> vector<16x32xf32>
    %68 = arith.truncf %7 : vector<16x32xf32> to vector<16x32xbf16>
    %c128_39 = arith.constant 128 : index
    %c0_40 = arith.constant 0 : index
    %69 = vector.load %arg4[%c128_39, %c0_40] : memref<288x32xbf16, #tpu.memory_space<vmem>>, vector<32x32xbf16>
    %cst_41 = arith.constant dense<0.000000e+00> : vector<16x32xf32>
    %70 = tpu.matmul %68, %69, %cst_41 {dimension_numbers = #tpu.dot_dimension_numbers<[1], [0], [0], [1], [0, 0, 1, 1], [], []>} : vector<16x32xbf16>, vector<32x32xbf16>, vector<16x32xf32> -> vector<16x32xf32>
    %71 = arith.addf %67, %70 : vector<16x32xf32>
    %c6_42 = arith.constant 6 : index
    %c0_43 = arith.constant 0 : index
    %72 = vector.load %arg8[%c6_42, %c0_43] : memref<26x32xf32, #tpu.memory_space<vmem>>, vector<16x32xf32>
    %73 = vector.extract_strided_slice %4 {offsets = [0, 5], sizes = [16, 1], strides = [1, 1]} : vector<16x9xf32> to vector<16x1xf32>
    %74 = vector.broadcast %73 : vector<16x1xf32> to vector<16x32xf32>
    %75 = arith.mulf %72, %74 : vector<16x32xf32>
    %76 = arith.truncf %75 : vector<16x32xf32> to vector<16x32xbf16>
    %c160_44 = arith.constant 160 : index
    %c0_45 = arith.constant 0 : index
    %77 = vector.load %arg4[%c160_44, %c0_45] : memref<288x32xbf16, #tpu.memory_space<vmem>>, vector<32x32xbf16>
    %cst_46 = arith.constant dense<0.000000e+00> : vector<16x32xf32>
    %78 = tpu.matmul %76, %77, %cst_46 {dimension_numbers = #tpu.dot_dimension_numbers<[1], [0], [0], [1], [0, 0, 1, 1], [], []>} : vector<16x32xbf16>, vector<32x32xbf16>, vector<16x32xf32> -> vector<16x32xf32>
    %79 = arith.addf %71, %78 : vector<16x32xf32>
    %c8 = arith.constant 8 : index
    %c0_47 = arith.constant 0 : index
    %80 = vector.load %arg8[%c8, %c0_47] : memref<26x32xf32, #tpu.memory_space<vmem>>, vector<16x32xf32>
    %81 = vector.extract_strided_slice %4 {offsets = [0, 6], sizes = [16, 1], strides = [1, 1]} : vector<16x9xf32> to vector<16x1xf32>
    %82 = vector.broadcast %81 : vector<16x1xf32> to vector<16x32xf32>
    %83 = arith.mulf %80, %82 : vector<16x32xf32>
    %84 = arith.truncf %83 : vector<16x32xf32> to vector<16x32xbf16>
    %c192 = arith.constant 192 : index
    %c0_48 = arith.constant 0 : index
    %85 = vector.load %arg4[%c192, %c0_48] : memref<288x32xbf16, #tpu.memory_space<vmem>>, vector<32x32xbf16>
    %cst_49 = arith.constant dense<0.000000e+00> : vector<16x32xf32>
    %86 = tpu.matmul %84, %85, %cst_49 {dimension_numbers = #tpu.dot_dimension_numbers<[1], [0], [0], [1], [0, 0, 1, 1], [], []>} : vector<16x32xbf16>, vector<32x32xbf16>, vector<16x32xf32> -> vector<16x32xf32>
    %87 = arith.addf %79, %86 : vector<16x32xf32>
    %c9 = arith.constant 9 : index
    %c0_50 = arith.constant 0 : index
    %88 = vector.load %arg8[%c9, %c0_50] : memref<26x32xf32, #tpu.memory_space<vmem>>, vector<16x32xf32>
    %89 = vector.extract_strided_slice %4 {offsets = [0, 7], sizes = [16, 1], strides = [1, 1]} : vector<16x9xf32> to vector<16x1xf32>
    %90 = vector.broadcast %89 : vector<16x1xf32> to vector<16x32xf32>
    %91 = arith.mulf %88, %90 : vector<16x32xf32>
    %92 = arith.truncf %91 : vector<16x32xf32> to vector<16x32xbf16>
    %c224 = arith.constant 224 : index
    %c0_51 = arith.constant 0 : index
    %93 = vector.load %arg4[%c224, %c0_51] : memref<288x32xbf16, #tpu.memory_space<vmem>>, vector<32x32xbf16>
    %cst_52 = arith.constant dense<0.000000e+00> : vector<16x32xf32>
    %94 = tpu.matmul %92, %93, %cst_52 {dimension_numbers = #tpu.dot_dimension_numbers<[1], [0], [0], [1], [0, 0, 1, 1], [], []>} : vector<16x32xbf16>, vector<32x32xbf16>, vector<16x32xf32> -> vector<16x32xf32>
    %95 = arith.addf %87, %94 : vector<16x32xf32>
    %c10 = arith.constant 10 : index
    %c0_53 = arith.constant 0 : index
    %96 = vector.load %arg8[%c10, %c0_53] : memref<26x32xf32, #tpu.memory_space<vmem>>, vector<16x32xf32>
    %97 = vector.extract_strided_slice %4 {offsets = [0, 8], sizes = [16, 1], strides = [1, 1]} : vector<16x9xf32> to vector<16x1xf32>
    %98 = vector.broadcast %97 : vector<16x1xf32> to vector<16x32xf32>
    %99 = arith.mulf %96, %98 : vector<16x32xf32>
    %100 = arith.truncf %99 : vector<16x32xf32> to vector<16x32xbf16>
    %c256 = arith.constant 256 : index
    %c0_54 = arith.constant 0 : index
    %101 = vector.load %arg4[%c256, %c0_54] : memref<288x32xbf16, #tpu.memory_space<vmem>>, vector<32x32xbf16>
    %cst_55 = arith.constant dense<0.000000e+00> : vector<16x32xf32>
    %102 = tpu.matmul %100, %101, %cst_55 {dimension_numbers = #tpu.dot_dimension_numbers<[1], [0], [0], [1], [0, 0, 1, 1], [], []>} : vector<16x32xbf16>, vector<32x32xbf16>, vector<16x32xf32> -> vector<16x32xf32>
    %103 = arith.addf %95, %102 : vector<16x32xf32>
    %104 = vector.broadcast %9 : vector<1x32xf32> to vector<16x32xf32>
    %105 = arith.addf %103, %104 : vector<16x32xf32>
    %cst_56 = arith.constant 0.000000e+00 : f32
    %106 = vector.broadcast %cst_56 : f32 to vector<16x32xf32>
    %107 = arith.maximumf %105, %106 : vector<16x32xf32>
    %108 = arith.truncf %107 : vector<16x32xf32> to vector<16x32xbf16>
    %c0_57 = arith.constant 0 : index
    %c0_58 = arith.constant 0 : index
    %c0_59 = arith.constant 0 : index
    %109 = vector.load %arg7[%c0_57, %c0_58, %c0_59] : memref<1x16x32xbf16, #tpu.memory_space<vmem>>, vector<1x16x32xbf16>
    %110 = vector.shape_cast %109 : vector<1x16x32xbf16> to vector<16x32xbf16>
    %111 = vector.shape_cast %108 : vector<16x32xbf16> to vector<1x16x32xbf16>
    tpu.vector_store %arg7[%c0_57, %c0_58, %c0_59], %111 {strides = array<i32>} : memref<1x16x32xbf16, #tpu.memory_space<vmem>>, vector<1x16x32xbf16>,
    return
  }
  func.func @transform_0(%arg0: i32) -> (i32, i32, i32) {
    %c0_i32 = arith.constant 0 : i32
    %c0_i32_0 = arith.constant 0 : i32
    %c0_i32_1 = arith.constant 0 : i32
    return %arg0, %c0_i32, %c0_i32_0 : i32, i32, i32
  }
  func.func @transform_1(%arg0: i32) -> (i32, i32) {
    %c0_i32 = arith.constant 0 : i32
    %c0_i32_0 = arith.constant 0 : i32
    %c0_i32_1 = arith.constant 0 : i32
    return %c0_i32, %c0_i32_0 : i32, i32
  }
  func.func @transform_2(%arg0: i32) -> (i32, i32) {
    %c0_i32 = arith.constant 0 : i32
    %c0_i32_0 = arith.constant 0 : i32
    %c0_i32_1 = arith.constant 0 : i32
    return %c0_i32, %c0_i32_0 : i32, i32
  }
  func.func @transform_3(%arg0: i32) -> (i32, i32) {
    %c0_i32 = arith.constant 0 : i32
    %c0_i32_0 = arith.constant 0 : i32
    %c0_i32_1 = arith.constant 0 : i32
    return %c0_i32, %c0_i32_0 : i32, i32
  }
  func.func @transform_4(%arg0: i32) -> (i32, i32) {
    %c0_i32 = arith.constant 0 : i32
    %c0_i32_0 = arith.constant 0 : i32
    %c0_i32_1 = arith.constant 0 : i32
    return %c0_i32, %c0_i32_0 : i32, i32
  }
  func.func @transform_5(%arg0: i32) -> (i32, i32, i32) {
    %c0_i32 = arith.constant 0 : i32
    %c0_i32_0 = arith.constant 0 : i32
    %c0_i32_1 = arith.constant 0 : i32
    return %arg0, %c0_i32, %c0_i32_0 : i32, i32, i32
  }
  func.func @transform_6(%arg0: i32) -> (i32, i32, i32) {
    %c0_i32 = arith.constant 0 : i32
    %c0_i32_0 = arith.constant 0 : i32
    %c0_i32_1 = arith.constant 0 : i32
    return %arg0, %c0_i32, %c0_i32_0 : i32, i32, i32
  }
}

module attributes {stable_mosaic.version = 11 : i64} {
  func.func @_deconv_kernel(%arg0: i32, %arg1: memref<1x64x16xbf16, #tpu.memory_space<vmem>>, %arg2: memref<64x9xf32, #tpu.memory_space<vmem>>, %arg3: memref<144x6xbf16, #tpu.memory_space<vmem>>, %arg4: memref<144x6xbf16, #tpu.memory_space<vmem>>, %arg5: memref<1x6xf32, #tpu.memory_space<vmem>>, %arg6: memref<1x64x6xf32, #tpu.memory_space<vmem>>, %arg7: memref<1x64x6xf32, #tpu.memory_space<vmem>>, %arg8: memref<82x16xf32, #tpu.memory_space<vmem>>) attributes {dimension_semantics = [#tpu.dimension_semantics<parallel>], iteration_bounds = array<i64: 2>, scalar_prefetch = 0 : i64, scratch_operands = 1 : i64, tpu.core_type = #tpu.core_type<tc>, window_params = [{transform_indices = @transform_0, window_bounds = array<i64: 1, 64, 16>}, {pipeline_mode = #tpu.pipeline_mode<synchronous>, transform_indices = @transform_1, window_bounds = array<i64: 64, 9>}, {pipeline_mode = #tpu.pipeline_mode<synchronous>, transform_indices = @transform_2, window_bounds = array<i64: 144, 6>}, {pipeline_mode = #tpu.pipeline_mode<synchronous>, transform_indices = @transform_3, window_bounds = array<i64: 144, 6>}, {pipeline_mode = #tpu.pipeline_mode<synchronous>, transform_indices = @transform_4, window_bounds = array<i64: 1, 6>}, {transform_indices = @transform_5, window_bounds = array<i64: 1, 64, 6>}, {transform_indices = @transform_6, window_bounds = array<i64: 1, 64, 6>}]} {
    %cst = arith.constant 0.000000e+00 : f32
    %0 = vector.broadcast %cst : f32 to vector<9x16xf32>
    %c0 = arith.constant 0 : index
    %c0_0 = arith.constant 0 : index
    %1 = vector.load %arg8[%c0, %c0_0] : memref<82x16xf32, #tpu.memory_space<vmem>>, vector<9x16xf32>
    tpu.vector_store %arg8[%c0, %c0_0], %0 {strides = array<i32>} : memref<82x16xf32, #tpu.memory_space<vmem>>, vector<9x16xf32>,
    %cst_1 = arith.constant 0.000000e+00 : f32
    %2 = vector.broadcast %cst_1 : f32 to vector<9x16xf32>
    %c73 = arith.constant 73 : index
    %c0_2 = arith.constant 0 : index
    %3 = vector.load %arg8[%c73, %c0_2] : memref<82x16xf32, #tpu.memory_space<vmem>>, vector<9x16xf32>
    tpu.vector_store %arg8[%c73, %c0_2], %2 {strides = array<i32>} : memref<82x16xf32, #tpu.memory_space<vmem>>, vector<9x16xf32>,
    %c0_3 = arith.constant 0 : index
    %c0_4 = arith.constant 0 : index
    %4 = vector.load %arg2[%c0_3, %c0_4] : memref<64x9xf32, #tpu.memory_space<vmem>>, vector<64x9xf32>
    %c0_5 = arith.constant 0 : index
    %c0_6 = arith.constant 0 : index
    %c0_7 = arith.constant 0 : index
    %5 = vector.load %arg1[%c0_5, %c0_6, %c0_7] : memref<1x64x16xbf16, #tpu.memory_space<vmem>>, vector<1x64x16xbf16>
    %6 = vector.shape_cast %5 : vector<1x64x16xbf16> to vector<64x16xbf16>
    %7 = arith.extf %6 : vector<64x16xbf16> to vector<64x16xf32>
    %c9 = arith.constant 9 : index
    %c0_8 = arith.constant 0 : index
    %8 = vector.load %arg8[%c9, %c0_8] : memref<82x16xf32, #tpu.memory_space<vmem>>, vector<64x16xf32>
    tpu.vector_store %arg8[%c9, %c0_8], %7 {strides = array<i32>} : memref<82x16xf32, #tpu.memory_space<vmem>>, vector<64x16xf32>,
    %c0_9 = arith.constant 0 : index
    %c0_10 = arith.constant 0 : index
    %9 = vector.load %arg5[%c0_9, %c0_10] : memref<1x6xf32, #tpu.memory_space<vmem>>, vector<1x6xf32>
    %c0_11 = arith.constant 0 : index
    %c0_12 = arith.constant 0 : index
    %10 = vector.load %arg8[%c0_11, %c0_12] : memref<82x16xf32, #tpu.memory_space<vmem>>, vector<64x16xf32>
    %11 = vector.extract_strided_slice %4 {offsets = [0, 0], sizes = [64, 1], strides = [1, 1]} : vector<64x9xf32> to vector<64x1xf32>
    %12 = vector.broadcast %11 : vector<64x1xf32> to vector<64x16xf32>
    %13 = arith.mulf %10, %12 : vector<64x16xf32>
    %14 = arith.truncf %13 : vector<64x16xf32> to vector<64x16xbf16>
    %c0_13 = arith.constant 0 : index
    %c0_14 = arith.constant 0 : index
    %15 = vector.load %arg3[%c0_13, %c0_14] : memref<144x6xbf16, #tpu.memory_space<vmem>>, vector<16x6xbf16>
    %cst_15 = arith.constant dense<0.000000e+00> : vector<64x6xf32>
    %16 = tpu.matmul %14, %15, %cst_15 {dimension_numbers = #tpu.dot_dimension_numbers<[1], [0], [0], [1], [0, 0, 1, 1], [], []>} : vector<64x16xbf16>, vector<16x6xbf16>, vector<64x6xf32> -> vector<64x6xf32>
    %c1 = arith.constant 1 : index
    %c0_16 = arith.constant 0 : index
    %17 = vector.load %arg8[%c1, %c0_16] : memref<82x16xf32, #tpu.memory_space<vmem>>, vector<64x16xf32>
    %18 = vector.extract_strided_slice %4 {offsets = [0, 1], sizes = [64, 1], strides = [1, 1]} : vector<64x9xf32> to vector<64x1xf32>
    %19 = vector.broadcast %18 : vector<64x1xf32> to vector<64x16xf32>
    %20 = arith.mulf %17, %19 : vector<64x16xf32>
    %21 = arith.truncf %20 : vector<64x16xf32> to vector<64x16xbf16>
    %c16 = arith.constant 16 : index
    %c0_17 = arith.constant 0 : index
    %22 = vector.load %arg3[%c16, %c0_17] : memref<144x6xbf16, #tpu.memory_space<vmem>>, vector<16x6xbf16>
    %cst_18 = arith.constant dense<0.000000e+00> : vector<64x6xf32>
    %23 = tpu.matmul %21, %22, %cst_18 {dimension_numbers = #tpu.dot_dimension_numbers<[1], [0], [0], [1], [0, 0, 1, 1], [], []>} : vector<64x16xbf16>, vector<16x6xbf16>, vector<64x6xf32> -> vector<64x6xf32>
    %24 = arith.addf %16, %23 : vector<64x6xf32>
    %c2 = arith.constant 2 : index
    %c0_19 = arith.constant 0 : index
    %25 = vector.load %arg8[%c2, %c0_19] : memref<82x16xf32, #tpu.memory_space<vmem>>, vector<64x16xf32>
    %26 = vector.extract_strided_slice %4 {offsets = [0, 2], sizes = [64, 1], strides = [1, 1]} : vector<64x9xf32> to vector<64x1xf32>
    %27 = vector.broadcast %26 : vector<64x1xf32> to vector<64x16xf32>
    %28 = arith.mulf %25, %27 : vector<64x16xf32>
    %29 = arith.truncf %28 : vector<64x16xf32> to vector<64x16xbf16>
    %c32 = arith.constant 32 : index
    %c0_20 = arith.constant 0 : index
    %30 = vector.load %arg3[%c32, %c0_20] : memref<144x6xbf16, #tpu.memory_space<vmem>>, vector<16x6xbf16>
    %cst_21 = arith.constant dense<0.000000e+00> : vector<64x6xf32>
    %31 = tpu.matmul %29, %30, %cst_21 {dimension_numbers = #tpu.dot_dimension_numbers<[1], [0], [0], [1], [0, 0, 1, 1], [], []>} : vector<64x16xbf16>, vector<16x6xbf16>, vector<64x6xf32> -> vector<64x6xf32>
    %32 = arith.addf %24, %31 : vector<64x6xf32>
    %c8 = arith.constant 8 : index
    %c0_22 = arith.constant 0 : index
    %33 = vector.load %arg8[%c8, %c0_22] : memref<82x16xf32, #tpu.memory_space<vmem>>, vector<64x16xf32>
    %34 = vector.extract_strided_slice %4 {offsets = [0, 3], sizes = [64, 1], strides = [1, 1]} : vector<64x9xf32> to vector<64x1xf32>
    %35 = vector.broadcast %34 : vector<64x1xf32> to vector<64x16xf32>
    %36 = arith.mulf %33, %35 : vector<64x16xf32>
    %37 = arith.truncf %36 : vector<64x16xf32> to vector<64x16xbf16>
    %c48 = arith.constant 48 : index
    %c0_23 = arith.constant 0 : index
    %38 = vector.load %arg3[%c48, %c0_23] : memref<144x6xbf16, #tpu.memory_space<vmem>>, vector<16x6xbf16>
    %cst_24 = arith.constant dense<0.000000e+00> : vector<64x6xf32>
    %39 = tpu.matmul %37, %38, %cst_24 {dimension_numbers = #tpu.dot_dimension_numbers<[1], [0], [0], [1], [0, 0, 1, 1], [], []>} : vector<64x16xbf16>, vector<16x6xbf16>, vector<64x6xf32> -> vector<64x6xf32>
    %40 = arith.addf %32, %39 : vector<64x6xf32>
    %41 = arith.truncf %7 : vector<64x16xf32> to vector<64x16xbf16>
    %c64 = arith.constant 64 : index
    %c0_25 = arith.constant 0 : index
    %42 = vector.load %arg3[%c64, %c0_25] : memref<144x6xbf16, #tpu.memory_space<vmem>>, vector<16x6xbf16>
    %cst_26 = arith.constant dense<0.000000e+00> : vector<64x6xf32>
    %43 = tpu.matmul %41, %42, %cst_26 {dimension_numbers = #tpu.dot_dimension_numbers<[1], [0], [0], [1], [0, 0, 1, 1], [], []>} : vector<64x16xbf16>, vector<16x6xbf16>, vector<64x6xf32> -> vector<64x6xf32>
    %44 = arith.addf %40, %43 : vector<64x6xf32>
    %c10 = arith.constant 10 : index
    %c0_27 = arith.constant 0 : index
    %45 = vector.load %arg8[%c10, %c0_27] : memref<82x16xf32, #tpu.memory_space<vmem>>, vector<64x16xf32>
    %46 = vector.extract_strided_slice %4 {offsets = [0, 5], sizes = [64, 1], strides = [1, 1]} : vector<64x9xf32> to vector<64x1xf32>
    %47 = vector.broadcast %46 : vector<64x1xf32> to vector<64x16xf32>
    %48 = arith.mulf %45, %47 : vector<64x16xf32>
    %49 = arith.truncf %48 : vector<64x16xf32> to vector<64x16xbf16>
    %c80 = arith.constant 80 : index
    %c0_28 = arith.constant 0 : index
    %50 = vector.load %arg3[%c80, %c0_28] : memref<144x6xbf16, #tpu.memory_space<vmem>>, vector<16x6xbf16>
    %cst_29 = arith.constant dense<0.000000e+00> : vector<64x6xf32>
    %51 = tpu.matmul %49, %50, %cst_29 {dimension_numbers = #tpu.dot_dimension_numbers<[1], [0], [0], [1], [0, 0, 1, 1], [], []>} : vector<64x16xbf16>, vector<16x6xbf16>, vector<64x6xf32> -> vector<64x6xf32>
    %52 = arith.addf %44, %51 : vector<64x6xf32>
    %53 = vector.broadcast %9 : vector<1x6xf32> to vector<64x6xf32>
    %54 = arith.addf %52, %53 : vector<64x6xf32>
    %c0_30 = arith.constant 0 : index
    %c0_31 = arith.constant 0 : index
    %c0_32 = arith.constant 0 : index
    %55 = vector.load %arg6[%c0_30, %c0_31, %c0_32] : memref<1x64x6xf32, #tpu.memory_space<vmem>>, vector<1x64x6xf32>
    %56 = vector.shape_cast %55 : vector<1x64x6xf32> to vector<64x6xf32>
    %57 = vector.shape_cast %54 : vector<64x6xf32> to vector<1x64x6xf32>
    tpu.vector_store %arg6[%c0_30, %c0_31, %c0_32], %57 {strides = array<i32>} : memref<1x64x6xf32, #tpu.memory_space<vmem>>, vector<1x64x6xf32>,
    %c8_33 = arith.constant 8 : index
    %c0_34 = arith.constant 0 : index
    %58 = vector.load %arg8[%c8_33, %c0_34] : memref<82x16xf32, #tpu.memory_space<vmem>>, vector<64x16xf32>
    %59 = vector.extract_strided_slice %4 {offsets = [0, 3], sizes = [64, 1], strides = [1, 1]} : vector<64x9xf32> to vector<64x1xf32>
    %60 = vector.broadcast %59 : vector<64x1xf32> to vector<64x16xf32>
    %61 = arith.mulf %58, %60 : vector<64x16xf32>
    %62 = arith.truncf %61 : vector<64x16xf32> to vector<64x16xbf16>
    %c48_35 = arith.constant 48 : index
    %c0_36 = arith.constant 0 : index
    %63 = vector.load %arg4[%c48_35, %c0_36] : memref<144x6xbf16, #tpu.memory_space<vmem>>, vector<16x6xbf16>
    %cst_37 = arith.constant dense<0.000000e+00> : vector<64x6xf32>
    %64 = tpu.matmul %62, %63, %cst_37 {dimension_numbers = #tpu.dot_dimension_numbers<[1], [0], [0], [1], [0, 0, 1, 1], [], []>} : vector<64x16xbf16>, vector<16x6xbf16>, vector<64x6xf32> -> vector<64x6xf32>
    %65 = arith.truncf %7 : vector<64x16xf32> to vector<64x16xbf16>
    %c64_38 = arith.constant 64 : index
    %c0_39 = arith.constant 0 : index
    %66 = vector.load %arg4[%c64_38, %c0_39] : memref<144x6xbf16, #tpu.memory_space<vmem>>, vector<16x6xbf16>
    %cst_40 = arith.constant dense<0.000000e+00> : vector<64x6xf32>
    %67 = tpu.matmul %65, %66, %cst_40 {dimension_numbers = #tpu.dot_dimension_numbers<[1], [0], [0], [1], [0, 0, 1, 1], [], []>} : vector<64x16xbf16>, vector<16x6xbf16>, vector<64x6xf32> -> vector<64x6xf32>
    %68 = arith.addf %64, %67 : vector<64x6xf32>
    %c10_41 = arith.constant 10 : index
    %c0_42 = arith.constant 0 : index
    %69 = vector.load %arg8[%c10_41, %c0_42] : memref<82x16xf32, #tpu.memory_space<vmem>>, vector<64x16xf32>
    %70 = vector.extract_strided_slice %4 {offsets = [0, 5], sizes = [64, 1], strides = [1, 1]} : vector<64x9xf32> to vector<64x1xf32>
    %71 = vector.broadcast %70 : vector<64x1xf32> to vector<64x16xf32>
    %72 = arith.mulf %69, %71 : vector<64x16xf32>
    %73 = arith.truncf %72 : vector<64x16xf32> to vector<64x16xbf16>
    %c80_43 = arith.constant 80 : index
    %c0_44 = arith.constant 0 : index
    %74 = vector.load %arg4[%c80_43, %c0_44] : memref<144x6xbf16, #tpu.memory_space<vmem>>, vector<16x6xbf16>
    %cst_45 = arith.constant dense<0.000000e+00> : vector<64x6xf32>
    %75 = tpu.matmul %73, %74, %cst_45 {dimension_numbers = #tpu.dot_dimension_numbers<[1], [0], [0], [1], [0, 0, 1, 1], [], []>} : vector<64x16xbf16>, vector<16x6xbf16>, vector<64x6xf32> -> vector<64x6xf32>
    %76 = arith.addf %68, %75 : vector<64x6xf32>
    %c16_46 = arith.constant 16 : index
    %c0_47 = arith.constant 0 : index
    %77 = vector.load %arg8[%c16_46, %c0_47] : memref<82x16xf32, #tpu.memory_space<vmem>>, vector<64x16xf32>
    %78 = vector.extract_strided_slice %4 {offsets = [0, 6], sizes = [64, 1], strides = [1, 1]} : vector<64x9xf32> to vector<64x1xf32>
    %79 = vector.broadcast %78 : vector<64x1xf32> to vector<64x16xf32>
    %80 = arith.mulf %77, %79 : vector<64x16xf32>
    %81 = arith.truncf %80 : vector<64x16xf32> to vector<64x16xbf16>
    %c96 = arith.constant 96 : index
    %c0_48 = arith.constant 0 : index
    %82 = vector.load %arg4[%c96, %c0_48] : memref<144x6xbf16, #tpu.memory_space<vmem>>, vector<16x6xbf16>
    %cst_49 = arith.constant dense<0.000000e+00> : vector<64x6xf32>
    %83 = tpu.matmul %81, %82, %cst_49 {dimension_numbers = #tpu.dot_dimension_numbers<[1], [0], [0], [1], [0, 0, 1, 1], [], []>} : vector<64x16xbf16>, vector<16x6xbf16>, vector<64x6xf32> -> vector<64x6xf32>
    %84 = arith.addf %76, %83 : vector<64x6xf32>
    %c17 = arith.constant 17 : index
    %c0_50 = arith.constant 0 : index
    %85 = vector.load %arg8[%c17, %c0_50] : memref<82x16xf32, #tpu.memory_space<vmem>>, vector<64x16xf32>
    %86 = vector.extract_strided_slice %4 {offsets = [0, 7], sizes = [64, 1], strides = [1, 1]} : vector<64x9xf32> to vector<64x1xf32>
    %87 = vector.broadcast %86 : vector<64x1xf32> to vector<64x16xf32>
    %88 = arith.mulf %85, %87 : vector<64x16xf32>
    %89 = arith.truncf %88 : vector<64x16xf32> to vector<64x16xbf16>
    %c112 = arith.constant 112 : index
    %c0_51 = arith.constant 0 : index
    %90 = vector.load %arg4[%c112, %c0_51] : memref<144x6xbf16, #tpu.memory_space<vmem>>, vector<16x6xbf16>
    %cst_52 = arith.constant dense<0.000000e+00> : vector<64x6xf32>
    %91 = tpu.matmul %89, %90, %cst_52 {dimension_numbers = #tpu.dot_dimension_numbers<[1], [0], [0], [1], [0, 0, 1, 1], [], []>} : vector<64x16xbf16>, vector<16x6xbf16>, vector<64x6xf32> -> vector<64x6xf32>
    %92 = arith.addf %84, %91 : vector<64x6xf32>
    %c18 = arith.constant 18 : index
    %c0_53 = arith.constant 0 : index
    %93 = vector.load %arg8[%c18, %c0_53] : memref<82x16xf32, #tpu.memory_space<vmem>>, vector<64x16xf32>
    %94 = vector.extract_strided_slice %4 {offsets = [0, 8], sizes = [64, 1], strides = [1, 1]} : vector<64x9xf32> to vector<64x1xf32>
    %95 = vector.broadcast %94 : vector<64x1xf32> to vector<64x16xf32>
    %96 = arith.mulf %93, %95 : vector<64x16xf32>
    %97 = arith.truncf %96 : vector<64x16xf32> to vector<64x16xbf16>
    %c128 = arith.constant 128 : index
    %c0_54 = arith.constant 0 : index
    %98 = vector.load %arg4[%c128, %c0_54] : memref<144x6xbf16, #tpu.memory_space<vmem>>, vector<16x6xbf16>
    %cst_55 = arith.constant dense<0.000000e+00> : vector<64x6xf32>
    %99 = tpu.matmul %97, %98, %cst_55 {dimension_numbers = #tpu.dot_dimension_numbers<[1], [0], [0], [1], [0, 0, 1, 1], [], []>} : vector<64x16xbf16>, vector<16x6xbf16>, vector<64x6xf32> -> vector<64x6xf32>
    %100 = arith.addf %92, %99 : vector<64x6xf32>
    %101 = vector.broadcast %9 : vector<1x6xf32> to vector<64x6xf32>
    %102 = arith.addf %100, %101 : vector<64x6xf32>
    %c0_56 = arith.constant 0 : index
    %c0_57 = arith.constant 0 : index
    %c0_58 = arith.constant 0 : index
    %103 = vector.load %arg7[%c0_56, %c0_57, %c0_58] : memref<1x64x6xf32, #tpu.memory_space<vmem>>, vector<1x64x6xf32>
    %104 = vector.shape_cast %103 : vector<1x64x6xf32> to vector<64x6xf32>
    %105 = vector.shape_cast %102 : vector<64x6xf32> to vector<1x64x6xf32>
    tpu.vector_store %arg7[%c0_56, %c0_57, %c0_58], %105 {strides = array<i32>} : memref<1x64x6xf32, #tpu.memory_space<vmem>>, vector<1x64x6xf32>,
    return
  }
  func.func @transform_0(%arg0: i32) -> (i32, i32, i32) {
    %c0_i32 = arith.constant 0 : i32
    %c0_i32_0 = arith.constant 0 : i32
    %c0_i32_1 = arith.constant 0 : i32
    return %arg0, %c0_i32, %c0_i32_0 : i32, i32, i32
  }
  func.func @transform_1(%arg0: i32) -> (i32, i32) {
    %c0_i32 = arith.constant 0 : i32
    %c0_i32_0 = arith.constant 0 : i32
    %c0_i32_1 = arith.constant 0 : i32
    return %c0_i32, %c0_i32_0 : i32, i32
  }
  func.func @transform_2(%arg0: i32) -> (i32, i32) {
    %c0_i32 = arith.constant 0 : i32
    %c0_i32_0 = arith.constant 0 : i32
    %c0_i32_1 = arith.constant 0 : i32
    return %c0_i32, %c0_i32_0 : i32, i32
  }
  func.func @transform_3(%arg0: i32) -> (i32, i32) {
    %c0_i32 = arith.constant 0 : i32
    %c0_i32_0 = arith.constant 0 : i32
    %c0_i32_1 = arith.constant 0 : i32
    return %c0_i32, %c0_i32_0 : i32, i32
  }
  func.func @transform_4(%arg0: i32) -> (i32, i32) {
    %c0_i32 = arith.constant 0 : i32
    %c0_i32_0 = arith.constant 0 : i32
    %c0_i32_1 = arith.constant 0 : i32
    return %c0_i32, %c0_i32_0 : i32, i32
  }
  func.func @transform_5(%arg0: i32) -> (i32, i32, i32) {
    %c0_i32 = arith.constant 0 : i32
    %c0_i32_0 = arith.constant 0 : i32
    %c0_i32_1 = arith.constant 0 : i32
    return %arg0, %c0_i32, %c0_i32_0 : i32, i32, i32
  }
  func.func @transform_6(%arg0: i32) -> (i32, i32, i32) {
    %c0_i32 = arith.constant 0 : i32
    %c0_i32_0 = arith.constant 0 : i32
    %c0_i32_1 = arith.constant 0 : i32
    return %arg0, %c0_i32, %c0_i32_0 : i32, i32, i32
  }
}

</mosaic_0001>

<bundles_post_ra>
// kernel: forward.7
= control target key start
LH: loop header
LB: loop body
LE: loop exit
PB: predicated region body
PF: predicated region fallthrough
CT: control target
= control target key end

     0   :  { %vm102_vm0 = vcmask 392192   ;;  %vm304_vm1 = vcmask 125952   ;;  %s555_s1 = inlined_call_operand.vmem [shape: bf16[48,16], index: 1, kind: input, shape index: {}]   ;;  %s556_s0 = inlined_call_operand.vmem [shape: bf16[128,48], index: 0, kind: input, shape index: {}]   ;;  %s557_s2 = inlined_call_operand.vmem [shape: f32[1,16], index: 2, kind: input, shape index: {}]   ;;  %s558_s3 = inlined_call_operand.vmem [shape: bf16[128,16], index: 3, kind: output, shape index: {}]  }
   0x1   :  { %v416_v0 = vld [vmem:[%s555_s1] sm:$0xff]   ;;  %v417_v1 = vld [vmem:[%s555_s1 + $0x8] sm:$0xff]   ;;  %v418_v2 = vld [vmem:[%s555_s1 + $0x10] sm:$0xff]  }
   0x2   :  { %388 = vmatprep.subr.bf16.mxu0 %v416_v0  ;;  %410 = vmatprep.subr.bf16.mxu1 %v416_v0  ;;  %v419_v3 = vld [vmem:[%s556_s0] sm:$0xff]   ;;  %v421_v5 = vld [vmem:[%s556_s0 + $0x8] sm:$0xff]   ;;  %v423_v7 = vld [vmem:[%s556_s0 + $0x10] sm:$0xff]  }
   0x3   :  { %389 = vmatpush3.bf16.msra.mxu0 %v416_v0  ;;  %413 = vmatpush3.bf16.msra.mxu1 %v416_v0  ;;  %v420_v4 = vld [vmem:[%s556_s0 + $0x20] sm:$0xff]   ;;  %v422_v6 = vld [vmem:[%s556_s0 + $0x28] sm:$0xff]   ;;  %v424_v8 = vld [vmem:[%s556_s0 + $0x30] sm:$0xff]  }
   0x4   :  { %390 = vmatprep.subr.bf16.mxu0 %v417_v1  ;;  %411 = vmatprep.subr.bf16.mxu1 %v417_v1  ;;  %v425_v9 = vld [vmem:[%s556_s0 + $0x18] sm:$0xff]   ;;  %v325_v11 = vld [vmem:[%s557_s2] ss:$0 sm:$0xff] }
   0x5   :  { %394 = vmatprep.mubr.msk.bf16.mxu0 %vm102_vm0, %v419_v3  ;;  %402 = vmatprep.mubr.msk.bf16.mxu1 %vm102_vm0, %v420_v4  ;;  %v426_v10 = vld [vmem:[%s556_s0 + $0x38] sm:$0xff]  }
   0x7   :  { %391 = vmatpush3.bf16.msra.mxu0 %v417_v1  ;;  %414 = vmatpush3.bf16.msra.mxu1 %v417_v1 }
   0x8   :  { %392 = vmatprep.subr.bf16.mxu0 %v418_v2  ;;  %412 = vmatprep.subr.bf16.mxu1 %v418_v2 }
   0xb   :  { %393 = vmatpush3.bf16.msra.mxu0 %v418_v2  ;;  %415 = vmatpush3.bf16.msra.mxu1 %v418_v2 }
   0xe   :  { %395 = vmatmul.mubr.msk.bf16.vlgmr.msra.gmra.mrb[0].mxu0 %vm102_vm0, %v421_v5  ;;  %403 = vmatmul.mubr.msk.bf16.vlgmr.msra.gmra.mrb[0].mxu1 %vm102_vm0, %v422_v6 }
   0xf   :  { %398 = vmatprep.mubr.msk.bf16.mxu0 %vm102_vm0, %v423_v7  ;;  %406 = vmatprep.mubr.msk.bf16.mxu1 %vm102_vm0, %v424_v8 }
  0x16   :  { %399 = vmatmul.mubr.msk.bf16.gmra.mrb[4].mxu0 %vm102_vm0, %v425_v9  ;;  %407 = vmatmul.mubr.msk.bf16.gmra.mrb[4].mxu1 %vm102_vm0, %v426_v10 }
  0xe1   :  { %v396_v12 = vpop.f32.mrb[0].mxu0  ;;  %v404_v13 = vpop.f32.mrb[0].mxu1 }
  0xe2   :  { %v170_v14 = vadd.f32 %v396_v12, %v325_v11  ;;  %v202_v15 = vadd.f32 %v404_v13, %v325_v11  ;;  %v161_v16 = vpop.f32.mrb[1].mxu0  ;;  %v193_v17 = vpop.f32.mrb[1].mxu1 }
  0xe3   :  { %v162_v18 = vadd.f32 %v325_v11, %v161_v16  ;;  %v194_v19 = vadd.f32 %v325_v11, %v193_v17  ;;  %v397_v20 = vpop.f32.mrb[2].mxu0  ;;  %v405_v21 = vpop.f32.mrb[2].mxu1 }
  0xe4   :  { %v226_v22 = vmax.f32 %v170_v14, 0.0  ;;  %v234_v23 = vmax.f32 %v202_v15, 0.0  ;;  %v173_v24 = vadd.f32 %v397_v20, %v325_v11  ;;  %v205_v25 = vadd.f32 %v405_v21, %v325_v11  ;;  %v164_v26 = vpop.f32.mrb[3].mxu0  ;;  %v196_v27 = vpop.f32.mrb[3].mxu1 }
  0xe5   :  { %v224_v28 = vmax.f32 %v162_v18, 0.0  ;;  %v232_v29 = vmax.f32 %v194_v19, 0.0  ;;  %v165_v30 = vadd.f32 %v325_v11, %v164_v26  ;;  %v197_v31 = vadd.f32 %v325_v11, %v196_v27 }
  0xe6   :  { %v363_v32 = vpack.c.bf16 %v226_v22, %v226_v22  ;;  %v371_v33 = vpack.c.bf16 %v234_v23, %v234_v23  ;;  %v227_v34 = vmax.f32 %v173_v24, 0.0  ;;  %v235_v35 = vmax.f32 %v205_v25, 0.0 }
  0xe7   :  { %v361_v36 = vpack.c.bf16 %v224_v28, %v224_v28  ;;  %v369_v37 = vpack.c.bf16 %v232_v29, %v232_v29  ;;  %v225_v38 = vmax.f32 %v165_v30, 0.0  ;;  %v233_v39 = vmax.f32 %v197_v31, 0.0 }
  0xe8   :  { %307 = vst.msk [vmem:[%s558_s3 + $0x8] sm:$0xf] %vm304_vm1, %v363_v32  ;;  %315 = vst.msk [vmem:[%s558_s3 + $0x28] sm:$0xf] %vm304_vm1, %v371_v33  ;;  %v364_v40 = vpack.c.bf16 %v227_v34, %v227_v34  ;;  %v372_v41 = vpack.c.bf16 %v235_v35, %v235_v35 }
  0xe9   :  { %305 = vst.msk [vmem:[%s558_s3] sm:$0xf] %vm304_vm1, %v361_v36  ;;  %313 = vst.msk [vmem:[%s558_s3 + $0x20] sm:$0xf] %vm304_vm1, %v369_v37  ;;  %v362_v42 = vpack.c.bf16 %v225_v38, %v225_v38  ;;  %v370_v43 = vpack.c.bf16 %v233_v39, %v233_v39  ;;  %v400_v44 = vpop.f32.mrb[4].mxu0  ;;  %v408_v45 = vpop.f32.mrb[4].mxu1 }
  0xea   :  { %308 = vst.msk [vmem:[%s558_s3 + $0xc] sm:$0xf] %vm304_vm1, %v364_v40  ;;  %316 = vst.msk [vmem:[%s558_s3 + $0x2c] sm:$0xf] %vm304_vm1, %v372_v41  ;;  %v186_v46 = vadd.f32 %v400_v44, %v325_v11  ;;  %v218_v47 = vadd.f32 %v408_v45, %v325_v11  ;;  %v177_v48 = vpop.f32.mrb[5].mxu0  ;;  %v209_v49 = vpop.f32.mrb[5].mxu1 }
  0xeb   :  { %306 = vst.msk [vmem:[%s558_s3 + $0x4] sm:$0xf] %vm304_vm1, %v362_v42  ;;  %314 = vst.msk [vmem:[%s558_s3 + $0x24] sm:$0xf] %vm304_vm1, %v370_v43  ;;  %v178_v50 = vadd.f32 %v325_v11, %v177_v48  ;;  %v210_v51 = vadd.f32 %v325_v11, %v209_v49  ;;  %v401_v52 = vpop.f32.mrb[6].mxu0  ;;  %v409_v53 = vpop.f32.mrb[6].mxu1 }
  0xec   :  { %v230_v54 = vmax.f32 %v186_v46, 0.0  ;;  %v238_v55 = vmax.f32 %v218_v47, 0.0  ;;  %v189_v56 = vadd.f32 %v401_v52, %v325_v11  ;;  %v221_v57 = vadd.f32 %v409_v53, %v325_v11  ;;  %v180_v58 = vpop.f32.mrb[7].mxu0  ;;  %v212_v59 = vpop.f32.mrb[7].mxu1 }
  0xed   :  { %v228_v60 = vmax.f32 %v178_v50, 0.0  ;;  %v236_v61 = vmax.f32 %v210_v51, 0.0  ;;  %v181_v62 = vadd.f32 %v325_v11, %v180_v58  ;;  %v213_v63 = vadd.f32 %v325_v11, %v212_v59 }
  0xee   :  { %v367_v0 = vpack.c.bf16 %v230_v54, %v230_v54  ;;  %v375_v1 = vpack.c.bf16 %v238_v55, %v238_v55  ;;  %v231_v2 = vmax.f32 %v189_v56, 0.0  ;;  %v239_v3 = vmax.f32 %v221_v57, 0.0 }
  0xef   :  { %v365_v4 = vpack.c.bf16 %v228_v60, %v228_v60  ;;  %v373_v5 = vpack.c.bf16 %v236_v61, %v236_v61  ;;  %v229_v6 = vmax.f32 %v181_v62, 0.0  ;;  %v237_v7 = vmax.f32 %v213_v63, 0.0 }
  0xf0   :  { %311 = vst.msk [vmem:[%s558_s3 + $0x18] sm:$0xf] %vm304_vm1, %v367_v0  ;;  %319 = vst.msk [vmem:[%s558_s3 + $0x38] sm:$0xf] %vm304_vm1, %v375_v1  ;;  %v368_v8 = vpack.c.bf16 %v231_v2, %v231_v2  ;;  %v376_v9 = vpack.c.bf16 %v239_v3, %v239_v3 }
  0xf1   :  { %309 = vst.msk [vmem:[%s558_s3 + $0x10] sm:$0xf] %vm304_vm1, %v365_v4  ;;  %317 = vst.msk [vmem:[%s558_s3 + $0x30] sm:$0xf] %vm304_vm1, %v373_v5  ;;  %v366_v10 = vpack.c.bf16 %v229_v6, %v229_v6  ;;  %v374_v11 = vpack.c.bf16 %v237_v7, %v237_v7 }
  0xf2   :  { %312 = vst.msk [vmem:[%s558_s3 + $0x1c] sm:$0xf] %vm304_vm1, %v368_v8  ;;  %320 = vst.msk [vmem:[%s558_s3 + $0x3c] sm:$0xf] %vm304_vm1, %v376_v9 }
  0xf3   :  { %310 = vst.msk [vmem:[%s558_s3 + $0x14] sm:$0xf] %vm304_vm1, %v366_v10  ;;  %318 = vst.msk [vmem:[%s558_s3 + $0x34] sm:$0xf] %vm304_vm1, %v374_v11 }

// kernel: forward.8
= control target key start
LH: loop header
LB: loop body
LE: loop exit
PB: predicated region body
PF: predicated region fallthrough
CT: control target
= control target key end

     0   :  { %vm243_vm0 = vcmask 257024   ;;  %s442_s1 = inlined_call_operand.vmem [shape: bf16[256,32], index: 1, kind: input, shape index: {}]   ;;  %s443_s0 = inlined_call_operand.vmem [shape: bf16[32,256], index: 0, kind: input, shape index: {}]   ;;  %s444_s2 = inlined_call_operand.vmem [shape: f32[1,32], index: 2, kind: input, shape index: {}]   ;;  %s445_s3 = inlined_call_operand.vmem [shape: bf16[32,32], index: 3, kind: output, shape index: {}]  }
   0x1   :  { %v325_v0 = vld [vmem:[%s442_s1 + $0x40] sm:$0xff]   ;;  %v327_v2 = vld [vmem:[%s442_s1 + $0x48] sm:$0xff]   ;;  %v329_v4 = vld [vmem:[%s442_s1 + $0x50] sm:$0xff]  }
   0x2   :  { %v326_v1 = vld [vmem:[%s442_s1] sm:$0xff]   ;;  %281 = vmatprep.subr.bf16.mxu0 %v325_v0  ;;  %309 = vmatprep.subr.bf16.mxu1 %v325_v0  ;;  %v328_v3 = vld [vmem:[%s442_s1 + $0x8] sm:$0xff]   ;;  %v330_v5 = vld [vmem:[%s442_s1 + $0x10] sm:$0xff]  }
   0x3   :  { %282 = vmatpush3.bf16.msra.mxu0 %v326_v1  ;;  %317 = vmatpush3.bf16.msra.mxu1 %v326_v1  ;;  %v331_v6 = vld [vmem:[%s442_s1 + $0x58] sm:$0xff]   ;;  %v333_v8 = vld [vmem:[%s442_s1 + $0x60] sm:$0xff]   ;;  %v335_v10 = vld [vmem:[%s442_s1 + $0x68] sm:$0xff]  }
   0x4   :  { %283 = vmatprep.subr.bf16.mxu0 %v327_v2  ;;  %310 = vmatprep.subr.bf16.mxu1 %v327_v2  ;;  %v332_v7 = vld [vmem:[%s442_s1 + $0x18] sm:$0xff]   ;;  %v334_v9 = vld [vmem:[%s442_s1 + $0x20] sm:$0xff]   ;;  %v336_v13 = vld [vmem:[%s442_s1 + $0x28] sm:$0xff]  }
   0x5   :  { %v343_v11 = vld [vmem:[%s443_s0 + $0x4] ss:$8 sps:$4 sm:$0xff]   ;;  %v346_v12 = vld [vmem:[%s443_s0 + $0x14] ss:$8 sps:$4 sm:$0xff]   ;;  %v341_v18 = vld [vmem:[%s443_s0] ss:$8 sps:$4 sm:$0xff]  }
   0x6   :  { %v337_v14 = vld [vmem:[%s442_s1 + $0x70] sm:$0xff]   ;;  %206 = vmatprep.mubr.bf16.mxu0 %v343_v11  ;;  %214 = vmatprep.mubr.bf16.mxu1 %v346_v12  ;;  %v339_v16 = vld [vmem:[%s442_s1 + $0x78] sm:$0xff]   ;;  %v252_v22 = vld [vmem:[%s444_s2] ss:$0 sm:$0xff] }
   0x7   :  { %284 = vmatpush3.bf16.msra.mxu0 %v328_v3  ;;  %318 = vmatpush3.bf16.msra.mxu1 %v328_v3  ;;  %v338_v15 = vld [vmem:[%s442_s1 + $0x30] sm:$0xff]   ;;  %v340_v17 = vld [vmem:[%s442_s1 + $0x38] sm:$0xff]  }
   0x8   :  { %285 = vmatprep.subr.bf16.mxu0 %v329_v4  ;;  %311 = vmatprep.subr.bf16.mxu1 %v329_v4  ;;  %v344_v19 = vld [vmem:[%s443_s0 + $0x10] ss:$8 sps:$4 sm:$0xff]  }
   0xb   :  { %286 = vmatpush3.bf16.msra.mxu0 %v330_v5  ;;  %319 = vmatpush3.bf16.msra.mxu1 %v330_v5 }
   0xc   :  { %287 = vmatprep.subr.bf16.mxu0 %v331_v6  ;;  %312 = vmatprep.subr.bf16.mxu1 %v331_v6 }
   0xf   :  { %288 = vmatpush3.bf16.msra.mxu0 %v332_v7  ;;  %320 = vmatpush3.bf16.msra.mxu1 %v332_v7 }
  0x10   :  { %289 = vmatprep.subr.bf16.mxu0 %v333_v8  ;;  %313 = vmatprep.subr.bf16.mxu1 %v333_v8 }
  0x13   :  { %290 = vmatpush3.bf16.msra.mxu0 %v334_v9  ;;  %321 = vmatpush3.bf16.msra.mxu1 %v334_v9 }
  0x14   :  { %291 = vmatprep.subr.bf16.mxu0 %v335_v10  ;;  %314 = vmatprep.subr.bf16.mxu1 %v335_v10 }
  0x17   :  { %292 = vmatpush3.bf16.msra.mxu0 %v336_v13  ;;  %322 = vmatpush3.bf16.msra.mxu1 %v336_v13 }
  0x18   :  { %293 = vmatprep.subr.bf16.mxu0 %v337_v14  ;;  %315 = vmatprep.subr.bf16.mxu1 %v337_v14 }
  0x1b   :  { %294 = vmatpush3.bf16.msra.mxu0 %v338_v15  ;;  %323 = vmatpush3.bf16.msra.mxu1 %v338_v15 }
  0x1c   :  { %295 = vmatprep.subr.bf16.mxu0 %v339_v16  ;;  %316 = vmatprep.subr.bf16.mxu1 %v339_v16 }
  0x1f   :  { %296 = vmatpush3.bf16.msra.mxu0 %v340_v17  ;;  %324 = vmatpush3.bf16.msra.mxu1 %v340_v17 }
  0x22   :  { %207 = vmatmul.mubr.bf16.vlgmr.msra.gmra.mrb[0].mxu0 %v341_v18  ;;  %215 = vmatmul.mubr.bf16.vlgmr.msra.gmra.mrb[0].mxu1 %v344_v19 }
  0xf5   :  { %v297_v20 = vpop.f32.mrb[0].mxu0  ;;  %v303_v21 = vpop.f32.mrb[0].mxu1 }
  0xf6   :  { %v298_v23 = vpop.f32.mrb[1].mxu0  ;;  %v304_v24 = vpop.f32.mrb[1].mxu1 }
  0xf7   :  { %v299_v25 = vadd.f32 %v298_v23, %v297_v20  ;;  %v305_v26 = vadd.f32 %v304_v24, %v303_v21  ;;  %v300_v27 = vpop.f32.mrb[2].mxu0  ;;  %v306_v28 = vpop.f32.mrb[2].mxu1 }
  0xf8   :  { %v301_v29 = vpop.f32.mrb[3].mxu0  ;;  %v307_v30 = vpop.f32.mrb[3].mxu1 }
  0xf9   :  { %v209_v31 = vadd.f32 %v299_v25, %v252_v22  ;;  %v217_v32 = vadd.f32 %v305_v26, %v252_v22  ;;  %v302_v33 = vadd.f32 %v301_v29, %v300_v27  ;;  %v308_v34 = vadd.f32 %v307_v30, %v306_v28 }
  0xfb   :  { %v223_v35 = vmax.f32 %v209_v31, 0.0  ;;  %v225_v36 = vmax.f32 %v217_v32, 0.0  ;;  %v212_v37 = vadd.f32 %v302_v33, %v252_v22  ;;  %v220_v38 = vadd.f32 %v308_v34, %v252_v22 }
  0xfd   :  { %v277_v39 = vpack.c.bf16 %v223_v35, %v223_v35  ;;  %v279_v40 = vpack.c.bf16 %v225_v36, %v225_v36  ;;  %v224_v41 = vmax.f32 %v212_v37, 0.0  ;;  %v226_v42 = vmax.f32 %v220_v38, 0.0 }
  0xff   :  { %244 = vst.msk [vmem:[%s445_s3] sm:$0xf] %vm243_vm0, %v277_v39  ;;  %246 = vst.msk [vmem:[%s445_s3 + $0x8] sm:$0xf] %vm243_vm0, %v279_v40  ;;  %v278_v43 = vpack.c.bf16 %v224_v41, %v224_v41  ;;  %v280_v44 = vpack.c.bf16 %v226_v42, %v226_v42 }
 0x101   :  { %245 = vst.msk [vmem:[%s445_s3 + $0x4] sm:$0xf] %vm243_vm0, %v278_v43  ;;  %247 = vst.msk [vmem:[%s445_s3 + $0xc] sm:$0xf] %vm243_vm0, %v280_v44 }

// kernel: forward.10
= control target key start
LH: loop header
LB: loop body
LE: loop exit
PB: predicated region body
PF: predicated region fallthrough
CT: control target
= control target key end

     0   :  { %vm42_vm0 = vcmask 261120   ;;  %vm146_vm1 = vcmask 64512   ;;  %s961_s0 = inlined_call_operand.vmem [shape: f32[32,32], index: 0, kind: input, shape index: {}]   ;;  %s962_s1 = inlined_call_operand.vmem [shape: f32[32,8], index: 1, kind: input, shape index: {}]   ;;  %s963_s2 = inlined_call_operand.vmem [shape: f32[1,8], index: 2, kind: input, shape index: {}]   ;;  %s964_s3 = inlined_call_operand.vmem [shape: f32[16,8], index: 3, kind: input, shape index: {}]   ;;  %s965_s4 = inlined_call_operand.vmem [shape: f32[1,16], index: 4, kind: input, shape index: {}]   ;;  %s966_s5 = inlined_call_operand.vmem [shape: f32[32,16], index: 5, kind: output, shape index: {0}]   ;;  %s967_s6 = inlined_call_operand.vmem [shape: s32[32,1], index: 6, kind: output, shape index: {1}]   ;;  %s968_s7 = inlined_call_operand.vmem [shape: f32[32,16], index: 7, kind: output, shape index: {2}]   ;;  %s969_s8 = inlined_call_operand.vmem [shape: f32[32,8], index: 8, kind: output, shape index: {3}]   ;;  %s970_s9 = inlined_call_operand.hbm [shape: f32[1,1], index: 9, kind: output, shape index: {4}]   ;;  %s971_s10 = inlined_call_operand.vmem [shape: f32[1,16], index: 10, kind: output, shape index: {5}]  }
   0x1   :  { %v31_v0 = vld [vmem:[%s962_s1] sm:$0xff]  ;;  %v32_v1 = vld [vmem:[%s962_s1 + $0x8] sm:$0xff]  ;;  %v33_v2 = vld [vmem:[%s962_s1 + $0x10] sm:$0xff] }
   0x2   :  { %v675_v3 = vpack.c.bf16 %v32_v1, %v31_v0  ;;  %v34_v4 = vld [vmem:[%s962_s1 + $0x18] sm:$0xff]  ;;  %v27_v5 = vld [vmem:[%s961_s0] sm:$0xff]  ;;  %v141_v8 = vld [vmem:[%s964_s3 + $0x8] sm:$0xff] }
   0x3   :  { %v679_v6 = vpack.c.bf16 %v34_v4, %v33_v2  ;;  %649 = vmatprep.mubr.msk.f32.mxu0 %vm42_vm0, %v27_v5  ;;  %v140_v7 = vld [vmem:[%s964_s3] sm:$0xff]  ;;  %vm684_vm2 = vmpackc.low %vm146_vm1, %vm146_vm1 }
   0x4   :  { %676 = vmatprep.subr.bf16.mxu0 %v675_v3  ;;  %v683_v9 = vpack.c.bf16 %v141_v8, %v140_v7 }
   0x5   :  { %678 = vmatpush3.bf16.msra.mxu0 %v675_v3 }
   0x6   :  { %16 = vsyncpa [#allocation3], 0  ;;  %680 = vmatprep.subr.bf16.mxu0 %v679_v6  ;;  %685 = vmatprep.subr.msk.bf16.mxu1 %vm684_vm2, %v683_v9  ;;  %v28_v10 = vld [vmem:[%s961_s0 + $0x8] sm:$0xff]  ;;  %v29_v11 = vld [vmem:[%s961_s0 + $0x10] sm:$0xff]  ;;  %vm281_vm3 = vcmask 130048   ;;  %v286_v55 = vlaneseq  ;;  %vm368_vm12 = vcmask 7168  }
   0x7   :  { %688 = vmatpush3.bf16.xpose.msk.msra.mxu1 %vm684_vm2, %v683_v9  ;;  %v30_v12 = vld [vmem:[%s961_s0 + $0x18] sm:$0xff]  ;;  %v601_v13 = vld [vmem:[%s963_s2] ss:$0 sm:$0xff]  ;;  %vm565_vm2 = vcmask 122880  }
   0x8   :  { %693 = vmatprep.subr.bf16.mxu1 %v683_v9  ;;  %v612_v33 = vld [vmem:[%s965_s4] ss:$0 sm:$0xff]  ;;  %v868_v56 = vand.u32 127, %v286_v55 }
   0x9   :  { %682 = vmatpush3.bf16.msra.mxu0 %v679_v6 }
   0xa   :  { %690 = vmatprep.subr.bf16.mxu0 %v683_v9 }
   0xc   :  { %650 = vmatmul.mubr.msk.f32.vlgmr.msra.gmra.mrb[0].mxu0 %vm42_vm0, %v28_v10 }
   0xd   :  { %652 = vmatprep.mubr.msk.f32.mxu0 %vm42_vm0, %v29_v11  ;;  %692 = vmatpush3.bf16.msra.mxu0 %v683_v9 }
  0x10   :  { %653 = vmatmul.mubr.msk.f32.gmra.mrb[2].mxu0 %vm42_vm0, %v30_v12 }
  0xdf   :  { %v651_v14 = vpop.f32.mrb[0].mxu0 }
  0xe0   :  { %v121_v15 = vpop.f32.mrb[1].mxu0  ;;  %v817_v16 = vadd.f32 %v651_v14, %v601_v13 }
  0xe1   :  { %v819_v17 = vadd.f32 %v601_v13, %v121_v15 }
  0xe2   :  { %v143_v24 = vmul.f32 %v817_v16, %v817_v16 }
  0xe3   :  { %v654_v18 = vpop.f32.mrb[2].mxu0  ;;  %659 = vmatprep.mubr.msk.f32.mxu1 %vm146_vm1, %v819_v17  ;;  %v142_v19 = vmul.f32 %v819_v17, %v819_v17 }
  0xe4   :  { %v131_v20 = vpop.f32.mrb[3].mxu0  ;;  %660 = vmatmul.mubr.msk.f32.vlgmr.msra.gmra.mrb[0].mxu1 %vm146_vm1, %v817_v16  ;;  %v827_v21 = vadd.f32 %v654_v18, %v601_v13  ;;  %v150_v27 = vsel %vm146_vm1, %v143_v24, 0.0 }
  0xe5   :  { %v829_v22 = vadd.f32 %v601_v13, %v131_v20  ;;  %v147_v23 = vsel %vm146_vm1, %v142_v19, 0.0  ;;  %694 = vmatpush3.bf16.msra.mxu1 %v683_v9 }
  0xe6   :  { %148 = vadd.xlane.f32.xlu0 %v147_v23  ;;  %v145_v28 = vmul.f32 %v827_v21, %v827_v21 }
  0xe7   :  { %662 = vmatprep.mubr.msk.f32.mxu1 %vm146_vm1, %v829_v22  ;;  %v144_v25 = vmul.f32 %v829_v22, %v829_v22 }
  0xe8   :  { %663 = vmatmul.mubr.msk.f32.gmra.mrb[2].mxu1 %vm146_vm1, %v827_v21  ;;  %v156_v29 = vsel %vm146_vm1, %v145_v28, 0.0 }
  0xe9   :  { %v153_v26 = vsel %vm146_vm1, %v144_v25, 0.0 }
  0xea   :  { %154 = vadd.xlane.f32.xlu1 %v153_v26  ;;  %151 = vadd.xlane.f32.xlu0 %v150_v27 }
  0xee   :  { %157 = vadd.xlane.f32.xlu1 %v156_v29 }
 0x173   :  { %v149_v30 = vpop.xlane.xlu0 %148 }
 0x174   :  { %v269_v38 = vadd.f32 %v612_v33, %v149_v30 }
 0x177   :  { %v155_v31 = vpop.xlane.xlu1 %154  ;;  %v152_v32 = vpop.xlane.xlu0 %151 }
 0x178   :  { %v270_v35 = vadd.f32 %v612_v33, %v152_v32  ;;  %v271_v48 = vadd.f32 %v612_v33, %v155_v31 }
 0x17b   :  { %v158_v39 = vpop.xlane.xlu1 %157 }
 0x17c   :  { %v272_v44 = vadd.f32 %v612_v33, %v158_v39 }
 0x1b7   :  { %v661_v34 = vpop.f32.mrb[0].mxu1 }
 0x1b8   :  { %v274_v36 = vmul.f32 2.0, %v661_v34  ;;  %v243_v37 = vpop.f32.mrb[1].mxu1 }
 0x1b9   :  { %v273_v40 = vmul.f32 2.0, %v243_v37 }
 0x1ba   :  { %v278_v41 = vsub.f32 %v270_v35, %v274_v36 }
 0x1bb   :  { %v277_v42 = vsub.f32 %v269_v38, %v273_v40  ;;  %v664_v43 = vpop.f32.mrb[2].mxu1 }
 0x1bc   :  { %283 = vst.msk [vmem:[%s966_s5 + $0x8] sm:$0xff] %vm281_vm3, %v278_v41  ;;  %v276_v45 = vmul.f32 2.0, %v664_v43  ;;  %v253_v46 = vpop.f32.mrb[3].mxu1  ;;  %v291_v47 = vsel %vm281_vm3, %v278_v41, inf }
 0x1bd   :  { %282 = vst.msk [vmem:[%s966_s5] sm:$0xff] %vm281_vm3, %v277_v42  ;;  %v275_v49 = vmul.f32 2.0, %v253_v46  ;;  %292 = vmin.xlane.f32.xlu1 %v291_v47  ;;  %v288_v50 = vsel %vm281_vm3, %v277_v42, inf }
 0x1be   :  { %v280_v51 = vsub.f32 %v272_v44, %v276_v45  ;;  %289 = vmin.xlane.f32.xlu0 %v288_v50  ;;  %v721_v50 = vmov 0.0  }
 0x1bf   :  { %v279_v52 = vsub.f32 %v271_v48, %v275_v49 }
 0x1c0   :  { %285 = vst.msk [vmem:[%s966_s5 + $0x18] sm:$0xff] %vm281_vm3, %v280_v51  ;;  %v297_v53 = vsel %vm281_vm3, %v280_v51, inf }
 0x1c1   :  { %284 = vst.msk [vmem:[%s966_s5 + $0x10] sm:$0xff] %vm281_vm3, %v279_v52  ;;  %298 = vmin.xlane.f32.xlu1 %v297_v53  ;;  %v294_v54 = vsel %vm281_vm3, %v279_v52, inf }
 0x1c2   :  { %295 = vmin.xlane.f32.xlu0 %v294_v54 }
 0x24a   :  { %v293_v57 = vpop.xlane.xlu1 %292 }
 0x24b   :  { %vm301_vm4 = vcmp.eq.f32.partialorder %v278_v41, %v293_v57  ;;  %v290_v58 = vpop.xlane.xlu0 %289 }
 0x24c   :  { %v305_v59 = vsel %vm301_vm4, %v868_v56, 16  ;;  %vm300_vm5 = vcmp.eq.f32.partialorder %v277_v42, %v290_v58 }
 0x24d   :  { %v323_v60 = vsel %vm281_vm3, %v305_v59, 2147483647  ;;  %v304_v61 = vsel %vm300_vm5, %v868_v56, 16 }
 0x24e   :  { %v308_v62 = vsel %vm281_vm3, %v304_v61, 2147483647  ;;  %v299_v63 = vpop.xlane.xlu1 %298  ;;  %v325_v0 = vshra.s32 %v323_v60, 16  ;;  %v324_v13 = vand.u32 65535, %v323_v60 }
 0x24f   :  { %vm303_vm6 = vcmp.eq.f32.partialorder %v280_v51, %v299_v63  ;;  %v296_v1 = vpop.xlane.xlu0 %295  ;;  %v310_v2 = vshra.s32 %v308_v62, 16  ;;  %v309_v14 = vand.u32 65535, %v308_v62 }
 0x250   :  { %v307_v3 = vsel %vm303_vm6, %v868_v56, 16  ;;  %vm302_vm7 = vcmp.eq.f32.partialorder %v279_v52, %v296_v1  ;;  %v327_v4 = vcvt.s32.f32 %v325_v0  ;;  %v326_v18 = vcvt.s32.f32 %v324_v13 }
 0x251   :  { %v353_v5 = vsel %vm281_vm3, %v307_v3, 2147483647  ;;  %v306_v6 = vsel %vm302_vm7, %v868_v56, 16  ;;  %v312_v7 = vcvt.s32.f32 %v310_v2  ;;  %v311_v23 = vcvt.s32.f32 %v309_v14 }
 0x252   :  { %v338_v8 = vsel %vm281_vm3, %v306_v6, 2147483647  ;;  %328 = vmin.xlane.f32.xlu1 %v327_v4  ;;  %v355_v9 = vshra.s32 %v353_v5, 16  ;;  %v354_v19 = vand.u32 65535, %v353_v5 }
 0x253   :  { %313 = vmin.xlane.f32.xlu0 %v312_v7  ;;  %v340_v10 = vshra.s32 %v338_v8, 16  ;;  %v339_v24 = vand.u32 65535, %v338_v8 }
 0x254   :  { %v357_v11 = vcvt.s32.f32 %v355_v9  ;;  %v356_v28 = vcvt.s32.f32 %v354_v19 }
 0x255   :  { %v342_v12 = vcvt.s32.f32 %v340_v10  ;;  %v341_v30 = vcvt.s32.f32 %v339_v24 }
 0x256   :  { %358 = vmin.xlane.f32.xlu1 %v357_v11 }
 0x257   :  { %343 = vmin.xlane.f32.xlu0 %v342_v12 }
 0x2df   :  { %v329_v15 = vpop.xlane.xlu1 %328 }
 0x2e0   :  { %v314_v20 = vpop.xlane.xlu0 %313  ;;  %vm330_vm8 = vcmp.eq.f32.partialorder %v327_v4, %v329_v15  ;;  %v335_v33 = vcvt.f32.s32 %v329_v15 }
 0x2e1   :  { %v331_v25 = vsel %vm330_vm8, %v326_v18, inf  ;;  %vm315_vm9 = vcmp.eq.f32.partialorder %v312_v7, %v314_v20  ;;  %v320_v34 = vcvt.f32.s32 %v314_v20 }
 0x2e2   :  { %332 = vmin.xlane.f32.xlu1 %v331_v25  ;;  %v316_v26 = vsel %vm315_vm9, %v311_v23, inf  ;;  %v336_v36 = vshll.u32 %v335_v33, 16 }
 0x2e3   :  { %v359_v27 = vpop.xlane.xlu1 %358  ;;  %317 = vmin.xlane.f32.xlu0 %v316_v26  ;;  %v321_v40 = vshll.u32 %v320_v34, 16 }
 0x2e4   :  { %v344_v29 = vpop.xlane.xlu0 %343  ;;  %vm360_vm10 = vcmp.eq.f32.partialorder %v357_v11, %v359_v27  ;;  %v365_v37 = vcvt.f32.s32 %v359_v27 }
 0x2e5   :  { %v361_v31 = vsel %vm360_vm10, %v356_v28, inf  ;;  %vm345_vm11 = vcmp.eq.f32.partialorder %v342_v12, %v344_v29  ;;  %v350_v41 = vcvt.f32.s32 %v344_v29 }
 0x2e6   :  { %362 = vmin.xlane.f32.xlu1 %v361_v31  ;;  %v346_v32 = vsel %vm345_vm11, %v341_v30, inf  ;;  %v366_v46 = vshll.u32 %v365_v37, 16 }
 0x2e7   :  { %347 = vmin.xlane.f32.xlu0 %v346_v32  ;;  %v351_v49 = vshll.u32 %v350_v41, 16 }
 0x36f   :  { %v333_v35 = vpop.xlane.xlu1 %332 }
 0x370   :  { %v334_v38 = vcvt.f32.s32 %v333_v35  ;;  %v318_v39 = vpop.xlane.xlu0 %317 }
 0x371   :  { %v319_v42 = vcvt.f32.s32 %v318_v39 }
 0x372   :  { %v337_v43 = vadd.s32 %v336_v36, %v334_v38 }
 0x373   :  { %v322_v44 = vadd.s32 %v321_v40, %v319_v42  ;;  %v363_v45 = vpop.xlane.xlu1 %362 }
 0x374   :  { %370 = vst.msk [vmem:[%s967_s6 + $0x8] sm:$0xff] %vm368_vm12, %v337_v43  ;;  %vm374_vm13 = vcmp.eq.s32.totalorder %v868_v56, %v337_v43  ;;  %v364_v47 = vcvt.f32.s32 %v363_v45  ;;  %v348_v48 = vpop.xlane.xlu0 %347 }
 0x375   :  { %v614_v51 = vsel %vm374_vm13, 1.0, %v721_v50  ;;  %369 = vst.msk [vmem:[%s967_s6] sm:$0xff] %vm368_vm12, %v322_v44  ;;  %v349_v52 = vcvt.f32.s32 %v348_v48  ;;  %vm373_vm14 = vcmp.eq.s32.totalorder %v868_v56, %v322_v44 }
 0x376   :  { %386 = vst.msk [vmem:[%s968_s7 + $0x8] sm:$0xff] %vm281_vm3, %v614_v51  ;;  %v367_v53 = vadd.s32 %v366_v46, %v364_v47  ;;  %v613_v54 = vsel %vm373_vm14, 1.0, %v721_v50  ;;  %v553_v55 = vsel %vm281_vm3, %v614_v51, 0.0 }
 0x377   :  { %v352_v57 = vadd.s32 %v351_v49, %v349_v52  ;;  %385 = vst.msk [vmem:[%s968_s7] sm:$0xff] %vm281_vm3, %v613_v54  ;;  %669 = vmatprep.mubr.msk.f32.mxu0 %vm281_vm3, %v613_v54  ;;  %v552_v58 = vsel %vm281_vm3, %v613_v54, 0.0 }
 0x378   :  { %372 = vst.msk [vmem:[%s967_s6 + $0x18] sm:$0xff] %vm368_vm12, %v367_v53  ;;  %vm376_vm15 = vcmp.eq.s32.totalorder %v868_v56, %v367_v53  ;;  %v554_v59 = vadd.f32 %v553_v55, %v552_v58  ;;  %670 = vmatmul.mubr.msk.f32.vlgmr.msra.gmra.mrb[4].mxu0 %vm281_vm3, %v614_v51 }
 0x379   :  { %v616_v60 = vsel %vm376_vm15, 1.0, %v721_v50  ;;  %371 = vst.msk [vmem:[%s967_s6 + $0x10] sm:$0xff] %vm368_vm12, %v352_v57  ;;  %vm375_vm0 = vcmp.eq.s32.totalorder %v868_v56, %v352_v57 }
 0x37a   :  { %388 = vst.msk [vmem:[%s968_s7 + $0x18] sm:$0xff] %vm281_vm3, %v616_v60  ;;  %v615_v61 = vsel %vm375_vm0, 1.0, %v721_v50  ;;  %v557_v56 = vsel %vm281_vm3, %v616_v60, 0.0 }
 0x37b   :  { %387 = vst.msk [vmem:[%s968_s7 + $0x10] sm:$0xff] %vm281_vm3, %v615_v61  ;;  %672 = vmatprep.mubr.msk.f32.mxu1 %vm281_vm3, %v615_v61  ;;  %v555_v62 = vsel %vm281_vm3, %v615_v61, 0.0 }
 0x37c   :  { %v556_v63 = vadd.f32 %v555_v62, %v554_v59  ;;  %673 = vmatmul.mubr.msk.f32.vlgmr.msra.gmra.mrb[4].mxu1 %vm281_vm3, %v616_v60  ;;  %vm546_vm3 = vcmask 0  }
 0x37e   :  { %v558_v0 = vadd.f32 %v557_v56, %v556_v63 }
 0x380   :  { %v559_v1 = vrot.slane %v558_v0, 4 }
 0x382   :  { %v560_v2 = vadd.f32 %v559_v1, %v558_v0 }
 0x384   :  { %v561_v3 = vrot.slane %v560_v2, 2 }
 0x386   :  { %v562_v4 = vadd.f32 %v561_v3, %v560_v2 }
 0x388   :  { %v563_v5 = vrot.slane %v562_v4, 1 }
 0x38a   :  { %v564_v6 = vadd.f32 %v563_v5, %v562_v4 }
 0x38c   :  { %566 = vst.msk [vmem:[%s971_s10] sm:$0x1] %vm565_vm2, %v564_v6 }
 0x44b   :  { %v671_v7 = vpop.f32.mrb[4].mxu0 }
 0x44c   :  { %487 = vst.msk [vmem:[%s969_s8 + $0x8] sm:$0xff] %vm146_vm1, %v671_v7  ;;  %v506_v8 = vsub.f32 %v671_v7, %v817_v16  ;;  %v467_v9 = vpop.f32.mrb[5].mxu0 }
 0x44d   :  { %486 = vst.msk [vmem:[%s969_s8] sm:$0xff] %vm146_vm1, %v467_v9  ;;  %v505_v10 = vsub.f32 %v467_v9, %v819_v17 }
 0x44e   :  { %v522_v11 = vmul.f32 %v506_v8, %v506_v8 }
 0x44f   :  { %v521_v12 = vmul.f32 %v505_v10, %v505_v10  ;;  %v674_v13 = vpop.f32.mrb[4].mxu1 }
 0x450   :  { %489 = vst.msk [vmem:[%s969_s8 + $0x18] sm:$0xff] %vm146_vm1, %v674_v13  ;;  %v508_v14 = vsub.f32 %v674_v13, %v827_v21  ;;  %v477_v15 = vpop.f32.mrb[5].mxu1  ;;  %v528_v16 = vsel %vm146_vm1, %v522_v11, 0.0 }
 0x451   :  { %488 = vst.msk [vmem:[%s969_s8 + $0x10] sm:$0xff] %vm146_vm1, %v477_v15  ;;  %v507_v17 = vsub.f32 %v477_v15, %v829_v22  ;;  %529 = vadd.xlane.f32.xlu1 %v528_v16  ;;  %v525_v18 = vsel %vm146_vm1, %v521_v12, 0.0  ;;  %s722_s8 = smov [#allocation2]  }
 0x452   :  { %v524_v19 = vmul.f32 %v508_v14, %v508_v14  ;;  %526 = vadd.xlane.f32.xlu0 %v525_v18  ;;  %s581_s17 = sshll.u32 %s722_s8, 4  ;;  %s582_s17 = int_to_ptr.vmem [resolvable:$true] %s581_s17 }
 0x453   :  { %v523_v20 = vmul.f32 %v507_v17, %v507_v17  ;;  %s697_s18 = scalar_lea.vmem %s582_s17, 16  ;;  %s701_s19 = scalar_lea.vmem %s582_s17, 32 }
 0x454   :  { %v534_v23 = vsel %vm146_vm1, %v524_v19, 0.0  ;;  %p698_p0 = scmp.ne.s32.totalorder %s582_s17, %s697_s18  ;;  %p702_p1 = scmp.lt.s32.totalorder %s582_s17, %s582_s17 }
 0x455   :  { %535 = vadd.xlane.f32.xlu1 %v534_v23  ;;  %v531_v21 = vsel %vm146_vm1, %v523_v20, 0.0  ;;  %p703_p2 = scmp.lt.s32.totalorder %s701_s19, %s697_s18 }
 0x456   :  { %532 = vadd.xlane.f32.xlu0 %v531_v21 }
 0x457   :  { %p704_p3 = por %p703_p2, %p702_p1 }
 0x459   :  { %p705_p4 = pnand %p704_p3, %p698_p0 }
 0x4de   :  { %v530_v24 = vpop.xlane.xlu1 %529 }
 0x4df   :  { %v527_v25 = vpop.xlane.xlu0 %526 }
 0x4e0   :  { %v537_v26 = vadd.f32 %v530_v24, %v527_v25 }
 0x4e2   :  { %v536_v29 = vpop.xlane.xlu1 %535 }
 0x4e3   :  { %v533_v27 = vpop.xlane.xlu0 %532 }
 0x4e4   :  { %v538_v28 = vadd.f32 %v537_v26, %v533_v27 }
 0x4e6   :  { %v539_v30 = vadd.f32 %v538_v28, %v536_v29 }
 0x4e8   :  { %v540_v22 = vrot.slane %v539_v30, 4 }
 0x4ea   :  { %v541_v31 = vadd.f32 %v540_v22, %v539_v30 }
 0x4ec   :  { %v542_v32 = vrot.slane %v541_v31, 2 }
 0x4ee   :  { %v543_v33 = vadd.f32 %v542_v32, %v541_v31 }
 0x4f0   :  { %v544_v34 = vrot.slane %v543_v33, 1 }
 0x4f2   :  { %v545_v35 = vadd.f32 %v544_v34, %v543_v33 }
 0x4f4   :  { %547 = vst.msk [vmem:[#allocation2] sm:$0x1] %vm546_vm3, %v545_v35 }
 0x4f5   :  { %708 = shalt.err (!%p705_p4)
}
 0x4f6   :  { %s709_s21 = scalar_lea.hbm %s970_s9, 16 }
 0x4f7   :  { %p710_p5 = scmp.ne.s32.totalorder %s970_s9, %s709_s21  ;;  %p713_p6 = scmp.lt.u32.totalorder %s709_s21, %s970_s9 }
 0x4f9   :  { %p715_p7 = pnand %p713_p6, %p710_p5 }
 0x4fb   :  { %718 = shalt.err (!%p715_p7)
}
 0x4fc   :  { %584 = dma.vmem_to_hbm [thread:$0]  %s582_s17, 16, %s970_s9, [#allocation3]  }
 0x4fd   :  { %719 = dma.done.wait [#allocation3], 16  }
 0x4fe   :  { %720 = vsyncadd [#allocation3], 4294967280 }
 0x4ff   :  { %600 = vsyncpa [#allocation3], 1 }

// kernel: tile.13
= control target key start
LH: loop header
LB: loop body
LE: loop exit
PB: predicated region body
PF: predicated region fallthrough
CT: control target
= control target key end

     0   :  { %s22_s0 = inlined_call_operand.vmem [shape: f32[16], index: 0, kind: input, shape index: {}]   ;;  %s23_s1 = inlined_call_operand.vmem [shape: f32[2,16], index: 1, kind: output, shape index: {}]  }
   0x1   :  { %v4_v0 = vld [vmem:[%s22_s0] ss:$0 sm:$0xff] }
   0x2   :  { %5 = vst [vmem:[%s23_s1] sm:$0x3] %v4_v0 }

// kernel: tile.14
= control target key start
LH: loop header
LB: loop body
LE: loop exit
PB: predicated region body
PF: predicated region fallthrough
CT: control target
= control target key end

     0   :  { %vm7_vm0 = vcmask 130048   ;;  %vm13_vm1 = vcmask 261248   ;;  %s39_s0 = inlined_call_operand.vmem [shape: f32[2,16], index: 0, kind: input, shape index: {}]   ;;  %s40_s1 = inlined_call_operand.vmem [shape: f32[1,32], index: 1, kind: output, shape index: {}]  }
   0x1   :  { %v4_v0 = vld [vmem:[%s39_s0] sm:$0x3]  ;;  %s22_s0 = smov 16  }
   0x2   :  { %5 = vst [vmem:[#allocation1] sm:$0x3] %v4_v0 }
   0x9   :  { %v10_v1 = vld [vmem:[#allocation1 + $0x1] sm:$0x1]   ;;  %v6_v2 = vld [vmem:[#allocation1] sm:$0x1]  }
   0xa   :  { %11 = vrot.lane.b32.xlu0 %v10_v1, %s22_s0  ;;  %8 = vst.msk [vmem:[#allocation0] sm:$0x1] %vm7_vm0, %v6_v2  }
  0x7c   :  { %v12_v3 = vpop.permute.xlu0 %11  }
  0x7d   :  { %14 = vst.msk [vmem:[#allocation0] sm:$0x1] %vm13_vm1, %v12_v3  }
  0x84   :  { %v18_v4 = vld [vmem:[#allocation0] sm:$0x1] }
  0x85   :  { %20 = vst [vmem:[%s40_s1] sm:$0x1] %v18_v4 }

// kernel: forward.9
= control target key start
LH: loop header
LB: loop body
LE: loop exit
PB: predicated region body
PF: predicated region fallthrough
CT: control target
= control target key end

     0   :  { %s2982_s27 = smov 0   ;;  %s3482_s0 = inlined_call_operand.vmem [shape: bf16[2,16,32], index: 0, kind: input, shape index: {}]   ;;  %s3483_s1 = inlined_call_operand.vmem [shape: f32[16,9], index: 1, kind: input, shape index: {}]   ;;  %s3484_s2 = inlined_call_operand.vmem [shape: bf16[288,32], index: 2, kind: input, shape index: {}]   ;;  %s3485_s3 = inlined_call_operand.vmem [shape: f32[1,32], index: 3, kind: input, shape index: {}]   ;;  %s3486_s4 = inlined_call_operand.vmem [shape: bf16[288,8], index: 4, kind: input, shape index: {}]   ;;  %s3487_s5 = inlined_call_operand.vmem [shape: bf16[8,32], index: 5, kind: input, shape index: {}]   ;;  %s3488_s6 = inlined_call_operand.vmem [shape: bf16[288,8], index: 6, kind: input, shape index: {}]   ;;  %s3489_s7 = inlined_call_operand.vmem [shape: bf16[8,32], index: 7, kind: input, shape index: {}]   ;;  %s3490_s8 = inlined_call_operand.vmem [shape: f32[2,16,32], index: 8, kind: output, shape index: {}]  }
   0x1 LB: > { %s2358_s28 = sadd.s32 4294967295, %s2925_s27   ;;  %p2362_p0 = scmp.ge.s32.totalorder %s2925_s27, 1  ;;  %s2925_s27 = sphi %s2982_s27, %s18_s27  }
   0x2   : > { %p262_p1 = scmp.lt.s32.totalorder %s2925_s27, 3 }
   0x4   : > { %p263_p2 = pnand %p2362_p0, %p262_p1 }
   0x5   : > { %v2993_v0 = vld [vmem:[%s3483_s1] sm:$0xff] (!%p263_p2)  ;;  %v2927_v1 = vmov (!%p263_p2), 1   ;;  %v2928_v2 = vmov (!%p263_p2), 0   ;;  %p296_p3 = scmp.lt.s32.totalorder (!%p263_p2), %s2358_s28, 1  ;;  %v2864_v3 = vld [vmem:[%s3484_s2 + $0x10] sm:$0xff] (!%p263_p2)   ;;  %vm307_vm0 = vcmask (!%p263_p2), 258048  }
   0x6   : > { %266 = sbr.rel (%p263_p2) target bundleno = 1490 (0x5d2), region = 52  ;;  %2851 = vset.pattern.permute.xlu0 (!%p263_p2), %v2927_v1  ;;  %2852 = vset.pattern.permute.xlu1 (!%p263_p2), %v2928_v2  ;;  %v2865_v4 = vld [vmem:[%s3484_s2] sm:$0xff] (!%p263_p2)   ;;  %v311_v5 = vld [vmem:[%s3483_s1 + $0x8] sm:$0xff] (!%p263_p2)  ;;  %v2929_v6 = vmov (!%p263_p2), 0.0   ;;  %v2866_v7 = vld [vmem:[%s3484_s2 + $0x18] sm:$0xff] (!%p263_p2)   ;;  %vm316_vm1 = vcmask (!%p263_p2), 261120  }
   0x7   : > { %323 = vperm.xlu1 (!%p263_p2), %2852, %v2993_v0   ;;  %341 = vperm.xlu0 (!%p263_p2), %2851, %v2993_v0   ;;  %308 = vst.msk [vmem:[#allocation2] sm:$0x1f] (!%p263_p2), %vm307_vm0, %v2929_v6  ;;  %309 = vst.msk [vmem:[#allocation2 + $0x15] sm:$0x1f] (!%p263_p2), %vm307_vm0, %v2929_v6  ;;  %v2867_v8 = vld [vmem:[%s3484_s2 + $0x8] sm:$0xff] (!%p263_p2)   ;;  %vm2930_vm2 = vmmov (!%p263_p2), 0  }
   0x8   : > { %2541 = vmatprep.subr.bf16.mxu0 (!%p263_p2), %v2929_v6  ;;  %2549 = vmatprep.subr.bf16.mxu1 (!%p263_p2), %v2929_v6  ;;  %v2931_v12 = vmov (!%p263_p2), 2   ;;  %v2932_v13 = vmov (!%p263_p2), 3   ;;  %v2933_v14 = vmov (!%p263_p2), 5   ;;  %v2934_v15 = vmov (!%p263_p2), 6   ;;  %v2868_v30 = vld [vmem:[%s3484_s2 + $0x20] sm:$0xff] (!%p263_p2)   ;;  %v2869_v31 = vld [vmem:[%s3484_s2 + $0x30] sm:$0xff] (!%p263_p2)  }
   0x9   : > { %2542 = vmatpush3.bf16.msra.mxu0 (!%p263_p2), %v2864_v3  ;;  %2550 = vmatpush3.bf16.msra.mxu1 (!%p263_p2), %v2865_v4  ;;  %v2935_v16 = vmov (!%p263_p2), 7   ;;  %v2936_v17 = vmov (!%p263_p2), 8   ;;  %v2870_v38 = vld [vmem:[%s3484_s2 + $0x28] sm:$0xff] (!%p263_p2)   ;;  %v2871_v39 = vld [vmem:[%s3484_s2 + $0x38] sm:$0xff] (!%p263_p2)   ;;  %v2872_v46 = vld [vmem:[%s3484_s2 + $0x40] sm:$0xff] (!%p263_p2)   ;;  %vm1600_vm3 = vcmask (!%p263_p2), 1043456  }
   0xa   : > { %2543 = vmatprep.subr.bf16.mxu0 (!%p263_p2), %v2929_v6  ;;  %2551 = vmatprep.subr.bf16.mxu1 (!%p263_p2), %v2929_v6  ;;  %v2873_v50 = vld [vmem:[%s3484_s2 + $0x50] sm:$0xff] (!%p263_p2)   ;;  %v2874_v52 = vld [vmem:[%s3484_s2 + $0x48] sm:$0xff] (!%p263_p2)   ;;  %v2875_v54 = vld [vmem:[%s3484_s2 + $0x58] sm:$0xff] (!%p263_p2)   ;;  %vm1596_vm4 = vcmask (!%p263_p2), 64512  }
   0xb   : > { %328 = vperm.xlu1 (!%p263_p2), %2852, %v311_v5   ;;  %345 = vperm.xlu0 (!%p263_p2), %2851, %v311_v5   ;;  %v2876_v57 = vld [vmem:[%s3484_s2 + $0x60] sm:$0xff] (!%p263_p2)   ;;  %v2878_v62 = vld [vmem:[%s3484_s2 + $0x70] sm:$0xff] (!%p263_p2)   ;;  %v2877_v1 = vld [vmem:[%s3484_s2 + $0x68] sm:$0xff] (!%p263_p2)  }
   0xc   : > { %2545 = vmatprep.mubr.msk.bf16.mxu0 (!%p263_p2), %vm2930_vm2, %v2929_v6  ;;  %2553 = vmatprep.mubr.msk.bf16.mxu1 (!%p263_p2), %vm2930_vm2, %v2929_v6 }
   0xd   : > { %s3492_s28 = smov (!%p296_p3, %s2358_s28), 1  ;;  %2544 = vmatpush3.bf16.msra.mxu0 %v2866_v7  ;;  %2552 = vmatpush3.bf16.msra.mxu1 %v2867_v8  ;;  %v2879_v8 = vld [vmem:[%s3484_s2 + $0x78] sm:$0xff]  }
   0xe   : > { %s2454_s15 = sshll.u32 %s3492_s28, 3  ;;  %2557 = vmatprep.subr.bf16.mxu0 %v2929_v6  ;;  %2565 = vmatprep.subr.bf16.mxu1 %v2929_v6  ;;  %s2455_s9 = sshll.u32 %s3492_s28, 4 }
   0xf   : > { %s300_s20 = scalar_lea.vmem %s3482_s0, %s2454_s15  ;;  %2854 = vset.pattern.permute.xlu1 %v2931_v12  ;;  %2853 = vset.pattern.permute.xlu0 %v2931_v12  ;;  %s305_s12 = scalar_lea.vmem %s3490_s8, %s2455_s9 }
  0x10   : > { %v3024_v9 = vld [vmem:[%s300_s20] sm:$0xff]   ;;  %474 = vperm.xlu1 %2854, %v311_v5   ;;  %470 = vperm.xlu0 %2853, %v2993_v0  }
  0x11   : > { %v314_v10 = vunpack.c.l.bf16 %v3024_v9  ;;  %v315_v11 = vunpack.c.h.bf16 %v3024_v9 }
  0x13   : > { %317 = vst.msk [vmem:[#allocation2 + $0x5] sm:$0xff] %vm316_vm1, %v314_v10  ;;  %318 = vst.msk [vmem:[#allocation2 + $0xd] sm:$0xff] %vm316_vm1, %v315_v11 }
  0x14   : > { %2855 = vset.pattern.permute.xlu1 %v2932_v13  ;;  %2856 = vset.pattern.permute.xlu0 %v2932_v13 }
  0x15   : > { %545 = vperm.xlu1 %2855, %v2993_v0   ;;  %549 = vperm.xlu0 %2856, %v311_v5  }
  0x19   : > { %2857 = vset.pattern.permute.xlu1 %v2933_v14  ;;  %2858 = vset.pattern.permute.xlu0 %v2934_v15  ;;  %v2881_v14 = vld [vmem:[%s3484_s2 + $0x88] sm:$0xff]  }
  0x1a   : > { %687 = vperm.xlu1 %2857, %v2993_v0   ;;  %762 = vperm.xlu0 %2858, %v2993_v0   ;;  %v338_v20 = vld [vmem:[#allocation2 + $0x1] sm:$0xff]  ;;  %v3048_v23 = vld [vmem:[#allocation2 + $0x9] sm:$0xff]  ;;  %v835_v7 = vld [vmem:[#allocation2 + $0x11] sm:$0xff] }
  0x1b   : > { %v319_v21 = vld [vmem:[#allocation2] sm:$0xff]  ;;  %v3046_v22 = vld [vmem:[#allocation2 + $0x8] sm:$0xff] }
  0x1c   : > { %v3066_v34 = vld [vmem:[#allocation2 + $0xa] sm:$0xff]  ;;  %v467_v35 = vld [vmem:[#allocation2 + $0x2] sm:$0xff] }
  0x1d   : > { %v542_v42 = vld [vmem:[#allocation2 + $0x4] sm:$0xff]  ;;  %v543_v43 = vld [vmem:[#allocation2 + $0xc] sm:$0xff] }
  0x1e   : > { %691 = vperm.xlu1 %2857, %v311_v5   ;;  %2861 = vset.pattern.permute.xlu0 %v2935_v16  ;;  %v684_v55 = vld [vmem:[#allocation2 + $0x6] sm:$0xff]  ;;  %v685_v56 = vld [vmem:[#allocation2 + $0xe] sm:$0xff] }
  0x1f   : > { %841 = vperm.xlu0 %2861, %v311_v5  }
  0x22   : > { %2859 = vset.pattern.permute.xlu1 %v2934_v15 }
  0x23   : > { %766 = vperm.xlu1 %2859, %v311_v5   ;;  %2863 = vset.pattern.permute.xlu0 %v2936_v17 }
  0x27   : > { %2860 = vset.pattern.permute.xlu1 %v2935_v16 }
  0x28   : > { %837 = vperm.xlu1 %2860, %v2993_v0  }
  0x2c   : > { %2862 = vset.pattern.permute.xlu1 %v2936_v17  ;;  %v910_v17 = vld [vmem:[#allocation2 + $0x12] sm:$0xff] }
  0x2d   : > { %912 = vperm.xlu1 %2862, %v2993_v0   ;;  %v760_v0 = vld [vmem:[#allocation2 + $0x10] sm:$0xff] }
  0x31   : > { %916 = vperm.xlu1 %2862, %v311_v5  }
  0x86   : > { %v3042_v18 = vpop.permute.xlu1 %323  ;;  %v3044_v19 = vpop.permute.xlu0 %341 }
  0x87   : > { %v348_v24 = vmul.f32 %v3044_v19, %v338_v20  ;;  %v331_v27 = vmul.f32 %v3042_v18, %v319_v21 }
  0x8a   : > { %v3051_v25 = vpop.permute.xlu1 %328  ;;  %v3053_v26 = vpop.permute.xlu0 %345 }
  0x8b   : > { %v332_v28 = vmul.f32 %v3051_v25, %v3046_v22  ;;  %v349_v29 = vmul.f32 %v3053_v26, %v3048_v23 }
  0x8d   : > { %v333_v32 = vpack.c.bf16 %v332_v28, %v331_v27  ;;  %v350_v33 = vpack.c.bf16 %v349_v29, %v348_v24  ;;  %v2882_v24 = vld [vmem:[%s3486_s4 + $0x10] sm:$0xff]   ;;  %v2883_v27 = vld [vmem:[%s3486_s4 + $0x18] sm:$0xff]  }
  0x8f   : > { %v3068_v36 = vpop.permute.xlu1 %474  ;;  %v3070_v37 = vpop.permute.xlu0 %470  ;;  %2546 = vmatmul.mubr.msk.bf16.vlgmr.msra.gmra.mrb[0].mxu0 %vm316_vm1, %v350_v33  ;;  %2554 = vmatmul.mubr.msk.bf16.vlgmr.msra.gmra.mrb[0].mxu1 %vm316_vm1, %v333_v32 }
  0x90   : > { %2558 = vmatpush3.bf16.msra.mxu0 %v2868_v30  ;;  %2566 = vmatpush3.bf16.msra.mxu1 %v2869_v31  ;;  %v478_v40 = vmul.f32 %v3068_v36, %v3066_v34  ;;  %v477_v41 = vmul.f32 %v3070_v37, %v467_v35 }
  0x91   : > { %2559 = vmatprep.subr.bf16.mxu0 %v2929_v6  ;;  %2567 = vmatprep.subr.bf16.mxu1 %v2929_v6 }
  0x92   : > { %2561 = vmatprep.mubr.msk.bf16.mxu0 %vm2930_vm2, %v2929_v6  ;;  %2569 = vmatprep.mubr.msk.bf16.mxu1 %vm2930_vm2, %v2929_v6  ;;  %v479_v47 = vpack.c.bf16 %v478_v40, %v477_v41 }
  0x94   : > { %v3089_v44 = vpop.permute.xlu1 %545  ;;  %v3091_v45 = vpop.permute.xlu0 %549  ;;  %2560 = vmatpush3.bf16.msra.mxu0 %v2870_v38  ;;  %2568 = vmatpush3.bf16.msra.mxu1 %v2871_v39 }
  0x95   : > { %v552_v48 = vmul.f32 %v3089_v44, %v542_v42  ;;  %v553_v49 = vmul.f32 %v3091_v45, %v543_v43  ;;  %2573 = vmatprep.subr.bf16.mxu0 %v2929_v6  ;;  %2581 = vmatprep.subr.bf16.mxu1 %v2929_v6 }
  0x97   : > { %v554_v51 = vpack.c.bf16 %v553_v49, %v552_v48  ;;  %2562 = vmatmul.mubr.msk.bf16.vlgmr.msra.gmra.mrb[4].mxu0 %vm316_vm1, %v479_v47 }
  0x98   : > { %2574 = vmatpush3.bf16.msra.mxu0 %v2872_v46  ;;  %2577 = vmatprep.mubr.msk.bf16.mxu0 %vm2930_vm2, %v2929_v6 }
  0x99   : > { %v3109_v53 = vpop.permute.xlu1 %687  ;;  %2570 = vmatmul.mubr.msk.bf16.vlgmr.msra.gmra.mrb[4].mxu1 %vm316_vm1, %v554_v51  ;;  %2575 = vmatprep.subr.bf16.mxu0 %v2929_v6  ;;  %v3125_v59 = vpop.permute.xlu0 %762 }
  0x9a   : > { %2582 = vmatpush3.bf16.msra.mxu1 %v2873_v50  ;;  %2585 = vmatprep.mubr.msk.bf16.mxu1 %vm2930_vm2, %v2929_v6  ;;  %v694_v60 = vmul.f32 %v3109_v53, %v684_v55  ;;  %v769_v2 = vmul.f32 %v3125_v59, %v3046_v22 }
  0x9b   : > { %2583 = vmatprep.subr.bf16.mxu1 %v2929_v6 }
  0x9c   : > { %2576 = vmatpush3.bf16.msra.mxu0 %v2874_v52 }
  0x9d   : > { %v3122_v58 = vpop.permute.xlu1 %691  ;;  %2589 = vmatprep.subr.bf16.mxu0 %v2929_v6 }
  0x9e   : > { %v695_v61 = vmul.f32 %v3122_v58, %v685_v56  ;;  %2584 = vmatpush3.bf16.msra.mxu1 %v2875_v54  ;;  %v3147_v5 = vpop.permute.xlu0 %841 }
  0x9f   : > { %2578 = vmatmul.mubr.msk.bf16.vlgmr.msra.gmra.mrb[8].mxu0 %vm316_vm1, %v3024_v9  ;;  %2597 = vmatprep.subr.bf16.mxu1 %v2929_v6  ;;  %v2880_v9 = vld [vmem:[%s3484_s2 + $0x80] sm:$0xff]   ;;  %v845_v11 = vmul.f32 %v3147_v5, %v835_v7 }
  0xa0   : > { %v696_v63 = vpack.c.bf16 %v695_v61, %v694_v60  ;;  %2590 = vmatpush3.bf16.msra.mxu0 %v2876_v57  ;;  %2593 = vmatprep.mubr.msk.bf16.mxu0 %vm2930_vm2, %v2929_v6 }
  0xa1   : > { %2591 = vmatprep.subr.bf16.mxu0 %v2929_v6 }
  0xa2   : > { %v3143_v3 = vpop.permute.xlu1 %766  ;;  %2586 = vmatmul.mubr.msk.bf16.vlgmr.msra.gmra.mrb[8].mxu1 %vm316_vm1, %v696_v63 }
  0xa3   : > { %v770_v4 = vmul.f32 %v3143_v3, %v760_v0  ;;  %2598 = vmatpush3.bf16.msra.mxu1 %v2878_v62  ;;  %2601 = vmatprep.mubr.msk.bf16.mxu1 %vm2930_vm2, %v2929_v6 }
  0xa4   : > { %2592 = vmatpush3.bf16.msra.mxu0 %v2877_v1  ;;  %2599 = vmatprep.subr.bf16.mxu1 %v2929_v6 }
  0xa5   : > { %v771_v10 = vpack.c.bf16 %v770_v4, %v769_v2  ;;  %2605 = vmatprep.subr.bf16.mxu0 %v2929_v6 }
  0xa7   : > { %v3160_v12 = vpop.permute.xlu1 %837  ;;  %2594 = vmatmul.mubr.msk.bf16.vlgmr.msra.gmra.mrb[12].mxu0 %vm316_vm1, %v771_v10  ;;  %2600 = vmatpush3.bf16.msra.mxu1 %v2879_v8 }
  0xa8   : > { %v844_v13 = vmul.f32 %v3160_v12, %v3048_v23  ;;  %2606 = vmatpush3.bf16.msra.mxu0 %v2880_v9  ;;  %2609 = vmatprep.mubr.msk.bf16.mxu0 %vm2930_vm2, %v2929_v6 }
  0xa9   : > { %2607 = vmatprep.subr.bf16.mxu0 %v2929_v6  ;;  %2613 = vmatprep.subr.bf16.mxu1 %v2929_v6 }
  0xaa   : > { %v846_v15 = vpack.c.bf16 %v845_v11, %v844_v13 }
  0xac   : > { %v3172_v16 = vpop.permute.xlu1 %912  ;;  %2602 = vmatmul.mubr.msk.bf16.vlgmr.msra.gmra.mrb[12].mxu1 %vm316_vm1, %v846_v15  ;;  %2608 = vmatpush3.bf16.msra.mxu0 %v2881_v14  ;;  %v1595_v15 = vld [vmem:[%s3487_s5] sm:$0xf] }
  0xad   : > { %2617 = vmatprep.mubr.msk.bf16.mxu1 %vm2930_vm2, %v2929_v6  ;;  %2685 = vmatprep.subr.bf16.mxu0 %v2929_v6  ;;  %v919_v21 = vmul.f32 %v3172_v16, %v3066_v34 }
  0xae   : > { %2614 = vmatpush3.bf16.msra.mxu1 %v2882_v24 }
  0xaf   : > { %2615 = vmatprep.subr.bf16.mxu1 %v2929_v6 }
  0xb0   : > { %v3178_v20 = vpop.permute.xlu1 %916 }
  0xb1   : > { %v920_v22 = vmul.f32 %v3178_v20, %v910_v17  ;;  %v1602_v17 = vsel %vm1600_vm3, %v1595_v15, 0  ;;  %v2892_v15 = vld [vmem:[%s3486_s4 + $0x50] sm:$0xff]  }
  0xb2   : > { %2616 = vmatpush3.bf16.msra.mxu1 %v2883_v27 }
  0xb3   : > { %v921_v23 = vpack.c.bf16 %v920_v22, %v919_v21  ;;  %2621 = vmatprep.subr.bf16.mxu1 %v2929_v6 }
  0xb5   : > { %2610 = vmatmul.mubr.msk.bf16.vlgmr.msra.gmra.mrb[16].mxu0 %vm316_vm1, %v921_v23 }
  0xb6   : > { %2687 = vmatprep.mubr.msk.bf16.mxu0 %vm2930_vm2, %v2929_v6  ;;  %2686 = vmatpush3.bf16.msra.mxu0 %v1602_v17 }
  0xb7   : > { %2691 = vmatprep.subr.bf16.mxu0 %v2929_v6 }
 0x162   : > { %v404_v28 = vpop.f32.mrb[0].mxu0  ;;  %v460_v29 = vpop.f32.mrb[0].mxu1 }
 0x163   : > { %v461_v30 = vadd.f32 %v460_v29, %v404_v28  ;;  %v2547_v31 = vpop.f32.mrb[1].mxu0  ;;  %v2555_v32 = vpop.f32.mrb[1].mxu1 }
 0x164   : > { %v407_v33 = vpop.f32.mrb[2].mxu0  ;;  %v463_v34 = vpop.f32.mrb[2].mxu1 }
 0x165   : > { %v464_v35 = vadd.f32 %v463_v34, %v407_v33  ;;  %v2548_v38 = vpop.f32.mrb[3].mxu0  ;;  %v2556_v39 = vpop.f32.mrb[3].mxu1 }
 0x16a   : > { %v533_v40 = vpop.f32.mrb[4].mxu0 }
 0x16b   : > { %v540_v41 = vadd.f32 %v533_v40, %v461_v30  ;;  %v2563_v42 = vpop.f32.mrb[5].mxu0  ;;  %v2395_v30 = vld [vmem:[%s3485_s3] ss:$0 sm:$0xff] }
 0x16c   : > { %v536_v43 = vpop.f32.mrb[6].mxu0  ;;  %v608_v46 = vpop.f32.mrb[4].mxu1 }
 0x16d   : > { %v541_v47 = vadd.f32 %v536_v43, %v464_v35  ;;  %v615_v48 = vadd.f32 %v608_v46, %v540_v41  ;;  %v2564_v49 = vpop.f32.mrb[7].mxu0  ;;  %v2571_v50 = vpop.f32.mrb[5].mxu1 }
 0x16e   : > { %v611_v51 = vpop.f32.mrb[6].mxu1  ;;  %v2885_v50 = vld [vmem:[%s3486_s4 + $0x8] sm:$0xff]  }
 0x16f   : > { %v616_v52 = vadd.f32 %v611_v51, %v541_v47  ;;  %v2572_v54 = vpop.f32.mrb[7].mxu1 }
 0x172   : > { %v675_v55 = vpop.f32.mrb[8].mxu0 }
 0x173   : > { %v682_v56 = vadd.f32 %v675_v55, %v615_v48  ;;  %v2579_v57 = vpop.f32.mrb[9].mxu0  ;;  %v2884_v48 = vld [vmem:[%s3486_s4] sm:$0xff]  }
 0x174   : > { %v678_v60 = vpop.f32.mrb[10].mxu0 }
 0x175   : > { %v683_v61 = vadd.f32 %v678_v60, %v616_v52  ;;  %v750_v62 = vpop.f32.mrb[8].mxu1  ;;  %v2580_v63 = vpop.f32.mrb[11].mxu0  ;;  %v2887_v60 = vld [vmem:[%s3486_s4 + $0x28] sm:$0xff]  }
 0x176   : > { %v757_v0 = vadd.f32 %v750_v62, %v682_v56  ;;  %v2587_v1 = vpop.f32.mrb[9].mxu1  ;;  %v2886_v56 = vld [vmem:[%s3486_s4 + $0x20] sm:$0xff]  }
 0x177   : > { %v753_v2 = vpop.f32.mrb[10].mxu1  ;;  %v2888_v1 = vld [vmem:[%s3486_s4 + $0x30] sm:$0xff]  }
 0x178   : > { %v758_v4 = vadd.f32 %v753_v2, %v683_v61  ;;  %v2588_v7 = vpop.f32.mrb[11].mxu1 }
 0x17a   : > { %v825_v8 = vpop.f32.mrb[12].mxu0 }
 0x17b   : > { %v832_v9 = vadd.f32 %v825_v8, %v757_v0  ;;  %v2595_v10 = vpop.f32.mrb[13].mxu0 }
 0x17c   : > { %v828_v11 = vpop.f32.mrb[14].mxu0 }
 0x17d   : > { %v833_v13 = vadd.f32 %v828_v11, %v758_v4  ;;  %v2596_v14 = vpop.f32.mrb[15].mxu0  ;;  %v2889_v4 = vld [vmem:[%s3486_s4 + $0x38] sm:$0xff]   ;;  %v2890_v11 = vld [vmem:[%s3486_s4 + $0x40] sm:$0xff]  }
 0x17e   : > { %v2891_v14 = vld [vmem:[%s3486_s4 + $0x48] sm:$0xff]  }
 0x17f   : > { %v900_v21 = vpop.f32.mrb[12].mxu1 }
 0x180   : > { %v907_v22 = vadd.f32 %v900_v21, %v832_v9  ;;  %v2603_v23 = vpop.f32.mrb[13].mxu1  ;;  %v2893_v21 = vld [vmem:[%s3486_s4 + $0x58] sm:$0xff]  }
 0x181   : > { %v903_v24 = vpop.f32.mrb[14].mxu1 }
 0x182   : > { %v908_v27 = vadd.f32 %v903_v24, %v833_v13  ;;  %v2604_v28 = vpop.f32.mrb[15].mxu1 }
 0x183   : > { %v2894_v28 = vld [vmem:[%s3486_s4 + $0x60] sm:$0xff]  }
 0x188   : > { %v975_v29 = vpop.f32.mrb[16].mxu0 }
 0x189   : > { %v982_v31 = vadd.f32 %v975_v29, %v907_v22  ;;  %v2611_v32 = vpop.f32.mrb[17].mxu0 }
 0x18a   : > { %v978_v33 = vpop.f32.mrb[18].mxu0 }
 0x18b   : > { %v3202_v34 = vadd.f32 %v2395_v30, %v982_v31  ;;  %v983_v35 = vadd.f32 %v978_v33, %v908_v27  ;;  %v2612_v38 = vpop.f32.mrb[19].mxu0 }
 0x18d   : > { %v993_v39 = vmax.f32 %v3202_v34, 0.0  ;;  %v3205_v40 = vadd.f32 %v2395_v30, %v983_v35  ;;  %v2895_v30 = vld [vmem:[%s3486_s4 + $0x68] sm:$0xff]   ;;  %v2896_v35 = vld [vmem:[%s3486_s4 + $0x70] sm:$0xff]  }
 0x18f   : > { %995 = vst.msk [vmem:[#allocation2 + $0x5] sm:$0xff] %vm316_vm1, %v993_v39  ;;  %v994_v41 = vmax.f32 %v3205_v40, 0.0 }
 0x191   : > { %996 = vst.msk [vmem:[#allocation2 + $0xd] sm:$0xff] %vm316_vm1, %v994_v41  ;;  %v1261_v17 = vpack.c.bf16 %v994_v41, %v993_v39  ;;  %v2897_v39 = vld [vmem:[%s3486_s4 + $0x78] sm:$0xff]  }
 0x196   : > { %v1006_v42 = vld [vmem:[#allocation2 + $0x1] sm:$0xff] }
 0x197   : > { %v1008_v46 = vmul.f32 %v1006_v42, %v3044_v19  ;;  %v997_v52 = vld [vmem:[#allocation2] sm:$0xff] }
 0x198   : > { %v3210_v43 = vld [vmem:[#allocation2 + $0x9] sm:$0xff]  ;;  %v999_v55 = vmul.f32 %v997_v52, %v3042_v18  ;;  %v1459_v41 = vld [vmem:[#allocation2 + $0x11] sm:$0xff] }
 0x199   : > { %v1009_v47 = vmul.f32 %v3210_v43, %v3053_v26  ;;  %v3225_v51 = vld [vmem:[#allocation2 + $0x8] sm:$0xff]  ;;  %v1392_v31 = vld [vmem:[#allocation2 + $0x10] sm:$0xff]  ;;  %v1460_v42 = vmul.f32 %v3210_v43, %v3160_v12 }
 0x19a   : > { %v1000_v54 = vmul.f32 %v3225_v51, %v3051_v25  ;;  %v3241_v61 = vld [vmem:[#allocation2 + $0xa] sm:$0xff]  ;;  %v1127_v62 = vld [vmem:[#allocation2 + $0x2] sm:$0xff]  ;;  %v1393_v32 = vmul.f32 %v3225_v51, %v3125_v59  ;;  %v1394_v33 = vmul.f32 %v1392_v31, %v3143_v3  ;;  %v1526_v43 = vld [vmem:[#allocation2 + $0x12] sm:$0xff] }
 0x19b   : > { %v1010_v49 = vpack.c.bf16 %v1009_v47, %v1008_v46  ;;  %v1130_v63 = vmul.f32 %v3241_v61, %v3068_v36  ;;  %v1129_v0 = vmul.f32 %v1127_v62, %v3070_v37  ;;  %v1195_v7 = vld [vmem:[#allocation2 + $0xc] sm:$0xff]  ;;  %v1194_v8 = vld [vmem:[#allocation2 + $0x4] sm:$0xff]  ;;  %v1461_v46 = vmul.f32 %v1459_v41, %v3147_v5 }
 0x19c   : > { %v1001_v57 = vpack.c.bf16 %v1000_v54, %v999_v55  ;;  %v1197_v9 = vmul.f32 %v1195_v7, %v3091_v45  ;;  %v1196_v10 = vmul.f32 %v1194_v8, %v3089_v44  ;;  %v1324_v22 = vld [vmem:[#allocation2 + $0x6] sm:$0xff]  ;;  %v1325_v23 = vld [vmem:[#allocation2 + $0xe] sm:$0xff]  ;;  %v1395_v38 = vpack.c.bf16 %v1394_v33, %v1393_v32 }
 0x19d   : > { %2618 = vmatmul.mubr.msk.bf16.vlgmr.msra.gmra.mrb[16].mxu1 %vm316_vm1, %v1010_v49  ;;  %v1131_v2 = vpack.c.bf16 %v1130_v63, %v1129_v0  ;;  %v1326_v24 = vmul.f32 %v1324_v22, %v3109_v53  ;;  %v1327_v27 = vmul.f32 %v1325_v23, %v3122_v58  ;;  %v2898_v47 = vld [vmem:[%s3486_s4 + $0x80] sm:$0xff]   ;;  %v2899_v49 = vld [vmem:[%s3486_s4 + $0x88] sm:$0xff]   ;;  %v1528_v51 = vmul.f32 %v1526_v43, %v3178_v20  ;;  %v2901_v0 = vld [vmem:[%s3488_s6 + $0x18] sm:$0xff]  }
 0x19e   : > { %2622 = vmatpush3.bf16.msra.mxu1 %v2884_v48  ;;  %2625 = vmatprep.mubr.msk.bf16.mxu1 %vm2930_vm2, %v2929_v6  ;;  %v1198_v13 = vpack.c.bf16 %v1197_v9, %v1196_v10  ;;  %v1462_v48 = vpack.c.bf16 %v1461_v46, %v1460_v42  ;;  %v2903_v23 = vld [vmem:[%s3488_s6 + $0x8] sm:$0xff]   ;;  %v2906_v33 = vld [vmem:[%s3488_s6 + $0x30] sm:$0xff]   ;;  %v2908_v42 = vld [vmem:[%s3488_s6 + $0x40] sm:$0xff]  }
 0x19f   : > { %2623 = vmatprep.subr.bf16.mxu1 %v2929_v6  ;;  %v1328_v29 = vpack.c.bf16 %v1327_v27, %v1326_v24 }
 0x1a2   : > { %2624 = vmatpush3.bf16.msra.mxu1 %v2885_v50  ;;  %v1527_v50 = vmul.f32 %v3241_v61, %v3172_v16  ;;  %v2900_v61 = vld [vmem:[%s3488_s6 + $0x10] sm:$0xff]  }
 0x1a3   : > { %2629 = vmatprep.subr.bf16.mxu1 %v2929_v6 }
 0x1a4   : > { %v1529_v52 = vpack.c.bf16 %v1528_v51, %v1527_v50 }
 0x1a9   : > { %2626 = vmatmul.mubr.msk.bf16.vlgmr.msra.gmra.mrb[16].mxu1 %vm316_vm1, %v1001_v57 }
 0x1aa   : > { %2630 = vmatpush3.bf16.msra.mxu1 %v2886_v56  ;;  %2633 = vmatprep.mubr.msk.bf16.mxu1 %vm2930_vm2, %v2929_v6 }
 0x1ab   : > { %2631 = vmatprep.subr.bf16.mxu1 %v2929_v6 }
 0x1ae   : > { %2632 = vmatpush3.bf16.msra.mxu1 %v2887_v60 }
 0x1af   : > { %2637 = vmatprep.subr.bf16.mxu1 %v2929_v6 }
 0x1b5   : > { %2634 = vmatmul.mubr.msk.bf16.vlgmr.msra.gmra.mrb[16].mxu1 %vm316_vm1, %v1131_v2 }
 0x1b6   : > { %2638 = vmatpush3.bf16.msra.mxu1 %v2888_v1  ;;  %2641 = vmatprep.mubr.msk.bf16.mxu1 %vm2930_vm2, %v2929_v6  ;;  %v2249_v1 = vld [vmem:[%s3489_s7] sm:$0xf] }
 0x1b7   : > { %2639 = vmatprep.subr.bf16.mxu1 %v2929_v6  ;;  %v2254_v2 = vsel %vm1600_vm3, %v2249_v1, 0  ;;  %v2917_v1 = vld [vmem:[%s3488_s6 + $0x88] sm:$0xff]  }
 0x1ba   : > { %2640 = vmatpush3.bf16.msra.mxu1 %v2889_v4 }
 0x1bb   : > { %2645 = vmatprep.subr.bf16.mxu1 %v2929_v6 }
 0x1c1   : > { %2642 = vmatmul.mubr.msk.bf16.vlgmr.msra.gmra.mrb[16].mxu1 %vm316_vm1, %v1198_v13 }
 0x1c2   : > { %2646 = vmatpush3.bf16.msra.mxu1 %v2890_v11  ;;  %2649 = vmatprep.mubr.msk.bf16.mxu1 %vm2930_vm2, %v2929_v6 }
 0x1c3   : > { %2647 = vmatprep.subr.bf16.mxu1 %v2929_v6 }
 0x1c6   : > { %2648 = vmatpush3.bf16.msra.mxu1 %v2891_v14 }
 0x1c7   : > { %2653 = vmatprep.subr.bf16.mxu1 %v2929_v6 }
 0x1cd   : > { %2650 = vmatmul.mubr.msk.bf16.vlgmr.msra.gmra.mrb[16].mxu1 %vm316_vm1, %v1261_v17 }
 0x1ce   : > { %2654 = vmatpush3.bf16.msra.mxu1 %v2892_v15  ;;  %2657 = vmatprep.mubr.msk.bf16.mxu1 %vm2930_vm2, %v2929_v6 }
 0x1cf   : > { %2655 = vmatprep.subr.bf16.mxu1 %v2929_v6 }
 0x1d2   : > { %2656 = vmatpush3.bf16.msra.mxu1 %v2893_v21 }
 0x1d3   : > { %2661 = vmatprep.subr.bf16.mxu1 %v2929_v6 }
 0x1d9   : > { %2658 = vmatmul.mubr.msk.bf16.vlgmr.msra.gmra.mrb[16].mxu1 %vm316_vm1, %v1328_v29 }
 0x1da   : > { %2662 = vmatpush3.bf16.msra.mxu1 %v2894_v28  ;;  %2665 = vmatprep.mubr.msk.bf16.mxu1 %vm2930_vm2, %v2929_v6  ;;  %v2904_v28 = vld [vmem:[%s3488_s6 + $0x20] sm:$0xff]  }
 0x1db   : > { %2663 = vmatprep.subr.bf16.mxu1 %v2929_v6 }
 0x1de   : > { %2664 = vmatpush3.bf16.msra.mxu1 %v2895_v30  ;;  %v2905_v30 = vld [vmem:[%s3488_s6 + $0x28] sm:$0xff]  }
 0x1df   : > { %2669 = vmatprep.subr.bf16.mxu1 %v2929_v6 }
 0x1e5   : > { %2666 = vmatmul.mubr.msk.bf16.vlgmr.msra.gmra.mrb[16].mxu1 %vm316_vm1, %v1395_v38  ;;  %v2907_v38 = vld [vmem:[%s3488_s6 + $0x38] sm:$0xff]  }
 0x1e6   : > { %2670 = vmatpush3.bf16.msra.mxu1 %v2896_v35  ;;  %2673 = vmatprep.mubr.msk.bf16.mxu1 %vm2930_vm2, %v2929_v6 }
 0x1e7   : > { %2671 = vmatprep.subr.bf16.mxu1 %v2929_v6 }
 0x1ea   : > { %2672 = vmatpush3.bf16.msra.mxu1 %v2897_v39 }
 0x1eb   : > { %2677 = vmatprep.subr.bf16.mxu1 %v2929_v6 }
 0x1f1   : > { %2674 = vmatmul.mubr.msk.bf16.vlgmr.msra.gmra.mrb[16].mxu1 %vm316_vm1, %v1462_v48  ;;  %v2911_v48 = vld [vmem:[%s3488_s6 + $0x58] sm:$0xff]  }
 0x1f2   : > { %2678 = vmatpush3.bf16.msra.mxu1 %v2898_v47  ;;  %2681 = vmatprep.mubr.msk.bf16.mxu1 %vm2930_vm2, %v2929_v6  ;;  %v2909_v47 = vld [vmem:[%s3488_s6 + $0x48] sm:$0xff]  }
 0x1f3   : > { %2679 = vmatprep.subr.bf16.mxu1 %v2929_v6 }
 0x1f6   : > { %2680 = vmatpush3.bf16.msra.mxu1 %v2899_v49 }
 0x1f7   : > { %2763 = vmatprep.subr.bf16.mxu1 %v2929_v6 }
 0x1fd   : > { %2682 = vmatmul.mubr.msk.bf16.vlgmr.msra.gmra.mrb[16].mxu1 %vm316_vm1, %v1529_v52  ;;  %v2912_v52 = vld [vmem:[%s3488_s6 + $0x60] sm:$0xff]  }
 0x1fe   : > { %2765 = vmatprep.mubr.msk.bf16.mxu1 %vm2930_vm2, %v2929_v6  ;;  %2764 = vmatpush3.bf16.msra.mxu1 %v2254_v2 }
 0x2d0   : > { %v1583_v54 = vpop.f32.mrb[16].mxu1 }
 0x2d1   : > { %v2683_v55 = vpop.f32.mrb[17].mxu1  ;;  %v1592_v57 = vmax.f32 %v1583_v54, 0.0 }
 0x2d2   : > { %v1586_v56 = vpop.f32.mrb[18].mxu1  ;;  %v2913_v55 = vld [vmem:[%s3488_s6 + $0x68] sm:$0xff]  }
 0x2d3   : > { %v1593_v60 = vmax.f32 %v1586_v56, 0.0  ;;  %v2684_v62 = vpop.f32.mrb[19].mxu1 }
 0x2d4   : > { %v2915_v62 = vld [vmem:[%s3488_s6 + $0x78] sm:$0xff]  }
 0x2d5   : > { %v1594_v63 = vpack.c.bf16 %v1593_v60, %v1592_v57  ;;  %v2914_v57 = vld [vmem:[%s3488_s6 + $0x70] sm:$0xff]  }
 0x2d7   : > { %2688 = vmatmul.mubr.msk.bf16.vlgmr.msra.gmra.mrb[20].mxu0 %vm1596_vm4, %v1594_v63 }
 0x2d8   : > { %2695 = vmatprep.mubr.msk.bf16.mxu0 %vm2930_vm2, %v2929_v6  ;;  %2692 = vmatpush3.bf16.msra.mxu0 %v2900_v61  ;;  %v2916_v61 = vld [vmem:[%s3488_s6 + $0x80] sm:$0xff]  }
 0x2d9   : > { %2693 = vmatprep.subr.bf16.mxu0 %v2929_v6 }
 0x2dc   : > { %2694 = vmatpush3.bf16.msra.mxu0 %v2901_v0 }
 0x2dd   : > { %2699 = vmatprep.subr.bf16.mxu0 %v2929_v6 }
 0x3aa   : > { %v1638_v4 = vpop.f32.mrb[20].mxu0 }
 0x3ab   : > { %v3345_v7 = vadd.f32 %v1638_v4, %v3202_v34  ;;  %v2689_v8 = vpop.f32.mrb[21].mxu0 }
 0x3ac   : > { %v1641_v9 = vpop.f32.mrb[22].mxu0 }
 0x3ad   : > { %v1647_v10 = vmax.f32 %v3345_v7, 0.0  ;;  %v3349_v11 = vadd.f32 %v1641_v9, %v3205_v40  ;;  %v2690_v13 = vpop.f32.mrb[23].mxu0  ;;  %v2902_v40 = vld [vmem:[%s3488_s6] sm:$0xff]  }
 0x3af   : > { %1649 = vst.msk [vmem:[#allocation2 + $0x5] sm:$0xff] %vm316_vm1, %v1647_v10  ;;  %v1648_v14 = vmax.f32 %v3349_v11, 0.0 }
 0x3b1   : > { %1650 = vst.msk [vmem:[#allocation2 + $0xd] sm:$0xff] %vm316_vm1, %v1648_v14 }
 0x3b6   : > { %v1660_v15 = vld [vmem:[#allocation2 + $0x1] sm:$0xff] }
 0x3b7   : > { %v1662_v34 = vmul.f32 %v1660_v15, %v3044_v19 }
 0x3b8   : > { %v3354_v17 = vld [vmem:[#allocation2 + $0x9] sm:$0xff] }
 0x3b9   : > { %v1663_v21 = vmul.f32 %v3354_v17, %v3053_v26  ;;  %v3369_v19 = vld [vmem:[#allocation2 + $0x8] sm:$0xff]  ;;  %v1651_v26 = vld [vmem:[#allocation2] sm:$0xff] }
 0x3ba   : > { %v1654_v24 = vmul.f32 %v3369_v19, %v3051_v25  ;;  %v1653_v27 = vmul.f32 %v1651_v26, %v3042_v18  ;;  %v3385_v25 = vld [vmem:[#allocation2 + $0xa] sm:$0xff]  ;;  %v1781_v18 = vld [vmem:[#allocation2 + $0x2] sm:$0xff] }
 0x3bb   : > { %v1664_v22 = vpack.c.bf16 %v1663_v21, %v1662_v34  ;;  %v1784_v31 = vmul.f32 %v3385_v25, %v3068_v36  ;;  %v1783_v32 = vmul.f32 %v1781_v18, %v3070_v37  ;;  %v1849_v36 = vld [vmem:[#allocation2 + $0xc] sm:$0xff]  ;;  %v1848_v37 = vld [vmem:[#allocation2 + $0x4] sm:$0xff] }
 0x3bc   : > { %v1655_v29 = vpack.c.bf16 %v1654_v24, %v1653_v27  ;;  %v1851_v39 = vmul.f32 %v1849_v36, %v3091_v45  ;;  %v1850_v41 = vmul.f32 %v1848_v37, %v3089_v44  ;;  %v2910_v44 = vld [vmem:[%s3488_s6 + $0x50] sm:$0xff]   ;;  %v1915_v45 = vpack.c.bf16 %v1648_v14, %v1647_v10  ;;  %v1978_v49 = vld [vmem:[#allocation2 + $0x6] sm:$0xff] }
 0x3bd   : > { %2696 = vmatmul.mubr.msk.bf16.vlgmr.msra.gmra.mrb[24].mxu0 %vm316_vm1, %v1664_v22  ;;  %v1785_v35 = vpack.c.bf16 %v1784_v31, %v1783_v32  ;;  %v1979_v43 = vld [vmem:[#allocation2 + $0xe] sm:$0xff]  ;;  %v1980_v50 = vmul.f32 %v1978_v49, %v3109_v53 }
 0x3be   : > { %2700 = vmatpush3.bf16.msra.mxu0 %v2902_v40  ;;  %2703 = vmatprep.mubr.msk.bf16.mxu0 %vm2930_vm2, %v2929_v6  ;;  %v1852_v46 = vpack.c.bf16 %v1851_v39, %v1850_v41  ;;  %v1981_v51 = vmul.f32 %v1979_v43, %v3122_v58  ;;  %v2046_v53 = vld [vmem:[#allocation2 + $0x10] sm:$0xff]  ;;  %v2047_v58 = vmul.f32 %v3369_v19, %v3125_v59 }
 0x3bf   : > { %2701 = vmatprep.subr.bf16.mxu0 %v2929_v6  ;;  %v2048_v56 = vmul.f32 %v2046_v53, %v3143_v3  ;;  %v2113_v59 = vld [vmem:[#allocation2 + $0x11] sm:$0xff]  ;;  %v2114_v3 = vmul.f32 %v3354_v17, %v3160_v12 }
 0x3c0   : > { %v1982_v54 = vpack.c.bf16 %v1981_v51, %v1980_v50  ;;  %v2115_v63 = vmul.f32 %v2113_v59, %v3147_v5  ;;  %v2180_v12 = vld [vmem:[#allocation2 + $0x12] sm:$0xff]  ;;  %v2181_v5 = vmul.f32 %v3385_v25, %v3172_v16 }
 0x3c1   : > { %v2049_v60 = vpack.c.bf16 %v2048_v56, %v2047_v58  ;;  %v2182_v2 = vmul.f32 %v2180_v12, %v3178_v20 }
 0x3c2   : > { %2702 = vmatpush3.bf16.msra.mxu0 %v2903_v23  ;;  %v2116_v0 = vpack.c.bf16 %v2115_v63, %v2114_v3 }
 0x3c3   : > { %2707 = vmatprep.subr.bf16.mxu0 %v2929_v6  ;;  %v2183_v4 = vpack.c.bf16 %v2182_v2, %v2181_v5 }
 0x3c9   : > { %2704 = vmatmul.mubr.msk.bf16.vlgmr.msra.gmra.mrb[24].mxu0 %vm316_vm1, %v1655_v29 }
 0x3ca   : > { %2708 = vmatpush3.bf16.msra.mxu0 %v2904_v28  ;;  %2711 = vmatprep.mubr.msk.bf16.mxu0 %vm2930_vm2, %v2929_v6 }
 0x3cb   : > { %2709 = vmatprep.subr.bf16.mxu0 %v2929_v6 }
 0x3ce   : > { %2710 = vmatpush3.bf16.msra.mxu0 %v2905_v30 }
 0x3cf   : > { %2715 = vmatprep.subr.bf16.mxu0 %v2929_v6 }
 0x3d5   : > { %2712 = vmatmul.mubr.msk.bf16.vlgmr.msra.gmra.mrb[24].mxu0 %vm316_vm1, %v1785_v35 }
 0x3d6   : > { %2716 = vmatpush3.bf16.msra.mxu0 %v2906_v33  ;;  %2719 = vmatprep.mubr.msk.bf16.mxu0 %vm2930_vm2, %v2929_v6 }
 0x3d7   : > { %2717 = vmatprep.subr.bf16.mxu0 %v2929_v6 }
 0x3da   : > { %2718 = vmatpush3.bf16.msra.mxu0 %v2907_v38 }
 0x3db   : > { %2723 = vmatprep.subr.bf16.mxu0 %v2929_v6 }
 0x3e1   : > { %2720 = vmatmul.mubr.msk.bf16.vlgmr.msra.gmra.mrb[24].mxu0 %vm316_vm1, %v1852_v46 }
 0x3e2   : > { %2724 = vmatpush3.bf16.msra.mxu0 %v2908_v42  ;;  %2727 = vmatprep.mubr.msk.bf16.mxu0 %vm2930_vm2, %v2929_v6 }
 0x3e3   : > { %2725 = vmatprep.subr.bf16.mxu0 %v2929_v6 }
 0x3e6   : > { %2726 = vmatpush3.bf16.msra.mxu0 %v2909_v47 }
 0x3e7   : > { %2731 = vmatprep.subr.bf16.mxu0 %v2929_v6 }
 0x3ed   : > { %2728 = vmatmul.mubr.msk.bf16.vlgmr.msra.gmra.mrb[24].mxu0 %vm316_vm1, %v1915_v45 }
 0x3ee   : > { %2732 = vmatpush3.bf16.msra.mxu0 %v2910_v44  ;;  %2735 = vmatprep.mubr.msk.bf16.mxu0 %vm2930_vm2, %v2929_v6 }
 0x3ef   : > { %2733 = vmatprep.subr.bf16.mxu0 %v2929_v6 }
 0x3f2   : > { %2734 = vmatpush3.bf16.msra.mxu0 %v2911_v48 }
 0x3f3   : > { %2739 = vmatprep.subr.bf16.mxu0 %v2929_v6 }
 0x3f9   : > { %2736 = vmatmul.mubr.msk.bf16.vlgmr.msra.gmra.mrb[24].mxu0 %vm316_vm1, %v1982_v54 }
 0x3fa   : > { %2740 = vmatpush3.bf16.msra.mxu0 %v2912_v52  ;;  %2743 = vmatprep.mubr.msk.bf16.mxu0 %vm2930_vm2, %v2929_v6 }
 0x3fb   : > { %2741 = vmatprep.subr.bf16.mxu0 %v2929_v6 }
 0x3fe   : > { %2742 = vmatpush3.bf16.msra.mxu0 %v2913_v55 }
 0x3ff   : > { %2747 = vmatprep.subr.bf16.mxu0 %v2929_v6 }
 0x405   : > { %2744 = vmatmul.mubr.msk.bf16.vlgmr.msra.gmra.mrb[24].mxu0 %vm316_vm1, %v2049_v60 }
 0x406   : > { %2748 = vmatpush3.bf16.msra.mxu0 %v2914_v57  ;;  %2751 = vmatprep.mubr.msk.bf16.mxu0 %vm2930_vm2, %v2929_v6 }
 0x407   : > { %2749 = vmatprep.subr.bf16.mxu0 %v2929_v6 }
 0x40a   : > { %2750 = vmatpush3.bf16.msra.mxu0 %v2915_v62 }
 0x40b   : > { %2755 = vmatprep.subr.bf16.mxu0 %v2929_v6 }
 0x411   : > { %2752 = vmatmul.mubr.msk.bf16.vlgmr.msra.gmra.mrb[24].mxu0 %vm316_vm1, %v2116_v0 }
 0x412   : > { %2756 = vmatpush3.bf16.msra.mxu0 %v2916_v61  ;;  %2759 = vmatprep.mubr.msk.bf16.mxu0 %vm2930_vm2, %v2929_v6 }
 0x413   : > { %2757 = vmatprep.subr.bf16.mxu0 %v2929_v6 }
 0x416   : > { %2758 = vmatpush3.bf16.msra.mxu0 %v2917_v1 }
 0x41d   : > { %2760 = vmatmul.mubr.msk.bf16.vlgmr.msra.gmra.mrb[24].mxu0 %vm316_vm1, %v2183_v4 }
 0x4f0   : > { %v2237_v8 = vpop.f32.mrb[24].mxu0 }
 0x4f1   : > { %v2761_v9 = vpop.f32.mrb[25].mxu0  ;;  %v2246_v13 = vmax.f32 %v2237_v8, 0.0 }
 0x4f2   : > { %v2240_v10 = vpop.f32.mrb[26].mxu0 }
 0x4f3   : > { %v2247_v14 = vmax.f32 %v2240_v10, 0.0  ;;  %v2762_v15 = vpop.f32.mrb[27].mxu0 }
 0x4f5   : > { %v2248_v17 = vpack.c.bf16 %v2247_v14, %v2246_v13 }
 0x4f7   : > { %2766 = vmatmul.mubr.msk.bf16.vlgmr.msra.gmra.mrb[20].mxu1 %vm1596_vm4, %v2248_v17 }
 0x5ca   : > { %v2290_v6 = vpop.f32.mrb[20].mxu1 }
 0x5cb   : > { %v2297_v34 = vadd.f32 %v2290_v6, %v3345_v7  ;;  %v2767_v21 = vpop.f32.mrb[21].mxu1 }
 0x5cc   : > { %v2293_v16 = vpop.f32.mrb[22].mxu1 }
 0x5cd   : > { %v2299_v20 = vmax.f32 %v2297_v34, 0.0  ;;  %v2298_v40 = vadd.f32 %v2293_v16, %v3349_v11  ;;  %v2768_v22 = vpop.f32.mrb[23].mxu1 }
 0x5cf   : > { %2301 = vst.msk [vmem:[%s305_s12] sm:$0xff] %vm316_vm1, %v2299_v20  ;;  %v2300_v23 = vmax.f32 %v2298_v40, 0.0 }
 0x5d1   : > { %2302 = vst.msk [vmem:[%s305_s12 + $0x8] sm:$0xff] %vm316_vm1, %v2300_v23 }
 0x5d2 PF: > { %s18_s27 = sadd.s32 1, %s2925_s27  }
 0x5d3   : > { %p15_p4 = scmp.ge.s32.totalorder %s18_s27, 4  }
 0x5d5   :  { %17 = sbr.rel (!%p15_p4) target bundleno = 1 (0x1), region = 82 }

// kernel: forward.11
= control target key start
LH: loop header
LB: loop body
LE: loop exit
PB: predicated region body
PF: predicated region fallthrough
CT: control target
= control target key end

     0   :  { %s2824_s27 = smov 0   ;;  %s3298_s0 = inlined_call_operand.vmem [shape: bf16[2,16,8], index: 0, kind: input, shape index: {}]   ;;  %s3299_s1 = inlined_call_operand.vmem [shape: f32[16,9], index: 1, kind: input, shape index: {}]   ;;  %s3300_s2 = inlined_call_operand.vmem [shape: bf16[72,32], index: 2, kind: input, shape index: {}]   ;;  %s3301_s3 = inlined_call_operand.vmem [shape: f32[1,32], index: 3, kind: input, shape index: {}]   ;;  %s3302_s4 = inlined_call_operand.vmem [shape: bf16[288,8], index: 4, kind: input, shape index: {}]   ;;  %s3303_s5 = inlined_call_operand.vmem [shape: bf16[8,32], index: 5, kind: input, shape index: {}]   ;;  %s3304_s6 = inlined_call_operand.vmem [shape: bf16[288,8], index: 6, kind: input, shape index: {}]   ;;  %s3305_s7 = inlined_call_operand.vmem [shape: bf16[8,32], index: 7, kind: input, shape index: {}]   ;;  %s3306_s8 = inlined_call_operand.vmem [shape: bf16[2,16,32], index: 8, kind: output, shape index: {}]  }
   0x1 LB: > { %s2259_s28 = sadd.s32 4294967295, %s2767_s27   ;;  %p2263_p0 = scmp.ge.s32.totalorder %s2767_s27, 1  ;;  %s2767_s27 = sphi %s2824_s27, %s18_s27  }
   0x2   : > { %p262_p1 = scmp.lt.s32.totalorder %s2767_s27, 3 }
   0x4   : > { %p263_p2 = pnand %p2263_p0, %p262_p1 }
   0x5   : > { %v2835_v0 = vld [vmem:[%s3299_s1] sm:$0xff] (!%p263_p2)  ;;  %v2769_v1 = vmov (!%p263_p2), 1   ;;  %v2770_v2 = vmov (!%p263_p2), 0   ;;  %p296_p3 = scmp.lt.s32.totalorder (!%p263_p2), %s2259_s28, 1  ;;  %v311_v3 = vld [vmem:[%s3299_s1 + $0x8] sm:$0xff] (!%p263_p2)  ;;  %vm307_vm0 = vcmask (!%p263_p2), 258048  }
   0x6   : > { %266 = sbr.rel (%p263_p2) target bundleno = 1492 (0x5d4), region = 52  ;;  %2711 = vset.pattern.permute.xlu0 (!%p263_p2), %v2769_v1  ;;  %2712 = vset.pattern.permute.xlu1 (!%p263_p2), %v2770_v2  ;;  %v2771_v4 = vmov (!%p263_p2), 0.0   ;;  %v348_v5 = vld [vmem:[%s3300_s2 + $0x4] sm:$0xf] (!%p263_p2)  ;;  %vm352_vm1 = vcmask (!%p263_p2), 1043456   ;;  %vm316_vm2 = vcmask (!%p263_p2), 64512  }
   0x7   : > { %323 = vperm.xlu1 (!%p263_p2), %2712, %v2835_v0   ;;  %338 = vperm.xlu0 (!%p263_p2), %2711, %v2835_v0   ;;  %308 = vst.msk [vmem:[#allocation2] sm:$0x1f] (!%p263_p2), %vm307_vm0, %v2771_v4  ;;  %309 = vst.msk [vmem:[#allocation2 + $0x15] sm:$0x1f] (!%p263_p2), %vm307_vm0, %v2771_v4  ;;  %v334_v6 = vld [vmem:[%s3300_s2] sm:$0xf] (!%p263_p2) }
   0x8   : > { %2419 = vmatprep.subr.bf16.mxu0 (!%p263_p2), %v2771_v4  ;;  %2425 = vmatprep.subr.bf16.mxu1 (!%p263_p2), %v2771_v4  ;;  %v354_v7 = vsel (!%p263_p2), %vm352_vm1, %v348_v5, 0  ;;  %v401_v8 = vsel (!%p263_p2), %vm352_vm1, %v334_v6, 0  ;;  %vm2772_vm3 = vmmov (!%p263_p2), 0   ;;  %v2773_v12 = vmov (!%p263_p2), 2   ;;  %v457_v27 = vld [vmem:[%s3300_s2 + $0x8] sm:$0xf] (!%p263_p2) }
   0x9   : > { %2420 = vmatpush3.bf16.msra.mxu0 (!%p263_p2), %v354_v7  ;;  %2426 = vmatpush3.bf16.msra.mxu1 (!%p263_p2), %v401_v8  ;;  %v2774_v13 = vmov (!%p263_p2), 3   ;;  %v2775_v14 = vmov (!%p263_p2), 5   ;;  %v2776_v15 = vmov (!%p263_p2), 6   ;;  %v2777_v16 = vmov (!%p263_p2), 7   ;;  %v520_v31 = vld [vmem:[%s3300_s2 + $0xc] sm:$0xf] (!%p263_p2) }
   0xa   : > { %2431 = vmatprep.subr.bf16.mxu0 (!%p263_p2), %v2771_v4  ;;  %2437 = vmatprep.subr.bf16.mxu1 (!%p263_p2), %v2771_v4  ;;  %v2778_v17 = vmov (!%p263_p2), 8   ;;  %v462_v34 = vsel (!%p263_p2), %vm352_vm1, %v457_v27, 0  ;;  %v525_v37 = vsel (!%p263_p2), %vm352_vm1, %v520_v31, 0  ;;  %v570_v44 = vld [vmem:[%s3300_s2 + $0x10] sm:$0xf] (!%p263_p2)  ;;  %v2725_v27 = vld [vmem:[%s3302_s4 + $0x18] sm:$0xff] (!%p263_p2)  }
   0xb   : > { %328 = vperm.xlu1 (!%p263_p2), %2712, %v311_v3   ;;  %342 = vperm.xlu0 (!%p263_p2), %2711, %v311_v3   ;;  %v638_v47 = vld [vmem:[%s3300_s2 + $0x14] sm:$0xf] (!%p263_p2)  ;;  %v580_v51 = vsel (!%p263_p2), %vm352_vm1, %v570_v44, 0  ;;  %v701_v55 = vld [vmem:[%s3300_s2 + $0x18] sm:$0xf] (!%p263_p2)  ;;  %vm888_vm4 = vcmask (!%p263_p2), 261120  }
   0xc   : > { %2421 = vmatprep.mubr.msk.bf16.mxu0 (!%p263_p2), %vm2772_vm3, %v2771_v4  ;;  %2427 = vmatprep.mubr.msk.bf16.mxu1 (!%p263_p2), %vm2772_vm3, %v2771_v4  ;;  %v643_v53 = vsel (!%p263_p2), %vm352_vm1, %v638_v47, 0  ;;  %v706_v60 = vsel (!%p263_p2), %vm352_vm1, %v701_v55, 0  ;;  %v764_v61 = vld [vmem:[%s3300_s2 + $0x1c] sm:$0xf] (!%p263_p2)  ;;  %v827_v6 = vld [vmem:[%s3300_s2 + $0x20] sm:$0xf] (!%p263_p2) }
   0xd   : > { %s3308_s28 = smov (!%p296_p3, %s2259_s28), 1  ;;  %v769_v2 = vsel %vm352_vm1, %v764_v61, 0  ;;  %vm2201_vm5 = vcmask 257024  }
   0xe   : > { %s2339_s11 = sshll.u32 %s3308_s28, 3 }
   0xf   : > { %s300_s18 = scalar_lea.vmem %s3298_s0, %s2339_s11  ;;  %2714 = vset.pattern.permute.xlu1 %v2773_v12  ;;  %2713 = vset.pattern.permute.xlu0 %v2773_v12 }
  0x10   : > { %v2862_v9 = vld [vmem:[%s300_s18] sm:$0xff]   ;;  %451 = vperm.xlu1 %2714, %v311_v3   ;;  %447 = vperm.xlu0 %2713, %v2835_v0   ;;  %s305_s18 = scalar_lea.vmem %s3306_s8, %s2339_s11 }
  0x11   : > { %v314_v10 = vunpack.c.l.bf16 %v2862_v9  ;;  %v315_v11 = vunpack.c.h.bf16 %v2862_v9 }
  0x13   : > { %317 = vst.msk [vmem:[#allocation2 + $0x5] sm:$0xff] %vm316_vm2, %v314_v10  ;;  %318 = vst.msk [vmem:[#allocation2 + $0xd] sm:$0xff] %vm316_vm2, %v315_v11  ;;  %v832_v11 = vsel %vm352_vm1, %v827_v6, 0 }
  0x14   : > { %2715 = vset.pattern.permute.xlu1 %v2774_v13  ;;  %2716 = vset.pattern.permute.xlu0 %v2774_v13 }
  0x15   : > { %510 = vperm.xlu1 %2715, %v2835_v0   ;;  %514 = vperm.xlu0 %2716, %v311_v3  }
  0x19   : > { %2717 = vset.pattern.permute.xlu1 %v2775_v14  ;;  %2718 = vset.pattern.permute.xlu0 %v2776_v15 }
  0x1a   : > { %628 = vperm.xlu1 %2717, %v2835_v0   ;;  %691 = vperm.xlu0 %2718, %v2835_v0   ;;  %v335_v20 = vld [vmem:[#allocation2 + $0x1] sm:$0xff]  ;;  %v2886_v23 = vld [vmem:[#allocation2 + $0x9] sm:$0xff] }
  0x1b   : > { %v319_v21 = vld [vmem:[#allocation2] sm:$0xff]  ;;  %v2884_v22 = vld [vmem:[#allocation2 + $0x8] sm:$0xff]  ;;  %v689_v1 = vld [vmem:[#allocation2 + $0x10] sm:$0xff] }
  0x1c   : > { %v2905_v35 = vld [vmem:[#allocation2 + $0xa] sm:$0xff]  ;;  %v444_v36 = vld [vmem:[#allocation2 + $0x2] sm:$0xff] }
  0x1d   : > { %v507_v42 = vld [vmem:[#allocation2 + $0x4] sm:$0xff]  ;;  %v508_v43 = vld [vmem:[#allocation2 + $0xc] sm:$0xff] }
  0x1e   : > { %632 = vperm.xlu1 %2717, %v311_v3   ;;  %2721 = vset.pattern.permute.xlu0 %v2777_v16  ;;  %v625_v56 = vld [vmem:[#allocation2 + $0x6] sm:$0xff]  ;;  %v626_v57 = vld [vmem:[#allocation2 + $0xe] sm:$0xff] }
  0x1f   : > { %758 = vperm.xlu0 %2721, %v311_v3  }
  0x22   : > { %2719 = vset.pattern.permute.xlu1 %v2776_v15 }
  0x23   : > { %695 = vperm.xlu1 %2719, %v311_v3   ;;  %2723 = vset.pattern.permute.xlu0 %v2778_v17 }
  0x27   : > { %2720 = vset.pattern.permute.xlu1 %v2777_v16 }
  0x28   : > { %754 = vperm.xlu1 %2720, %v2835_v0  }
  0x2c   : > { %2722 = vset.pattern.permute.xlu1 %v2778_v17  ;;  %v815_v17 = vld [vmem:[#allocation2 + $0x12] sm:$0xff] }
  0x2d   : > { %817 = vperm.xlu1 %2722, %v2835_v0  }
  0x31   : > { %821 = vperm.xlu1 %2722, %v311_v3  }
  0x86   : > { %v2880_v18 = vpop.permute.xlu1 %323  ;;  %v2882_v19 = vpop.permute.xlu0 %338 }
  0x87   : > { %v345_v24 = vmul.f32 %v2882_v19, %v335_v20  ;;  %v331_v28 = vmul.f32 %v2880_v18, %v319_v21 }
  0x8a   : > { %v2889_v25 = vpop.permute.xlu1 %328  ;;  %v2891_v26 = vpop.permute.xlu0 %342 }
  0x8b   : > { %v332_v29 = vmul.f32 %v2889_v25, %v2884_v22  ;;  %v346_v30 = vmul.f32 %v2891_v26, %v2886_v23 }
  0x8d   : > { %v333_v32 = vpack.c.bf16 %v332_v29, %v331_v28  ;;  %v347_v33 = vpack.c.bf16 %v346_v30, %v345_v24  ;;  %v2724_v24 = vld [vmem:[%s3302_s4 + $0x10] sm:$0xff]  }
  0x8f   : > { %v2908_v38 = vpop.permute.xlu1 %451  ;;  %v2910_v39 = vpop.permute.xlu0 %447  ;;  %2422 = vmatmul.mubr.msk.bf16.vlgmr.msra.gmra.mrb[0].mxu0 %vm316_vm2, %v347_v33  ;;  %2428 = vmatmul.mubr.msk.bf16.vlgmr.msra.gmra.mrb[0].mxu1 %vm316_vm2, %v333_v32 }
  0x90   : > { %2432 = vmatpush3.bf16.msra.mxu0 %v462_v34  ;;  %2433 = vmatprep.mubr.msk.bf16.mxu0 %vm2772_vm3, %v2771_v4  ;;  %v455_v40 = vmul.f32 %v2908_v38, %v2905_v35  ;;  %v454_v41 = vmul.f32 %v2910_v39, %v444_v36 }
  0x91   : > { %2438 = vmatpush3.bf16.msra.mxu1 %v525_v37  ;;  %2439 = vmatprep.mubr.msk.bf16.mxu1 %vm2772_vm3, %v2771_v4 }
  0x92   : > { %2443 = vmatprep.subr.bf16.mxu0 %v2771_v4  ;;  %2449 = vmatprep.subr.bf16.mxu1 %v2771_v4  ;;  %v456_v48 = vpack.c.bf16 %v455_v40, %v454_v41 }
  0x94   : > { %v2926_v45 = vpop.permute.xlu1 %510  ;;  %v2928_v46 = vpop.permute.xlu0 %514 }
  0x95   : > { %v517_v49 = vmul.f32 %v2926_v45, %v507_v42  ;;  %v518_v50 = vmul.f32 %v2928_v46, %v508_v43 }
  0x97   : > { %v519_v52 = vpack.c.bf16 %v518_v50, %v517_v49  ;;  %2434 = vmatmul.mubr.msk.bf16.vlgmr.msra.gmra.mrb[4].mxu0 %vm316_vm2, %v456_v48 }
  0x98   : > { %2444 = vmatpush3.bf16.msra.mxu0 %v580_v51  ;;  %2445 = vmatprep.mubr.msk.bf16.mxu0 %vm2772_vm3, %v2771_v4 }
  0x99   : > { %v2940_v54 = vpop.permute.xlu1 %628  ;;  %2440 = vmatmul.mubr.msk.bf16.vlgmr.msra.gmra.mrb[4].mxu1 %vm316_vm2, %v519_v52  ;;  %2455 = vmatprep.subr.bf16.mxu0 %v2771_v4  ;;  %v2952_v59 = vpop.permute.xlu0 %691 }
  0x9a   : > { %2450 = vmatpush3.bf16.msra.mxu1 %v643_v53  ;;  %2451 = vmatprep.mubr.msk.bf16.mxu1 %vm2772_vm3, %v2771_v4  ;;  %v635_v62 = vmul.f32 %v2940_v54, %v625_v56  ;;  %v698_v3 = vmul.f32 %v2952_v59, %v2884_v22 }
  0x9b   : > { %2461 = vmatprep.subr.bf16.mxu1 %v2771_v4 }
  0x9d   : > { %v2950_v58 = vpop.permute.xlu1 %632 }
  0x9e   : > { %v636_v63 = vmul.f32 %v2950_v58, %v626_v57  ;;  %v2975_v8 = vpop.permute.xlu0 %758 }
  0x9f   : > { %2446 = vmatmul.mubr.msk.bf16.vlgmr.msra.gmra.mrb[8].mxu0 %vm316_vm2, %v2862_v9  ;;  %v752_v9 = vld [vmem:[#allocation2 + $0x11] sm:$0xff] }
  0xa0   : > { %v637_v0 = vpack.c.bf16 %v636_v63, %v635_v62  ;;  %2456 = vmatpush3.bf16.msra.mxu0 %v706_v60  ;;  %2457 = vmatprep.mubr.msk.bf16.mxu0 %vm2772_vm3, %v2771_v4  ;;  %v762_v12 = vmul.f32 %v2975_v8, %v752_v9 }
  0xa1   : > { %2467 = vmatprep.subr.bf16.mxu0 %v2771_v4 }
  0xa2   : > { %v2968_v5 = vpop.permute.xlu1 %695  ;;  %2452 = vmatmul.mubr.msk.bf16.vlgmr.msra.gmra.mrb[8].mxu1 %vm316_vm2, %v637_v0 }
  0xa3   : > { %v699_v7 = vmul.f32 %v2968_v5, %v689_v1  ;;  %2462 = vmatpush3.bf16.msra.mxu1 %v769_v2  ;;  %2463 = vmatprep.mubr.msk.bf16.mxu1 %vm2772_vm3, %v2771_v4 }
  0xa4   : > { %2473 = vmatprep.subr.bf16.mxu1 %v2771_v4 }
  0xa5   : > { %v700_v10 = vpack.c.bf16 %v699_v7, %v698_v3 }
  0xa7   : > { %v2982_v13 = vpop.permute.xlu1 %754  ;;  %2458 = vmatmul.mubr.msk.bf16.vlgmr.msra.gmra.mrb[12].mxu0 %vm316_vm2, %v700_v10 }
  0xa8   : > { %v761_v14 = vmul.f32 %v2982_v13, %v2886_v23  ;;  %2468 = vmatpush3.bf16.msra.mxu0 %v832_v11  ;;  %2469 = vmatprep.mubr.msk.bf16.mxu0 %vm2772_vm3, %v2771_v4 }
  0xa9   : > { %2545 = vmatprep.subr.bf16.mxu0 %v2771_v4 }
  0xaa   : > { %v763_v15 = vpack.c.bf16 %v762_v12, %v761_v14 }
  0xac   : > { %v2990_v16 = vpop.permute.xlu1 %817  ;;  %2464 = vmatmul.mubr.msk.bf16.vlgmr.msra.gmra.mrb[12].mxu1 %vm316_vm2, %v763_v15  ;;  %v1489_v15 = vld [vmem:[%s3303_s5] sm:$0xf] }
  0xad   : > { %2477 = vmatprep.mubr.msk.bf16.mxu1 %vm2772_vm3, %v2771_v4  ;;  %v824_v21 = vmul.f32 %v2990_v16, %v2905_v35  ;;  %2474 = vmatpush3.bf16.msra.mxu1 %v2724_v24 }
  0xae   : > { %2475 = vmatprep.subr.bf16.mxu1 %v2771_v4 }
  0xb0   : > { %v2995_v20 = vpop.permute.xlu1 %821 }
  0xb1   : > { %v825_v22 = vmul.f32 %v2995_v20, %v815_v17  ;;  %2476 = vmatpush3.bf16.msra.mxu1 %v2725_v27  ;;  %v1494_v17 = vsel %vm352_vm1, %v1489_v15, 0  ;;  %v2734_v15 = vld [vmem:[%s3302_s4 + $0x50] sm:$0xff]  }
  0xb2   : > { %2481 = vmatprep.subr.bf16.mxu1 %v2771_v4 }
  0xb3   : > { %v826_v23 = vpack.c.bf16 %v825_v22, %v824_v21 }
  0xb5   : > { %2470 = vmatmul.mubr.msk.bf16.vlgmr.msra.gmra.mrb[16].mxu0 %vm316_vm2, %v826_v23 }
  0xb6   : > { %2547 = vmatprep.mubr.msk.bf16.mxu0 %vm2772_vm3, %v2771_v4  ;;  %2546 = vmatpush3.bf16.msra.mxu0 %v1494_v17 }
  0xb7   : > { %2551 = vmatprep.subr.bf16.mxu0 %v2771_v4 }
 0x162   : > { %v390_v28 = vpop.f32.mrb[0].mxu0  ;;  %v437_v29 = vpop.f32.mrb[0].mxu1 }
 0x163   : > { %v438_v30 = vadd.f32 %v437_v29, %v390_v28  ;;  %v2423_v31 = vpop.f32.mrb[1].mxu0  ;;  %v2429_v32 = vpop.f32.mrb[1].mxu1 }
 0x164   : > { %v393_v33 = vpop.f32.mrb[2].mxu0  ;;  %v440_v34 = vpop.f32.mrb[2].mxu1 }
 0x165   : > { %v441_v35 = vadd.f32 %v440_v34, %v393_v33  ;;  %v2424_v36 = vpop.f32.mrb[3].mxu0  ;;  %v2430_v37 = vpop.f32.mrb[3].mxu1 }
 0x16a   : > { %v498_v40 = vpop.f32.mrb[4].mxu0 }
 0x16b   : > { %v505_v41 = vadd.f32 %v498_v40, %v438_v30  ;;  %v2435_v42 = vpop.f32.mrb[5].mxu0  ;;  %v2278_v30 = vld [vmem:[%s3301_s3] ss:$0 sm:$0xff] }
 0x16c   : > { %v501_v43 = vpop.f32.mrb[6].mxu0  ;;  %v561_v44 = vpop.f32.mrb[4].mxu1 }
 0x16d   : > { %v506_v47 = vadd.f32 %v501_v43, %v441_v35  ;;  %v568_v48 = vadd.f32 %v561_v44, %v505_v41  ;;  %v2436_v49 = vpop.f32.mrb[7].mxu0  ;;  %v2441_v50 = vpop.f32.mrb[5].mxu1 }
 0x16e   : > { %v564_v51 = vpop.f32.mrb[6].mxu1  ;;  %v2727_v50 = vld [vmem:[%s3302_s4 + $0x8] sm:$0xff]  }
 0x16f   : > { %v569_v52 = vadd.f32 %v564_v51, %v506_v47  ;;  %v2442_v53 = vpop.f32.mrb[7].mxu1 }
 0x172   : > { %v616_v55 = vpop.f32.mrb[8].mxu0 }
 0x173   : > { %v623_v56 = vadd.f32 %v616_v55, %v568_v48  ;;  %v2447_v57 = vpop.f32.mrb[9].mxu0  ;;  %v2726_v48 = vld [vmem:[%s3302_s4] sm:$0xff]  }
 0x174   : > { %v619_v60 = vpop.f32.mrb[10].mxu0 }
 0x175   : > { %v624_v61 = vadd.f32 %v619_v60, %v569_v52  ;;  %v679_v62 = vpop.f32.mrb[8].mxu1  ;;  %v2448_v63 = vpop.f32.mrb[11].mxu0  ;;  %v2729_v60 = vld [vmem:[%s3302_s4 + $0x28] sm:$0xff]  }
 0x176   : > { %v686_v0 = vadd.f32 %v679_v62, %v623_v56  ;;  %v2453_v1 = vpop.f32.mrb[9].mxu1  ;;  %v2728_v56 = vld [vmem:[%s3302_s4 + $0x20] sm:$0xff]  }
 0x177   : > { %v682_v2 = vpop.f32.mrb[10].mxu1  ;;  %v2730_v1 = vld [vmem:[%s3302_s4 + $0x30] sm:$0xff]  }
 0x178   : > { %v687_v3 = vadd.f32 %v682_v2, %v624_v61  ;;  %v2454_v6 = vpop.f32.mrb[11].mxu1 }
 0x17a   : > { %v742_v7 = vpop.f32.mrb[12].mxu0 }
 0x17b   : > { %v749_v9 = vadd.f32 %v742_v7, %v686_v0  ;;  %v2459_v10 = vpop.f32.mrb[13].mxu0 }
 0x17c   : > { %v745_v11 = vpop.f32.mrb[14].mxu0 }
 0x17d   : > { %v750_v12 = vadd.f32 %v745_v11, %v687_v3  ;;  %v2460_v14 = vpop.f32.mrb[15].mxu0  ;;  %v2731_v3 = vld [vmem:[%s3302_s4 + $0x38] sm:$0xff]   ;;  %v2732_v11 = vld [vmem:[%s3302_s4 + $0x40] sm:$0xff]  }
 0x17e   : > { %v2733_v14 = vld [vmem:[%s3302_s4 + $0x48] sm:$0xff]  }
 0x17f   : > { %v805_v21 = vpop.f32.mrb[12].mxu1 }
 0x180   : > { %v812_v22 = vadd.f32 %v805_v21, %v749_v9  ;;  %v2465_v23 = vpop.f32.mrb[13].mxu1  ;;  %v2735_v21 = vld [vmem:[%s3302_s4 + $0x58] sm:$0xff]  }
 0x181   : > { %v808_v24 = vpop.f32.mrb[14].mxu1 }
 0x182   : > { %v813_v27 = vadd.f32 %v808_v24, %v750_v12  ;;  %v2466_v28 = vpop.f32.mrb[15].mxu1 }
 0x183   : > { %v2736_v28 = vld [vmem:[%s3302_s4 + $0x60] sm:$0xff]  }
 0x188   : > { %v868_v29 = vpop.f32.mrb[16].mxu0 }
 0x189   : > { %v875_v31 = vadd.f32 %v868_v29, %v812_v22  ;;  %v2471_v32 = vpop.f32.mrb[17].mxu0 }
 0x18a   : > { %v871_v33 = vpop.f32.mrb[18].mxu0 }
 0x18b   : > { %v3019_v34 = vadd.f32 %v2278_v30, %v875_v31  ;;  %v876_v35 = vadd.f32 %v871_v33, %v813_v27  ;;  %v2472_v36 = vpop.f32.mrb[19].mxu0 }
 0x18d   : > { %v886_v37 = vmax.f32 %v3019_v34, 0.0  ;;  %v3022_v40 = vadd.f32 %v2278_v30, %v876_v35  ;;  %v2737_v30 = vld [vmem:[%s3302_s4 + $0x68] sm:$0xff]   ;;  %v2738_v35 = vld [vmem:[%s3302_s4 + $0x70] sm:$0xff]  }
 0x18f   : > { %v887_v41 = vmax.f32 %v3022_v40, 0.0  ;;  %889 = vst.msk [vmem:[#allocation2 + $0x5] sm:$0xff] %vm888_vm4, %v886_v37 }
 0x191   : > { %890 = vst.msk [vmem:[#allocation2 + $0xd] sm:$0xff] %vm888_vm4, %v887_v41  ;;  %v1155_v17 = vpack.c.bf16 %v887_v41, %v886_v37  ;;  %v2739_v37 = vld [vmem:[%s3302_s4 + $0x78] sm:$0xff]  }
 0x196   : > { %v900_v42 = vld [vmem:[#allocation2 + $0x1] sm:$0xff] }
 0x197   : > { %v902_v44 = vmul.f32 %v900_v42, %v2882_v19  ;;  %v891_v52 = vld [vmem:[#allocation2] sm:$0xff] }
 0x198   : > { %v3027_v43 = vld [vmem:[#allocation2 + $0x9] sm:$0xff]  ;;  %v893_v55 = vmul.f32 %v891_v52, %v2880_v18  ;;  %v1353_v41 = vld [vmem:[#allocation2 + $0x11] sm:$0xff] }
 0x199   : > { %v903_v47 = vmul.f32 %v3027_v43, %v2891_v26  ;;  %v3042_v51 = vld [vmem:[#allocation2 + $0x8] sm:$0xff]  ;;  %v1286_v31 = vld [vmem:[#allocation2 + $0x10] sm:$0xff]  ;;  %v1354_v42 = vmul.f32 %v3027_v43, %v2982_v13 }
 0x19a   : > { %v894_v53 = vmul.f32 %v3042_v51, %v2889_v25  ;;  %v3058_v61 = vld [vmem:[#allocation2 + $0xa] sm:$0xff]  ;;  %v1021_v62 = vld [vmem:[#allocation2 + $0x2] sm:$0xff]  ;;  %v1287_v32 = vmul.f32 %v3042_v51, %v2952_v59  ;;  %v1288_v33 = vmul.f32 %v1286_v31, %v2968_v5  ;;  %v1420_v43 = vld [vmem:[#allocation2 + $0x12] sm:$0xff] }
 0x19b   : > { %v904_v49 = vpack.c.bf16 %v903_v47, %v902_v44  ;;  %v1024_v63 = vmul.f32 %v3058_v61, %v2908_v38  ;;  %v1023_v0 = vmul.f32 %v1021_v62, %v2910_v39  ;;  %v1089_v6 = vld [vmem:[#allocation2 + $0xc] sm:$0xff]  ;;  %v1088_v7 = vld [vmem:[#allocation2 + $0x4] sm:$0xff]  ;;  %v1355_v44 = vmul.f32 %v1353_v41, %v2975_v8 }
 0x19c   : > { %v895_v57 = vpack.c.bf16 %v894_v53, %v893_v55  ;;  %v1091_v9 = vmul.f32 %v1089_v6, %v2928_v46  ;;  %v1090_v10 = vmul.f32 %v1088_v7, %v2926_v45  ;;  %v1218_v22 = vld [vmem:[#allocation2 + $0x6] sm:$0xff]  ;;  %v1219_v23 = vld [vmem:[#allocation2 + $0xe] sm:$0xff]  ;;  %v1289_v36 = vpack.c.bf16 %v1288_v33, %v1287_v32 }
 0x19d   : > { %2478 = vmatmul.mubr.msk.bf16.vlgmr.msra.gmra.mrb[16].mxu1 %vm888_vm4, %v904_v49  ;;  %v1025_v2 = vpack.c.bf16 %v1024_v63, %v1023_v0  ;;  %v1220_v24 = vmul.f32 %v1218_v22, %v2940_v54  ;;  %v1221_v27 = vmul.f32 %v1219_v23, %v2950_v58  ;;  %v2740_v47 = vld [vmem:[%s3302_s4 + $0x80] sm:$0xff]   ;;  %v2741_v49 = vld [vmem:[%s3302_s4 + $0x88] sm:$0xff]   ;;  %v1422_v51 = vmul.f32 %v1420_v43, %v2995_v20  ;;  %v2743_v0 = vld [vmem:[%s3304_s6 + $0x18] sm:$0xff]  }
 0x19e   : > { %2482 = vmatpush3.bf16.msra.mxu1 %v2726_v48  ;;  %2485 = vmatprep.mubr.msk.bf16.mxu1 %vm2772_vm3, %v2771_v4  ;;  %v1092_v12 = vpack.c.bf16 %v1091_v9, %v1090_v10  ;;  %v1356_v48 = vpack.c.bf16 %v1355_v44, %v1354_v42  ;;  %v2745_v23 = vld [vmem:[%s3304_s6 + $0x8] sm:$0xff]   ;;  %v2748_v33 = vld [vmem:[%s3304_s6 + $0x30] sm:$0xff]   ;;  %v2750_v42 = vld [vmem:[%s3304_s6 + $0x40] sm:$0xff]  }
 0x19f   : > { %2483 = vmatprep.subr.bf16.mxu1 %v2771_v4  ;;  %v1222_v29 = vpack.c.bf16 %v1221_v27, %v1220_v24 }
 0x1a2   : > { %2484 = vmatpush3.bf16.msra.mxu1 %v2727_v50  ;;  %v1421_v50 = vmul.f32 %v3058_v61, %v2990_v16  ;;  %v2742_v61 = vld [vmem:[%s3304_s6 + $0x10] sm:$0xff]  }
 0x1a3   : > { %2489 = vmatprep.subr.bf16.mxu1 %v2771_v4 }
 0x1a4   : > { %v1423_v52 = vpack.c.bf16 %v1422_v51, %v1421_v50 }
 0x1a9   : > { %2486 = vmatmul.mubr.msk.bf16.vlgmr.msra.gmra.mrb[16].mxu1 %vm888_vm4, %v895_v57 }
 0x1aa   : > { %2490 = vmatpush3.bf16.msra.mxu1 %v2728_v56  ;;  %2493 = vmatprep.mubr.msk.bf16.mxu1 %vm2772_vm3, %v2771_v4 }
 0x1ab   : > { %2491 = vmatprep.subr.bf16.mxu1 %v2771_v4 }
 0x1ae   : > { %2492 = vmatpush3.bf16.msra.mxu1 %v2729_v60 }
 0x1af   : > { %2497 = vmatprep.subr.bf16.mxu1 %v2771_v4 }
 0x1b5   : > { %2494 = vmatmul.mubr.msk.bf16.vlgmr.msra.gmra.mrb[16].mxu1 %vm888_vm4, %v1025_v2 }
 0x1b6   : > { %2498 = vmatpush3.bf16.msra.mxu1 %v2730_v1  ;;  %2501 = vmatprep.mubr.msk.bf16.mxu1 %vm2772_vm3, %v2771_v4  ;;  %v2141_v1 = vld [vmem:[%s3305_s7] sm:$0xf] }
 0x1b7   : > { %2499 = vmatprep.subr.bf16.mxu1 %v2771_v4  ;;  %v2146_v2 = vsel %vm352_vm1, %v2141_v1, 0  ;;  %v2759_v1 = vld [vmem:[%s3304_s6 + $0x88] sm:$0xff]  }
 0x1ba   : > { %2500 = vmatpush3.bf16.msra.mxu1 %v2731_v3 }
 0x1bb   : > { %2505 = vmatprep.subr.bf16.mxu1 %v2771_v4 }
 0x1c1   : > { %2502 = vmatmul.mubr.msk.bf16.vlgmr.msra.gmra.mrb[16].mxu1 %vm888_vm4, %v1092_v12 }
 0x1c2   : > { %2506 = vmatpush3.bf16.msra.mxu1 %v2732_v11  ;;  %2509 = vmatprep.mubr.msk.bf16.mxu1 %vm2772_vm3, %v2771_v4 }
 0x1c3   : > { %2507 = vmatprep.subr.bf16.mxu1 %v2771_v4 }
 0x1c6   : > { %2508 = vmatpush3.bf16.msra.mxu1 %v2733_v14 }
 0x1c7   : > { %2513 = vmatprep.subr.bf16.mxu1 %v2771_v4 }
 0x1cd   : > { %2510 = vmatmul.mubr.msk.bf16.vlgmr.msra.gmra.mrb[16].mxu1 %vm888_vm4, %v1155_v17 }
 0x1ce   : > { %2514 = vmatpush3.bf16.msra.mxu1 %v2734_v15  ;;  %2517 = vmatprep.mubr.msk.bf16.mxu1 %vm2772_vm3, %v2771_v4 }
 0x1cf   : > { %2515 = vmatprep.subr.bf16.mxu1 %v2771_v4 }
 0x1d2   : > { %2516 = vmatpush3.bf16.msra.mxu1 %v2735_v21 }
 0x1d3   : > { %2521 = vmatprep.subr.bf16.mxu1 %v2771_v4 }
 0x1d9   : > { %2518 = vmatmul.mubr.msk.bf16.vlgmr.msra.gmra.mrb[16].mxu1 %vm888_vm4, %v1222_v29 }
 0x1da   : > { %2522 = vmatpush3.bf16.msra.mxu1 %v2736_v28  ;;  %2525 = vmatprep.mubr.msk.bf16.mxu1 %vm2772_vm3, %v2771_v4  ;;  %v2746_v28 = vld [vmem:[%s3304_s6 + $0x20] sm:$0xff]  }
 0x1db   : > { %2523 = vmatprep.subr.bf16.mxu1 %v2771_v4 }
 0x1de   : > { %2524 = vmatpush3.bf16.msra.mxu1 %v2737_v30  ;;  %v2747_v30 = vld [vmem:[%s3304_s6 + $0x28] sm:$0xff]  }
 0x1df   : > { %2529 = vmatprep.subr.bf16.mxu1 %v2771_v4 }
 0x1e5   : > { %2526 = vmatmul.mubr.msk.bf16.vlgmr.msra.gmra.mrb[16].mxu1 %vm888_vm4, %v1289_v36  ;;  %v2749_v36 = vld [vmem:[%s3304_s6 + $0x38] sm:$0xff]  }
 0x1e6   : > { %2530 = vmatpush3.bf16.msra.mxu1 %v2738_v35  ;;  %2533 = vmatprep.mubr.msk.bf16.mxu1 %vm2772_vm3, %v2771_v4 }
 0x1e7   : > { %2531 = vmatprep.subr.bf16.mxu1 %v2771_v4 }
 0x1ea   : > { %2532 = vmatpush3.bf16.msra.mxu1 %v2739_v37 }
 0x1eb   : > { %2537 = vmatprep.subr.bf16.mxu1 %v2771_v4 }
 0x1f1   : > { %2534 = vmatmul.mubr.msk.bf16.vlgmr.msra.gmra.mrb[16].mxu1 %vm888_vm4, %v1356_v48  ;;  %v2753_v48 = vld [vmem:[%s3304_s6 + $0x58] sm:$0xff]  }
 0x1f2   : > { %2538 = vmatpush3.bf16.msra.mxu1 %v2740_v47  ;;  %2541 = vmatprep.mubr.msk.bf16.mxu1 %vm2772_vm3, %v2771_v4  ;;  %v2751_v47 = vld [vmem:[%s3304_s6 + $0x48] sm:$0xff]  }
 0x1f3   : > { %2539 = vmatprep.subr.bf16.mxu1 %v2771_v4 }
 0x1f6   : > { %2540 = vmatpush3.bf16.msra.mxu1 %v2741_v49 }
 0x1f7   : > { %2623 = vmatprep.subr.bf16.mxu1 %v2771_v4 }
 0x1fd   : > { %2542 = vmatmul.mubr.msk.bf16.vlgmr.msra.gmra.mrb[16].mxu1 %vm888_vm4, %v1423_v52  ;;  %v2754_v52 = vld [vmem:[%s3304_s6 + $0x60] sm:$0xff]  }
 0x1fe   : > { %2625 = vmatprep.mubr.msk.bf16.mxu1 %vm2772_vm3, %v2771_v4  ;;  %2624 = vmatpush3.bf16.msra.mxu1 %v2146_v2 }
 0x2d0   : > { %v1477_v53 = vpop.f32.mrb[16].mxu1 }
 0x2d1   : > { %v2543_v55 = vpop.f32.mrb[17].mxu1  ;;  %v1486_v57 = vmax.f32 %v1477_v53, 0.0 }
 0x2d2   : > { %v1480_v56 = vpop.f32.mrb[18].mxu1  ;;  %v2755_v55 = vld [vmem:[%s3304_s6 + $0x68] sm:$0xff]  }
 0x2d3   : > { %v1487_v60 = vmax.f32 %v1480_v56, 0.0  ;;  %v2544_v62 = vpop.f32.mrb[19].mxu1 }
 0x2d4   : > { %v2757_v62 = vld [vmem:[%s3304_s6 + $0x78] sm:$0xff]  }
 0x2d5   : > { %v1488_v63 = vpack.c.bf16 %v1487_v60, %v1486_v57  ;;  %v2756_v57 = vld [vmem:[%s3304_s6 + $0x70] sm:$0xff]  }
 0x2d7   : > { %2548 = vmatmul.mubr.msk.bf16.vlgmr.msra.gmra.mrb[20].mxu0 %vm316_vm2, %v1488_v63 }
 0x2d8   : > { %2555 = vmatprep.mubr.msk.bf16.mxu0 %vm2772_vm3, %v2771_v4  ;;  %2552 = vmatpush3.bf16.msra.mxu0 %v2742_v61  ;;  %v2758_v61 = vld [vmem:[%s3304_s6 + $0x80] sm:$0xff]  }
 0x2d9   : > { %2553 = vmatprep.subr.bf16.mxu0 %v2771_v4 }
 0x2dc   : > { %2554 = vmatpush3.bf16.msra.mxu0 %v2743_v0 }
 0x2dd   : > { %2559 = vmatprep.subr.bf16.mxu0 %v2771_v4 }
 0x3aa   : > { %v1530_v3 = vpop.f32.mrb[20].mxu0 }
 0x3ab   : > { %v3162_v6 = vadd.f32 %v1530_v3, %v3019_v34  ;;  %v2549_v7 = vpop.f32.mrb[21].mxu0 }
 0x3ac   : > { %v1533_v9 = vpop.f32.mrb[22].mxu0 }
 0x3ad   : > { %v1539_v10 = vmax.f32 %v3162_v6, 0.0  ;;  %v3166_v11 = vadd.f32 %v1533_v9, %v3022_v40  ;;  %v2550_v12 = vpop.f32.mrb[23].mxu0  ;;  %v2744_v40 = vld [vmem:[%s3304_s6] sm:$0xff]  }
 0x3af   : > { %1541 = vst.msk [vmem:[#allocation2 + $0x5] sm:$0xff] %vm888_vm4, %v1539_v10  ;;  %v1540_v14 = vmax.f32 %v3166_v11, 0.0 }
 0x3b1   : > { %1542 = vst.msk [vmem:[#allocation2 + $0xd] sm:$0xff] %vm888_vm4, %v1540_v14 }
 0x3b6   : > { %v1552_v15 = vld [vmem:[#allocation2 + $0x1] sm:$0xff] }
 0x3b7   : > { %v1554_v34 = vmul.f32 %v1552_v15, %v2882_v19 }
 0x3b8   : > { %v3171_v17 = vld [vmem:[#allocation2 + $0x9] sm:$0xff] }
 0x3b9   : > { %v1555_v21 = vmul.f32 %v3171_v17, %v2891_v26  ;;  %v3186_v19 = vld [vmem:[#allocation2 + $0x8] sm:$0xff]  ;;  %v1543_v26 = vld [vmem:[#allocation2] sm:$0xff] }
 0x3ba   : > { %v1546_v24 = vmul.f32 %v3186_v19, %v2889_v25  ;;  %v1545_v27 = vmul.f32 %v1543_v26, %v2880_v18  ;;  %v3202_v25 = vld [vmem:[#allocation2 + $0xa] sm:$0xff]  ;;  %v1673_v18 = vld [vmem:[#allocation2 + $0x2] sm:$0xff] }
 0x3bb   : > { %v1556_v22 = vpack.c.bf16 %v1555_v21, %v1554_v34  ;;  %v1676_v31 = vmul.f32 %v3202_v25, %v2908_v38  ;;  %v1675_v32 = vmul.f32 %v1673_v18, %v2910_v39  ;;  %v1741_v38 = vld [vmem:[#allocation2 + $0xc] sm:$0xff]  ;;  %v1740_v39 = vld [vmem:[#allocation2 + $0x4] sm:$0xff] }
 0x3bc   : > { %v1547_v29 = vpack.c.bf16 %v1546_v24, %v1545_v27  ;;  %v1743_v37 = vmul.f32 %v1741_v38, %v2928_v46  ;;  %v1742_v41 = vmul.f32 %v1740_v39, %v2926_v45  ;;  %v2752_v45 = vld [vmem:[%s3304_s6 + $0x50] sm:$0xff]   ;;  %v1807_v46 = vpack.c.bf16 %v1540_v14, %v1539_v10  ;;  %v1870_v49 = vld [vmem:[#allocation2 + $0x6] sm:$0xff] }
 0x3bd   : > { %2556 = vmatmul.mubr.msk.bf16.vlgmr.msra.gmra.mrb[24].mxu0 %vm888_vm4, %v1556_v22  ;;  %v1677_v35 = vpack.c.bf16 %v1676_v31, %v1675_v32  ;;  %v1871_v43 = vld [vmem:[#allocation2 + $0xe] sm:$0xff]  ;;  %v1872_v50 = vmul.f32 %v1870_v49, %v2940_v54 }
 0x3be   : > { %2560 = vmatpush3.bf16.msra.mxu0 %v2744_v40  ;;  %2563 = vmatprep.mubr.msk.bf16.mxu0 %vm2772_vm3, %v2771_v4  ;;  %v1744_v44 = vpack.c.bf16 %v1743_v37, %v1742_v41  ;;  %v1873_v51 = vmul.f32 %v1871_v43, %v2950_v58  ;;  %v1938_v54 = vld [vmem:[#allocation2 + $0x10] sm:$0xff]  ;;  %v1939_v58 = vmul.f32 %v3186_v19, %v2952_v59 }
 0x3bf   : > { %2561 = vmatprep.subr.bf16.mxu0 %v2771_v4  ;;  %v1940_v56 = vmul.f32 %v1938_v54, %v2968_v5  ;;  %v2005_v59 = vld [vmem:[#allocation2 + $0x11] sm:$0xff]  ;;  %v2006_v5 = vmul.f32 %v3171_v17, %v2982_v13 }
 0x3c0   : > { %v1874_v53 = vpack.c.bf16 %v1873_v51, %v1872_v50  ;;  %v2007_v63 = vmul.f32 %v2005_v59, %v2975_v8  ;;  %v2072_v13 = vld [vmem:[#allocation2 + $0x12] sm:$0xff]  ;;  %v2073_v8 = vmul.f32 %v3202_v25, %v2990_v16 }
 0x3c1   : > { %v1941_v60 = vpack.c.bf16 %v1940_v56, %v1939_v58  ;;  %v2074_v2 = vmul.f32 %v2072_v13, %v2995_v20 }
 0x3c2   : > { %2562 = vmatpush3.bf16.msra.mxu0 %v2745_v23  ;;  %v2008_v0 = vpack.c.bf16 %v2007_v63, %v2006_v5 }
 0x3c3   : > { %2567 = vmatprep.subr.bf16.mxu0 %v2771_v4  ;;  %v2075_v3 = vpack.c.bf16 %v2074_v2, %v2073_v8 }
 0x3c9   : > { %2564 = vmatmul.mubr.msk.bf16.vlgmr.msra.gmra.mrb[24].mxu0 %vm888_vm4, %v1547_v29 }
 0x3ca   : > { %2568 = vmatpush3.bf16.msra.mxu0 %v2746_v28  ;;  %2571 = vmatprep.mubr.msk.bf16.mxu0 %vm2772_vm3, %v2771_v4 }
 0x3cb   : > { %2569 = vmatprep.subr.bf16.mxu0 %v2771_v4 }
 0x3ce   : > { %2570 = vmatpush3.bf16.msra.mxu0 %v2747_v30 }
 0x3cf   : > { %2575 = vmatprep.subr.bf16.mxu0 %v2771_v4 }
 0x3d5   : > { %2572 = vmatmul.mubr.msk.bf16.vlgmr.msra.gmra.mrb[24].mxu0 %vm888_vm4, %v1677_v35 }
 0x3d6   : > { %2576 = vmatpush3.bf16.msra.mxu0 %v2748_v33  ;;  %2579 = vmatprep.mubr.msk.bf16.mxu0 %vm2772_vm3, %v2771_v4 }
 0x3d7   : > { %2577 = vmatprep.subr.bf16.mxu0 %v2771_v4 }
 0x3da   : > { %2578 = vmatpush3.bf16.msra.mxu0 %v2749_v36 }
 0x3db   : > { %2583 = vmatprep.subr.bf16.mxu0 %v2771_v4 }
 0x3e1   : > { %2580 = vmatmul.mubr.msk.bf16.vlgmr.msra.gmra.mrb[24].mxu0 %vm888_vm4, %v1744_v44 }
 0x3e2   : > { %2584 = vmatpush3.bf16.msra.mxu0 %v2750_v42  ;;  %2587 = vmatprep.mubr.msk.bf16.mxu0 %vm2772_vm3, %v2771_v4 }
 0x3e3   : > { %2585 = vmatprep.subr.bf16.mxu0 %v2771_v4 }
 0x3e6   : > { %2586 = vmatpush3.bf16.msra.mxu0 %v2751_v47 }
 0x3e7   : > { %2591 = vmatprep.subr.bf16.mxu0 %v2771_v4 }
 0x3ed   : > { %2588 = vmatmul.mubr.msk.bf16.vlgmr.msra.gmra.mrb[24].mxu0 %vm888_vm4, %v1807_v46 }
 0x3ee   : > { %2592 = vmatpush3.bf16.msra.mxu0 %v2752_v45  ;;  %2595 = vmatprep.mubr.msk.bf16.mxu0 %vm2772_vm3, %v2771_v4 }
 0x3ef   : > { %2593 = vmatprep.subr.bf16.mxu0 %v2771_v4 }
 0x3f2   : > { %2594 = vmatpush3.bf16.msra.mxu0 %v2753_v48 }
 0x3f3   : > { %2599 = vmatprep.subr.bf16.mxu0 %v2771_v4 }
 0x3f9   : > { %2596 = vmatmul.mubr.msk.bf16.vlgmr.msra.gmra.mrb[24].mxu0 %vm888_vm4, %v1874_v53 }
 0x3fa   : > { %2600 = vmatpush3.bf16.msra.mxu0 %v2754_v52  ;;  %2603 = vmatprep.mubr.msk.bf16.mxu0 %vm2772_vm3, %v2771_v4 }
 0x3fb   : > { %2601 = vmatprep.subr.bf16.mxu0 %v2771_v4 }
 0x3fe   : > { %2602 = vmatpush3.bf16.msra.mxu0 %v2755_v55 }
 0x3ff   : > { %2607 = vmatprep.subr.bf16.mxu0 %v2771_v4 }
 0x405   : > { %2604 = vmatmul.mubr.msk.bf16.vlgmr.msra.gmra.mrb[24].mxu0 %vm888_vm4, %v1941_v60 }
 0x406   : > { %2608 = vmatpush3.bf16.msra.mxu0 %v2756_v57  ;;  %2611 = vmatprep.mubr.msk.bf16.mxu0 %vm2772_vm3, %v2771_v4 }
 0x407   : > { %2609 = vmatprep.subr.bf16.mxu0 %v2771_v4 }
 0x40a   : > { %2610 = vmatpush3.bf16.msra.mxu0 %v2757_v62 }
 0x40b   : > { %2615 = vmatprep.subr.bf16.mxu0 %v2771_v4 }
 0x411   : > { %2612 = vmatmul.mubr.msk.bf16.vlgmr.msra.gmra.mrb[24].mxu0 %vm888_vm4, %v2008_v0 }
 0x412   : > { %2616 = vmatpush3.bf16.msra.mxu0 %v2758_v61  ;;  %2619 = vmatprep.mubr.msk.bf16.mxu0 %vm2772_vm3, %v2771_v4 }
 0x413   : > { %2617 = vmatprep.subr.bf16.mxu0 %v2771_v4 }
 0x416   : > { %2618 = vmatpush3.bf16.msra.mxu0 %v2759_v1 }
 0x41d   : > { %2620 = vmatmul.mubr.msk.bf16.vlgmr.msra.gmra.mrb[24].mxu0 %vm888_vm4, %v2075_v3 }
 0x4f0   : > { %v2129_v7 = vpop.f32.mrb[24].mxu0 }
 0x4f1   : > { %v2621_v9 = vpop.f32.mrb[25].mxu0  ;;  %v2138_v12 = vmax.f32 %v2129_v7, 0.0 }
 0x4f2   : > { %v2132_v10 = vpop.f32.mrb[26].mxu0 }
 0x4f3   : > { %v2139_v14 = vmax.f32 %v2132_v10, 0.0  ;;  %v2622_v15 = vpop.f32.mrb[27].mxu0 }
 0x4f5   : > { %v2140_v17 = vpack.c.bf16 %v2139_v14, %v2138_v12 }
 0x4f7   : > { %2626 = vmatmul.mubr.msk.bf16.vlgmr.msra.gmra.mrb[20].mxu1 %vm316_vm2, %v2140_v17 }
 0x5ca   : > { %v2182_v4 = vpop.f32.mrb[20].mxu1 }
 0x5cb   : > { %v2189_v34 = vadd.f32 %v2182_v4, %v3162_v6  ;;  %v2627_v21 = vpop.f32.mrb[21].mxu1 }
 0x5cc   : > { %v2185_v16 = vpop.f32.mrb[22].mxu1 }
 0x5cd   : > { %v2191_v40 = vmax.f32 %v2189_v34, 0.0  ;;  %v2190_v20 = vadd.f32 %v2185_v16, %v3166_v11  ;;  %v2628_v22 = vpop.f32.mrb[23].mxu1 }
 0x5cf   : > { %v2341_v23 = vpack.c.bf16 %v2191_v40, %v2191_v40  ;;  %v2192_v19 = vmax.f32 %v2190_v20, 0.0 }
 0x5d1   : > { %2202 = vst.msk [vmem:[%s305_s18] sm:$0xf] %vm2201_vm5, %v2341_v23  ;;  %v2342_v26 = vpack.c.bf16 %v2192_v19, %v2192_v19 }
 0x5d3   : > { %2203 = vst.msk [vmem:[%s305_s18 + $0x4] sm:$0xf] %vm2201_vm5, %v2342_v26 }
 0x5d4 PF: > { %s18_s27 = sadd.s32 1, %s2767_s27  }
 0x5d5   : > { %p15_p4 = scmp.ge.s32.totalorder %s18_s27, 4  }
 0x5d7   :  { %17 = sbr.rel (!%p15_p4) target bundleno = 1 (0x1), region = 82 }

// kernel: tile.18
= control target key start
LH: loop header
LB: loop body
LE: loop exit
PB: predicated region body
PF: predicated region fallthrough
CT: control target
= control target key end

     0   :  { %s22_s0 = inlined_call_operand.vmem [shape: f32[3], index: 0, kind: input, shape index: {}]   ;;  %s23_s1 = inlined_call_operand.vmem [shape: f32[2,3], index: 1, kind: output, shape index: {}]  }
   0x1   :  { %v4_v0 = vld [vmem:[%s22_s0] ss:$0 sm:$0xff] }
   0x2   :  { %5 = vst [vmem:[%s23_s1] sm:$0x3] %v4_v0 }

// kernel: tile.19
= control target key start
LH: loop header
LB: loop body
LE: loop exit
PB: predicated region body
PF: predicated region fallthrough
CT: control target
= control target key end

     0   :  { %vm7_vm0 = vcmask 23552   ;;  %vm13_vm1 = vcmask 48152   ;;  %s39_s0 = inlined_call_operand.vmem [shape: f32[2,3], index: 0, kind: input, shape index: {}]   ;;  %s40_s1 = inlined_call_operand.vmem [shape: f32[1,6], index: 1, kind: output, shape index: {}]  }
   0x1   :  { %v4_v0 = vld [vmem:[%s39_s0] sm:$0x3]  ;;  %s22_s0 = smov 3  }
   0x2   :  { %5 = vst [vmem:[#allocation1] sm:$0x3] %v4_v0 }
   0x9   :  { %v10_v1 = vld [vmem:[#allocation1 + $0x1] sm:$0x1]   ;;  %v6_v2 = vld [vmem:[#allocation1] sm:$0x1]  }
   0xa   :  { %11 = vrot.lane.b32.xlu0 %v10_v1, %s22_s0  ;;  %8 = vst.msk [vmem:[#allocation0] sm:$0x1] %vm7_vm0, %v6_v2  }
  0x7c   :  { %v12_v3 = vpop.permute.xlu0 %11  }
  0x7d   :  { %14 = vst.msk [vmem:[#allocation0] sm:$0x1] %vm13_vm1, %v12_v3  }
  0x84   :  { %v18_v4 = vld [vmem:[#allocation0] sm:$0x1] }
  0x85   :  { %20 = vst [vmem:[%s40_s1] sm:$0x1] %v18_v4 }

// kernel: forward.12
= control target key start
LH: loop header
LB: loop body
LE: loop exit
PB: predicated region body
PF: predicated region fallthrough
CT: control target
= control target key end

     0   :  { %s1559_s21 = smov 0   ;;  %s1761_s0 = inlined_call_operand.vmem [shape: bf16[2,16,32], index: 0, kind: input, shape index: {}]   ;;  %s1762_s1 = inlined_call_operand.vmem [shape: f32[16,9], index: 1, kind: input, shape index: {}]   ;;  %s1763_s2 = inlined_call_operand.vmem [shape: bf16[288,32], index: 2, kind: input, shape index: {}]   ;;  %s1764_s3 = inlined_call_operand.vmem [shape: bf16[288,32], index: 3, kind: input, shape index: {}]   ;;  %s1765_s4 = inlined_call_operand.vmem [shape: f32[1,32], index: 4, kind: input, shape index: {}]   ;;  %s1766_s5 = inlined_call_operand.vmem [shape: bf16[2,16,32], index: 5, kind: output, shape index: {0}]   ;;  %s1767_s6 = inlined_call_operand.vmem [shape: bf16[2,16,32], index: 6, kind: output, shape index: {1}]  }
   0x1 LB: > { %s1256_s22 = sadd.s32 4294967295, %s1512_s21   ;;  %p1260_p0 = scmp.ge.s32.totalorder %s1512_s21, 1  ;;  %s1512_s21 = sphi %s1559_s21, %s17_s21  }
   0x2   : > { %p215_p1 = scmp.lt.s32.totalorder %s1512_s21, 3 }
   0x4   : > { %p216_p2 = pnand %p1260_p0, %p215_p1 }
   0x5   : > { %v1570_v0 = vld [vmem:[%s1762_s1] sm:$0xff] (!%p216_p2)  ;;  %v1514_v1 = vmov (!%p216_p2), 1   ;;  %v1515_v2 = vmov (!%p216_p2), 0   ;;  %p250_p3 = scmp.lt.s32.totalorder (!%p216_p2), %s1256_s22, 1  ;;  %v1481_v3 = vld [vmem:[%s1763_s2 + $0x10] sm:$0xff] (!%p216_p2)   ;;  %vm266_vm0 = vcmask (!%p216_p2), 258048  }
   0x6   : > { %219 = sbr.rel (%p216_p2) target bundleno = 409 (0x199), region = 40  ;;  %1468 = vset.pattern.permute.xlu0 (!%p216_p2), %v1514_v1  ;;  %1469 = vset.pattern.permute.xlu1 (!%p216_p2), %v1515_v2  ;;  %v1482_v4 = vld [vmem:[%s1763_s2] sm:$0xff] (!%p216_p2)   ;;  %v270_v5 = vld [vmem:[%s1762_s1 + $0x8] sm:$0xff] (!%p216_p2)  ;;  %v1516_v6 = vmov (!%p216_p2), 0.0   ;;  %v1483_v7 = vld [vmem:[%s1763_s2 + $0x18] sm:$0xff] (!%p216_p2)   ;;  %vm275_vm1 = vcmask (!%p216_p2), 261120  }
   0x7   : > { %283 = vperm.xlu1 (!%p216_p2), %1469, %v1570_v0   ;;  %301 = vperm.xlu0 (!%p216_p2), %1468, %v1570_v0   ;;  %267 = vst.msk [vmem:[#allocation2] sm:$0x1f] (!%p216_p2), %vm266_vm0, %v1516_v6  ;;  %268 = vst.msk [vmem:[#allocation2 + $0x15] sm:$0x1f] (!%p216_p2), %vm266_vm0, %v1516_v6  ;;  %v1484_v8 = vld [vmem:[%s1763_s2 + $0x8] sm:$0xff] (!%p216_p2)   ;;  %vm1517_vm2 = vmmov (!%p216_p2), 0  }
   0x8   : > { %1354 = vmatprep.subr.bf16.mxu0 (!%p216_p2), %v1516_v6  ;;  %1362 = vmatprep.subr.bf16.mxu1 (!%p216_p2), %v1516_v6  ;;  %v1518_v12 = vmov (!%p216_p2), 2   ;;  %v1519_v13 = vmov (!%p216_p2), 3   ;;  %v1520_v14 = vmov (!%p216_p2), 5   ;;  %v1521_v15 = vmov (!%p216_p2), 6   ;;  %v1485_v30 = vld [vmem:[%s1763_s2 + $0x20] sm:$0xff] (!%p216_p2)   ;;  %v1486_v31 = vld [vmem:[%s1763_s2 + $0x30] sm:$0xff] (!%p216_p2)  }
   0x9   : > { %1355 = vmatpush3.bf16.msra.mxu0 (!%p216_p2), %v1481_v3  ;;  %1363 = vmatpush3.bf16.msra.mxu1 (!%p216_p2), %v1482_v4  ;;  %v1522_v16 = vmov (!%p216_p2), 7   ;;  %v1523_v17 = vmov (!%p216_p2), 8   ;;  %v1487_v38 = vld [vmem:[%s1763_s2 + $0x28] sm:$0xff] (!%p216_p2)   ;;  %v1488_v39 = vld [vmem:[%s1763_s2 + $0x38] sm:$0xff] (!%p216_p2)   ;;  %v1489_v46 = vld [vmem:[%s1763_s2 + $0x40] sm:$0xff] (!%p216_p2)   ;;  %vm737_vm3 = vcmask (!%p216_p2), 257024  }
   0xa   : > { %1356 = vmatprep.subr.bf16.mxu0 (!%p216_p2), %v1516_v6  ;;  %1364 = vmatprep.subr.bf16.mxu1 (!%p216_p2), %v1516_v6  ;;  %v1490_v50 = vld [vmem:[%s1763_s2 + $0x50] sm:$0xff] (!%p216_p2)   ;;  %v1491_v52 = vld [vmem:[%s1763_s2 + $0x48] sm:$0xff] (!%p216_p2)   ;;  %v1492_v54 = vld [vmem:[%s1763_s2 + $0x58] sm:$0xff] (!%p216_p2)  }
   0xb   : > { %288 = vperm.xlu1 (!%p216_p2), %1469, %v270_v5   ;;  %305 = vperm.xlu0 (!%p216_p2), %1468, %v270_v5   ;;  %v1493_v57 = vld [vmem:[%s1764_s3 + $0x40] sm:$0xff] (!%p216_p2)   ;;  %v1494_v61 = vld [vmem:[%s1764_s3 + $0x30] sm:$0xff] (!%p216_p2)   ;;  %v1495_v63 = vld [vmem:[%s1764_s3 + $0x48] sm:$0xff] (!%p216_p2)  }
   0xc   : > { %1358 = vmatprep.mubr.msk.bf16.mxu0 (!%p216_p2), %vm1517_vm2, %v1516_v6  ;;  %1366 = vmatprep.mubr.msk.bf16.mxu1 (!%p216_p2), %vm1517_vm2, %v1516_v6  ;;  %v1496_v1 = vld [vmem:[%s1764_s3 + $0x38] sm:$0xff] (!%p216_p2)   ;;  %v1497_v2 = vld [vmem:[%s1764_s3 + $0x50] sm:$0xff] (!%p216_p2)   ;;  %v1498_v4 = vld [vmem:[%s1764_s3 + $0x60] sm:$0xff] (!%p216_p2)  }
   0xd   : > { %s1769_s22 = smov (!%p250_p3, %s1256_s22), 1  ;;  %1357 = vmatpush3.bf16.msra.mxu0 %v1483_v7  ;;  %1365 = vmatpush3.bf16.msra.mxu1 %v1484_v8  ;;  %v1499_v7 = vld [vmem:[%s1764_s3 + $0x58] sm:$0xff]  }
   0xe   : > { %s1587_s7 = sshll.u32 %s1769_s22, 3  ;;  %1370 = vmatprep.subr.bf16.mxu0 %v1516_v6  ;;  %1378 = vmatprep.subr.bf16.mxu1 %v1516_v6 }
   0xf   : > { %s254_s12 = scalar_lea.vmem %s1761_s0, %s1587_s7  ;;  %1471 = vset.pattern.permute.xlu1 %v1518_v12  ;;  %1470 = vset.pattern.permute.xlu0 %v1518_v12  ;;  %s259_s15 = scalar_lea.vmem %s1766_s5, %s1587_s7 }
  0x10   : > { %v1601_v9 = vld [vmem:[%s254_s12] sm:$0xff]   ;;  %434 = vperm.xlu1 %1471, %v270_v5   ;;  %430 = vperm.xlu0 %1470, %v1570_v0   ;;  %s264_s18 = scalar_lea.vmem %s1767_s6, %s1587_s7 }
  0x11   : > { %v273_v10 = vunpack.c.l.bf16 %v1601_v9  ;;  %v274_v11 = vunpack.c.h.bf16 %v1601_v9 }
  0x13   : > { %276 = vst.msk [vmem:[#allocation2 + $0x5] sm:$0xff] %vm275_vm1, %v273_v10  ;;  %277 = vst.msk [vmem:[#allocation2 + $0xd] sm:$0xff] %vm275_vm1, %v274_v11 }
  0x14   : > { %1472 = vset.pattern.permute.xlu1 %v1519_v13  ;;  %1473 = vset.pattern.permute.xlu0 %v1519_v13  ;;  %v1501_v13 = vld [vmem:[%s1764_s3 + $0x70] sm:$0xff]  }
  0x15   : > { %505 = vperm.xlu1 %1472, %v1570_v0   ;;  %509 = vperm.xlu0 %1473, %v270_v5  }
  0x19   : > { %1474 = vset.pattern.permute.xlu1 %v1520_v14  ;;  %1475 = vset.pattern.permute.xlu0 %v1521_v15 }
  0x1a   : > { %647 = vperm.xlu1 %1474, %v1570_v0   ;;  %932 = vperm.xlu0 %1475, %v1570_v0   ;;  %v279_v20 = vld [vmem:[#allocation2] sm:$0xff]  ;;  %v1619_v22 = vld [vmem:[#allocation2 + $0x8] sm:$0xff]  ;;  %v930_v8 = vld [vmem:[#allocation2 + $0x10] sm:$0xff] }
  0x1b   : > { %v298_v21 = vld [vmem:[#allocation2 + $0x1] sm:$0xff]  ;;  %v1621_v23 = vld [vmem:[#allocation2 + $0x9] sm:$0xff] }
  0x1c   : > { %v1631_v34 = vld [vmem:[#allocation2 + $0xa] sm:$0xff]  ;;  %v427_v35 = vld [vmem:[#allocation2 + $0x2] sm:$0xff] }
  0x1d   : > { %v502_v42 = vld [vmem:[#allocation2 + $0x4] sm:$0xff]  ;;  %v503_v43 = vld [vmem:[#allocation2 + $0xc] sm:$0xff] }
  0x1e   : > { %651 = vperm.xlu1 %1474, %v270_v5   ;;  %1478 = vset.pattern.permute.xlu0 %v1522_v16  ;;  %v644_v55 = vld [vmem:[#allocation2 + $0x6] sm:$0xff]  ;;  %v645_v56 = vld [vmem:[#allocation2 + $0xe] sm:$0xff] }
  0x1f   : > { %1011 = vperm.xlu0 %1478, %v270_v5  }
  0x22   : > { %1476 = vset.pattern.permute.xlu1 %v1521_v15  ;;  %v1005_v15 = vld [vmem:[#allocation2 + $0x11] sm:$0xff] }
  0x23   : > { %936 = vperm.xlu1 %1476, %v270_v5   ;;  %1480 = vset.pattern.permute.xlu0 %v1523_v17 }
  0x27   : > { %1477 = vset.pattern.permute.xlu1 %v1522_v16  ;;  %v1502_v16 = vld [vmem:[%s1764_s3 + $0x80] sm:$0xff]  }
  0x28   : > { %1007 = vperm.xlu1 %1477, %v1570_v0  }
  0x2c   : > { %1479 = vset.pattern.permute.xlu1 %v1523_v17 }
  0x2d   : > { %1082 = vperm.xlu1 %1479, %v1570_v0  }
  0x31   : > { %1086 = vperm.xlu1 %1479, %v270_v5  }
  0x86   : > { %v284_v18 = vpop.permute.xlu1 %283  ;;  %v302_v19 = vpop.permute.xlu0 %301 }
  0x87   : > { %v291_v26 = vmul.f32 %v284_v18, %v279_v20  ;;  %v308_v27 = vmul.f32 %v302_v19, %v298_v21  ;;  %v1503_v18 = vld [vmem:[%s1764_s3 + $0x78] sm:$0xff]  }
  0x8a   : > { %v289_v24 = vpop.permute.xlu1 %288  ;;  %v306_v25 = vpop.permute.xlu0 %305 }
  0x8b   : > { %v292_v28 = vmul.f32 %v289_v24, %v1619_v22  ;;  %v309_v29 = vmul.f32 %v306_v25, %v1621_v23  ;;  %v1504_v24 = vld [vmem:[%s1764_s3 + $0x88] sm:$0xff]  }
  0x8d   : > { %v293_v32 = vpack.c.bf16 %v292_v28, %v291_v26  ;;  %v310_v33 = vpack.c.bf16 %v309_v29, %v308_v27 }
  0x8f   : > { %v435_v36 = vpop.permute.xlu1 %434  ;;  %v431_v37 = vpop.permute.xlu0 %430  ;;  %1359 = vmatmul.mubr.msk.bf16.vlgmr.msra.gmra.mrb[0].mxu0 %vm275_vm1, %v310_v33  ;;  %1367 = vmatmul.mubr.msk.bf16.vlgmr.msra.gmra.mrb[0].mxu1 %vm275_vm1, %v293_v32 }
  0x90   : > { %1371 = vmatpush3.bf16.msra.mxu0 %v1485_v30  ;;  %1379 = vmatpush3.bf16.msra.mxu1 %v1486_v31  ;;  %v438_v40 = vmul.f32 %v435_v36, %v1631_v34  ;;  %v437_v41 = vmul.f32 %v431_v37, %v427_v35 }
  0x91   : > { %1372 = vmatprep.subr.bf16.mxu0 %v1516_v6  ;;  %1380 = vmatprep.subr.bf16.mxu1 %v1516_v6 }
  0x92   : > { %1374 = vmatprep.mubr.msk.bf16.mxu0 %vm1517_vm2, %v1516_v6  ;;  %1382 = vmatprep.mubr.msk.bf16.mxu1 %vm1517_vm2, %v1516_v6  ;;  %v439_v47 = vpack.c.bf16 %v438_v40, %v437_v41 }
  0x94   : > { %v506_v44 = vpop.permute.xlu1 %505  ;;  %v510_v45 = vpop.permute.xlu0 %509  ;;  %1373 = vmatpush3.bf16.msra.mxu0 %v1487_v38  ;;  %1381 = vmatpush3.bf16.msra.mxu1 %v1488_v39 }
  0x95   : > { %v512_v48 = vmul.f32 %v506_v44, %v502_v42  ;;  %v513_v49 = vmul.f32 %v510_v45, %v503_v43  ;;  %1386 = vmatprep.subr.bf16.mxu0 %v1516_v6  ;;  %1394 = vmatprep.subr.bf16.mxu1 %v1516_v6 }
  0x97   : > { %v514_v51 = vpack.c.bf16 %v513_v49, %v512_v48  ;;  %1375 = vmatmul.mubr.msk.bf16.vlgmr.msra.gmra.mrb[4].mxu0 %vm275_vm1, %v439_v47 }
  0x98   : > { %1387 = vmatpush3.bf16.msra.mxu0 %v1489_v46  ;;  %1390 = vmatprep.mubr.msk.bf16.mxu0 %vm1517_vm2, %v1516_v6 }
  0x99   : > { %v648_v53 = vpop.permute.xlu1 %647  ;;  %1383 = vmatmul.mubr.msk.bf16.vlgmr.msra.gmra.mrb[4].mxu1 %vm275_vm1, %v514_v51  ;;  %1388 = vmatprep.subr.bf16.mxu0 %v1516_v6  ;;  %v933_v5 = vpop.permute.xlu0 %932 }
  0x9a   : > { %1395 = vmatpush3.bf16.msra.mxu1 %v1490_v50  ;;  %1398 = vmatprep.mubr.msk.bf16.mxu1 %vm1517_vm2, %v1516_v6  ;;  %v654_v59 = vmul.f32 %v648_v53, %v644_v55  ;;  %v939_v11 = vmul.f32 %v933_v5, %v1619_v22  ;;  %v1080_v22 = vld [vmem:[#allocation2 + $0x12] sm:$0xff]  ;;  %v1286_v55 = vld [vmem:[%s1765_s4] ss:$0 sm:$0xff] }
  0x9b   : > { %1396 = vmatprep.subr.bf16.mxu1 %v1516_v6 }
  0x9c   : > { %1389 = vmatpush3.bf16.msra.mxu0 %v1491_v52 }
  0x9d   : > { %v652_v58 = vpop.permute.xlu1 %651  ;;  %1402 = vmatprep.subr.bf16.mxu0 %v1516_v6 }
  0x9e   : > { %v655_v60 = vmul.f32 %v652_v58, %v645_v56  ;;  %1397 = vmatpush3.bf16.msra.mxu1 %v1492_v54  ;;  %v1012_v14 = vpop.permute.xlu0 %1011 }
  0x9f   : > { %1391 = vmatmul.mubr.msk.bf16.vlgmr.msra.gmra.mrb[8].mxu0 %vm275_vm1, %v1601_v9  ;;  %1410 = vmatprep.subr.bf16.mxu1 %v1516_v6  ;;  %v1015_v20 = vmul.f32 %v1012_v14, %v1005_v15 }
  0xa0   : > { %v656_v62 = vpack.c.bf16 %v655_v60, %v654_v59  ;;  %1403 = vmatpush3.bf16.msra.mxu0 %v1493_v57  ;;  %1406 = vmatprep.mubr.msk.bf16.mxu0 %vm1517_vm2, %v1516_v6 }
  0xa1   : > { %1404 = vmatprep.subr.bf16.mxu0 %v1516_v6 }
  0xa2   : > { %1399 = vmatmul.mubr.msk.bf16.vlgmr.msra.gmra.mrb[8].mxu1 %vm275_vm1, %v656_v62  ;;  %v937_v0 = vpop.permute.xlu1 %936 }
  0xa3   : > { %1411 = vmatpush3.bf16.msra.mxu1 %v1494_v61  ;;  %1414 = vmatprep.mubr.msk.bf16.mxu1 %vm1517_vm2, %v1516_v6  ;;  %v940_v10 = vmul.f32 %v937_v0, %v930_v8 }
  0xa4   : > { %1405 = vmatpush3.bf16.msra.mxu0 %v1495_v63  ;;  %1412 = vmatprep.subr.bf16.mxu1 %v1516_v6 }
  0xa5   : > { %1418 = vmatprep.subr.bf16.mxu0 %v1516_v6  ;;  %v941_v17 = vpack.c.bf16 %v940_v10, %v939_v11 }
  0xa7   : > { %1413 = vmatpush3.bf16.msra.mxu1 %v1496_v1  ;;  %1407 = vmatmul.mubr.msk.bf16.vlgmr.msra.gmra.mrb[12].mxu0 %vm275_vm1, %v1601_v9  ;;  %v1008_v3 = vpop.permute.xlu1 %1007  ;;  %v1500_v9 = vld [vmem:[%s1764_s3 + $0x68] sm:$0xff]  }
  0xa8   : > { %1419 = vmatpush3.bf16.msra.mxu0 %v1497_v2  ;;  %1426 = vmatprep.subr.bf16.mxu1 %v1516_v6  ;;  %v1014_v19 = vmul.f32 %v1008_v3, %v1621_v23 }
  0xa9   : > { %1420 = vmatprep.subr.bf16.mxu0 %v1516_v6  ;;  %1422 = vmatprep.mubr.msk.bf16.mxu0 %vm1517_vm2, %v1516_v6 }
  0xaa   : > { %1415 = vmatmul.mubr.msk.bf16.vlgmr.msra.gmra.mrb[12].mxu1 %vm275_vm1, %v514_v51  ;;  %v1016_v26 = vpack.c.bf16 %v1015_v20, %v1014_v19 }
  0xab   : > { %1427 = vmatpush3.bf16.msra.mxu1 %v1498_v4  ;;  %1430 = vmatprep.mubr.msk.bf16.mxu1 %vm1517_vm2, %v1516_v6 }
  0xac   : > { %1421 = vmatpush3.bf16.msra.mxu0 %v1499_v7  ;;  %v1083_v12 = vpop.permute.xlu1 %1082  ;;  %1428 = vmatprep.subr.bf16.mxu1 %v1516_v6 }
  0xad   : > { %1434 = vmatprep.subr.bf16.mxu0 %v1516_v6  ;;  %v1089_v23 = vmul.f32 %v1083_v12, %v1631_v34 }
  0xaf   : > { %1429 = vmatpush3.bf16.msra.mxu1 %v1500_v9  ;;  %1423 = vmatmul.mubr.msk.bf16.vlgmr.msra.gmra.mrb[16].mxu0 %vm275_vm1, %v656_v62 }
  0xb0   : > { %1435 = vmatpush3.bf16.msra.mxu0 %v1501_v13  ;;  %1442 = vmatprep.subr.bf16.mxu1 %v1516_v6  ;;  %v1087_v21 = vpop.permute.xlu1 %1086 }
  0xb1   : > { %1436 = vmatprep.subr.bf16.mxu0 %v1516_v6  ;;  %1438 = vmatprep.mubr.msk.bf16.mxu0 %vm1517_vm2, %v1516_v6  ;;  %v1090_v25 = vmul.f32 %v1087_v21, %v1080_v22 }
  0xb2   : > { %1431 = vmatmul.mubr.msk.bf16.vlgmr.msra.gmra.mrb[16].mxu1 %vm275_vm1, %v941_v17 }
  0xb3   : > { %1443 = vmatpush3.bf16.msra.mxu1 %v1502_v16  ;;  %1446 = vmatprep.mubr.msk.bf16.mxu1 %vm1517_vm2, %v1516_v6  ;;  %v1091_v27 = vpack.c.bf16 %v1090_v25, %v1089_v23 }
  0xb4   : > { %1437 = vmatpush3.bf16.msra.mxu0 %v1503_v18  ;;  %1444 = vmatprep.subr.bf16.mxu1 %v1516_v6 }
  0xb7   : > { %1445 = vmatpush3.bf16.msra.mxu1 %v1504_v24  ;;  %1439 = vmatmul.mubr.msk.bf16.vlgmr.msra.gmra.mrb[20].mxu0 %vm275_vm1, %v1016_v26 }
  0xba   : > { %1447 = vmatmul.mubr.msk.bf16.vlgmr.msra.gmra.mrb[20].mxu1 %vm275_vm1, %v1091_v27 }
 0x162   : > { %v364_v28 = vpop.f32.mrb[0].mxu0  ;;  %v420_v29 = vpop.f32.mrb[0].mxu1 }
 0x163   : > { %v421_v30 = vadd.f32 %v420_v29, %v364_v28  ;;  %v1360_v31 = vpop.f32.mrb[1].mxu0  ;;  %v1368_v32 = vpop.f32.mrb[1].mxu1 }
 0x164   : > { %v367_v33 = vpop.f32.mrb[2].mxu0  ;;  %v423_v35 = vpop.f32.mrb[2].mxu1 }
 0x165   : > { %v424_v36 = vadd.f32 %v423_v35, %v367_v33  ;;  %v1361_v34 = vpop.f32.mrb[3].mxu0  ;;  %v1369_v37 = vpop.f32.mrb[3].mxu1 }
 0x16a   : > { %v493_v38 = vpop.f32.mrb[4].mxu0 }
 0x16b   : > { %v500_v39 = vadd.f32 %v493_v38, %v421_v30  ;;  %v1376_v6 = vpop.f32.mrb[5].mxu0 }
 0x16c   : > { %v496_v40 = vpop.f32.mrb[6].mxu0  ;;  %v568_v41 = vpop.f32.mrb[4].mxu1 }
 0x16d   : > { %v501_v42 = vadd.f32 %v496_v40, %v424_v36  ;;  %v575_v43 = vadd.f32 %v568_v41, %v500_v39  ;;  %v1377_v44 = vpop.f32.mrb[7].mxu0  ;;  %v1384_v45 = vpop.f32.mrb[5].mxu1 }
 0x16e   : > { %v571_v46 = vpop.f32.mrb[6].mxu1 }
 0x16f   : > { %v576_v47 = vadd.f32 %v571_v46, %v501_v42  ;;  %v1385_v48 = vpop.f32.mrb[7].mxu1 }
 0x172   : > { %v635_v49 = vpop.f32.mrb[8].mxu0 }
 0x173   : > { %v642_v50 = vadd.f32 %v635_v49, %v575_v43  ;;  %v1392_v51 = vpop.f32.mrb[9].mxu0 }
 0x174   : > { %v638_v52 = vpop.f32.mrb[10].mxu0 }
 0x175   : > { %v643_v53 = vadd.f32 %v638_v52, %v576_v47  ;;  %v1393_v54 = vpop.f32.mrb[11].mxu0  ;;  %v710_v56 = vpop.f32.mrb[8].mxu1 }
 0x176   : > { %v717_v57 = vadd.f32 %v710_v56, %v642_v50  ;;  %v1400_v58 = vpop.f32.mrb[9].mxu1 }
 0x177   : > { %v713_v59 = vpop.f32.mrb[10].mxu1 }
 0x178   : > { %v725_v60 = vadd.f32 %v1286_v55, %v717_v57  ;;  %v718_v61 = vadd.f32 %v713_v59, %v643_v53  ;;  %v1401_v62 = vpop.f32.mrb[11].mxu1 }
 0x17a   : > { %v727_v63 = vmax.f32 %v725_v60, 0.0  ;;  %v726_v0 = vadd.f32 %v1286_v55, %v718_v61  ;;  %v799_v1 = vpop.f32.mrb[12].mxu0 }
 0x17b   : > { %v1408_v2 = vpop.f32.mrb[13].mxu0 }
 0x17c   : > { %v1314_v3 = vpack.c.bf16 %v727_v63, %v727_v63  ;;  %v728_v4 = vmax.f32 %v726_v0, 0.0  ;;  %v802_v5 = vpop.f32.mrb[14].mxu0 }
 0x17d   : > { %v1409_v7 = vpop.f32.mrb[15].mxu0  ;;  %v855_v8 = vpop.f32.mrb[12].mxu1 }
 0x17e   : > { %738 = vst.msk [vmem:[%s259_s15] sm:$0xf] %vm737_vm3, %v1314_v3  ;;  %v1315_v9 = vpack.c.bf16 %v728_v4, %v728_v4  ;;  %v856_v10 = vadd.f32 %v855_v8, %v799_v1  ;;  %v1416_v11 = vpop.f32.mrb[13].mxu1 }
 0x17f   : > { %v858_v12 = vpop.f32.mrb[14].mxu1 }
 0x180   : > { %739 = vst.msk [vmem:[%s259_s15 + $0x4] sm:$0xf] %vm737_vm3, %v1315_v9  ;;  %v859_v13 = vadd.f32 %v858_v12, %v802_v5  ;;  %v1417_v14 = vpop.f32.mrb[15].mxu1 }
 0x182   : > { %v920_v15 = vpop.f32.mrb[16].mxu0 }
 0x183   : > { %v927_v16 = vadd.f32 %v920_v15, %v856_v10  ;;  %v1424_v17 = vpop.f32.mrb[17].mxu0 }
 0x184   : > { %v923_v18 = vpop.f32.mrb[18].mxu0 }
 0x185   : > { %v928_v19 = vadd.f32 %v923_v18, %v859_v13  ;;  %v1425_v20 = vpop.f32.mrb[19].mxu0  ;;  %v995_v21 = vpop.f32.mrb[16].mxu1 }
 0x186   : > { %v1002_v22 = vadd.f32 %v995_v21, %v927_v16  ;;  %v1432_v24 = vpop.f32.mrb[17].mxu1 }
 0x187   : > { %v998_v23 = vpop.f32.mrb[18].mxu1 }
 0x188   : > { %v1003_v25 = vadd.f32 %v998_v23, %v928_v19  ;;  %v1433_v26 = vpop.f32.mrb[19].mxu1 }
 0x18a   : > { %v1070_v27 = vpop.f32.mrb[20].mxu0 }
 0x18b   : > { %v1077_v28 = vadd.f32 %v1070_v27, %v1002_v22  ;;  %v1440_v29 = vpop.f32.mrb[21].mxu0 }
 0x18c   : > { %v1073_v30 = vpop.f32.mrb[22].mxu0 }
 0x18d   : > { %v1078_v31 = vadd.f32 %v1073_v30, %v1003_v25  ;;  %v1441_v32 = vpop.f32.mrb[23].mxu0  ;;  %v1145_v33 = vpop.f32.mrb[20].mxu1 }
 0x18e   : > { %v1152_v35 = vadd.f32 %v1145_v33, %v1077_v28  ;;  %v1448_v36 = vpop.f32.mrb[21].mxu1 }
 0x18f   : > { %v1148_v34 = vpop.f32.mrb[22].mxu1 }
 0x190   : > { %v1154_v37 = vadd.f32 %v1286_v55, %v1152_v35  ;;  %v1153_v38 = vadd.f32 %v1148_v34, %v1078_v31  ;;  %v1449_v39 = vpop.f32.mrb[23].mxu1 }
 0x192   : > { %v1156_v6 = vmax.f32 %v1154_v37, 0.0  ;;  %v1155_v40 = vadd.f32 %v1286_v55, %v1153_v38 }
 0x194   : > { %v1316_v41 = vpack.c.bf16 %v1156_v6, %v1156_v6  ;;  %v1157_v42 = vmax.f32 %v1155_v40, 0.0 }
 0x196   : > { %1166 = vst.msk [vmem:[%s264_s18] sm:$0xf] %vm737_vm3, %v1316_v41  ;;  %v1317_v43 = vpack.c.bf16 %v1157_v42, %v1157_v42 }
 0x198   : > { %1167 = vst.msk [vmem:[%s264_s18 + $0x4] sm:$0xf] %vm737_vm3, %v1317_v43 }
 0x199 PF: > { %s17_s21 = sadd.s32 1, %s1512_s21  }
 0x19a   : > { %p14_p4 = scmp.ge.s32.totalorder %s17_s21, 4  }
 0x19c   :  { %16 = sbr.rel (!%p14_p4) target bundleno = 1 (0x1), region = 82 }

// kernel: forward.13
= control target key start
LH: loop header
LB: loop body
LE: loop exit
PB: predicated region body
PF: predicated region fallthrough
CT: control target
= control target key end

     0   :  { %s2442_s21 = smov 0   ;;  %s2849_s0 = inlined_call_operand.vmem [shape: bf16[2,64,16], index: 0, kind: input, shape index: {}]   ;;  %s2850_s1 = inlined_call_operand.vmem [shape: f32[64,9], index: 1, kind: input, shape index: {}]   ;;  %s2851_s2 = inlined_call_operand.vmem [shape: bf16[144,6], index: 2, kind: input, shape index: {}]   ;;  %s2852_s3 = inlined_call_operand.vmem [shape: bf16[144,6], index: 3, kind: input, shape index: {}]   ;;  %s2853_s4 = inlined_call_operand.vmem [shape: f32[1,6], index: 4, kind: input, shape index: {}]   ;;  %s2854_s5 = inlined_call_operand.vmem [shape: f32[2,64,6], index: 5, kind: output, shape index: {0}]   ;;  %s2855_s6 = inlined_call_operand.vmem [shape: f32[2,64,6], index: 6, kind: output, shape index: {1}]  }
   0x1 LB: > { %s1988_s22 = sadd.s32 4294967295, %s2396_s21   ;;  %p1992_p0 = scmp.ge.s32.totalorder %s2396_s21, 1  ;;  %s2396_s21 = sphi %s2442_s21, %s17_s21  }
   0x2   : > { %p215_p1 = scmp.lt.s32.totalorder %s2396_s21, 3 }
   0x4   : > { %p216_p2 = pnand %p1992_p0, %p215_p1 }
   0x5   : > { %v2453_v0 = vld [vmem:[%s2850_s1 + $0x10] sm:$0xff] (!%p216_p2)  ;;  %v2458_v1 = vld [vmem:[%s2850_s1] sm:$0xff] (!%p216_p2)  ;;  %v2398_v2 = vmov (!%p216_p2), 1   ;;  %v2465_v3 = vld [vmem:[%s2850_s1 + $0x18] sm:$0xff] (!%p216_p2)  ;;  %p250_p3 = scmp.lt.s32.totalorder (!%p216_p2), %s1988_s22, 1  ;;  %vm266_vm0 = vcmask (!%p216_p2), 130048  }
   0x6   : > { %219 = sbr.rel (%p216_p2) target bundleno = 520 (0x208), region = 40  ;;  %2347 = vset.pattern.permute.xlu1 (!%p216_p2), %v2398_v2  ;;  %2346 = vset.pattern.permute.xlu0 (!%p216_p2), %v2398_v2  ;;  %v2470_v4 = vld [vmem:[%s2850_s1 + $0x8] sm:$0xff] (!%p216_p2)  ;;  %v2399_v5 = vmov (!%p216_p2), 0.0   ;;  %vm268_vm1 = vcmask (!%p216_p2), 122880   ;;  %v2489_v8 = vld [vmem:[%s2850_s1 + $0x20] sm:$0xff] (!%p216_p2)  ;;  %v2504_v12 = vld [vmem:[%s2850_s1 + $0x38] sm:$0xff] (!%p216_p2) }
   0x7   : > { %384 = vperm.xlu1 (!%p216_p2), %2347, %v2453_v0   ;;  %376 = vperm.xlu0 (!%p216_p2), %2346, %v2458_v1   ;;  %267 = vst.msk [vmem:[#allocation2] sm:$0xff] (!%p216_p2), %vm266_vm0, %v2399_v5  ;;  %270 = vst.msk [vmem:[#allocation2 + $0x49] sm:$0xff] (!%p216_p2), %vm266_vm0, %v2399_v5  ;;  %v2479_v6 = vld [vmem:[%s2850_s1 + $0x28] sm:$0xff] (!%p216_p2)  ;;  %v2520_v21 = vld [vmem:[%s2850_s1 + $0x30] sm:$0xff] (!%p216_p2)  ;;  %v2400_v23 = vmov (!%p216_p2), 0   ;;  %v2401_v24 = vmov (!%p216_p2), 3  }
   0x8   : > { %269 = vst.msk [vmem:[#allocation2 + $0x8] sm:$0x1] (!%p216_p2), %vm268_vm1, %v2399_v5  ;;  %271 = vst.msk [vmem:[#allocation2 + $0x51] sm:$0x1] (!%p216_p2), %vm268_vm1, %v2399_v5  ;;  %v2374_v7 = vld [vmem:[%s2851_s2 + $0x8] sm:$0xff] (!%p216_p2)   ;;  %v2375_v22 = vld [vmem:[%s2852_s3 + $0x20] sm:$0xff] (!%p216_p2)  }
   0x9   : > { %2129 = vmatprep.subr.bf16.mxu0 (!%p216_p2), %v2374_v7  ;;  %2189 = vmatprep.subr.bf16.mxu1 (!%p216_p2), %v2375_v22  ;;  %v2550_v26 = vld [vmem:[%s2851_s2] sm:$0xff] (!%p216_p2)   ;;  %v2377_v27 = vld [vmem:[%s2852_s3 + $0x18] sm:$0xff] (!%p216_p2)   ;;  %v2402_v28 = vmov (!%p216_p2), 2   ;;  %v2403_v29 = vmov (!%p216_p2), 5   ;;  %v2404_v30 = vmov (!%p216_p2), 6   ;;  %v2586_v31 = vld [vmem:[%s2852_s3 + $0x28] sm:$0xff] (!%p216_p2)  }
   0xa   : > { %2130 = vmatpush3.bf16.msra.mxu0 (!%p216_p2), %v2374_v7  ;;  %2190 = vmatpush3.bf16.msra.mxu1 (!%p216_p2), %v2375_v22  ;;  %v2405_v32 = vmov (!%p216_p2), 7   ;;  %v2406_v33 = vmov (!%p216_p2), 8   ;;  %v2378_v52 = vld [vmem:[%s2851_s2 + $0x10] sm:$0xff] (!%p216_p2)   ;;  %vm1149_vm2 = vcmask (!%p216_p2), 48128  }
   0xb   : > { %388 = vperm.xlu1 (!%p216_p2), %2347, %v2465_v3   ;;  %380 = vperm.xlu0 (!%p216_p2), %2346, %v2470_v4  }
   0xc   : > { %2139 = vmatprep.subr.bf16.mxu0 (!%p216_p2), %v2550_v26  ;;  %2199 = vmatprep.subr.bf16.mxu1 (!%p216_p2), %v2377_v27 }
   0xd   : > { %s2857_s22 = smov (!%p250_p3, %s1988_s22), 1 }
   0xe   : > { %s2066_s13 = sshll.u32 %s2857_s22, 5  ;;  %s2067_s23 = sshll.u32 %s2857_s22, 6 }
   0xf   : > { %s254_s16 = scalar_lea.vmem %s2849_s0, %s2066_s13  ;;  %396 = vperm.xlu1 %2347, %v2479_v6   ;;  %392 = vperm.xlu0 %2346, %v2489_v8   ;;  %v367_v36 = vld [vmem:[#allocation2 + $0x1] sm:$0xff]  ;;  %s259_s28 = scalar_lea.vmem %s2854_s5, %s2067_s23 }
  0x10   : > { %v2495_v9 = vld [vmem:[%s254_s16] sm:$0xff]   ;;  %v2497_v10 = vld [vmem:[%s254_s16 + $0x8] sm:$0xff]   ;;  %v2499_v11 = vld [vmem:[%s254_s16 + $0x10] sm:$0xff]   ;;  %s264_s30 = scalar_lea.vmem %s2855_s6, %s2067_s23 }
  0x11   : > { %v289_v13 = vunpack.c.h.bf16 %v2495_v9  ;;  %v290_v14 = vunpack.c.l.bf16 %v2497_v10  ;;  %v288_v15 = vunpack.c.l.bf16 %v2495_v9  ;;  %v292_v16 = vunpack.c.l.bf16 %v2499_v11  ;;  %v2510_v17 = vld [vmem:[%s254_s16 + $0x18] sm:$0xff]   ;;  %2191 = vmatprep.mubr.msk.bf16.mxu1 %vm266_vm0, %v2495_v9 }
  0x12   : > { %v291_v18 = vunpack.c.h.bf16 %v2497_v10  ;;  %v294_v19 = vunpack.c.l.bf16 %v2510_v17  ;;  %v293_v20 = vunpack.c.h.bf16 %v2499_v11  ;;  %2192 = vmatmul.mubr.msk.bf16.vlgmr.msra.gmra.mrb[0].mxu1 %vm266_vm0, %v2497_v10  ;;  %v295_v25 = vunpack.c.h.bf16 %v2510_v17 }
  0x13   : > { %297 = vst.msk [vmem:[#allocation2 + $0x11] sm:$0xff] %vm266_vm0, %v289_v13  ;;  %298 = vst.msk [vmem:[#allocation2 + $0x19] sm:$0xff] %vm266_vm0, %v290_v14  ;;  %404 = vperm.xlu1 %2347, %v2504_v12   ;;  %400 = vperm.xlu0 %2346, %v2520_v21  }
  0x14   : > { %296 = vst.msk [vmem:[#allocation2 + $0x9] sm:$0xff] %vm266_vm0, %v288_v15  ;;  %300 = vst.msk [vmem:[#allocation2 + $0x29] sm:$0xff] %vm266_vm0, %v292_v16  ;;  %2195 = vmatprep.mubr.msk.bf16.mxu1 %vm266_vm0, %v2499_v11  ;;  %2200 = vmatpush3.bf16.msra.mxu1 %v2377_v27 }
  0x15   : > { %299 = vst.msk [vmem:[#allocation2 + $0x21] sm:$0xff] %vm266_vm0, %v291_v18  ;;  %302 = vst.msk [vmem:[#allocation2 + $0x39] sm:$0xff] %vm266_vm0, %v294_v19  ;;  %2209 = vmatprep.subr.bf16.mxu1 %v2586_v31 }
  0x16   : > { %301 = vst.msk [vmem:[#allocation2 + $0x31] sm:$0xff] %vm266_vm0, %v293_v20  ;;  %303 = vst.msk [vmem:[#allocation2 + $0x41] sm:$0xff] %vm266_vm0, %v295_v25 }
  0x17   : > { %2349 = vset.pattern.permute.xlu1 %v2400_v23  ;;  %2348 = vset.pattern.permute.xlu0 %v2400_v23 }
  0x18   : > { %320 = vperm.xlu1 %2349, %v2470_v4   ;;  %315 = vperm.xlu0 %2348, %v2458_v1  }
  0x1a   : > { %2196 = vmatmul.mubr.msk.bf16.gmra.mrb[4].mxu1 %vm266_vm0, %v2510_v17  ;;  %v2607_v37 = vld [vmem:[#allocation2 + $0x11] sm:$0xff]  ;;  %v2609_v38 = vld [vmem:[#allocation2 + $0x19] sm:$0xff] }
  0x1b   : > { %v368_v39 = vld [vmem:[#allocation2 + $0x9] sm:$0xff] }
  0x1c   : > { %2350 = vset.pattern.permute.xlu1 %v2401_v24  ;;  %335 = vperm.xlu0 %2348, %v2489_v8   ;;  %v2614_v46 = vld [vmem:[#allocation2 + $0x29] sm:$0xff]  ;;  %v2616_v47 = vld [vmem:[#allocation2 + $0x21] sm:$0xff]  ;;  %v2626_v55 = vld [vmem:[#allocation2 + $0x39] sm:$0xff] }
  0x1d   : > { %741 = vperm.xlu1 %2350, %v2458_v1   ;;  %v2628_v56 = vld [vmem:[#allocation2 + $0x31] sm:$0xff]  ;;  %v306_v63 = vld [vmem:[#allocation2 + $0x8] sm:$0xff] }
  0x20   : > { %2353 = vset.pattern.permute.xlu0 %v2401_v24 }
  0x21   : > { %2351 = vset.pattern.permute.xlu1 %v2400_v23  ;;  %745 = vperm.xlu0 %2353, %v2470_v4  }
  0x22   : > { %325 = vperm.xlu1 %2351, %v2453_v0  }
  0x25   : > { %749 = vperm.xlu0 %2353, %v2453_v0  }
  0x26   : > { %330 = vperm.xlu1 %2351, %v2465_v3  }
  0x29   : > { %761 = vperm.xlu0 %2353, %v2479_v6  }
  0x2a   : > { %2352 = vset.pattern.permute.xlu1 %v2401_v24 }
  0x2b   : > { %753 = vperm.xlu1 %2352, %v2465_v3  }
  0x2d   : > { %765 = vperm.xlu0 %2353, %v2520_v21  }
  0x2f   : > { %2354 = vset.pattern.permute.xlu1 %v2400_v23 }
  0x30   : > { %340 = vperm.xlu1 %2354, %v2479_v6  }
  0x31   : > { %2358 = vset.pattern.permute.xlu0 %v2402_v28 }
  0x32   : > { %596 = vperm.xlu0 %2358, %v2458_v1  }
  0x34   : > { %2355 = vset.pattern.permute.xlu1 %v2401_v24 }
  0x35   : > { %757 = vperm.xlu1 %2355, %v2489_v8  }
  0x36   : > { %612 = vperm.xlu0 %2358, %v2489_v8  }
  0x39   : > { %2356 = vset.pattern.permute.xlu1 %v2400_v23 }
  0x3a   : > { %345 = vperm.xlu1 %2356, %v2520_v21   ;;  %2363 = vset.pattern.permute.xlu0 %v2403_v29 }
  0x3b   : > { %1003 = vperm.xlu0 %2363, %v2470_v4  }
  0x3e   : > { %350 = vperm.xlu1 %2356, %v2504_v12  }
  0x3f   : > { %1007 = vperm.xlu0 %2363, %v2453_v0  }
  0x42   : > { %2357 = vset.pattern.permute.xlu1 %v2401_v24 }
  0x43   : > { %769 = vperm.xlu1 %2357, %v2504_v12   ;;  %1019 = vperm.xlu0 %2363, %v2479_v6  }
  0x47   : > { %2359 = vset.pattern.permute.xlu1 %v2402_v28  ;;  %1023 = vperm.xlu0 %2363, %v2520_v21  }
  0x48   : > { %600 = vperm.xlu1 %2359, %v2470_v4  }
  0x4b   : > { %2368 = vset.pattern.permute.xlu0 %v2404_v30 }
  0x4c   : > { %2360 = vset.pattern.permute.xlu1 %v2403_v29  ;;  %1458 = vperm.xlu0 %2368, %v2458_v1  }
  0x4d   : > { %999 = vperm.xlu1 %2360, %v2458_v1  }
  0x50   : > { %1470 = vperm.xlu0 %2368, %v2465_v3  }
  0x51   : > { %2361 = vset.pattern.permute.xlu1 %v2402_v28 }
  0x52   : > { %604 = vperm.xlu1 %2361, %v2453_v0  }
  0x54   : > { %1478 = vperm.xlu0 %2368, %v2479_v6  }
  0x56   : > { %608 = vperm.xlu1 %2361, %v2465_v3  }
  0x58   : > { %1486 = vperm.xlu0 %2368, %v2504_v12  }
  0x5a   : > { %2362 = vset.pattern.permute.xlu1 %v2403_v29 }
  0x5b   : > { %1011 = vperm.xlu1 %2362, %v2465_v3  }
  0x5c   : > { %2371 = vset.pattern.permute.xlu0 %v2405_v32 }
  0x5d   : > { %1607 = vperm.xlu0 %2371, %v2470_v4  }
  0x5f   : > { %2364 = vset.pattern.permute.xlu1 %v2402_v28 }
  0x60   : > { %616 = vperm.xlu1 %2364, %v2479_v6  }
  0x61   : > { %1619 = vperm.xlu0 %2371, %v2489_v8  }
  0x64   : > { %2365 = vset.pattern.permute.xlu1 %v2403_v29 }
  0x65   : > { %1015 = vperm.xlu1 %2365, %v2489_v8   ;;  %1627 = vperm.xlu0 %2371, %v2520_v21  }
  0x69   : > { %2366 = vset.pattern.permute.xlu1 %v2402_v28  ;;  %2372 = vset.pattern.permute.xlu0 %v2406_v33 }
  0x6a   : > { %620 = vperm.xlu1 %2366, %v2520_v21   ;;  %1748 = vperm.xlu0 %2372, %v2458_v1  }
  0x6e   : > { %624 = vperm.xlu1 %2366, %v2504_v12   ;;  %1760 = vperm.xlu0 %2372, %v2465_v3  }
  0x72   : > { %2367 = vset.pattern.permute.xlu1 %v2403_v29  ;;  %1768 = vperm.xlu0 %2372, %v2479_v6  }
  0x73   : > { %1027 = vperm.xlu1 %2367, %v2504_v12  }
  0x76   : > { %1776 = vperm.xlu0 %2372, %v2504_v12  }
  0x77   : > { %2369 = vset.pattern.permute.xlu1 %v2404_v30 }
  0x78   : > { %1462 = vperm.xlu1 %2369, %v2470_v4  }
  0x7c   : > { %1466 = vperm.xlu1 %2369, %v2453_v0  }
  0x80   : > { %1474 = vperm.xlu1 %2369, %v2489_v8  }
  0x84   : > { %1482 = vperm.xlu1 %2369, %v2520_v21  }
  0x86   : > { %v385_v34 = vpop.permute.xlu1 %384  ;;  %v377_v35 = vpop.permute.xlu0 %376 }
  0x87   : > { %v407_v40 = vmul.f32 %v377_v35, %v367_v36  ;;  %v409_v43 = vmul.f32 %v385_v34, %v2607_v37  ;;  %v2668_v34 = vld [vmem:[#allocation2 + $0x28] sm:$0xff]  ;;  %v2673_v35 = vld [vmem:[%s2852_s3 + $0x30] sm:$0xff]  }
  0x88   : > { %2370 = vset.pattern.permute.xlu1 %v2405_v32 }
  0x89   : > { %1603 = vperm.xlu1 %2370, %v2458_v1   ;;  %v305_v1 = vld [vmem:[#allocation2] sm:$0xff] }
  0x8a   : > { %v389_v41 = vpop.permute.xlu1 %388  ;;  %v381_v42 = vpop.permute.xlu0 %380 }
  0x8b   : > { %v410_v44 = vmul.f32 %v389_v41, %v2609_v38  ;;  %v408_v45 = vmul.f32 %v381_v42, %v368_v39 }
  0x8d   : > { %v416_v48 = vpack.c.bf16 %v410_v44, %v409_v43  ;;  %1611 = vperm.xlu1 %2370, %v2453_v0   ;;  %v415_v49 = vpack.c.bf16 %v408_v45, %v407_v40  ;;  %v2679_v40 = vld [vmem:[#allocation2 + $0x30] sm:$0xff] }
  0x8e   : > { %v397_v50 = vpop.permute.xlu1 %396  ;;  %v393_v51 = vpop.permute.xlu0 %392 }
  0x8f   : > { %v412_v53 = vmul.f32 %v397_v50, %v2614_v46  ;;  %v411_v54 = vmul.f32 %v393_v51, %v2616_v47  ;;  %2131 = vmatprep.mubr.msk.bf16.mxu0 %vm266_vm0, %v415_v49  ;;  %v2688_v50 = vld [vmem:[#allocation2 + $0x12] sm:$0xff] }
  0x90   : > { %2132 = vmatmul.mubr.msk.bf16.vlgmr.msra.gmra.mrb[0].mxu0 %vm266_vm0, %v416_v48 }
  0x91   : > { %v417_v57 = vpack.c.bf16 %v412_v53, %v411_v54  ;;  %1615 = vperm.xlu1 %2370, %v2465_v3   ;;  %2140 = vmatpush3.bf16.msra.mxu0 %v2550_v26  ;;  %v2654_v26 = vld [vmem:[#allocation2 + $0x20] sm:$0xff] }
  0x92   : > { %v405_v58 = vpop.permute.xlu1 %404  ;;  %v401_v59 = vpop.permute.xlu0 %400  ;;  %2149 = vmatprep.subr.bf16.mxu0 %v2378_v52 }
  0x93   : > { %v414_v60 = vmul.f32 %v405_v58, %v2626_v55  ;;  %v413_v61 = vmul.f32 %v401_v59, %v2628_v56  ;;  %2135 = vmatprep.mubr.msk.bf16.mxu0 %vm266_vm0, %v417_v57 }
  0x95   : > { %v418_v62 = vpack.c.bf16 %v414_v60, %v413_v61  ;;  %1623 = vperm.xlu1 %2370, %v2479_v6   ;;  %v2641_v6 = vld [vmem:[#allocation2 + $0x10] sm:$0xff]  ;;  %v2697_v60 = vld [vmem:[#allocation2 + $0x40] sm:$0xff] }
  0x97   : > { %v321_v2 = vpop.permute.xlu1 %320  ;;  %v316_v5 = vpop.permute.xlu0 %315 }
  0x98   : > { %v354_v7 = vmul.f32 %v321_v2, %v306_v63  ;;  %v353_v3 = vmul.f32 %v316_v5, %v305_v1  ;;  %2136 = vmatmul.mubr.msk.bf16.gmra.mrb[4].mxu0 %vm266_vm0, %v418_v62  ;;  %v587_v1 = vld [vmem:[#allocation2 + $0x2] sm:$0xff]  ;;  %v588_v5 = vld [vmem:[#allocation2 + $0xa] sm:$0xff] }
  0x99   : > { %1631 = vperm.xlu1 %2370, %v2504_v12   ;;  %v2647_v12 = vld [vmem:[#allocation2 + $0x18] sm:$0xff] }
  0x9a   : > { %v361_v13 = vpack.c.bf16 %v354_v7, %v353_v3 }
  0x9b   : > { %v336_v14 = vpop.permute.xlu0 %335 }
  0x9c   : > { %v742_v15 = vpop.permute.xlu1 %741  ;;  %2141 = vmatprep.mubr.msk.bf16.mxu0 %vm266_vm0, %v361_v13 }
  0x9d   : > { %v772_v16 = vmul.f32 %v742_v15, %v306_v63  ;;  %2373 = vset.pattern.permute.xlu1 %v2406_v33 }
  0x9e   : > { %1752 = vperm.xlu1 %2373, %v2470_v4  }
  0xa0   : > { %v746_v18 = vpop.permute.xlu0 %745 }
  0xa1   : > { %v773_v19 = vmul.f32 %v746_v18, %v2641_v6  ;;  %v326_v20 = vpop.permute.xlu1 %325 }
  0xa2   : > { %1756 = vperm.xlu1 %2373, %v2453_v0   ;;  %v355_v25 = vmul.f32 %v2641_v6, %v326_v20  ;;  %v2659_v0 = vld [vmem:[%s2851_s2 + $0x18] sm:$0xff]  }
  0xa3   : > { %v2645_v22 = vpack.c.bf16 %v773_v19, %v772_v16  ;;  %v2711_v20 = vld [vmem:[#allocation2 + $0x1a] sm:$0xff] }
  0xa4   : > { %v750_v23 = vpop.permute.xlu0 %749 }
  0xa5   : > { %v331_v24 = vpop.permute.xlu1 %330  ;;  %2201 = vmatprep.mubr.msk.bf16.mxu1 %vm266_vm0, %v2645_v22  ;;  %v774_v29 = vmul.f32 %v750_v23, %v2647_v12 }
  0xa6   : > { %v356_v4 = vmul.f32 %v331_v24, %v2647_v12  ;;  %1764 = vperm.xlu1 %2373, %v2489_v8  }
  0xa8   : > { %v362_v27 = vpack.c.bf16 %v356_v4, %v355_v25  ;;  %v762_v28 = vpop.permute.xlu0 %761 }
  0xa9   : > { %v777_v43 = vmul.f32 %v762_v28, %v2679_v40 }
  0xaa   : > { %1772 = vperm.xlu1 %2373, %v2520_v21   ;;  %v754_v30 = vpop.permute.xlu1 %753  ;;  %2142 = vmatmul.mubr.msk.bf16.vlgmr.msra.gmra.mrb[0].mxu0 %vm266_vm0, %v362_v27  ;;  %v357_v21 = vmul.f32 %v336_v14, %v2654_v26  ;;  %v2715_v27 = vld [vmem:[#allocation2 + $0x22] sm:$0xff] }
  0xab   : > { %v775_v32 = vmul.f32 %v754_v30, %v2654_v26  ;;  %2150 = vmatpush3.bf16.msra.mxu0 %v2378_v52  ;;  %v2692_v52 = vld [vmem:[#allocation2 + $0x38] sm:$0xff] }
  0xac   : > { %v766_v8 = vpop.permute.xlu0 %765  ;;  %2159 = vmatprep.subr.bf16.mxu0 %v2659_v0 }
  0xad   : > { %v2666_v33 = vpack.c.bf16 %v775_v32, %v774_v29  ;;  %v1172_v61 = vmul.f32 %v766_v8, %v2692_v52  ;;  %v2382_v29 = vld [vmem:[%s2851_s2 + $0x20] sm:$0xff]  }
  0xaf   : > { %v341_v36 = vpop.permute.xlu1 %340  ;;  %2202 = vmatmul.mubr.msk.bf16.vlgmr.msra.gmra.mrb[0].mxu1 %vm266_vm0, %v2666_v33 }
  0xb0   : > { %v358_v39 = vmul.f32 %v341_v36, %v2668_v34  ;;  %2210 = vmatpush3.bf16.msra.mxu1 %v2586_v31  ;;  %v2726_v36 = vld [vmem:[#allocation2 + $0x2a] sm:$0xff] }
  0xb1   : > { %v597_v41 = vpop.permute.xlu0 %596  ;;  %2219 = vmatprep.subr.bf16.mxu1 %v2673_v35 }
  0xb2   : > { %v363_v42 = vpack.c.bf16 %v358_v39, %v357_v21  ;;  %v627_v7 = vmul.f32 %v597_v41, %v587_v1  ;;  %v2383_v39 = vld [vmem:[%s2852_s3 + $0x38] sm:$0xff]   ;;  %v2749_v1 = vld [vmem:[#allocation2 + $0x42] sm:$0xff] }
  0xb4   : > { %v758_v44 = vpop.permute.xlu1 %757  ;;  %2145 = vmatprep.mubr.msk.bf16.mxu0 %vm266_vm0, %v363_v42 }
  0xb5   : > { %v776_v45 = vmul.f32 %v758_v44, %v2668_v34  ;;  %v613_v48 = vpop.permute.xlu0 %612 }
  0xb6   : > { %v631_v41 = vmul.f32 %v613_v48, %v2715_v27 }
  0xb7   : > { %v2686_v49 = vpack.c.bf16 %v777_v43, %v776_v45  ;;  %v2735_v45 = vld [vmem:[#allocation2 + $0x32] sm:$0xff] }
  0xb9   : > { %v346_v51 = vpop.permute.xlu1 %345  ;;  %2205 = vmatprep.mubr.msk.bf16.mxu1 %vm266_vm0, %v2686_v49 }
  0xba   : > { %v1004_v31 = vpop.permute.xlu0 %1003  ;;  %v359_v57 = vmul.f32 %v2679_v40, %v346_v51 }
  0xbb   : > { %v1031_v53 = vmul.f32 %v1004_v31, %v2688_v50 }
  0xbd   : > { %v351_v54 = vpop.permute.xlu1 %350 }
  0xbe   : > { %v360_v58 = vmul.f32 %v351_v54, %v2692_v52  ;;  %v1008_v4 = vpop.permute.xlu0 %1007 }
  0xbf   : > { %v1346_v30 = vmul.f32 %v1008_v4, %v2711_v20 }
  0xc0   : > { %v364_v59 = vpack.c.bf16 %v360_v58, %v359_v57  ;;  %v2745_v58 = vld [vmem:[#allocation2 + $0x3a] sm:$0xff] }
  0xc2   : > { %v770_v62 = vpop.permute.xlu1 %769  ;;  %2146 = vmatmul.mubr.msk.bf16.gmra.mrb[4].mxu0 %vm266_vm0, %v364_v59  ;;  %v1020_v44 = vpop.permute.xlu0 %1019 }
  0xc3   : > { %v1173_v63 = vmul.f32 %v770_v62, %v2697_v60  ;;  %v1349_v51 = vmul.f32 %v1020_v44, %v2735_v45 }
  0xc5   : > { %v2702_v2 = vpack.c.bf16 %v1173_v63, %v1172_v61 }
  0xc6   : > { %v1024_v54 = vpop.permute.xlu0 %1023 }
  0xc7   : > { %v601_v3 = vpop.permute.xlu1 %600  ;;  %2206 = vmatmul.mubr.msk.bf16.gmra.mrb[4].mxu1 %vm266_vm0, %v2702_v2 }
  0xc8   : > { %v628_v13 = vmul.f32 %v601_v3, %v588_v5 }
  0xca   : > { %v635_v14 = vpack.c.bf16 %v628_v13, %v627_v7  ;;  %v1350_v7 = vmul.f32 %v1024_v54, %v2745_v58  ;;  %v1600_v54 = vld [vmem:[#allocation2 + $0x41] sm:$0xff] }
  0xcc   : > { %v1000_v15 = vpop.permute.xlu1 %999  ;;  %2151 = vmatprep.mubr.msk.bf16.mxu0 %vm266_vm0, %v635_v14 }
  0xcd   : > { %v1030_v16 = vmul.f32 %v1000_v15, %v588_v5 }
  0xcf   : > { %v2707_v18 = vpack.c.bf16 %v1031_v53, %v1030_v16 }
  0xd1   : > { %v605_v19 = vpop.permute.xlu1 %604  ;;  %2211 = vmatprep.mubr.msk.bf16.mxu1 %vm266_vm0, %v2707_v18 }
  0xd2   : > { %v629_v24 = vmul.f32 %v2688_v50, %v605_v19 }
  0xd5   : > { %v609_v23 = vpop.permute.xlu1 %608 }
  0xd6   : > { %v630_v25 = vmul.f32 %v609_v23, %v2711_v20  ;;  %v2384_v23 = vld [vmem:[%s2851_s2 + $0x28] sm:$0xff]  }
  0xd8   : > { %v636_v28 = vpack.c.bf16 %v630_v25, %v629_v24 }
  0xda   : > { %v1012_v32 = vpop.permute.xlu1 %1011  ;;  %2152 = vmatmul.mubr.msk.bf16.vlgmr.msra.gmra.mrb[0].mxu0 %vm266_vm0, %v636_v28  ;;  %v2385_v28 = vld [vmem:[%s2852_s3 + $0x40] sm:$0xff]  }
  0xdb   : > { %v1347_v8 = vmul.f32 %v1012_v32, %v2715_v27  ;;  %2160 = vmatpush3.bf16.msra.mxu0 %v2659_v0 }
  0xdc   : > { %2169 = vmatprep.subr.bf16.mxu0 %v2382_v29 }
  0xdd   : > { %v2724_v21 = vpack.c.bf16 %v1347_v8, %v1346_v30 }
  0xdf   : > { %v617_v42 = vpop.permute.xlu1 %616  ;;  %2212 = vmatmul.mubr.msk.bf16.vlgmr.msra.gmra.mrb[0].mxu1 %vm266_vm0, %v2724_v21 }
  0xe0   : > { %v632_v43 = vmul.f32 %v617_v42, %v2726_v36  ;;  %2220 = vmatpush3.bf16.msra.mxu1 %v2673_v35  ;;  %v1459_v35 = vpop.permute.xlu0 %1458 }
  0xe1   : > { %2229 = vmatprep.subr.bf16.mxu1 %v2383_v39  ;;  %v1489_v15 = vmul.f32 %v1459_v35, %v2641_v6 }
  0xe2   : > { %v637_v0 = vpack.c.bf16 %v632_v43, %v631_v41 }
  0xe4   : > { %v1016_v31 = vpop.permute.xlu1 %1015  ;;  %2155 = vmatprep.mubr.msk.bf16.mxu0 %vm266_vm0, %v637_v0  ;;  %v1471_v13 = vpop.permute.xlu0 %1470 }
  0xe5   : > { %v1348_v48 = vmul.f32 %v1016_v31, %v2726_v36  ;;  %v1492_v25 = vmul.f32 %v1471_v13, %v2668_v34 }
  0xe7   : > { %v2741_v53 = vpack.c.bf16 %v1349_v51, %v1348_v48 }
  0xe8   : > { %v1479_v24 = vpop.permute.xlu0 %1478 }
  0xe9   : > { %v621_v57 = vpop.permute.xlu1 %620  ;;  %2215 = vmatprep.mubr.msk.bf16.mxu1 %vm266_vm0, %v2741_v53  ;;  %v1494_v32 = vmul.f32 %v1479_v24, %v2692_v52 }
  0xea   : > { %v633_v61 = vmul.f32 %v2735_v45, %v621_v57 }
  0xec   : > { %v1487_v34 = vpop.permute.xlu0 %1486 }
  0xed   : > { %v625_v59 = vpop.permute.xlu1 %624 }
  0xee   : > { %v634_v62 = vmul.f32 %v2745_v58, %v625_v59 }
  0xf0   : > { %v638_v63 = vpack.c.bf16 %v634_v62, %v633_v61  ;;  %v1608_v8 = vpop.permute.xlu0 %1607 }
  0xf1   : > { %v1635_v52 = vmul.f32 %v1608_v8, %v2609_v38 }
  0xf2   : > { %v1028_v5 = vpop.permute.xlu1 %1027  ;;  %2156 = vmatmul.mubr.msk.bf16.gmra.mrb[4].mxu0 %vm266_vm0, %v638_v63 }
  0xf3   : > { %v1351_v3 = vmul.f32 %v1028_v5, %v2749_v1  ;;  %2161 = vmatprep.mubr.msk.bf16.mxu0 %vm266_vm0, %v2645_v22 }
  0xf5   : > { %v2756_v14 = vpack.c.bf16 %v1351_v3, %v1350_v7 }
  0xf7   : > { %v1463_v16 = vpop.permute.xlu1 %1462  ;;  %2216 = vmatmul.mubr.msk.bf16.gmra.mrb[4].mxu1 %vm266_vm0, %v2756_v14 }
  0xf8   : > { %v1490_v19 = vmul.f32 %v1463_v16, %v2647_v12 }
  0xfa   : > { %v1497_v4 = vpack.c.bf16 %v1490_v19, %v1489_v15  ;;  %2162 = vmatmul.mubr.msk.bf16.vlgmr.msra.gmra.mrb[0].mxu0 %vm266_vm0, %v2666_v33  ;;  %v1746_v15 = vld [vmem:[#allocation2 + $0x4a] sm:$0xff] }
  0xfb   : > { %v1467_v22 = vpop.permute.xlu1 %1466  ;;  %2165 = vmatprep.mubr.msk.bf16.mxu0 %vm266_vm0, %v2686_v49  ;;  %2170 = vmatpush3.bf16.msra.mxu0 %v2382_v29  ;;  %v1456_v49 = vld [vmem:[#allocation2 + $0x48] sm:$0xff] }
  0xfc   : > { %v1491_v6 = vmul.f32 %v1467_v22, %v2654_v26  ;;  %2221 = vmatprep.mubr.msk.bf16.mxu1 %vm266_vm0, %v1497_v4  ;;  %2179 = vmatprep.subr.bf16.mxu0 %v2384_v23  ;;  %v1496_v41 = vmul.f32 %v1487_v34, %v1456_v49 }
  0xfe   : > { %v1498_v12 = vpack.c.bf16 %v1492_v25, %v1491_v6 }
  0xff   : > { %v1475_v30 = vpop.permute.xlu1 %1474 }
 0x100   : > { %v1493_v33 = vmul.f32 %v1475_v30, %v2679_v40  ;;  %2222 = vmatmul.mubr.msk.bf16.vlgmr.msra.gmra.mrb[0].mxu1 %vm266_vm0, %v1498_v12 }
 0x101   : > { %2230 = vmatpush3.bf16.msra.mxu1 %v2383_v39 }
 0x102   : > { %v1499_v29 = vpack.c.bf16 %v1494_v32, %v1493_v33  ;;  %2166 = vmatmul.mubr.msk.bf16.gmra.mrb[4].mxu0 %vm266_vm0, %v2702_v2  ;;  %2239 = vmatprep.subr.bf16.mxu1 %v2385_v28  ;;  %v1620_v2 = vpop.permute.xlu0 %1619 }
 0x103   : > { %v1483_v26 = vpop.permute.xlu1 %1482  ;;  %2171 = vmatprep.mubr.msk.bf16.mxu0 %vm266_vm0, %v2495_v9 }
 0x104   : > { %v1495_v42 = vmul.f32 %v1483_v26, %v2697_v60  ;;  %2225 = vmatprep.mubr.msk.bf16.mxu1 %vm266_vm0, %v1499_v29 }
 0x106   : > { %v1500_v40 = vpack.c.bf16 %v1496_v41, %v1495_v42  ;;  %v1628_v60 = vpop.permute.xlu0 %1627 }
 0x107   : > { %v1640_v59 = vmul.f32 %v1628_v60, %v1600_v54 }
 0x108   : > { %v1604_v43 = vpop.permute.xlu1 %1603  ;;  %2226 = vmatmul.mubr.msk.bf16.gmra.mrb[4].mxu1 %vm266_vm0, %v1500_v40 }
 0x109   : > { %v1634_v39 = vmul.f32 %v1604_v43, %v2607_v37 }
 0x10a   : > { %2172 = vmatmul.mubr.msk.bf16.vlgmr.msra.gmra.mrb[0].mxu0 %vm266_vm0, %v2497_v10  ;;  %v1749_v31 = vpop.permute.xlu0 %1748 }
 0x10b   : > { %v1642_v44 = vpack.c.bf16 %v1635_v52, %v1634_v39  ;;  %2175 = vmatprep.mubr.msk.bf16.mxu0 %vm266_vm0, %v2499_v11  ;;  %2180 = vmatpush3.bf16.msra.mxu0 %v2384_v23  ;;  %v1638_v11 = vmul.f32 %v1620_v2, %v2628_v56 }
 0x10c   : > { %v1612_v9 = vpop.permute.xlu1 %1611 }
 0x10d   : > { %2231 = vmatprep.mubr.msk.bf16.mxu1 %vm266_vm0, %v1642_v44  ;;  %v1636_v38 = vmul.f32 %v1612_v9, %v2616_v47  ;;  %v1601_v47 = vld [vmem:[#allocation2 + $0x49] sm:$0xff] }
 0x110   : > { %v1616_v0 = vpop.permute.xlu1 %1615 }
 0x111   : > { %v1637_v51 = vmul.f32 %v1616_v0, %v2614_v46 }
 0x112   : > { %2176 = vmatmul.mubr.msk.bf16.gmra.mrb[4].mxu0 %vm266_vm0, %v2510_v17  ;;  %v1761_v17 = vpop.permute.xlu0 %1760 }
 0x113   : > { %v1643_v37 = vpack.c.bf16 %v1637_v51, %v1636_v38  ;;  %2181 = vmatprep.mubr.msk.bf16.mxu0 %vm266_vm0, %v2707_v18  ;;  %v1782_v7 = vmul.f32 %v1761_v17, %v2726_v36 }
 0x114   : > { %v1624_v10 = vpop.permute.xlu1 %1623 }
 0x115   : > { %v1639_v48 = vmul.f32 %v1624_v10, %v2626_v55  ;;  %2232 = vmatmul.mubr.msk.bf16.vlgmr.msra.gmra.mrb[0].mxu1 %vm266_vm0, %v1643_v37  ;;  %v1779_v55 = vmul.f32 %v1749_v31, %v2688_v50 }
 0x116   : > { %2240 = vmatpush3.bf16.msra.mxu1 %v2385_v28  ;;  %v1769_v63 = vpop.permute.xlu0 %1768 }
 0x117   : > { %v1644_v57 = vpack.c.bf16 %v1639_v48, %v1638_v11 }
 0x118   : > { %v1632_v46 = vpop.permute.xlu1 %1631 }
 0x119   : > { %v1641_v35 = vmul.f32 %v1632_v46, %v1601_v47  ;;  %2235 = vmatprep.mubr.msk.bf16.mxu1 %vm266_vm0, %v1644_v57 }
 0x11a   : > { %2182 = vmatmul.mubr.msk.bf16.vlgmr.msra.gmra.mrb[0].mxu0 %vm266_vm0, %v2724_v21 }
 0x11b   : > { %v1645_v18 = vpack.c.bf16 %v1641_v35, %v1640_v59  ;;  %2185 = vmatprep.mubr.msk.bf16.mxu0 %vm266_vm0, %v2741_v53  ;;  %v1784_v53 = vmul.f32 %v1769_v63, %v2745_v58  ;;  %v2033_v58 = vld [vmem:[%s2853_s4] ss:$0 sm:$0xff] }
 0x11d   : > { %v1753_v56 = vpop.permute.xlu1 %1752  ;;  %2236 = vmatmul.mubr.msk.bf16.gmra.mrb[4].mxu1 %vm266_vm0, %v1645_v18 }
 0x11e   : > { %v1780_v61 = vmul.f32 %v1753_v56, %v2711_v20  ;;  %v1777_v20 = vpop.permute.xlu0 %1776 }
 0x11f   : > { %v1786_v19 = vmul.f32 %v1777_v20, %v1746_v15 }
 0x120   : > { %v1787_v62 = vpack.c.bf16 %v1780_v61, %v1779_v55 }
 0x121   : > { %v1757_v5 = vpop.permute.xlu1 %1756 }
 0x122   : > { %v1781_v3 = vmul.f32 %v1757_v5, %v2715_v27  ;;  %2186 = vmatmul.mubr.msk.bf16.gmra.mrb[4].mxu0 %vm266_vm0, %v2756_v14  ;;  %2241 = vmatprep.mubr.msk.bf16.mxu1 %vm266_vm0, %v1787_v62 }
 0x124   : > { %v1788_v21 = vpack.c.bf16 %v1782_v7, %v1781_v3 }
 0x125   : > { %v1765_v50 = vpop.permute.xlu1 %1764 }
 0x126   : > { %v1783_v13 = vmul.f32 %v1765_v50, %v2735_v45  ;;  %2242 = vmatmul.mubr.msk.bf16.vlgmr.msra.gmra.mrb[0].mxu1 %vm266_vm0, %v1788_v21 }
 0x128   : > { %v1789_v16 = vpack.c.bf16 %v1784_v53, %v1783_v13 }
 0x129   : > { %v1773_v36 = vpop.permute.xlu1 %1772 }
 0x12a   : > { %v1785_v27 = vmul.f32 %v1773_v36, %v2749_v1  ;;  %2245 = vmatprep.mubr.msk.bf16.mxu1 %vm266_vm0, %v1789_v16 }
 0x12c   : > { %v1790_v14 = vpack.c.bf16 %v1786_v19, %v1785_v27 }
 0x12e   : > { %2246 = vmatmul.mubr.msk.bf16.gmra.mrb[4].mxu1 %vm266_vm0, %v1790_v14 }
 0x1ed   : > { %v2183_v45 = vpop.f32.mrb[0].mxu0 }
 0x1ee   : > { %v1143_v23 = vadd.f32 %v2183_v45, %v2033_v58  ;;  %v1096_v24 = vpop.f32.mrb[1].mxu0 }
 0x1ef   : > { %v1141_v25 = vadd.f32 %v2033_v58, %v1096_v24  ;;  %v2184_v1 = vpop.f32.mrb[2].mxu0 }
 0x1f0   : > { %1152 = vst.msk [vmem:[%s259_s28 + $0x10] sm:$0xff] %vm1149_vm2, %v1143_v23  ;;  %v1144_v4 = vadd.f32 %v2184_v1, %v2033_v58  ;;  %v1099_v22 = vpop.f32.mrb[3].mxu0 }
 0x1f1   : > { %1150 = vst.msk [vmem:[%s259_s28] sm:$0xff] %vm1149_vm2, %v1141_v25  ;;  %v1142_v6 = vadd.f32 %v2033_v58, %v1099_v22 }
 0x1f2   : > { %1153 = vst.msk [vmem:[%s259_s28 + $0x18] sm:$0xff] %vm1149_vm2, %v1144_v4 }
 0x1f3   : > { %1151 = vst.msk [vmem:[%s259_s28 + $0x8] sm:$0xff] %vm1149_vm2, %v1142_v6 }
 0x1f5   : > { %v2187_v12 = vpop.f32.mrb[4].mxu0 }
 0x1f6   : > { %v1147_v28 = vadd.f32 %v2187_v12, %v2033_v58  ;;  %v1112_v34 = vpop.f32.mrb[5].mxu0 }
 0x1f7   : > { %v1145_v30 = vadd.f32 %v2033_v58, %v1112_v34  ;;  %v2188_v32 = vpop.f32.mrb[6].mxu0 }
 0x1f8   : > { %1156 = vst.msk [vmem:[%s259_s28 + $0x30] sm:$0xff] %vm1149_vm2, %v1147_v28  ;;  %v1148_v33 = vadd.f32 %v2188_v32, %v2033_v58  ;;  %v1115_v49 = vpop.f32.mrb[7].mxu0 }
 0x1f9   : > { %1154 = vst.msk [vmem:[%s259_s28 + $0x20] sm:$0xff] %vm1149_vm2, %v1145_v30  ;;  %v1146_v29 = vadd.f32 %v2033_v58, %v1115_v49  ;;  %v2243_v26 = vpop.f32.mrb[0].mxu1 }
 0x1fa   : > { %1157 = vst.msk [vmem:[%s259_s28 + $0x38] sm:$0xff] %vm1149_vm2, %v1148_v33  ;;  %v1886_v8 = vadd.f32 %v2243_v26, %v2033_v58  ;;  %v1845_v41 = vpop.f32.mrb[1].mxu1 }
 0x1fb   : > { %1155 = vst.msk [vmem:[%s259_s28 + $0x28] sm:$0xff] %vm1149_vm2, %v1146_v29  ;;  %v1884_v42 = vadd.f32 %v2033_v58, %v1845_v41  ;;  %v2244_v40 = vpop.f32.mrb[2].mxu1 }
 0x1fc   : > { %1894 = vst.msk [vmem:[%s264_s30 + $0x10] sm:$0xff] %vm1149_vm2, %v1886_v8  ;;  %v1887_v52 = vadd.f32 %v2244_v40, %v2033_v58  ;;  %v1848_v43 = vpop.f32.mrb[3].mxu1 }
 0x1fd   : > { %1892 = vst.msk [vmem:[%s264_s30] sm:$0xff] %vm1149_vm2, %v1884_v42  ;;  %v1885_v39 = vadd.f32 %v2033_v58, %v1848_v43 }
 0x1fe   : > { %1895 = vst.msk [vmem:[%s264_s30 + $0x18] sm:$0xff] %vm1149_vm2, %v1887_v52 }
 0x1ff   : > { %1893 = vst.msk [vmem:[%s264_s30 + $0x8] sm:$0xff] %vm1149_vm2, %v1885_v39 }
 0x201   : > { %v2247_v2 = vpop.f32.mrb[4].mxu1 }
 0x202   : > { %v1890_v44 = vadd.f32 %v2247_v2, %v2033_v58  ;;  %v1861_v9 = vpop.f32.mrb[5].mxu1 }
 0x203   : > { %v1888_v60 = vadd.f32 %v2033_v58, %v1861_v9  ;;  %v2248_v0 = vpop.f32.mrb[6].mxu1 }
 0x204   : > { %1898 = vst.msk [vmem:[%s264_s30 + $0x30] sm:$0xff] %vm1149_vm2, %v1890_v44  ;;  %v1891_v38 = vadd.f32 %v2248_v0, %v2033_v58  ;;  %v1864_v51 = vpop.f32.mrb[7].mxu1 }
 0x205   : > { %1896 = vst.msk [vmem:[%s264_s30 + $0x20] sm:$0xff] %vm1149_vm2, %v1888_v60  ;;  %v1889_v37 = vadd.f32 %v2033_v58, %v1864_v51 }
 0x206   : > { %1899 = vst.msk [vmem:[%s264_s30 + $0x38] sm:$0xff] %vm1149_vm2, %v1891_v38 }
 0x207   : > { %1897 = vst.msk [vmem:[%s264_s30 + $0x28] sm:$0xff] %vm1149_vm2, %v1889_v37 }
 0x208 PF: > { %s17_s21 = sadd.s32 1, %s2396_s21  }
 0x209   : > { %p14_p4 = scmp.ge.s32.totalorder %s17_s21, 4  }
 0x20b   :  { %16 = sbr.rel (!%p14_p4) target bundleno = 1 (0x1), region = 82 }

</bundles_post_ra>
